<compile_context>
chip_gen: v6e
topology: v6e:2x2x1
jax: 0.10.0
libtpu: 0.0.40
codegen_flags: <defaults>
</compile_context>

<pallas_src>
import functools

import jax
import jax.numpy as jnp
from jax import lax
from jax.experimental import pallas as pl

Z_DIM = 100
C_PAD = 128          # lane-dense channel padding for conv / deconv kernel outputs
FLAT = 32 * 7 * 7    # 1568

# MXU operand dtype (accumulation stays f32 via preferred_element_type).
# jnp.bfloat16 -> native MXU path on v5e/v6e/v7x; jnp.float32 -> bit-exact matmuls.
MXU_DTYPE = jnp.bfloat16


# ---------------------------------------------------------------------------
# Pallas kernels
# ---------------------------------------------------------------------------
def _conv_bn_lrelu_kernel(p_ref, w_ref, s_ref, o_ref):
    """patches (M,K) @ weight (K,128) + bias, BatchNorm2d (batch stats), LeakyReLU(0.2).

    s_ref packs (bias; gamma; beta) as one (3, 128) slab (1 DMA, not 3).  Rows are
    N*OH*OW, so per-column mean/var are exactly PyTorch's training-mode per-channel
    batch statistics (biased variance, eps=1e-5).  Padded (all-zero) columns stay 0.
    One-pass stats: var = E[y^2] - mean^2 (f32, |err| << eps at these magnitudes).
    """
    y = jnp.dot(p_ref[...], w_ref[...], preferred_element_type=jnp.float32)
    y = y + s_ref[0:1, :]                                     # conv bias
    mu = jnp.mean(y, axis=0, keepdims=True)
    msq = jnp.mean(y * y, axis=0, keepdims=True)
    var = msq - mu * mu                                       # biased variance
    yn = (y - mu) * lax.rsqrt(var + 1e-5)
    yn = yn * s_ref[1:2, :] + s_ref[2:3, :]                   # gamma, beta
    o_ref[...] = jnp.where(yn > 0, yn, 0.2 * yn)              # LeakyReLU(0.2)


def conv_bn_lrelu(patches, w_mat, scale):
    M = patches.shape[0]
    N = w_mat.shape[1]
    return pl.pallas_call(
        _conv_bn_lrelu_kernel,
        out_shape=jax.ShapeDtypeStruct((M, N), jnp.float32),
    )(patches, w_mat, scale)


def _fc_reparam_kernel(flat_ref, wfc_ref, bfc_ref, eps_ref, wd_ref, bd_ref,
                       ml_ref, dec_ref):
    """fc1 + fc2 (concatenated, lane-padded) + reparameterize + decoder_fc in one kernel.

    wfc columns [0:128) hold fc1 (mean), [128:256) hold fc2 (logstd); real width is
    Z_DIM=100, padding columns are zero so mean/logstd/z are zero there and wd's
    padded rows are zero.  wfc rows / wd columns are pre-permuted to NHWC order, so
    flat_ref is the plain NHWC flatten (no boundary transpose).
    """
    y = jnp.dot(flat_ref[...], wfc_ref[...], preferred_element_type=jnp.float32)
    y = y + bfc_ref[...]
    mean = y[:, :C_PAD]
    logstd = y[:, C_PAD:]
    z = mean + eps_ref[...] * jnp.exp(logstd)                 # z = mean + eps * exp(logstd)
    ml_ref[...] = y                                           # packed (mean || logstd)
    dec_ref[...] = (jnp.dot(z.astype(wd_ref.dtype), wd_ref[...],
                            preferred_element_type=jnp.float32) + bd_ref[...])


def _deconv_phase_kernel(p_ref, w_ref, b_ref, o_ref, *, act):
    """Phase-decomposed stride-2 4x4 ConvTranspose: 4 dense matmuls (one per output phase)."""
    for ph in range(4):
        y = jnp.dot(p_ref[ph], w_ref[ph], preferred_element_type=jnp.float32)
        y = y + b_ref[...]
        if act == "relu":
            y = jnp.maximum(y, 0.0)
        else:
            # numerically stable sigmoid; reciprocal on the EUP (approx vrcp)
            e = jnp.exp(-jnp.abs(y))
            r = pl.reciprocal(1.0 + e, approx=True)
            y = r * jnp.where(y >= 0, 1.0, e)
        o_ref[ph] = y


def deconv_phases(phase_patches, w_phase, bias, act):
    P, M, _ = phase_patches.shape
    N = w_phase.shape[-1]
    return pl.pallas_call(
        functools.partial(_deconv_phase_kernel, act=act),
        out_shape=jax.ShapeDtypeStruct((P, M, N), jnp.float32),
    )(phase_patches, w_phase, bias)


# ---------------------------------------------------------------------------
# JAX-level glue (single XLA patch op per layer, NHWC throughout)
# ---------------------------------------------------------------------------
def conv_patches(x_nhwc, k, stride, pad):
    # Output features ordered channel-major (c, kh, kw) -> matches torch
    # (Cout, Cin, kh, kw) flatten.  (Keep a unit test vs. an XLA/torch conv if this
    # ordering assumption is ever in doubt.)
    return lax.conv_general_dilated_patches(
        x_nhwc, filter_shape=(k, k), window_strides=(stride, stride),
        padding=((pad, pad), (pad, pad)),
        dimension_numbers=("NHWC", "HWIO", "NHWC"))


def conv_layer(x_nhwc, w_mat, scale, stride):
    B = x_nhwc.shape[0]
    p = conv_patches(x_nhwc, 3, stride, 1)                    # (B, OH, OW, Cin*9)
    OH, OW, K = p.shape[1], p.shape[2], p.shape[3]
    y = conv_bn_lrelu(p.reshape(B * OH * OW, K).astype(MXU_DTYPE), w_mat, scale)
    return y.reshape(B, OH, OW, C_PAD)


def deconv_layer(x_nhwc, w_phase, bias, c_out, act):
    """ConvTranspose2d(k=4, s=2, p=1) via sub-pixel phase decomposition.

    Output phase (r, c): out[b, 2i+r, 2j+c, :] = sum_{dh,dw} xpad[b, i+r+dh, j+c+dw, :]
                                                           @ W[:, :, 3-r-2dh, 3-c-2dw]
    x_nhwc carries only the real channels, so the phase stack stays small [R1/R9].
    Returns the real-channel (c_out) tensor, sliced before the relayout [R8].
    """
    B, H, W, C = x_nhwc.shape
    p = lax.conv_general_dilated_patches(
        x_nhwc, filter_shape=(2, 2), window_strides=(1, 1),
        padding=((1, 1), (1, 1)),
        dimension_numbers=("NHWC", "HWIO", "NHWC")).astype(MXU_DTYPE)  # (B,H+1,W+1,4C)
    phase = jnp.stack(
        [p[:, r:r + H, c:c + W, :].reshape(B * H * W, 4 * C)
         for r in range(2) for c in range(2)], axis=0)        # (4, B*H*W, 4*C)
    o = deconv_phases(phase, w_phase, bias, act)              # (4, B*H*W, C_PAD)
    o = o[..., :c_out]                                        # [R8] slice before relayout
    o = o.reshape(2, 2, B, H, W, c_out).transpose(2, 3, 0, 4, 1, 5)
    return o.reshape(B, 2 * H, 2 * W, c_out)


# ---------------------------------------------------------------------------
# Parameters (deterministic, PyTorch-default-like uniform init, torch layouts)
# ---------------------------------------------------------------------------
def init_params(key):
    ks = jax.random.split(key, 16)

    def u(k, shape, fan_in):
        bound = float(fan_in) ** -0.5
        return jax.random.uniform(k, shape, jnp.float32, -bound, bound)

    p = {}
    p["c1_w"] = u(ks[0], (16, 1, 3, 3), 1 * 9);   p["c1_b"] = u(ks[1], (16,), 1 * 9)
    p["c2_w"] = u(ks[2], (32, 16, 3, 3), 16 * 9); p["c2_b"] = u(ks[3], (32,), 16 * 9)
    p["c3_w"] = u(ks[4], (32, 32, 3, 3), 32 * 9); p["c3_b"] = u(ks[5], (32,), 32 * 9)
    for name, ch in (("bn1", 16), ("bn2", 32), ("bn3", 32)):
        p[name + "_g"] = jnp.ones((ch,), jnp.float32)
        p[name + "_b"] = jnp.zeros((ch,), jnp.float32)
    p["fc1_w"] = u(ks[6], (FLAT, Z_DIM), FLAT); p["fc1_b"] = u(ks[7], (Z_DIM,), FLAT)
    p["fc2_w"] = u(ks[8], (FLAT, Z_DIM), FLAT); p["fc2_b"] = u(ks[9], (Z_DIM,), FLAT)
    p["dfc_w"] = u(ks[10], (Z_DIM, FLAT), Z_DIM); p["dfc_b"] = u(ks[11], (FLAT,), Z_DIM)
    # ConvTranspose2d weight layout: (Cin, Cout, kh, kw)
    p["d1_w"] = u(ks[12], (32, 16, 4, 4), 32 * 16); p["d1_b"] = u(ks[13], (16,), 32 * 16)
    p["d2_w"] = u(ks[14], (16, 1, 4, 4), 16 * 16);  p["d2_b"] = u(ks[15], (1,), 16 * 16)
    return p


def prepare_params(p):
    """One-time packing / lane-padding of torch-layout weights into kernel-ready slabs.

    All contraction dims use the REAL input channel count [R1]; only output lanes
    are padded to 128.  The NHWC<->NCHW boundary permutations are folded into the
    FC weights here [R2].  Matmul operands are pre-cast to MXU_DTYPE [BF16].
    """
    q = {}

    def conv_mat(w):
        cout, cin, kh, kw = w.shape
        m = jnp.zeros((cin * kh * kw, C_PAD), jnp.float32)
        m = m.at[:, :cout].set(w.reshape(cout, cin * kh * kw).T)
        return m.astype(MXU_DTYPE)

    def pack_scale(b, g, be):
        s = jnp.zeros((3, C_PAD), jnp.float32)
        s = s.at[0, : b.shape[0]].set(b)
        s = s.at[1, : g.shape[0]].set(g)
        s = s.at[2, : be.shape[0]].set(be)
        return s

    q["w1"] = conv_mat(p["c1_w"])     # K = 9
    q["w2"] = conv_mat(p["c2_w"])     # K = 144  (real cin=16, no padding leak)
    q["w3"] = conv_mat(p["c3_w"])     # K = 288  (real cin=32)
    q["s1"] = pack_scale(p["c1_b"], p["bn1_g"], p["bn1_b"])
    q["s2"] = pack_scale(p["c2_b"], p["bn2_g"], p["bn2_b"])
    q["s3"] = pack_scale(p["c3_b"], p["bn3_g"], p["bn3_b"])

    # fc1/fc2 rows permuted from torch's (c,h,w) flatten order to (h,w,c) so the
    # kernel consumes the NHWC flatten directly [R2].
    def chw_rows_to_hwc(w):
        return w.reshape(32, 7, 7, -1).transpose(1, 2, 0, 3).reshape(FLAT, -1)

    wfc = jnp.zeros((FLAT, 2 * C_PAD), jnp.float32)
    wfc = wfc.at[:, :Z_DIM].set(chw_rows_to_hwc(p["fc1_w"]))
    wfc = wfc.at[:, C_PAD:C_PAD + Z_DIM].set(chw_rows_to_hwc(p["fc2_w"]))
    bfc = jnp.zeros((1, 2 * C_PAD), jnp.float32)
    bfc = bfc.at[0, :Z_DIM].set(p["fc1_b"]).at[0, C_PAD:C_PAD + Z_DIM].set(p["fc2_b"])
    q["wfc"], q["bfc"] = wfc.astype(MXU_DTYPE), bfc

    # decoder_fc columns permuted (c,h,w) -> (h,w,c): dec reshapes straight to NHWC [R2].
    wd_hwc = p["dfc_w"].reshape(Z_DIM, 32, 7, 7).transpose(0, 2, 3, 1).reshape(Z_DIM, FLAT)
    q["wd"] = (jnp.zeros((C_PAD, FLAT), jnp.float32)
               .at[:Z_DIM, :].set(wd_hwc).astype(MXU_DTYPE))
    q["bd"] = p["dfc_b"].reshape(32, 7, 7).transpose(1, 2, 0).reshape(1, FLAT)

    def deconv_phase(wt):
        cin, cout = wt.shape[0], wt.shape[1]
        ws = []
        for r in range(2):
            for c in range(2):
                # tap (dh, dw) of phase (r, c) uses kernel element (3-r-2dh, 3-c-2dw)
                w_rc = jnp.stack(
                    [jnp.stack([wt[:, :, 3 - r - 2 * dh, 3 - c - 2 * dw]
                                for dw in range(2)], axis=0)
                     for dh in range(2)], axis=0)             # (dh, dw, cin, cout)
                w_rc = w_rc.transpose(2, 0, 1, 3).reshape(cin * 4, cout)  # (c,dh,dw) major
                ws.append(w_rc)
        w = jnp.stack(ws, axis=0)                             # (4, cin*4, cout)
        wp = jnp.zeros((4, cin * 4, C_PAD), jnp.float32)
        return wp.at[:, :, :cout].set(w).astype(MXU_DTYPE)

    q["wd1"] = deconv_phase(p["d1_w"])   # K = 128 (cin=32)
    q["bd1"] = jnp.zeros((1, C_PAD), jnp.float32).at[0, :16].set(p["d1_b"])
    q["wd2"] = deconv_phase(p["d2_w"])   # K = 64  (real cin=16, no padding leak) [R1]
    q["bd2"] = jnp.zeros((1, C_PAD), jnp.float32).at[0, :1].set(p["d2_b"])
    return q


# ---------------------------------------------------------------------------
# VAE forward (encoder is deterministic, so torch's duplicated encoder(x) call
# collapses to a single evaluation)
# ---------------------------------------------------------------------------
def vae_forward(q, x_nchw, eps):
    B = x_nchw.shape[0]
    x = x_nchw.transpose(0, 2, 3, 1)                          # NHWC (B,28,28,1)

    # [R1] slice back to real channels before every patch extraction
    h = conv_layer(x, q["w1"], q["s1"], stride=2)             # (B,14,14,128) real 16 ch
    h = conv_layer(h[..., :16], q["w2"], q["s2"], stride=2)   # (B, 7, 7,128) real 32 ch
    h = conv_layer(h[..., :32], q["w3"], q["s3"], stride=1)   # (B, 7, 7,128) real 32 ch

    # [R2] plain NHWC flatten; fc weight rows were permuted to match
    flat = h[:, :, :, :32].reshape(B, FLAT).astype(MXU_DTYPE)

    eps_pad = jnp.pad(eps, ((0, 0), (0, C_PAD - Z_DIM)))
    ml, dec = pl.pallas_call(
        _fc_reparam_kernel,
        out_shape=(jax.ShapeDtypeStruct((B, 2 * C_PAD), jnp.float32),
                   jax.ShapeDtypeStruct((B, FLAT), jnp.float32)),
    )(flat, q["wfc"], q["bfc"], eps_pad, q["wd"], q["bd"])
    mean = ml[:, :Z_DIM]
    logstd = ml[:, C_PAD:C_PAD + Z_DIM]

    d = dec.reshape(B, 7, 7, 32)                              # NHWC directly [R2]
    d = deconv_layer(d, q["wd1"], q["bd1"], c_out=16, act="relu")     # (B,14,14,16)
    d = deconv_layer(d, q["wd2"], q["bd2"], c_out=1, act="sigmoid")   # (B,28,28, 1)
    out3 = d.transpose(0, 3, 1, 2)                            # NCHW (B,1,28,28)
    return out3, mean, logstd


if __name__ == "__main__":
    key = jax.random.PRNGKey(0)
    kp, kx, ke = jax.random.split(key, 3)
    params = prepare_params(init_params(kp))

    B = 2
    # 28x28 single-channel input is forced by the hardcoded 32*7*7 Linear layers.
    x = jax.random.normal(kx, (B, 1, 28, 28), jnp.float32)
    # deterministic stand-in for torch.randn(mean.shape) inside noise_reparameterize
    eps = jax.random.normal(ke, (B, Z_DIM), jnp.float32)

    out3, mean, logstd = jax.jit(vae_forward)(params, x, eps)
    jax.block_until_ready((out3, mean, logstd))

    assert out3.shape == (B, 1, 28, 28)
    assert mean.shape == (B, Z_DIM) and logstd.shape == (B, Z_DIM)
    assert bool(jnp.all(jnp.isfinite(out3)))
    assert bool(jnp.all(jnp.isfinite(mean))) and bool(jnp.all(jnp.isfinite(logstd)))
    # sigmoid range; approx EUP reciprocal may overshoot 1.0 by a few ulps
    assert bool(jnp.all((out3 >= 0.0) & (out3 <= 1.0 + 1e-3)))
    print("KERNEL_OK")
</pallas_src>

<mosaic_0001>
module attributes {stable_mosaic.version = 11 : i64} {
  func.func @_conv_bn_lrelu_kernel(%arg0: memref<392x9xbf16, #tpu.memory_space<vmem>>, %arg1: memref<9x128xbf16, #tpu.memory_space<vmem>>, %arg2: memref<3x128xf32, #tpu.memory_space<vmem>>, %arg3: memref<392x128xf32, #tpu.memory_space<vmem>>) attributes {dimension_semantics = [], scalar_prefetch = 0 : i64, scratch_operands = 0 : i64, tpu.core_type = #tpu.core_type<tc>} {
    %c0 = arith.constant 0 : index
    %c0_0 = arith.constant 0 : index
    %0 = vector.load %arg0[%c0, %c0_0] : memref<392x9xbf16, #tpu.memory_space<vmem>>, vector<392x9xbf16>
    %c0_1 = arith.constant 0 : index
    %c0_2 = arith.constant 0 : index
    %1 = vector.load %arg1[%c0_1, %c0_2] : memref<9x128xbf16, #tpu.memory_space<vmem>>, vector<9x128xbf16>
    %cst = arith.constant dense<0.000000e+00> : vector<392x128xf32>
    %2 = tpu.matmul %0, %1, %cst {dimension_numbers = #tpu.dot_dimension_numbers<[1], [0], [0], [1], [0, 0, 1, 1], [], []>} : vector<392x9xbf16>, vector<9x128xbf16>, vector<392x128xf32> -> vector<392x128xf32>
    %c0_3 = arith.constant 0 : index
    %c0_4 = arith.constant 0 : index
    %3 = vector.load %arg2[%c0_3, %c0_4] : memref<3x128xf32, #tpu.memory_space<vmem>>, vector<1x128xf32>
    %4 = vector.broadcast %3 : vector<1x128xf32> to vector<392x128xf32>
    %5 = arith.addf %2, %4 : vector<392x128xf32>
    %cst_5 = arith.constant dense<0.000000e+00> : vector<128xf32>
    %6 = vector.multi_reduction <add>, %5, %cst_5 [0] : vector<392x128xf32> to vector<128xf32>
    %7 = vector.shape_cast %6 : vector<128xf32> to vector<1x128xf32>
    %cst_6 = arith.constant 3.920000e+02 : f32
    %8 = vector.broadcast %cst_6 : f32 to vector<1x128xf32>
    %9 = arith.divf %7, %8 : vector<1x128xf32>
    %10 = arith.mulf %5, %5 : vector<392x128xf32>
    %cst_7 = arith.constant dense<0.000000e+00> : vector<128xf32>
    %11 = vector.multi_reduction <add>, %10, %cst_7 [0] : vector<392x128xf32> to vector<128xf32>
    %12 = vector.shape_cast %11 : vector<128xf32> to vector<1x128xf32>
    %cst_8 = arith.constant 3.920000e+02 : f32
    %13 = vector.broadcast %cst_8 : f32 to vector<1x128xf32>
    %14 = arith.divf %12, %13 : vector<1x128xf32>
    %15 = arith.mulf %9, %9 : vector<1x128xf32>
    %16 = arith.subf %14, %15 : vector<1x128xf32>
    %17 = vector.broadcast %9 : vector<1x128xf32> to vector<392x128xf32>
    %18 = arith.subf %5, %17 : vector<392x128xf32>
    %cst_9 = arith.constant 9.99999974E-6 : f32
    %19 = vector.broadcast %cst_9 : f32 to vector<1x128xf32>
    %20 = arith.addf %16, %19 : vector<1x128xf32>
    %21 = math.rsqrt %20 : vector<1x128xf32>
    %22 = vector.broadcast %21 : vector<1x128xf32> to vector<392x128xf32>
    %23 = arith.mulf %18, %22 : vector<392x128xf32>
    %c1 = arith.constant 1 : index
    %c0_10 = arith.constant 0 : index
    %24 = vector.load %arg2[%c1, %c0_10] : memref<3x128xf32, #tpu.memory_space<vmem>>, vector<1x128xf32>
    %25 = vector.broadcast %24 : vector<1x128xf32> to vector<392x128xf32>
    %26 = arith.mulf %23, %25 : vector<392x128xf32>
    %c2 = arith.constant 2 : index
    %c0_11 = arith.constant 0 : index
    %27 = vector.load %arg2[%c2, %c0_11] : memref<3x128xf32, #tpu.memory_space<vmem>>, vector<1x128xf32>
    %28 = vector.broadcast %27 : vector<1x128xf32> to vector<392x128xf32>
    %29 = arith.addf %26, %28 : vector<392x128xf32>
    %cst_12 = arith.constant 0.000000e+00 : f32
    %30 = vector.broadcast %cst_12 : f32 to vector<392x128xf32>
    %31 = arith.cmpf ogt, %29, %30 : vector<392x128xf32>
    %cst_13 = arith.constant 2.000000e-01 : f32
    %32 = vector.broadcast %cst_13 : f32 to vector<392x128xf32>
    %33 = arith.mulf %32, %29 : vector<392x128xf32>
    %34 = arith.select %31, %29, %33 : vector<392x128xi1>, vector<392x128xf32>
    %c0_14 = arith.constant 0 : index
    %c0_15 = arith.constant 0 : index
    %35 = vector.load %arg3[%c0_14, %c0_15] : memref<392x128xf32, #tpu.memory_space<vmem>>, vector<392x128xf32>
    tpu.vector_store %arg3[%c0_14, %c0_15], %34 {strides = array<i32>} : memref<392x128xf32, #tpu.memory_space<vmem>>, vector<392x128xf32>,
    return
  }
}

module attributes {stable_mosaic.version = 11 : i64} {
  func.func @_conv_bn_lrelu_kernel(%arg0: memref<98x144xbf16, #tpu.memory_space<vmem>>, %arg1: memref<144x128xbf16, #tpu.memory_space<vmem>>, %arg2: memref<3x128xf32, #tpu.memory_space<vmem>>, %arg3: memref<98x128xf32, #tpu.memory_space<vmem>>) attributes {dimension_semantics = [], scalar_prefetch = 0 : i64, scratch_operands = 0 : i64, tpu.core_type = #tpu.core_type<tc>} {
    %c0 = arith.constant 0 : index
    %c0_0 = arith.constant 0 : index
    %0 = vector.load %arg0[%c0, %c0_0] : memref<98x144xbf16, #tpu.memory_space<vmem>>, vector<98x144xbf16>
    %c0_1 = arith.constant 0 : index
    %c0_2 = arith.constant 0 : index
    %1 = vector.load %arg1[%c0_1, %c0_2] : memref<144x128xbf16, #tpu.memory_space<vmem>>, vector<144x128xbf16>
    %cst = arith.constant dense<0.000000e+00> : vector<98x128xf32>
    %2 = tpu.matmul %0, %1, %cst {dimension_numbers = #tpu.dot_dimension_numbers<[1], [0], [0], [1], [0, 0, 1, 1], [], []>} : vector<98x144xbf16>, vector<144x128xbf16>, vector<98x128xf32> -> vector<98x128xf32>
    %c0_3 = arith.constant 0 : index
    %c0_4 = arith.constant 0 : index
    %3 = vector.load %arg2[%c0_3, %c0_4] : memref<3x128xf32, #tpu.memory_space<vmem>>, vector<1x128xf32>
    %4 = vector.broadcast %3 : vector<1x128xf32> to vector<98x128xf32>
    %5 = arith.addf %2, %4 : vector<98x128xf32>
    %cst_5 = arith.constant dense<0.000000e+00> : vector<128xf32>
    %6 = vector.multi_reduction <add>, %5, %cst_5 [0] : vector<98x128xf32> to vector<128xf32>
    %7 = vector.shape_cast %6 : vector<128xf32> to vector<1x128xf32>
    %cst_6 = arith.constant 9.800000e+01 : f32
    %8 = vector.broadcast %cst_6 : f32 to vector<1x128xf32>
    %9 = arith.divf %7, %8 : vector<1x128xf32>
    %10 = arith.mulf %5, %5 : vector<98x128xf32>
    %cst_7 = arith.constant dense<0.000000e+00> : vector<128xf32>
    %11 = vector.multi_reduction <add>, %10, %cst_7 [0] : vector<98x128xf32> to vector<128xf32>
    %12 = vector.shape_cast %11 : vector<128xf32> to vector<1x128xf32>
    %cst_8 = arith.constant 9.800000e+01 : f32
    %13 = vector.broadcast %cst_8 : f32 to vector<1x128xf32>
    %14 = arith.divf %12, %13 : vector<1x128xf32>
    %15 = arith.mulf %9, %9 : vector<1x128xf32>
    %16 = arith.subf %14, %15 : vector<1x128xf32>
    %17 = vector.broadcast %9 : vector<1x128xf32> to vector<98x128xf32>
    %18 = arith.subf %5, %17 : vector<98x128xf32>
    %cst_9 = arith.constant 9.99999974E-6 : f32
    %19 = vector.broadcast %cst_9 : f32 to vector<1x128xf32>
    %20 = arith.addf %16, %19 : vector<1x128xf32>
    %21 = math.rsqrt %20 : vector<1x128xf32>
    %22 = vector.broadcast %21 : vector<1x128xf32> to vector<98x128xf32>
    %23 = arith.mulf %18, %22 : vector<98x128xf32>
    %c1 = arith.constant 1 : index
    %c0_10 = arith.constant 0 : index
    %24 = vector.load %arg2[%c1, %c0_10] : memref<3x128xf32, #tpu.memory_space<vmem>>, vector<1x128xf32>
    %25 = vector.broadcast %24 : vector<1x128xf32> to vector<98x128xf32>
    %26 = arith.mulf %23, %25 : vector<98x128xf32>
    %c2 = arith.constant 2 : index
    %c0_11 = arith.constant 0 : index
    %27 = vector.load %arg2[%c2, %c0_11] : memref<3x128xf32, #tpu.memory_space<vmem>>, vector<1x128xf32>
    %28 = vector.broadcast %27 : vector<1x128xf32> to vector<98x128xf32>
    %29 = arith.addf %26, %28 : vector<98x128xf32>
    %cst_12 = arith.constant 0.000000e+00 : f32
    %30 = vector.broadcast %cst_12 : f32 to vector<98x128xf32>
    %31 = arith.cmpf ogt, %29, %30 : vector<98x128xf32>
    %cst_13 = arith.constant 2.000000e-01 : f32
    %32 = vector.broadcast %cst_13 : f32 to vector<98x128xf32>
    %33 = arith.mulf %32, %29 : vector<98x128xf32>
    %34 = arith.select %31, %29, %33 : vector<98x128xi1>, vector<98x128xf32>
    %c0_14 = arith.constant 0 : index
    %c0_15 = arith.constant 0 : index
    %35 = vector.load %arg3[%c0_14, %c0_15] : memref<98x128xf32, #tpu.memory_space<vmem>>, vector<98x128xf32>
    tpu.vector_store %arg3[%c0_14, %c0_15], %34 {strides = array<i32>} : memref<98x128xf32, #tpu.memory_space<vmem>>, vector<98x128xf32>,
    return
  }
}

module attributes {stable_mosaic.version = 11 : i64} {
  func.func @_conv_bn_lrelu_kernel(%arg0: memref<98x288xbf16, #tpu.memory_space<vmem>>, %arg1: memref<288x128xbf16, #tpu.memory_space<vmem>>, %arg2: memref<3x128xf32, #tpu.memory_space<vmem>>, %arg3: memref<98x128xf32, #tpu.memory_space<vmem>>) attributes {dimension_semantics = [], scalar_prefetch = 0 : i64, scratch_operands = 0 : i64, tpu.core_type = #tpu.core_type<tc>} {
    %c0 = arith.constant 0 : index
    %c0_0 = arith.constant 0 : index
    %0 = vector.load %arg0[%c0, %c0_0] : memref<98x288xbf16, #tpu.memory_space<vmem>>, vector<98x288xbf16>
    %c0_1 = arith.constant 0 : index
    %c0_2 = arith.constant 0 : index
    %1 = vector.load %arg1[%c0_1, %c0_2] : memref<288x128xbf16, #tpu.memory_space<vmem>>, vector<288x128xbf16>
    %cst = arith.constant dense<0.000000e+00> : vector<98x128xf32>
    %2 = tpu.matmul %0, %1, %cst {dimension_numbers = #tpu.dot_dimension_numbers<[1], [0], [0], [1], [0, 0, 1, 1], [], []>} : vector<98x288xbf16>, vector<288x128xbf16>, vector<98x128xf32> -> vector<98x128xf32>
    %c0_3 = arith.constant 0 : index
    %c0_4 = arith.constant 0 : index
    %3 = vector.load %arg2[%c0_3, %c0_4] : memref<3x128xf32, #tpu.memory_space<vmem>>, vector<1x128xf32>
    %4 = vector.broadcast %3 : vector<1x128xf32> to vector<98x128xf32>
    %5 = arith.addf %2, %4 : vector<98x128xf32>
    %cst_5 = arith.constant dense<0.000000e+00> : vector<128xf32>
    %6 = vector.multi_reduction <add>, %5, %cst_5 [0] : vector<98x128xf32> to vector<128xf32>
    %7 = vector.shape_cast %6 : vector<128xf32> to vector<1x128xf32>
    %cst_6 = arith.constant 9.800000e+01 : f32
    %8 = vector.broadcast %cst_6 : f32 to vector<1x128xf32>
    %9 = arith.divf %7, %8 : vector<1x128xf32>
    %10 = arith.mulf %5, %5 : vector<98x128xf32>
    %cst_7 = arith.constant dense<0.000000e+00> : vector<128xf32>
    %11 = vector.multi_reduction <add>, %10, %cst_7 [0] : vector<98x128xf32> to vector<128xf32>
    %12 = vector.shape_cast %11 : vector<128xf32> to vector<1x128xf32>
    %cst_8 = arith.constant 9.800000e+01 : f32
    %13 = vector.broadcast %cst_8 : f32 to vector<1x128xf32>
    %14 = arith.divf %12, %13 : vector<1x128xf32>
    %15 = arith.mulf %9, %9 : vector<1x128xf32>
    %16 = arith.subf %14, %15 : vector<1x128xf32>
    %17 = vector.broadcast %9 : vector<1x128xf32> to vector<98x128xf32>
    %18 = arith.subf %5, %17 : vector<98x128xf32>
    %cst_9 = arith.constant 9.99999974E-6 : f32
    %19 = vector.broadcast %cst_9 : f32 to vector<1x128xf32>
    %20 = arith.addf %16, %19 : vector<1x128xf32>
    %21 = math.rsqrt %20 : vector<1x128xf32>
    %22 = vector.broadcast %21 : vector<1x128xf32> to vector<98x128xf32>
    %23 = arith.mulf %18, %22 : vector<98x128xf32>
    %c1 = arith.constant 1 : index
    %c0_10 = arith.constant 0 : index
    %24 = vector.load %arg2[%c1, %c0_10] : memref<3x128xf32, #tpu.memory_space<vmem>>, vector<1x128xf32>
    %25 = vector.broadcast %24 : vector<1x128xf32> to vector<98x128xf32>
    %26 = arith.mulf %23, %25 : vector<98x128xf32>
    %c2 = arith.constant 2 : index
    %c0_11 = arith.constant 0 : index
    %27 = vector.load %arg2[%c2, %c0_11] : memref<3x128xf32, #tpu.memory_space<vmem>>, vector<1x128xf32>
    %28 = vector.broadcast %27 : vector<1x128xf32> to vector<98x128xf32>
    %29 = arith.addf %26, %28 : vector<98x128xf32>
    %cst_12 = arith.constant 0.000000e+00 : f32
    %30 = vector.broadcast %cst_12 : f32 to vector<98x128xf32>
    %31 = arith.cmpf ogt, %29, %30 : vector<98x128xf32>
    %cst_13 = arith.constant 2.000000e-01 : f32
    %32 = vector.broadcast %cst_13 : f32 to vector<98x128xf32>
    %33 = arith.mulf %32, %29 : vector<98x128xf32>
    %34 = arith.select %31, %29, %33 : vector<98x128xi1>, vector<98x128xf32>
    %c0_14 = arith.constant 0 : index
    %c0_15 = arith.constant 0 : index
    %35 = vector.load %arg3[%c0_14, %c0_15] : memref<98x128xf32, #tpu.memory_space<vmem>>, vector<98x128xf32>
    tpu.vector_store %arg3[%c0_14, %c0_15], %34 {strides = array<i32>} : memref<98x128xf32, #tpu.memory_space<vmem>>, vector<98x128xf32>,
    return
  }
}

module attributes {stable_mosaic.version = 11 : i64} {
  func.func @_fc_reparam_kernel(%arg0: memref<2x1568xbf16, #tpu.memory_space<vmem>>, %arg1: memref<1568x256xbf16, #tpu.memory_space<vmem>>, %arg2: memref<1x256xf32, #tpu.memory_space<vmem>>, %arg3: memref<2x128xf32, #tpu.memory_space<vmem>>, %arg4: memref<128x1568xbf16, #tpu.memory_space<vmem>>, %arg5: memref<1x1568xf32, #tpu.memory_space<vmem>>, %arg6: memref<2x256xf32, #tpu.memory_space<vmem>>, %arg7: memref<2x1568xf32, #tpu.memory_space<vmem>>) attributes {dimension_semantics = [], scalar_prefetch = 0 : i64, scratch_operands = 0 : i64, tpu.core_type = #tpu.core_type<tc>} {
    %c0 = arith.constant 0 : index
    %c0_0 = arith.constant 0 : index
    %0 = vector.load %arg0[%c0, %c0_0] : memref<2x1568xbf16, #tpu.memory_space<vmem>>, vector<2x1568xbf16>
    %c0_1 = arith.constant 0 : index
    %c0_2 = arith.constant 0 : index
    %1 = vector.load %arg1[%c0_1, %c0_2] : memref<1568x256xbf16, #tpu.memory_space<vmem>>, vector<1568x256xbf16>
    %cst = arith.constant dense<0.000000e+00> : vector<2x256xf32>
    %2 = tpu.matmul %0, %1, %cst {dimension_numbers = #tpu.dot_dimension_numbers<[1], [0], [0], [1], [0, 0, 1, 1], [], []>} : vector<2x1568xbf16>, vector<1568x256xbf16>, vector<2x256xf32> -> vector<2x256xf32>
    %c0_3 = arith.constant 0 : index
    %c0_4 = arith.constant 0 : index
    %3 = vector.load %arg2[%c0_3, %c0_4] : memref<1x256xf32, #tpu.memory_space<vmem>>, vector<1x256xf32>
    %4 = vector.broadcast %3 : vector<1x256xf32> to vector<2x256xf32>
    %5 = arith.addf %2, %4 : vector<2x256xf32>
    %6 = vector.extract_strided_slice %5 {offsets = [0, 0], sizes = [2, 128], strides = [1, 1]} : vector<2x256xf32> to vector<2x128xf32>
    %7 = vector.extract_strided_slice %5 {offsets = [0, 128], sizes = [2, 128], strides = [1, 1]} : vector<2x256xf32> to vector<2x128xf32>
    %c0_5 = arith.constant 0 : index
    %c0_6 = arith.constant 0 : index
    %8 = vector.load %arg3[%c0_5, %c0_6] : memref<2x128xf32, #tpu.memory_space<vmem>>, vector<2x128xf32>
    %9 = math.exp %7 : vector<2x128xf32>
    %10 = arith.mulf %8, %9 : vector<2x128xf32>
    %11 = arith.addf %6, %10 : vector<2x128xf32>
    %c0_7 = arith.constant 0 : index
    %c0_8 = arith.constant 0 : index
    %12 = vector.load %arg6[%c0_7, %c0_8] : memref<2x256xf32, #tpu.memory_space<vmem>>, vector<2x256xf32>
    tpu.vector_store %arg6[%c0_7, %c0_8], %5 {strides = array<i32>} : memref<2x256xf32, #tpu.memory_space<vmem>>, vector<2x256xf32>,
    %13 = arith.truncf %11 : vector<2x128xf32> to vector<2x128xbf16>
    %c0_9 = arith.constant 0 : index
    %c0_10 = arith.constant 0 : index
    %14 = vector.load %arg4[%c0_9, %c0_10] : memref<128x1568xbf16, #tpu.memory_space<vmem>>, vector<128x1568xbf16>
    %cst_11 = arith.constant dense<0.000000e+00> : vector<2x1568xf32>
    %15 = tpu.matmul %13, %14, %cst_11 {dimension_numbers = #tpu.dot_dimension_numbers<[1], [0], [0], [1], [0, 0, 1, 1], [], []>} : vector<2x128xbf16>, vector<128x1568xbf16>, vector<2x1568xf32> -> vector<2x1568xf32>
    %c0_12 = arith.constant 0 : index
    %c0_13 = arith.constant 0 : index
    %16 = vector.load %arg5[%c0_12, %c0_13] : memref<1x1568xf32, #tpu.memory_space<vmem>>, vector<1x1568xf32>
    %17 = vector.broadcast %16 : vector<1x1568xf32> to vector<2x1568xf32>
    %18 = arith.addf %15, %17 : vector<2x1568xf32>
    %c0_14 = arith.constant 0 : index
    %c0_15 = arith.constant 0 : index
    %19 = vector.load %arg7[%c0_14, %c0_15] : memref<2x1568xf32, #tpu.memory_space<vmem>>, vector<2x1568xf32>
    tpu.vector_store %arg7[%c0_14, %c0_15], %18 {strides = array<i32>} : memref<2x1568xf32, #tpu.memory_space<vmem>>, vector<2x1568xf32>,
    return
  }
}

module attributes {stable_mosaic.version = 11 : i64} {
  func.func @_deconv_phase_kernel(%arg0: memref<4x98x128xbf16, #tpu.memory_space<vmem>>, %arg1: memref<4x128x128xbf16, #tpu.memory_space<vmem>>, %arg2: memref<1x128xf32, #tpu.memory_space<vmem>>, %arg3: memref<4x98x128xf32, #tpu.memory_space<vmem>>) attributes {dimension_semantics = [], scalar_prefetch = 0 : i64, scratch_operands = 0 : i64, tpu.core_type = #tpu.core_type<tc>} {
    %c0 = arith.constant 0 : index
    %c0_0 = arith.constant 0 : index
    %c0_1 = arith.constant 0 : index
    %0 = vector.load %arg0[%c0, %c0_0, %c0_1] : memref<4x98x128xbf16, #tpu.memory_space<vmem>>, vector<1x98x128xbf16>
    %1 = vector.shape_cast %0 : vector<1x98x128xbf16> to vector<98x128xbf16>
    %c0_2 = arith.constant 0 : index
    %c0_3 = arith.constant 0 : index
    %c0_4 = arith.constant 0 : index
    %2 = vector.load %arg1[%c0_2, %c0_3, %c0_4] : memref<4x128x128xbf16, #tpu.memory_space<vmem>>, vector<1x128x128xbf16>
    %3 = vector.shape_cast %2 : vector<1x128x128xbf16> to vector<128x128xbf16>
    %cst = arith.constant dense<0.000000e+00> : vector<98x128xf32>
    %4 = tpu.matmul %1, %3, %cst {dimension_numbers = #tpu.dot_dimension_numbers<[1], [0], [0], [1], [0, 0, 1, 1], [], []>} : vector<98x128xbf16>, vector<128x128xbf16>, vector<98x128xf32> -> vector<98x128xf32>
    %c0_5 = arith.constant 0 : index
    %c0_6 = arith.constant 0 : index
    %5 = vector.load %arg2[%c0_5, %c0_6] : memref<1x128xf32, #tpu.memory_space<vmem>>, vector<1x128xf32>
    %6 = vector.broadcast %5 : vector<1x128xf32> to vector<98x128xf32>
    %7 = arith.addf %4, %6 : vector<98x128xf32>
    %cst_7 = arith.constant 0.000000e+00 : f32
    %8 = vector.broadcast %cst_7 : f32 to vector<98x128xf32>
    %9 = arith.maximumf %7, %8 : vector<98x128xf32>
    %c0_8 = arith.constant 0 : index
    %c0_9 = arith.constant 0 : index
    %c0_10 = arith.constant 0 : index
    %10 = vector.load %arg3[%c0_8, %c0_9, %c0_10] : memref<4x98x128xf32, #tpu.memory_space<vmem>>, vector<1x98x128xf32>
    %11 = vector.shape_cast %10 : vector<1x98x128xf32> to vector<98x128xf32>
    %12 = vector.shape_cast %9 : vector<98x128xf32> to vector<1x98x128xf32>
    tpu.vector_store %arg3[%c0_8, %c0_9, %c0_10], %12 {strides = array<i32>} : memref<4x98x128xf32, #tpu.memory_space<vmem>>, vector<1x98x128xf32>,
    %c1 = arith.constant 1 : index
    %c0_11 = arith.constant 0 : index
    %c0_12 = arith.constant 0 : index
    %13 = vector.load %arg0[%c1, %c0_11, %c0_12] : memref<4x98x128xbf16, #tpu.memory_space<vmem>>, vector<1x98x128xbf16>
    %14 = vector.shape_cast %13 : vector<1x98x128xbf16> to vector<98x128xbf16>
    %c1_13 = arith.constant 1 : index
    %c0_14 = arith.constant 0 : index
    %c0_15 = arith.constant 0 : index
    %15 = vector.load %arg1[%c1_13, %c0_14, %c0_15] : memref<4x128x128xbf16, #tpu.memory_space<vmem>>, vector<1x128x128xbf16>
    %16 = vector.shape_cast %15 : vector<1x128x128xbf16> to vector<128x128xbf16>
    %cst_16 = arith.constant dense<0.000000e+00> : vector<98x128xf32>
    %17 = tpu.matmul %14, %16, %cst_16 {dimension_numbers = #tpu.dot_dimension_numbers<[1], [0], [0], [1], [0, 0, 1, 1], [], []>} : vector<98x128xbf16>, vector<128x128xbf16>, vector<98x128xf32> -> vector<98x128xf32>
    %c0_17 = arith.constant 0 : index
    %c0_18 = arith.constant 0 : index
    %18 = vector.load %arg2[%c0_17, %c0_18] : memref<1x128xf32, #tpu.memory_space<vmem>>, vector<1x128xf32>
    %19 = vector.broadcast %18 : vector<1x128xf32> to vector<98x128xf32>
    %20 = arith.addf %17, %19 : vector<98x128xf32>
    %cst_19 = arith.constant 0.000000e+00 : f32
    %21 = vector.broadcast %cst_19 : f32 to vector<98x128xf32>
    %22 = arith.maximumf %20, %21 : vector<98x128xf32>
    %c1_20 = arith.constant 1 : index
    %c0_21 = arith.constant 0 : index
    %c0_22 = arith.constant 0 : index
    %23 = vector.load %arg3[%c1_20, %c0_21, %c0_22] : memref<4x98x128xf32, #tpu.memory_space<vmem>>, vector<1x98x128xf32>
    %24 = vector.shape_cast %23 : vector<1x98x128xf32> to vector<98x128xf32>
    %25 = vector.shape_cast %22 : vector<98x128xf32> to vector<1x98x128xf32>
    tpu.vector_store %arg3[%c1_20, %c0_21, %c0_22], %25 {strides = array<i32>} : memref<4x98x128xf32, #tpu.memory_space<vmem>>, vector<1x98x128xf32>,
    %c2 = arith.constant 2 : index
    %c0_23 = arith.constant 0 : index
    %c0_24 = arith.constant 0 : index
    %26 = vector.load %arg0[%c2, %c0_23, %c0_24] : memref<4x98x128xbf16, #tpu.memory_space<vmem>>, vector<1x98x128xbf16>
    %27 = vector.shape_cast %26 : vector<1x98x128xbf16> to vector<98x128xbf16>
    %c2_25 = arith.constant 2 : index
    %c0_26 = arith.constant 0 : index
    %c0_27 = arith.constant 0 : index
    %28 = vector.load %arg1[%c2_25, %c0_26, %c0_27] : memref<4x128x128xbf16, #tpu.memory_space<vmem>>, vector<1x128x128xbf16>
    %29 = vector.shape_cast %28 : vector<1x128x128xbf16> to vector<128x128xbf16>
    %cst_28 = arith.constant dense<0.000000e+00> : vector<98x128xf32>
    %30 = tpu.matmul %27, %29, %cst_28 {dimension_numbers = #tpu.dot_dimension_numbers<[1], [0], [0], [1], [0, 0, 1, 1], [], []>} : vector<98x128xbf16>, vector<128x128xbf16>, vector<98x128xf32> -> vector<98x128xf32>
    %c0_29 = arith.constant 0 : index
    %c0_30 = arith.constant 0 : index
    %31 = vector.load %arg2[%c0_29, %c0_30] : memref<1x128xf32, #tpu.memory_space<vmem>>, vector<1x128xf32>
    %32 = vector.broadcast %31 : vector<1x128xf32> to vector<98x128xf32>
    %33 = arith.addf %30, %32 : vector<98x128xf32>
    %cst_31 = arith.constant 0.000000e+00 : f32
    %34 = vector.broadcast %cst_31 : f32 to vector<98x128xf32>
    %35 = arith.maximumf %33, %34 : vector<98x128xf32>
    %c2_32 = arith.constant 2 : index
    %c0_33 = arith.constant 0 : index
    %c0_34 = arith.constant 0 : index
    %36 = vector.load %arg3[%c2_32, %c0_33, %c0_34] : memref<4x98x128xf32, #tpu.memory_space<vmem>>, vector<1x98x128xf32>
    %37 = vector.shape_cast %36 : vector<1x98x128xf32> to vector<98x128xf32>
    %38 = vector.shape_cast %35 : vector<98x128xf32> to vector<1x98x128xf32>
    tpu.vector_store %arg3[%c2_32, %c0_33, %c0_34], %38 {strides = array<i32>} : memref<4x98x128xf32, #tpu.memory_space<vmem>>, vector<1x98x128xf32>,
    %c3 = arith.constant 3 : index
    %c0_35 = arith.constant 0 : index
    %c0_36 = arith.constant 0 : index
    %39 = vector.load %arg0[%c3, %c0_35, %c0_36] : memref<4x98x128xbf16, #tpu.memory_space<vmem>>, vector<1x98x128xbf16>
    %40 = vector.shape_cast %39 : vector<1x98x128xbf16> to vector<98x128xbf16>
    %c3_37 = arith.constant 3 : index
    %c0_38 = arith.constant 0 : index
    %c0_39 = arith.constant 0 : index
    %41 = vector.load %arg1[%c3_37, %c0_38, %c0_39] : memref<4x128x128xbf16, #tpu.memory_space<vmem>>, vector<1x128x128xbf16>
    %42 = vector.shape_cast %41 : vector<1x128x128xbf16> to vector<128x128xbf16>
    %cst_40 = arith.constant dense<0.000000e+00> : vector<98x128xf32>
    %43 = tpu.matmul %40, %42, %cst_40 {dimension_numbers = #tpu.dot_dimension_numbers<[1], [0], [0], [1], [0, 0, 1, 1], [], []>} : vector<98x128xbf16>, vector<128x128xbf16>, vector<98x128xf32> -> vector<98x128xf32>
    %c0_41 = arith.constant 0 : index
    %c0_42 = arith.constant 0 : index
    %44 = vector.load %arg2[%c0_41, %c0_42] : memref<1x128xf32, #tpu.memory_space<vmem>>, vector<1x128xf32>
    %45 = vector.broadcast %44 : vector<1x128xf32> to vector<98x128xf32>
    %46 = arith.addf %43, %45 : vector<98x128xf32>
    %cst_43 = arith.constant 0.000000e+00 : f32
    %47 = vector.broadcast %cst_43 : f32 to vector<98x128xf32>
    %48 = arith.maximumf %46, %47 : vector<98x128xf32>
    %c3_44 = arith.constant 3 : index
    %c0_45 = arith.constant 0 : index
    %c0_46 = arith.constant 0 : index
    %49 = vector.load %arg3[%c3_44, %c0_45, %c0_46] : memref<4x98x128xf32, #tpu.memory_space<vmem>>, vector<1x98x128xf32>
    %50 = vector.shape_cast %49 : vector<1x98x128xf32> to vector<98x128xf32>
    %51 = vector.shape_cast %48 : vector<98x128xf32> to vector<1x98x128xf32>
    tpu.vector_store %arg3[%c3_44, %c0_45, %c0_46], %51 {strides = array<i32>} : memref<4x98x128xf32, #tpu.memory_space<vmem>>, vector<1x98x128xf32>,
    return
  }
}

module attributes {stable_mosaic.version = 11 : i64} {
  func.func @_deconv_phase_kernel(%arg0: memref<4x392x64xbf16, #tpu.memory_space<vmem>>, %arg1: memref<4x64x128xbf16, #tpu.memory_space<vmem>>, %arg2: memref<1x128xf32, #tpu.memory_space<vmem>>, %arg3: memref<4x392x128xf32, #tpu.memory_space<vmem>>) attributes {dimension_semantics = [], scalar_prefetch = 0 : i64, scratch_operands = 0 : i64, tpu.core_type = #tpu.core_type<tc>} {
    %c0 = arith.constant 0 : index
    %c0_0 = arith.constant 0 : index
    %c0_1 = arith.constant 0 : index
    %0 = vector.load %arg0[%c0, %c0_0, %c0_1] : memref<4x392x64xbf16, #tpu.memory_space<vmem>>, vector<1x392x64xbf16>
    %1 = vector.shape_cast %0 : vector<1x392x64xbf16> to vector<392x64xbf16>
    %c0_2 = arith.constant 0 : index
    %c0_3 = arith.constant 0 : index
    %c0_4 = arith.constant 0 : index
    %2 = vector.load %arg1[%c0_2, %c0_3, %c0_4] : memref<4x64x128xbf16, #tpu.memory_space<vmem>>, vector<1x64x128xbf16>
    %3 = vector.shape_cast %2 : vector<1x64x128xbf16> to vector<64x128xbf16>
    %cst = arith.constant dense<0.000000e+00> : vector<392x128xf32>
    %4 = tpu.matmul %1, %3, %cst {dimension_numbers = #tpu.dot_dimension_numbers<[1], [0], [0], [1], [0, 0, 1, 1], [], []>} : vector<392x64xbf16>, vector<64x128xbf16>, vector<392x128xf32> -> vector<392x128xf32>
    %c0_5 = arith.constant 0 : index
    %c0_6 = arith.constant 0 : index
    %5 = vector.load %arg2[%c0_5, %c0_6] : memref<1x128xf32, #tpu.memory_space<vmem>>, vector<1x128xf32>
    %6 = vector.broadcast %5 : vector<1x128xf32> to vector<392x128xf32>
    %7 = arith.addf %4, %6 : vector<392x128xf32>
    %8 = math.absf %7 : vector<392x128xf32>
    %cst_7 = arith.constant 0.000000e+00 : f32
    %9 = vector.broadcast %cst_7 : f32 to vector<392x128xf32>
    %10 = arith.subf %9, %8 : vector<392x128xf32>
    %11 = math.exp %10 : vector<392x128xf32>
    %cst_8 = arith.constant 1.000000e+00 : f32
    %12 = vector.broadcast %cst_8 : f32 to vector<392x128xf32>
    %13 = arith.addf %12, %11 : vector<392x128xf32>
    %14 = tpu.reciprocal %13 {approx = true} : vector<392x128xf32> -> vector<392x128xf32>
    %cst_9 = arith.constant 0.000000e+00 : f32
    %15 = vector.broadcast %cst_9 : f32 to vector<392x128xf32>
    %16 = arith.cmpf oge, %7, %15 : vector<392x128xf32>
    %cst_10 = arith.constant 1.000000e+00 : f32
    %17 = vector.broadcast %cst_10 : f32 to vector<392x128xf32>
    %18 = arith.select %16, %17, %11 : vector<392x128xi1>, vector<392x128xf32>
    %19 = arith.mulf %14, %18 : vector<392x128xf32>
    %c0_11 = arith.constant 0 : index
    %c0_12 = arith.constant 0 : index
    %c0_13 = arith.constant 0 : index
    %20 = vector.load %arg3[%c0_11, %c0_12, %c0_13] : memref<4x392x128xf32, #tpu.memory_space<vmem>>, vector<1x392x128xf32>
    %21 = vector.shape_cast %20 : vector<1x392x128xf32> to vector<392x128xf32>
    %22 = vector.shape_cast %19 : vector<392x128xf32> to vector<1x392x128xf32>
    tpu.vector_store %arg3[%c0_11, %c0_12, %c0_13], %22 {strides = array<i32>} : memref<4x392x128xf32, #tpu.memory_space<vmem>>, vector<1x392x128xf32>,
    %c1 = arith.constant 1 : index
    %c0_14 = arith.constant 0 : index
    %c0_15 = arith.constant 0 : index
    %23 = vector.load %arg0[%c1, %c0_14, %c0_15] : memref<4x392x64xbf16, #tpu.memory_space<vmem>>, vector<1x392x64xbf16>
    %24 = vector.shape_cast %23 : vector<1x392x64xbf16> to vector<392x64xbf16>
    %c1_16 = arith.constant 1 : index
    %c0_17 = arith.constant 0 : index
    %c0_18 = arith.constant 0 : index
    %25 = vector.load %arg1[%c1_16, %c0_17, %c0_18] : memref<4x64x128xbf16, #tpu.memory_space<vmem>>, vector<1x64x128xbf16>
    %26 = vector.shape_cast %25 : vector<1x64x128xbf16> to vector<64x128xbf16>
    %cst_19 = arith.constant dense<0.000000e+00> : vector<392x128xf32>
    %27 = tpu.matmul %24, %26, %cst_19 {dimension_numbers = #tpu.dot_dimension_numbers<[1], [0], [0], [1], [0, 0, 1, 1], [], []>} : vector<392x64xbf16>, vector<64x128xbf16>, vector<392x128xf32> -> vector<392x128xf32>
    %c0_20 = arith.constant 0 : index
    %c0_21 = arith.constant 0 : index
    %28 = vector.load %arg2[%c0_20, %c0_21] : memref<1x128xf32, #tpu.memory_space<vmem>>, vector<1x128xf32>
    %29 = vector.broadcast %28 : vector<1x128xf32> to vector<392x128xf32>
    %30 = arith.addf %27, %29 : vector<392x128xf32>
    %31 = math.absf %30 : vector<392x128xf32>
    %cst_22 = arith.constant 0.000000e+00 : f32
    %32 = vector.broadcast %cst_22 : f32 to vector<392x128xf32>
    %33 = arith.subf %32, %31 : vector<392x128xf32>
    %34 = math.exp %33 : vector<392x128xf32>
    %cst_23 = arith.constant 1.000000e+00 : f32
    %35 = vector.broadcast %cst_23 : f32 to vector<392x128xf32>
    %36 = arith.addf %35, %34 : vector<392x128xf32>
    %37 = tpu.reciprocal %36 {approx = true} : vector<392x128xf32> -> vector<392x128xf32>
    %cst_24 = arith.constant 0.000000e+00 : f32
    %38 = vector.broadcast %cst_24 : f32 to vector<392x128xf32>
    %39 = arith.cmpf oge, %30, %38 : vector<392x128xf32>
    %cst_25 = arith.constant 1.000000e+00 : f32
    %40 = vector.broadcast %cst_25 : f32 to vector<392x128xf32>
    %41 = arith.select %39, %40, %34 : vector<392x128xi1>, vector<392x128xf32>
    %42 = arith.mulf %37, %41 : vector<392x128xf32>
    %c1_26 = arith.constant 1 : index
    %c0_27 = arith.constant 0 : index
    %c0_28 = arith.constant 0 : index
    %43 = vector.load %arg3[%c1_26, %c0_27, %c0_28] : memref<4x392x128xf32, #tpu.memory_space<vmem>>, vector<1x392x128xf32>
    %44 = vector.shape_cast %43 : vector<1x392x128xf32> to vector<392x128xf32>
    %45 = vector.shape_cast %42 : vector<392x128xf32> to vector<1x392x128xf32>
    tpu.vector_store %arg3[%c1_26, %c0_27, %c0_28], %45 {strides = array<i32>} : memref<4x392x128xf32, #tpu.memory_space<vmem>>, vector<1x392x128xf32>,
    %c2 = arith.constant 2 : index
    %c0_29 = arith.constant 0 : index
    %c0_30 = arith.constant 0 : index
    %46 = vector.load %arg0[%c2, %c0_29, %c0_30] : memref<4x392x64xbf16, #tpu.memory_space<vmem>>, vector<1x392x64xbf16>
    %47 = vector.shape_cast %46 : vector<1x392x64xbf16> to vector<392x64xbf16>
    %c2_31 = arith.constant 2 : index
    %c0_32 = arith.constant 0 : index
    %c0_33 = arith.constant 0 : index
    %48 = vector.load %arg1[%c2_31, %c0_32, %c0_33] : memref<4x64x128xbf16, #tpu.memory_space<vmem>>, vector<1x64x128xbf16>
    %49 = vector.shape_cast %48 : vector<1x64x128xbf16> to vector<64x128xbf16>
    %cst_34 = arith.constant dense<0.000000e+00> : vector<392x128xf32>
    %50 = tpu.matmul %47, %49, %cst_34 {dimension_numbers = #tpu.dot_dimension_numbers<[1], [0], [0], [1], [0, 0, 1, 1], [], []>} : vector<392x64xbf16>, vector<64x128xbf16>, vector<392x128xf32> -> vector<392x128xf32>
    %c0_35 = arith.constant 0 : index
    %c0_36 = arith.constant 0 : index
    %51 = vector.load %arg2[%c0_35, %c0_36] : memref<1x128xf32, #tpu.memory_space<vmem>>, vector<1x128xf32>
    %52 = vector.broadcast %51 : vector<1x128xf32> to vector<392x128xf32>
    %53 = arith.addf %50, %52 : vector<392x128xf32>
    %54 = math.absf %53 : vector<392x128xf32>
    %cst_37 = arith.constant 0.000000e+00 : f32
    %55 = vector.broadcast %cst_37 : f32 to vector<392x128xf32>
    %56 = arith.subf %55, %54 : vector<392x128xf32>
    %57 = math.exp %56 : vector<392x128xf32>
    %cst_38 = arith.constant 1.000000e+00 : f32
    %58 = vector.broadcast %cst_38 : f32 to vector<392x128xf32>
    %59 = arith.addf %58, %57 : vector<392x128xf32>
    %60 = tpu.reciprocal %59 {approx = true} : vector<392x128xf32> -> vector<392x128xf32>
    %cst_39 = arith.constant 0.000000e+00 : f32
    %61 = vector.broadcast %cst_39 : f32 to vector<392x128xf32>
    %62 = arith.cmpf oge, %53, %61 : vector<392x128xf32>
    %cst_40 = arith.constant 1.000000e+00 : f32
    %63 = vector.broadcast %cst_40 : f32 to vector<392x128xf32>
    %64 = arith.select %62, %63, %57 : vector<392x128xi1>, vector<392x128xf32>
    %65 = arith.mulf %60, %64 : vector<392x128xf32>
    %c2_41 = arith.constant 2 : index
    %c0_42 = arith.constant 0 : index
    %c0_43 = arith.constant 0 : index
    %66 = vector.load %arg3[%c2_41, %c0_42, %c0_43] : memref<4x392x128xf32, #tpu.memory_space<vmem>>, vector<1x392x128xf32>
    %67 = vector.shape_cast %66 : vector<1x392x128xf32> to vector<392x128xf32>
    %68 = vector.shape_cast %65 : vector<392x128xf32> to vector<1x392x128xf32>
    tpu.vector_store %arg3[%c2_41, %c0_42, %c0_43], %68 {strides = array<i32>} : memref<4x392x128xf32, #tpu.memory_space<vmem>>, vector<1x392x128xf32>,
    %c3 = arith.constant 3 : index
    %c0_44 = arith.constant 0 : index
    %c0_45 = arith.constant 0 : index
    %69 = vector.load %arg0[%c3, %c0_44, %c0_45] : memref<4x392x64xbf16, #tpu.memory_space<vmem>>, vector<1x392x64xbf16>
    %70 = vector.shape_cast %69 : vector<1x392x64xbf16> to vector<392x64xbf16>
    %c3_46 = arith.constant 3 : index
    %c0_47 = arith.constant 0 : index
    %c0_48 = arith.constant 0 : index
    %71 = vector.load %arg1[%c3_46, %c0_47, %c0_48] : memref<4x64x128xbf16, #tpu.memory_space<vmem>>, vector<1x64x128xbf16>
    %72 = vector.shape_cast %71 : vector<1x64x128xbf16> to vector<64x128xbf16>
    %cst_49 = arith.constant dense<0.000000e+00> : vector<392x128xf32>
    %73 = tpu.matmul %70, %72, %cst_49 {dimension_numbers = #tpu.dot_dimension_numbers<[1], [0], [0], [1], [0, 0, 1, 1], [], []>} : vector<392x64xbf16>, vector<64x128xbf16>, vector<392x128xf32> -> vector<392x128xf32>
    %c0_50 = arith.constant 0 : index
    %c0_51 = arith.constant 0 : index
    %74 = vector.load %arg2[%c0_50, %c0_51] : memref<1x128xf32, #tpu.memory_space<vmem>>, vector<1x128xf32>
    %75 = vector.broadcast %74 : vector<1x128xf32> to vector<392x128xf32>
    %76 = arith.addf %73, %75 : vector<392x128xf32>
    %77 = math.absf %76 : vector<392x128xf32>
    %cst_52 = arith.constant 0.000000e+00 : f32
    %78 = vector.broadcast %cst_52 : f32 to vector<392x128xf32>
    %79 = arith.subf %78, %77 : vector<392x128xf32>
    %80 = math.exp %79 : vector<392x128xf32>
    %cst_53 = arith.constant 1.000000e+00 : f32
    %81 = vector.broadcast %cst_53 : f32 to vector<392x128xf32>
    %82 = arith.addf %81, %80 : vector<392x128xf32>
    %83 = tpu.reciprocal %82 {approx = true} : vector<392x128xf32> -> vector<392x128xf32>
    %cst_54 = arith.constant 0.000000e+00 : f32
    %84 = vector.broadcast %cst_54 : f32 to vector<392x128xf32>
    %85 = arith.cmpf oge, %76, %84 : vector<392x128xf32>
    %cst_55 = arith.constant 1.000000e+00 : f32
    %86 = vector.broadcast %cst_55 : f32 to vector<392x128xf32>
    %87 = arith.select %85, %86, %80 : vector<392x128xi1>, vector<392x128xf32>
    %88 = arith.mulf %83, %87 : vector<392x128xf32>
    %c3_56 = arith.constant 3 : index
    %c0_57 = arith.constant 0 : index
    %c0_58 = arith.constant 0 : index
    %89 = vector.load %arg3[%c3_56, %c0_57, %c0_58] : memref<4x392x128xf32, #tpu.memory_space<vmem>>, vector<1x392x128xf32>
    %90 = vector.shape_cast %89 : vector<1x392x128xf32> to vector<392x128xf32>
    %91 = vector.shape_cast %88 : vector<392x128xf32> to vector<1x392x128xf32>
    tpu.vector_store %arg3[%c3_56, %c0_57, %c0_58], %91 {strides = array<i32>} : memref<4x392x128xf32, #tpu.memory_space<vmem>>, vector<1x392x128xf32>,
    return
  }
}

</mosaic_0001>

<bundles_post_ra>
// kernel: vae_forward.6
= control target key start
LH: loop header
LB: loop body
LE: loop exit
PB: predicated region body
PF: predicated region fallthrough
CT: control target
= control target key end

     0   :  { %vm275_vm0 = vcmask 1043456   ;;  %vm276_vm1 = vcmask 1044480   ;;  %v1299_v0 = vmov 0.0   ;;  %v1300_v2 = vmov 65535   ;;  %s2635_s1 = inlined_call_operand.vmem [shape: bf16[9,128], index: 1, kind: input, shape index: {}]   ;;  %s2636_s0 = inlined_call_operand.vmem [shape: bf16[392,9], index: 0, kind: input, shape index: {}]   ;;  %s2637_s2 = inlined_call_operand.vmem [shape: f32[3,128], index: 2, kind: input, shape index: {}]   ;;  %s2638_s3 = inlined_call_operand.vmem [shape: f32[392,128], index: 3, kind: output, shape index: {}]  }
   0x1   :  { %1164 = vmatprep.subr.bf16.mxu0 %v1299_v0  ;;  %v1271_v1 = vld [vmem:[%s2635_s1] sm:$0x1f]   ;;  %1266 = vmatprep.subr.bf16.mxu1 %v1299_v0  ;;  %v277_v3 = vsel %vm275_vm0, 4294967295, %v1300_v2  ;;  %vm1301_vm2 = vmmov 0   ;;  %vm199_vm3 = vcmask 72704   ;;  %v1279_v7 = vld [vmem:[%s2636_s0 + $0x68] sm:$0xff]  }
   0x2   :  { %v278_v4 = vsel %vm276_vm1, %v277_v3, 0  ;;  %1166 = vmatprep.mubr.msk.bf16.mxu0 %vm1301_vm2, %v1299_v0  ;;  %1218 = vmatprep.mubr.msk.bf16.mxu1 %vm1301_vm2, %v1299_v0  ;;  %v1272_v6 = vld [vmem:[%s2636_s0] sm:$0xff]   ;;  %v1273_v8 = vld [vmem:[%s2636_s0 + $0x8] sm:$0xff]   ;;  %v1281_v9 = vld [vmem:[%s2636_s0 + $0x70] sm:$0xff]  }
   0x3   :  { %v280_v5 = vand.u32 %v1271_v1, %v278_v4  ;;  %v1274_v10 = vld [vmem:[%s2636_s0 + $0x10] sm:$0xff]   ;;  %v1283_v11 = vld [vmem:[%s2636_s0 + $0x78] sm:$0xff]   ;;  %v1285_v13 = vld [vmem:[%s2636_s0 + $0x80] sm:$0xff]  }
   0x4   :  { %v1275_v12 = vld [vmem:[%s2636_s0 + $0x18] sm:$0xff]   ;;  %v1276_v14 = vld [vmem:[%s2636_s0 + $0x20] sm:$0xff]   ;;  %v1287_v15 = vld [vmem:[%s2636_s0 + $0x88] sm:$0xff]  }
   0x5   :  { %1165 = vmatpush3.bf16.msra.mxu0 %v280_v5  ;;  %1267 = vmatpush3.bf16.msra.mxu1 %v280_v5  ;;  %v1277_v16 = vld [vmem:[%s2636_s0 + $0x28] sm:$0xff]   ;;  %v1289_v17 = vld [vmem:[%s2636_s0 + $0x90] sm:$0xff]   ;;  %v1291_v19 = vld [vmem:[%s2636_s0 + $0x98] sm:$0xff]  }
   0x6   :  { %v1278_v18 = vld [vmem:[%s2636_s0 + $0x30] sm:$0xff]   ;;  %v1280_v20 = vld [vmem:[%s2636_s0 + $0x38] sm:$0xff]   ;;  %v1292_v21 = vld [vmem:[%s2636_s0 + $0xa0] sm:$0xff]  }
   0x7   :  { %v1282_v22 = vld [vmem:[%s2636_s0 + $0x40] sm:$0xff]   ;;  %v1293_v23 = vld [vmem:[%s2636_s0 + $0xa8] sm:$0xff]   ;;  %v1294_v25 = vld [vmem:[%s2636_s0 + $0xb0] sm:$0xff]  }
   0x8   :  { %1167 = vmatmul.mubr.msk.bf16.vlgmr.msra.gmra.mxu0 %vm199_vm3, %v1272_v6  ;;  %1219 = vmatmul.mubr.msk.bf16.vlgmr.msra.gmra.mxu1 %vm199_vm3, %v1279_v7  ;;  %v1284_v24 = vld [vmem:[%s2636_s0 + $0x48] sm:$0xff]   ;;  %v1286_v26 = vld [vmem:[%s2636_s0 + $0x50] sm:$0xff]   ;;  %v1295_v27 = vld [vmem:[%s2636_s0 + $0xb8] sm:$0xff]  }
   0x9   :  { %1170 = vmatprep.mubr.msk.bf16.mxu0 %vm1301_vm2, %v1299_v0  ;;  %1222 = vmatprep.mubr.msk.bf16.mxu1 %vm1301_vm2, %v1299_v0  ;;  %v1288_v28 = vld [vmem:[%s2636_s0 + $0x58] sm:$0xff]   ;;  %v1296_v29 = vld [vmem:[%s2636_s0 + $0xc0] ss:$0 sps:$4 sm:$0xff]  }
   0xa   :  { %v1290_v30 = vld [vmem:[%s2636_s0 + $0x60] sm:$0xff]  }
  0x10   :  { %1171 = vmatmul.mubr.msk.bf16.gmra.mxu0 %vm199_vm3, %v1273_v8  ;;  %1223 = vmatmul.mubr.msk.bf16.gmra.mxu1 %vm199_vm3, %v1281_v9 }
  0x11   :  { %1174 = vmatprep.mubr.msk.bf16.mxu0 %vm1301_vm2, %v1299_v0  ;;  %1226 = vmatprep.mubr.msk.bf16.mxu1 %vm1301_vm2, %v1299_v0 }
  0x18   :  { %1175 = vmatmul.mubr.msk.bf16.gmra.mxu0 %vm199_vm3, %v1274_v10  ;;  %1227 = vmatmul.mubr.msk.bf16.gmra.mxu1 %vm199_vm3, %v1283_v11 }
  0x19   :  { %1178 = vmatprep.mubr.msk.bf16.mxu0 %vm1301_vm2, %v1299_v0  ;;  %1230 = vmatprep.mubr.msk.bf16.mxu1 %vm1301_vm2, %v1299_v0 }
  0x20   :  { %1179 = vmatmul.mubr.msk.bf16.gmra.mxu0 %vm199_vm3, %v1275_v12  ;;  %1231 = vmatmul.mubr.msk.bf16.gmra.mxu1 %vm199_vm3, %v1285_v13 }
  0x21   :  { %1182 = vmatprep.mubr.msk.bf16.mxu0 %vm1301_vm2, %v1299_v0  ;;  %1234 = vmatprep.mubr.msk.bf16.mxu1 %vm1301_vm2, %v1299_v0 }
  0x28   :  { %1183 = vmatmul.mubr.msk.bf16.gmra.mxu0 %vm199_vm3, %v1276_v14  ;;  %1235 = vmatmul.mubr.msk.bf16.gmra.mxu1 %vm199_vm3, %v1287_v15  ;;  %v1506_v14 = vld [vmem:[%s2637_s2] ss:$0 sm:$0xff] }
  0x29   :  { %1186 = vmatprep.mubr.msk.bf16.mxu0 %vm1301_vm2, %v1299_v0  ;;  %1238 = vmatprep.mubr.msk.bf16.mxu1 %vm1301_vm2, %v1299_v0 }
  0x30   :  { %1187 = vmatmul.mubr.msk.bf16.gmra.mxu0 %vm199_vm3, %v1277_v16  ;;  %1239 = vmatmul.mubr.msk.bf16.gmra.mxu1 %vm199_vm3, %v1289_v17 }
  0x31   :  { %1190 = vmatprep.mubr.msk.bf16.mxu0 %vm1301_vm2, %v1299_v0  ;;  %1242 = vmatprep.mubr.msk.bf16.mxu1 %vm1301_vm2, %v1299_v0 }
  0x38   :  { %1191 = vmatmul.mubr.msk.bf16.gmra.mxu0 %vm199_vm3, %v1278_v18  ;;  %1243 = vmatmul.mubr.msk.bf16.gmra.mxu1 %vm199_vm3, %v1291_v19 }
  0x39   :  { %1194 = vmatprep.mubr.msk.bf16.mxu0 %vm1301_vm2, %v1299_v0  ;;  %1246 = vmatprep.mubr.msk.bf16.mxu1 %vm1301_vm2, %v1299_v0 }
  0x40   :  { %1195 = vmatmul.mubr.msk.bf16.gmra.mxu0 %vm199_vm3, %v1280_v20  ;;  %1247 = vmatmul.mubr.msk.bf16.gmra.mxu1 %vm199_vm3, %v1292_v21 }
  0x41   :  { %1198 = vmatprep.mubr.msk.bf16.mxu0 %vm1301_vm2, %v1299_v0  ;;  %1250 = vmatprep.mubr.msk.bf16.mxu1 %vm1301_vm2, %v1299_v0 }
  0x48   :  { %1199 = vmatmul.mubr.msk.bf16.gmra.mxu0 %vm199_vm3, %v1282_v22  ;;  %1251 = vmatmul.mubr.msk.bf16.gmra.mxu1 %vm199_vm3, %v1293_v23 }
  0x49   :  { %1202 = vmatprep.mubr.msk.bf16.mxu0 %vm1301_vm2, %v1299_v0  ;;  %1254 = vmatprep.mubr.msk.bf16.mxu1 %vm1301_vm2, %v1299_v0 }
  0x50   :  { %1203 = vmatmul.mubr.msk.bf16.gmra.mxu0 %vm199_vm3, %v1284_v24  ;;  %1255 = vmatmul.mubr.msk.bf16.gmra.mxu1 %vm199_vm3, %v1294_v25 }
  0x51   :  { %1206 = vmatprep.mubr.msk.bf16.mxu0 %vm1301_vm2, %v1299_v0  ;;  %1258 = vmatprep.mubr.msk.bf16.mxu1 %vm1301_vm2, %v1299_v0 }
  0x58   :  { %1207 = vmatmul.mubr.msk.bf16.gmra.mxu0 %vm199_vm3, %v1286_v26  ;;  %1259 = vmatmul.mubr.msk.bf16.gmra.mxu1 %vm199_vm3, %v1295_v27 }
  0x59   :  { %1210 = vmatprep.mubr.msk.bf16.mxu0 %vm1301_vm2, %v1299_v0  ;;  %1262 = vmatprep.mubr.msk.bf16.mxu1 %vm1301_vm2, %v1299_v0 }
  0x60   :  { %1211 = vmatmul.mubr.msk.bf16.gmra.mxu0 %vm199_vm3, %v1288_v28  ;;  %1263 = vmatmul.mubr.msk.bf16.gmra.mxu1 %vm199_vm3, %v1296_v29 }
  0x61   :  { %1214 = vmatprep.mubr.msk.bf16.mxu0 %vm1301_vm2, %v1299_v0 }
  0x68   :  { %1215 = vmatmul.mubr.msk.bf16.gmra.mxu0 %vm199_vm3, %v1290_v30 }
  0xc8   :  { %v316_v31 = vpop.f32.mrf.mxu0  ;;  %v1477_v33 = vpop.f32.mrf.mxu1 }
  0xc9   :  { %v1514_v19 = vadd.f32 %v1506_v14, %v316_v31 }
  0xca   :  { %v1168_v32 = vpop.f32.mrf.mxu0  ;;  %v1220_v35 = vpop.f32.mrf.mxu1 }
  0xcb   :  { %v570_v27 = vmul.f32 %v1514_v19, %v1514_v19 }
  0xcc   :  { %v319_v34 = vpop.f32.mrf.mxu0  ;;  %v1479_v37 = vpop.f32.mrf.mxu1 }
  0xcd   :  { %v1511_v16 = vadd.f32 %v1506_v14, %v319_v34 }
  0xce   :  { %v1169_v36 = vpop.f32.mrf.mxu0  ;;  %v1221_v39 = vpop.f32.mrf.mxu1 }
  0xcf   :  { %v571_v23 = vmul.f32 %v1511_v16, %v1511_v16  ;;  %v514_v28 = vadd.f32 %v1511_v16, %v1514_v19 }
  0xd0   :  { %v324_v38 = vpop.f32.mrf.mxu0  ;;  %v1481_v41 = vpop.f32.mrf.mxu1 }
  0xd1   :  { %v1517_v20 = vadd.f32 %v1506_v14, %v324_v38  ;;  %v619_v34 = vadd.f32 %v571_v23, %v570_v27 }
  0xd2   :  { %v1172_v40 = vpop.f32.mrf.mxu0  ;;  %v1224_v43 = vpop.f32.mrf.mxu1 }
  0xd3   :  { %v572_v29 = vmul.f32 %v1517_v20, %v1517_v20  ;;  %v515_v35 = vadd.f32 %v514_v28, %v1517_v20 }
  0xd4   :  { %v327_v42 = vpop.f32.mrf.mxu0  ;;  %v1483_v45 = vpop.f32.mrf.mxu1 }
  0xd5   :  { %v1524_v24 = vadd.f32 %v1506_v14, %v327_v42  ;;  %v620_v42 = vadd.f32 %v619_v34, %v572_v29 }
  0xd6   :  { %v1173_v44 = vpop.f32.mrf.mxu0  ;;  %v1225_v47 = vpop.f32.mrf.mxu1 }
  0xd7   :  { %v573_v36 = vmul.f32 %v1524_v24, %v1524_v24  ;;  %v516_v43 = vadd.f32 %v515_v35, %v1524_v24 }
  0xd8   :  { %v332_v46 = vpop.f32.mrf.mxu0  ;;  %v1485_v49 = vpop.f32.mrf.mxu1 }
  0xd9   :  { %v1533_v30 = vadd.f32 %v1506_v14, %v332_v46 }
  0xda   :  { %v1176_v48 = vpop.f32.mrf.mxu0  ;;  %v1228_v51 = vpop.f32.mrf.mxu1 }
  0xdb   :  { %v574_v44 = vmul.f32 %v1533_v30, %v1533_v30  ;;  %v621_v51 = vadd.f32 %v620_v42, %v573_v36 }
  0xdc   :  { %v335_v50 = vpop.f32.mrf.mxu0  ;;  %v1487_v53 = vpop.f32.mrf.mxu1 }
  0xdd   :  { %v1541_v38 = vadd.f32 %v1506_v14, %v335_v50 }
  0xde   :  { %v1177_v52 = vpop.f32.mrf.mxu0  ;;  %v1229_v55 = vpop.f32.mrf.mxu1 }
  0xdf   :  { %v517_v52 = vadd.f32 %v516_v43, %v1533_v30  ;;  %v575_v50 = vmul.f32 %v1541_v38, %v1541_v38 }
  0xe0   :  { %v340_v54 = vpop.f32.mrf.mxu0  ;;  %v1489_v57 = vpop.f32.mrf.mxu1 }
  0xe1   :  { %v1547_v46 = vadd.f32 %v1506_v14, %v340_v54 }
  0xe2   :  { %v1180_v56 = vpop.f32.mrf.mxu0  ;;  %v1232_v59 = vpop.f32.mrf.mxu1 }
  0xe3   :  { %v576_v54 = vmul.f32 %v1547_v46, %v1547_v46 }
  0xe4   :  { %v343_v58 = vpop.f32.mrf.mxu0  ;;  %v1491_v61 = vpop.f32.mrf.mxu1 }
  0xe5   :  { %v1555_v55 = vadd.f32 %v1506_v14, %v343_v58 }
  0xe6   :  { %v1181_v60 = vpop.f32.mrf.mxu0  ;;  %v1233_v63 = vpop.f32.mrf.mxu1 }
  0xe7   :  { %v622_v60 = vadd.f32 %v621_v51, %v574_v44  ;;  %v518_v63 = vadd.f32 %v517_v52, %v1541_v38  ;;  %v577_v58 = vmul.f32 %v1555_v55, %v1555_v55 }
  0xe8   :  { %v348_v62 = vpop.f32.mrf.mxu0  ;;  %v1493_v1 = vpop.f32.mrf.mxu1 }
  0xea   :  { %v1184_v0 = vpop.f32.mrf.mxu0  ;;  %v1236_v3 = vpop.f32.mrf.mxu1 }
  0xeb   :  { %v1561_v0 = vadd.f32 %v1506_v14, %v348_v62 }
  0xec   :  { %v351_v2 = vpop.f32.mrf.mxu0  ;;  %v1495_v5 = vpop.f32.mrf.mxu1 }
  0xed   :  { %v578_v62 = vmul.f32 %v1561_v0, %v1561_v0 }
  0xee   :  { %v1185_v4 = vpop.f32.mrf.mxu0  ;;  %v1237_v7 = vpop.f32.mrf.mxu1 }
  0xef   :  { %v623_v7 = vadd.f32 %v622_v60, %v575_v50 }
  0xf0   :  { %v356_v6 = vpop.f32.mrf.mxu0  ;;  %v1497_v9 = vpop.f32.mrf.mxu1 }
  0xf2   :  { %v1188_v8 = vpop.f32.mrf.mxu0  ;;  %v1240_v11 = vpop.f32.mrf.mxu1 }
  0xf3   :  { %v519_v8 = vadd.f32 %v518_v63, %v1547_v46  ;;  %v1569_v11 = vadd.f32 %v1506_v14, %v351_v2 }
  0xf4   :  { %v1499_v10 = vpop.f32.mrf.mxu0  ;;  %v1501_v13 = vpop.f32.mrf.mxu1 }
  0xf5   :  { %v520_v23 = vadd.f32 %v519_v8, %v1555_v55  ;;  %v579_v2 = vmul.f32 %v1569_v11, %v1569_v11  ;;  %v1584_v34 = vadd.f32 %v1506_v14, %v1499_v10 }
  0xf6   :  { %v1189_v12 = vpop.f32.mrf.mxu0  ;;  %v1241_v17 = vpop.f32.mrf.mxu1 }
  0xf7   :  { %v521_v29 = vadd.f32 %v520_v23, %v1561_v0  ;;  %v581_v10 = vmul.f32 %v1584_v34, %v1584_v34 }
  0xf8   :  { %v1508_v15 = vpop.f32.mrf.mxu0  ;;  %v1519_v21 = vpop.f32.mrf.mxu1 }
  0xf9   :  { %v1591_v42 = vadd.f32 %v1506_v14, %v1508_v15 }
  0xfa   :  { %v1192_v18 = vpop.f32.mrf.mxu0  ;;  %v1244_v25 = vpop.f32.mrf.mxu1 }
  0xfb   :  { %v624_v18 = vadd.f32 %v623_v7, %v576_v54  ;;  %v1575_v25 = vadd.f32 %v1506_v14, %v356_v6  ;;  %v582_v15 = vmul.f32 %v1591_v42, %v1591_v42 }
  0xfc   :  { %v367_v22 = vpop.f32.mrf.mxu0  ;;  %v1535_v31 = vpop.f32.mrf.mxu1 }
  0xfd   :  { %v625_v28 = vadd.f32 %v624_v18, %v577_v58  ;;  %v580_v6 = vmul.f32 %v1575_v25, %v1575_v25  ;;  %v1599_v50 = vadd.f32 %v1506_v14, %v367_v22 }
  0xfe   :  { %v1193_v26 = vpop.f32.mrf.mxu0  ;;  %v1245_v39 = vpop.f32.mrf.mxu1 }
  0xff   :  { %v626_v39 = vadd.f32 %v625_v28, %v578_v62  ;;  %v583_v22 = vmul.f32 %v1599_v50, %v1599_v50 }
 0x100   :  { %v372_v32 = vpop.f32.mrf.mxu0  ;;  %v1549_v47 = vpop.f32.mrf.mxu1 }
 0x101   :  { %v627_v51 = vadd.f32 %v626_v39, %v579_v2  ;;  %v1605_v54 = vadd.f32 %v1506_v14, %v372_v32 }
 0x102   :  { %v1196_v40 = vpop.f32.mrf.mxu0  ;;  %v1248_v56 = vpop.f32.mrf.mxu1 }
 0x103   :  { %v522_v40 = vadd.f32 %v521_v29, %v1569_v11  ;;  %v628_v60 = vadd.f32 %v627_v51, %v580_v6  ;;  %v584_v32 = vmul.f32 %v1605_v54, %v1605_v54 }
 0x104   :  { %v375_v48 = vpop.f32.mrf.mxu0  ;;  %v1563_v3 = vpop.f32.mrf.mxu1 }
 0x105   :  { %v523_v52 = vadd.f32 %v522_v40, %v1575_v25  ;;  %v629_v58 = vadd.f32 %v628_v60, %v581_v10 }
 0x106   :  { %v1197_v59 = vpop.f32.mrf.mxu0  ;;  %v1249_v12 = vpop.f32.mrf.mxu1 }
 0x107   :  { %v524_v63 = vadd.f32 %v523_v52, %v1584_v34  ;;  %v630_v62 = vadd.f32 %v629_v58, %v582_v15 }
 0x108   :  { %v380_v4 = vpop.f32.mrf.mxu0  ;;  %v1577_v26 = vpop.f32.mrf.mxu1 }
 0x109   :  { %v525_v12 = vadd.f32 %v524_v63, %v1591_v42  ;;  %v1619_v29 = vadd.f32 %v1506_v14, %v380_v4 }
 0x10a   :  { %v1200_v17 = vpop.f32.mrf.mxu0  ;;  %v1252_v35 = vpop.f32.mrf.mxu1 }
 0x10b   :  { %v1613_v17 = vadd.f32 %v1506_v14, %v375_v48  ;;  %v526_v28 = vadd.f32 %v525_v12, %v1599_v50  ;;  %v586_v4 = vmul.f32 %v1619_v29, %v1619_v29 }
 0x10c   :  { %v383_v27 = vpop.f32.mrf.mxu0  ;;  %v1593_v43 = vpop.f32.mrf.mxu1 }
 0x10d   :  { %v527_v39 = vadd.f32 %v526_v28, %v1605_v54  ;;  %v585_v48 = vmul.f32 %v1613_v17, %v1613_v17  ;;  %v1627_v40 = vadd.f32 %v1506_v14, %v383_v27 }
 0x10e   :  { %v1201_v36 = vpop.f32.mrf.mxu0  ;;  %v1253_v56 = vpop.f32.mrf.mxu1 }
 0x10f   :  { %v631_v36 = vadd.f32 %v630_v62, %v583_v22  ;;  %v528_v10 = vadd.f32 %v527_v39, %v1613_v17  ;;  %v587_v27 = vmul.f32 %v1627_v40, %v1627_v40 }
 0x110   :  { %v388_v44 = vpop.f32.mrf.mxu0  ;;  %v1607_v7 = vpop.f32.mrf.mxu1 }
 0x111   :  { %v632_v52 = vadd.f32 %v631_v36, %v584_v32  ;;  %v1633_v56 = vadd.f32 %v1506_v14, %v388_v44  ;;  %v529_v15 = vadd.f32 %v528_v10, %v1619_v29 }
 0x112   :  { %v1204_v59 = vpop.f32.mrf.mxu0  ;;  %v1256_v18 = vpop.f32.mrf.mxu1 }
 0x113   :  { %v633_v63 = vadd.f32 %v632_v52, %v585_v48  ;;  %v588_v44 = vmul.f32 %v1633_v56, %v1633_v56 }
 0x114   :  { %v391_v8 = vpop.f32.mrf.mxu0  ;;  %v1621_v2 = vpop.f32.mrf.mxu1 }
 0x115   :  { %v1641_v58 = vadd.f32 %v1506_v14, %v391_v8  ;;  %v634_v18 = vadd.f32 %v633_v63, %v586_v4 }
 0x116   :  { %v1205_v23 = vpop.f32.mrf.mxu0  ;;  %v1257_v6 = vpop.f32.mrf.mxu1 }
 0x117   :  { %v530_v23 = vadd.f32 %v529_v15, %v1627_v40  ;;  %v635_v36 = vadd.f32 %v634_v18, %v587_v27  ;;  %v589_v8 = vmul.f32 %v1641_v58, %v1641_v58 }
 0x118   :  { %v396_v35 = vpop.f32.mrf.mxu0  ;;  %v1635_v59 = vpop.f32.mrf.mxu1 }
 0x119   :  { %v1647_v62 = vadd.f32 %v1506_v14, %v396_v35  ;;  %v531_v39 = vadd.f32 %v530_v23, %v1633_v56  ;;  %v636_v52 = vadd.f32 %v635_v36, %v588_v44 }
 0x11a   :  { %v1208_v51 = vpop.f32.mrf.mxu0  ;;  %v1260_v12 = vpop.f32.mrf.mxu1 }
 0x11b   :  { %v532_v10 = vadd.f32 %v531_v39, %v1641_v58  ;;  %v590_v35 = vmul.f32 %v1647_v62, %v1647_v62  ;;  %v637_v27 = vadd.f32 %v636_v52, %v589_v8 }
 0x11c   :  { %v399_v60 = vpop.f32.mrf.mxu0  ;;  %v1649_v28 = vpop.f32.mrf.mxu1 }
 0x11d   :  { %v1655_v48 = vadd.f32 %v1506_v14, %v399_v60  ;;  %v533_v12 = vadd.f32 %v532_v10, %v1647_v62  ;;  %v638_v44 = vadd.f32 %v637_v27, %v590_v35 }
 0x11e   :  { %v1209_v22 = vpop.f32.mrf.mxu0  ;;  %v1261_v6 = vpop.f32.mrf.mxu1 }
 0x11f   :  { %v591_v60 = vmul.f32 %v1655_v48, %v1655_v48  ;;  %v534_v36 = vadd.f32 %v533_v12, %v1655_v48 }
 0x120   :  { %v404_v32 = vpop.f32.mrf.mxu0  ;;  %v1663_v63 = vpop.f32.mrf.mxu1 }
 0x121   :  { %v1661_v4 = vadd.f32 %v1506_v14, %v404_v32 }
 0x122   :  { %v1212_v51 = vpop.f32.mrf.mxu0  ;;  %v1264_v18 = vpop.f32.mrf.mxu1 }
 0x123   :  { %v592_v32 = vmul.f32 %v1661_v4, %v1661_v4  ;;  %v639_v51 = vadd.f32 %v638_v44, %v591_v60  ;;  %v535_v8 = vadd.f32 %v534_v36, %v1661_v4  ;;  %v1685_v60 = vadd.f32 %v1506_v14, %v1477_v33 }
 0x124   :  { %v407_v15 = vpop.f32.mrf.mxu0  ;;  %v511_v39 = vpop.f32.mrf.mxu1 }
 0x125   :  { %v1669_v22 = vadd.f32 %v1506_v14, %v407_v15  ;;  %v596_v33 = vmul.f32 %v1685_v60, %v1685_v60 }
 0x126   :  { %v1213_v23 = vpop.f32.mrf.mxu0  ;;  %v1265_v15 = vpop.f32.mrf.mxu1 }
 0x127   :  { %v593_v52 = vmul.f32 %v1669_v22, %v1669_v22  ;;  %v640_v23 = vadd.f32 %v639_v51, %v592_v32  ;;  %v536_v35 = vadd.f32 %v535_v8, %v1669_v22  ;;  %v1693_v32 = vadd.f32 %v1506_v14, %v1479_v37 }
 0x128   :  { %v412_v6 = vpop.f32.mrf.mxu0 }
 0x129   :  { %v1678_v10 = vadd.f32 %v1506_v14, %v412_v6  ;;  %v641_v44 = vadd.f32 %v640_v23, %v593_v52  ;;  %v1702_v52 = vadd.f32 %v1506_v14, %v1481_v41  ;;  %v597_v37 = vmul.f32 %v1693_v32, %v1693_v32 }
 0x12a   :  { %v1216_v18 = vpop.f32.mrf.mxu0  ;;  %v1716_v41 = vadd.f32 %v1506_v14, %v1485_v49  ;;  %v1730_v49 = vadd.f32 %v1506_v14, %v1489_v57  ;;  %v1744_v57 = vadd.f32 %v1506_v14, %v1493_v1  ;;  %v1758_v1 = vadd.f32 %v1506_v14, %v1497_v9 }
 0x12b   :  { %v594_v27 = vmul.f32 %v1678_v10, %v1678_v10  ;;  %v537_v36 = vadd.f32 %v536_v35, %v1678_v10  ;;  %v1709_v35 = vadd.f32 %v1506_v14, %v1483_v45  ;;  %v1723_v45 = vadd.f32 %v1506_v14, %v1487_v53 }
 0x12c   :  { %v415_v12 = vpop.f32.mrf.mxu0  ;;  %v1737_v53 = vadd.f32 %v1506_v14, %v1491_v61  ;;  %v1751_v61 = vadd.f32 %v1506_v14, %v1495_v5  ;;  %v1765_v5 = vadd.f32 %v1506_v14, %v1501_v13  ;;  %v1772_v9 = vadd.f32 %v1506_v14, %v1519_v21 }
 0x12d   :  { %v1689_v39 = vadd.f32 %v1506_v14, %v415_v12  ;;  %v642_v51 = vadd.f32 %v641_v44, %v594_v27  ;;  %v598_v44 = vmul.f32 %v1702_v52, %v1702_v52 }
 0x12e   :  { %v1217_v6 = vpop.f32.mrf.mxu0  ;;  %2676 = vst [vmem:[#allocation2_spill] sm:$0xff] %v1772_v9 }
 0x12f   :  { %v538_v8 = vadd.f32 %v537_v36, %v1689_v39  ;;  %v595_v15 = vmul.f32 %v1689_v39, %v1689_v39 }
 0x131   :  { %v539_v18 = vadd.f32 %v538_v8, %v1685_v60  ;;  %v643_v23 = vadd.f32 %v642_v51, %v595_v15  ;;  %v599_v51 = vmul.f32 %v1709_v35, %v1709_v35 }
 0x133   :  { %v540_v27 = vadd.f32 %v539_v18, %v1693_v32  ;;  %v644_v12 = vadd.f32 %v643_v23, %v596_v33  ;;  %v600_v33 = vmul.f32 %v1716_v41, %v1716_v41 }
 0x135   :  { %v541_v36 = vadd.f32 %v540_v27, %v1702_v52  ;;  %v645_v6 = vadd.f32 %v644_v12, %v597_v37  ;;  %v601_v37 = vmul.f32 %v1723_v45, %v1723_v45 }
 0x137   :  { %v542_v8 = vadd.f32 %v541_v36, %v1709_v35  ;;  %v646_v15 = vadd.f32 %v645_v6, %v598_v44  ;;  %v602_v44 = vmul.f32 %v1730_v49, %v1730_v49 }
 0x139   :  { %v543_v18 = vadd.f32 %v542_v8, %v1716_v41  ;;  %v647_v23 = vadd.f32 %v646_v15, %v599_v51  ;;  %v603_v51 = vmul.f32 %v1737_v53, %v1737_v53 }
 0x13b   :  { %v544_v27 = vadd.f32 %v543_v18, %v1723_v45  ;;  %v648_v12 = vadd.f32 %v647_v23, %v600_v33  ;;  %v604_v33 = vmul.f32 %v1744_v57, %v1744_v57 }
 0x13d   :  { %v649_v36 = vadd.f32 %v648_v12, %v601_v37  ;;  %v545_v6 = vadd.f32 %v544_v27, %v1730_v49  ;;  %v605_v37 = vmul.f32 %v1751_v61, %v1751_v61 }
 0x13f   :  { %v546_v8 = vadd.f32 %v545_v6, %v1737_v53  ;;  %v650_v15 = vadd.f32 %v649_v36, %v602_v44  ;;  %v606_v44 = vmul.f32 %v1758_v1, %v1758_v1 }
 0x141   :  { %v547_v18 = vadd.f32 %v546_v8, %v1744_v57  ;;  %v651_v23 = vadd.f32 %v650_v15, %v603_v51  ;;  %v607_v51 = vmul.f32 %v1765_v5, %v1765_v5  ;;  %v1780_v15 = vadd.f32 %v1506_v14, %v1535_v31 }
 0x142   :  { %v1794_v31 = vadd.f32 %v1506_v14, %v1563_v3  ;;  %v1808_v3 = vadd.f32 %v1506_v14, %v1593_v43 }
 0x143   :  { %v548_v27 = vadd.f32 %v547_v18, %v1751_v61  ;;  %v652_v12 = vadd.f32 %v651_v23, %v604_v33  ;;  %2677 = vst [vmem:[#allocation3_spill] sm:$0xff] %v1780_v15  ;;  %v608_v18 = vmul.f32 %v1772_v9, %v1772_v9  ;;  %v1787_v23 = vadd.f32 %v1506_v14, %v1549_v47 }
 0x144   :  { %2679 = vst [vmem:[#allocation5_spill] sm:$0xff] %v1794_v31  ;;  %v1801_v47 = vadd.f32 %v1506_v14, %v1577_v26  ;;  %2681 = vst [vmem:[#allocation7_spill] sm:$0xff] %v1808_v3  ;;  %v1815_v26 = vadd.f32 %v1506_v14, %v1607_v7  ;;  %v613_v43 = vmul.f32 %v1808_v3, %v1808_v3 }
 0x145   :  { %v549_v36 = vadd.f32 %v548_v27, %v1758_v1  ;;  %v653_v6 = vadd.f32 %v652_v12, %v605_v37  ;;  %2678 = vst [vmem:[#allocation4_spill] sm:$0xff] %v1787_v23  ;;  %v609_v12 = vmul.f32 %v1780_v15, %v1780_v15  ;;  %v1829_v7 = vadd.f32 %v1506_v14, %v1635_v59 }
 0x146   :  { %2680 = vst [vmem:[#allocation6_spill] sm:$0xff] %v1801_v47  ;;  %2682 = vst [vmem:[#allocation8_spill] sm:$0xff] %v1815_v26 }
 0x147   :  { %v550_v8 = vadd.f32 %v549_v36, %v1765_v5  ;;  %v654_v13 = vadd.f32 %v653_v6, %v606_v44  ;;  %v610_v6 = vmul.f32 %v1787_v23, %v1787_v23  ;;  %2684 = vst [vmem:[#allocation10_spill] sm:$0xff] %v1829_v7  ;;  %v616_v59 = vmul.f32 %v1829_v7, %v1829_v7 }
 0x149   :  { %v551_v33 = vadd.f32 %v550_v8, %v1772_v9  ;;  %v655_v21 = vadd.f32 %v654_v13, %v607_v51  ;;  %v611_v13 = vmul.f32 %v1794_v31, %v1794_v31 }
 0x14b   :  { %v656_v37 = vadd.f32 %v655_v21, %v608_v18  ;;  %v552_v27 = vadd.f32 %v551_v33, %v1780_v15  ;;  %v612_v21 = vmul.f32 %v1801_v47, %v1801_v47 }
 0x14d   :  { %v657_v44 = vadd.f32 %v656_v37, %v609_v12  ;;  %v553_v36 = vadd.f32 %v552_v27, %v1787_v23  ;;  %v1819_v37 = vadd.f32 %v1506_v14, %v1621_v2 }
 0x14f   :  { %v658_v51 = vadd.f32 %v657_v44, %v610_v6  ;;  %v554_v8 = vadd.f32 %v553_v36, %v1794_v31  ;;  %2683 = vst [vmem:[#allocation9_spill] sm:$0xff] %v1819_v37  ;;  %v614_v6 = vmul.f32 %v1815_v26, %v1815_v26  ;;  %v615_v2 = vmul.f32 %v1819_v37, %v1819_v37 }
 0x151   :  { %v659_v33 = vadd.f32 %v658_v51, %v611_v13  ;;  %v555_v18 = vadd.f32 %v554_v8, %v1801_v47  ;;  %v1836_v13 = vadd.f32 %v1506_v14, %v1649_v28 }
 0x153   :  { %v660_v27 = vadd.f32 %v659_v33, %v612_v21  ;;  %v556_v12 = vadd.f32 %v555_v18, %v1808_v3  ;;  %2685 = vst [vmem:[#allocation11_spill] sm:$0xff] %v1836_v13  ;;  %v1840_v33 = vadd.f32 %v1506_v14, %v1663_v63 }
 0x155   :  { %v661_v44 = vadd.f32 %v660_v27, %v613_v43  ;;  %v557_v36 = vadd.f32 %v556_v12, %v1815_v26  ;;  %2686 = vst [vmem:[#allocation12_spill] sm:$0xff] %v1840_v33  ;;  %v617_v43 = vmul.f32 %v1836_v13, %v1836_v13  ;;  %v618_v28 = vmul.f32 %v1840_v33, %v1840_v33 }
 0x157   :  { %v662_v51 = vadd.f32 %v661_v44, %v614_v6  ;;  %v558_v8 = vadd.f32 %v557_v36, %v1819_v37 }
 0x159   :  { %v663_v18 = vadd.f32 %v662_v51, %v615_v2  ;;  %v559_v21 = vadd.f32 %v558_v8, %v1829_v7 }
 0x15b   :  { %v664_v27 = vadd.f32 %v663_v18, %v616_v59  ;;  %v560_v12 = vadd.f32 %v559_v21, %v1836_v13 }
 0x15d   :  { %v665_v44 = vadd.f32 %v664_v27, %v617_v43  ;;  %v561_v36 = vadd.f32 %v560_v12, %v1840_v33 }
 0x15f   :  { %v562_v14 = vrot.slane %v561_v36, 4  ;;  %v666_v63 = vadd.f32 %v665_v44, %v618_v28 }
 0x161   :  { %v563_v6 = vadd.f32 %v562_v14, %v561_v36  ;;  %v667_v2 = vrot.slane %v666_v63, 4 }
 0x163   :  { %v564_v51 = vrot.slane %v563_v6, 2  ;;  %v668_v8 = vadd.f32 %v667_v2, %v666_v63 }
 0x165   :  { %v565_v3 = vadd.f32 %v564_v51, %v563_v6  ;;  %v669_v47 = vrot.slane %v668_v8, 2 }
 0x167   :  { %v566_v18 = vrot.slane %v565_v3, 1  ;;  %v670_v59 = vadd.f32 %v669_v47, %v668_v8 }
 0x169   :  { %v567_v21 = vadd.f32 %v566_v18, %v565_v3  ;;  %v671_v31 = vrot.slane %v670_v59, 1 }
 0x16b   :  { %v1851_v23 = vmul.f32 0.0025510204, %v567_v21  ;;  %v672_v15 = vadd.f32 %v671_v31, %v670_v59 }
 0x16d   :  { %2687 = vst [vmem:[#allocation13_spill] sm:$0xff] %v1851_v23  ;;  %v673_v9 = vmul.f32 0.0025510204, %v672_v15  ;;  %v674_v27 = vmul.f32 %v1851_v23, %v1851_v23  ;;  %v677_v3 = vsub.f32 %v1511_v16, %v1851_v23  ;;  %v678_v36 = vsub.f32 %v1517_v20, %v1851_v23 }
 0x16e   :  { %v679_v14 = vsub.f32 %v1524_v24, %v1851_v23  ;;  %v680_v63 = vsub.f32 %v1533_v30, %v1851_v23  ;;  %v681_v6 = vsub.f32 %v1541_v38, %v1851_v23  ;;  %v682_v2 = vsub.f32 %v1547_v46, %v1851_v23 }
 0x16f   :  { %v675_v12 = vsub.f32 %v673_v9, %v674_v27  ;;  %v676_v9 = vsub.f32 %v1514_v19, %v1851_v23  ;;  %v683_v19 = vsub.f32 %v1555_v55, %v1851_v23  ;;  %v684_v16 = vsub.f32 %v1561_v0, %v1851_v23 }
 0x170   :  { %v685_v20 = vsub.f32 %v1569_v11, %v1851_v23  ;;  %v686_v24 = vsub.f32 %v1575_v25, %v1851_v23  ;;  %v687_v30 = vsub.f32 %v1584_v34, %v1851_v23  ;;  %v688_v38 = vsub.f32 %v1591_v42, %v1851_v23 }
 0x171   :  { %v725_v15 = vadd.f32 1e-05, %v675_v12  ;;  %v689_v46 = vsub.f32 %v1599_v50, %v1851_v23  ;;  %v690_v55 = vsub.f32 %v1605_v54, %v1851_v23  ;;  %v691_v0 = vsub.f32 %v1613_v17, %v1851_v23 }
 0x172   :  { %v692_v11 = vsub.f32 %v1619_v29, %v1851_v23  ;;  %v693_v25 = vsub.f32 %v1627_v40, %v1851_v23  ;;  %v694_v34 = vsub.f32 %v1633_v56, %v1851_v23  ;;  %v695_v42 = vsub.f32 %v1641_v58, %v1851_v23 }
 0x173   :  { %1297 = vrsqrt.f32 %v725_v15  ;;  %v696_v50 = vsub.f32 %v1647_v62, %v1851_v23  ;;  %v697_v54 = vsub.f32 %v1655_v48, %v1851_v23  ;;  %v698_v17 = vsub.f32 %v1661_v4, %v1851_v23 }
 0x174   :  { %v699_v29 = vsub.f32 %v1669_v22, %v1851_v23  ;;  %v700_v40 = vsub.f32 %v1678_v10, %v1851_v23  ;;  %v701_v56 = vsub.f32 %v1689_v39, %v1851_v23  ;;  %v702_v58 = vsub.f32 %v1685_v60, %v1851_v23 }
 0x175   :  { %v703_v62 = vsub.f32 %v1693_v32, %v1851_v23  ;;  %v704_v48 = vsub.f32 %v1702_v52, %v1851_v23  ;;  %v705_v4 = vsub.f32 %v1709_v35, %v1851_v23  ;;  %v706_v22 = vsub.f32 %v1716_v41, %v1851_v23 }
 0x176   :  { %v707_v10 = vsub.f32 %v1723_v45, %v1851_v23  ;;  %v708_v39 = vsub.f32 %v1730_v49, %v1851_v23  ;;  %v709_v60 = vsub.f32 %v1737_v53, %v1851_v23  ;;  %v710_v32 = vsub.f32 %v1744_v57, %v1851_v23  ;;  %v2688_v45 = vld [vmem:[#allocation2_spill] sm:$0xff]  ;;  %v2689_v49 = vld [vmem:[#allocation3_spill] sm:$0xff]  ;;  %v2690_v53 = vld [vmem:[#allocation4_spill] sm:$0xff] }
 0x177   :  { %v711_v52 = vsub.f32 %v1751_v61, %v1851_v23  ;;  %v712_v35 = vsub.f32 %v1758_v1, %v1851_v23  ;;  %v713_v41 = vsub.f32 %v1765_v5, %v1851_v23  ;;  %v714_v51 = vsub.f32 %v2688_v45, %v1851_v23  ;;  %v2691_v57 = vld [vmem:[#allocation5_spill] sm:$0xff]  ;;  %v2692_v61 = vld [vmem:[#allocation6_spill] sm:$0xff]  ;;  %v2693_v1 = vld [vmem:[#allocation7_spill] sm:$0xff] }
 0x178   :  { %v715_v8 = vsub.f32 %v2689_v49, %v1851_v23  ;;  %v716_v59 = vsub.f32 %v2690_v53, %v1851_v23  ;;  %v717_v21 = vsub.f32 %v2691_v57, %v1851_v23  ;;  %v718_v27 = vsub.f32 %v2692_v61, %v1851_v23 }
 0x179   :  { %v719_v12 = vsub.f32 %v2693_v1, %v1851_v23 }
 0x180   :  { %v1298_v18 = vpop.eup %1297 }
 0x181   :  { %v727_v5 = vmul.f32 %v1298_v18, %v676_v9  ;;  %v728_v15 = vmul.f32 %v1298_v18, %v677_v3  ;;  %v729_v31 = vmul.f32 %v1298_v18, %v678_v36  ;;  %v730_v45 = vmul.f32 %v1298_v18, %v679_v14 }
 0x182   :  { %v731_v47 = vmul.f32 %v1298_v18, %v680_v63  ;;  %v732_v44 = vmul.f32 %v1298_v18, %v681_v6  ;;  %v733_v49 = vmul.f32 %v1298_v18, %v682_v2  ;;  %v734_v28 = vmul.f32 %v1298_v18, %v683_v19 }
 0x183   :  { %v735_v43 = vmul.f32 %v1298_v18, %v684_v16  ;;  %v736_v33 = vmul.f32 %v1298_v18, %v685_v20  ;;  %v737_v53 = vmul.f32 %v1298_v18, %v686_v24  ;;  %v738_v13 = vmul.f32 %v1298_v18, %v687_v30 }
 0x184   :  { %v739_v7 = vmul.f32 %v1298_v18, %v688_v38  ;;  %v740_v57 = vmul.f32 %v1298_v18, %v689_v46  ;;  %v741_v37 = vmul.f32 %v1298_v18, %v690_v55  ;;  %v742_v26 = vmul.f32 %v1298_v18, %v691_v0 }
 0x185   :  { %v743_v61 = vmul.f32 %v1298_v18, %v692_v11  ;;  %v744_v1 = vmul.f32 %v1298_v18, %v693_v25  ;;  %v745_v23 = vmul.f32 %v1298_v18, %v694_v34  ;;  %v746_v9 = vmul.f32 %v1298_v18, %v695_v42 }
 0x186   :  { %v747_v3 = vmul.f32 %v1298_v18, %v696_v50  ;;  %v748_v36 = vmul.f32 %v1298_v18, %v697_v54  ;;  %v749_v14 = vmul.f32 %v1298_v18, %v698_v17  ;;  %v750_v63 = vmul.f32 %v1298_v18, %v699_v29 }
 0x187   :  { %v751_v6 = vmul.f32 %v1298_v18, %v700_v40  ;;  %v752_v2 = vmul.f32 %v1298_v18, %v701_v56  ;;  %v753_v19 = vmul.f32 %v1298_v18, %v702_v58  ;;  %v754_v16 = vmul.f32 %v1298_v18, %v703_v62  ;;  %v2694_v56 = vld [vmem:[#allocation8_spill] sm:$0xff]  ;;  %v2695_v58 = vld [vmem:[#allocation13_spill] sm:$0xff] }
 0x188   :  { %v755_v20 = vmul.f32 %v1298_v18, %v704_v48  ;;  %v756_v24 = vmul.f32 %v1298_v18, %v705_v4  ;;  %v757_v30 = vmul.f32 %v1298_v18, %v706_v22  ;;  %v758_v38 = vmul.f32 %v1298_v18, %v707_v10  ;;  %v2697_v4 = vld [vmem:[#allocation9_spill] sm:$0xff] }
 0x189   :  { %v759_v46 = vmul.f32 %v1298_v18, %v708_v39  ;;  %v760_v55 = vmul.f32 %v1298_v18, %v709_v60  ;;  %v761_v0 = vmul.f32 %v1298_v18, %v710_v32  ;;  %v762_v11 = vmul.f32 %v1298_v18, %v711_v52  ;;  %v2699_v39 = vld [vmem:[#allocation10_spill] sm:$0xff]  ;;  %v2701_v52 = vld [vmem:[#allocation11_spill] sm:$0xff] }
 0x18a   :  { %v763_v25 = vmul.f32 %v1298_v18, %v712_v35  ;;  %v764_v34 = vmul.f32 %v1298_v18, %v713_v41  ;;  %v765_v42 = vmul.f32 %v1298_v18, %v714_v51  ;;  %v766_v50 = vmul.f32 %v1298_v18, %v715_v8  ;;  %v2703_v51 = vld [vmem:[#allocation12_spill] sm:$0xff] }
 0x18b   :  { %v767_v54 = vmul.f32 %v1298_v18, %v716_v59  ;;  %v768_v17 = vmul.f32 %v1298_v18, %v717_v21  ;;  %v769_v29 = vmul.f32 %v1298_v18, %v718_v27  ;;  %v770_v40 = vmul.f32 %v1298_v18, %v719_v12  ;;  %v1136_v21 = vld [vmem:[%s2637_s2 + $0x1] ss:$0 sm:$0xff] }
 0x18c   :  { %v2696_v62 = vsub.f32 %v2694_v56, %v2695_v58  ;;  %v2698_v22 = vsub.f32 %v2697_v4, %v2695_v58  ;;  %v2700_v60 = vsub.f32 %v2699_v39, %v2695_v58  ;;  %v2702_v35 = vsub.f32 %v2701_v52, %v2695_v58 }
 0x18d   :  { %v2704_v8 = vsub.f32 %v2703_v51, %v2695_v58  ;;  %v781_v27 = vmul.f32 %v1136_v21, %v727_v5  ;;  %v782_v12 = vmul.f32 %v1136_v21, %v728_v15  ;;  %v783_v56 = vmul.f32 %v1136_v21, %v729_v31 }
 0x18e   :  { %v771_v48 = vmul.f32 %v1298_v18, %v2696_v62  ;;  %v772_v10 = vmul.f32 %v1298_v18, %v2698_v22  ;;  %v773_v32 = vmul.f32 %v1298_v18, %v2700_v60  ;;  %v774_v41 = vmul.f32 %v1298_v18, %v2702_v35 }
 0x18f   :  { %v775_v59 = vmul.f32 %v1298_v18, %v2704_v8  ;;  %v784_v62 = vmul.f32 %v1136_v21, %v730_v45  ;;  %v785_v4 = vmul.f32 %v1136_v21, %v731_v47  ;;  %v786_v22 = vmul.f32 %v1136_v21, %v732_v44 }
 0x190   :  { %v787_v39 = vmul.f32 %v1136_v21, %v733_v49  ;;  %v788_v60 = vmul.f32 %v1136_v21, %v734_v28  ;;  %v789_v52 = vmul.f32 %v1136_v21, %v735_v43  ;;  %v790_v35 = vmul.f32 %v1136_v21, %v736_v33 }
 0x191   :  { %v791_v51 = vmul.f32 %v1136_v21, %v737_v53  ;;  %v792_v58 = vmul.f32 %v1136_v21, %v738_v13  ;;  %v793_v8 = vmul.f32 %v1136_v21, %v739_v7  ;;  %v794_v18 = vmul.f32 %v1136_v21, %v740_v57 }
 0x192   :  { %v795_v5 = vmul.f32 %v1136_v21, %v741_v37  ;;  %v796_v15 = vmul.f32 %v1136_v21, %v742_v26  ;;  %v797_v31 = vmul.f32 %v1136_v21, %v743_v61  ;;  %v798_v45 = vmul.f32 %v1136_v21, %v744_v1 }
 0x193   :  { %v799_v47 = vmul.f32 %v1136_v21, %v745_v23  ;;  %v800_v44 = vmul.f32 %v1136_v21, %v746_v9  ;;  %v801_v49 = vmul.f32 %v1136_v21, %v747_v3  ;;  %v802_v28 = vmul.f32 %v1136_v21, %v748_v36 }
 0x194   :  { %v803_v43 = vmul.f32 %v1136_v21, %v749_v14  ;;  %v804_v33 = vmul.f32 %v1136_v21, %v750_v63  ;;  %v805_v53 = vmul.f32 %v1136_v21, %v751_v6  ;;  %v806_v13 = vmul.f32 %v1136_v21, %v752_v2  ;;  %v1974_v63 = vld [vmem:[%s2637_s2 + $0x2] ss:$0 sm:$0xff] }
 0x195   :  { %v807_v7 = vmul.f32 %v1136_v21, %v753_v19  ;;  %v808_v57 = vmul.f32 %v1136_v21, %v754_v16  ;;  %v809_v37 = vmul.f32 %v1136_v21, %v755_v20  ;;  %v810_v26 = vmul.f32 %v1136_v21, %v756_v24 }
 0x196   :  { %v811_v61 = vmul.f32 %v1136_v21, %v757_v30  ;;  %v812_v1 = vmul.f32 %v1136_v21, %v758_v38  ;;  %v813_v23 = vmul.f32 %v1136_v21, %v759_v46  ;;  %v814_v9 = vmul.f32 %v1136_v21, %v760_v55 }
 0x197   :  { %v815_v3 = vmul.f32 %v1136_v21, %v761_v0  ;;  %v816_v36 = vmul.f32 %v1136_v21, %v762_v11  ;;  %v817_v14 = vmul.f32 %v1136_v21, %v763_v25  ;;  %v818_v6 = vmul.f32 %v1136_v21, %v764_v34 }
 0x198   :  { %v819_v2 = vmul.f32 %v1136_v21, %v765_v42  ;;  %v820_v19 = vmul.f32 %v1136_v21, %v766_v50  ;;  %v821_v16 = vmul.f32 %v1136_v21, %v767_v54  ;;  %v822_v20 = vmul.f32 %v1136_v21, %v768_v17 }
 0x199   :  { %v823_v24 = vmul.f32 %v1136_v21, %v769_v29  ;;  %v824_v30 = vmul.f32 %v1136_v21, %v770_v40  ;;  %v825_v38 = vmul.f32 %v1136_v21, %v771_v48  ;;  %v826_v46 = vmul.f32 %v1136_v21, %v772_v10 }
 0x19a   :  { %v827_v55 = vmul.f32 %v1136_v21, %v773_v32  ;;  %v828_v0 = vmul.f32 %v1136_v21, %v774_v41  ;;  %v1976_v11 = vmul.f32 %v1136_v21, %v775_v59  ;;  %v1979_v25 = vadd.f32 %v1974_v63, %v781_v27 }
 0x19b   :  { %v1982_v34 = vadd.f32 %v1974_v63, %v782_v12  ;;  %v1985_v42 = vadd.f32 %v1974_v63, %v783_v56  ;;  %v1988_v50 = vadd.f32 %v1974_v63, %v784_v62  ;;  %v1991_v54 = vadd.f32 %v1974_v63, %v785_v4 }
 0x19c   :  { %v1994_v17 = vadd.f32 %v1974_v63, %v786_v22  ;;  %v1997_v29 = vadd.f32 %v1974_v63, %v787_v39  ;;  %v2000_v40 = vadd.f32 %v1974_v63, %v788_v60  ;;  %v2003_v48 = vadd.f32 %v1974_v63, %v789_v52 }
 0x19d   :  { %v2006_v10 = vadd.f32 %v1974_v63, %v790_v35  ;;  %v2009_v32 = vadd.f32 %v1974_v63, %v791_v51  ;;  %v2012_v41 = vadd.f32 %v1974_v63, %v792_v58  ;;  %v2015_v59 = vadd.f32 %v1974_v63, %v793_v8 }
 0x19e   :  { %v2018_v21 = vadd.f32 %v1974_v63, %v794_v18  ;;  %v2021_v27 = vadd.f32 %v1974_v63, %v795_v5  ;;  %v2024_v12 = vadd.f32 %v1974_v63, %v796_v15  ;;  %v2027_v56 = vadd.f32 %v1974_v63, %v797_v31 }
 0x19f   :  { %2705 = vst [vmem:[#allocation2_spill] sm:$0xff] %v2012_v41  ;;  %v2030_v62 = vadd.f32 %v1974_v63, %v798_v45  ;;  %v2033_v4 = vadd.f32 %v1974_v63, %v799_v47  ;;  %v2036_v22 = vadd.f32 %v1974_v63, %v800_v44  ;;  %v2039_v39 = vadd.f32 %v1974_v63, %v801_v49 }
 0x1a0   :  { %v2042_v60 = vadd.f32 %v1974_v63, %v802_v28  ;;  %v2045_v52 = vadd.f32 %v1974_v63, %v803_v43  ;;  %v2048_v35 = vadd.f32 %v1974_v63, %v804_v33  ;;  %v2051_v51 = vadd.f32 %v1974_v63, %v805_v53 }
 0x1a1   :  { %2706 = vst [vmem:[#allocation3_spill] sm:$0xff] %v2039_v39  ;;  %v2054_v58 = vadd.f32 %v1974_v63, %v806_v13  ;;  %v2057_v8 = vadd.f32 %v1974_v63, %v807_v7  ;;  %v2060_v18 = vadd.f32 %v1974_v63, %v808_v57  ;;  %v2063_v5 = vadd.f32 %v1974_v63, %v809_v37 }
 0x1a2   :  { %2707 = vst [vmem:[#allocation4_spill] sm:$0xff] %v2048_v35  ;;  %v2066_v15 = vadd.f32 %v1974_v63, %v810_v26  ;;  %v2069_v31 = vadd.f32 %v1974_v63, %v811_v61  ;;  %v2072_v45 = vadd.f32 %v1974_v63, %v812_v1  ;;  %v2075_v47 = vadd.f32 %v1974_v63, %v813_v23 }
 0x1a3   :  { %2708 = vst [vmem:[#allocation5_spill] sm:$0xff] %v2057_v8  ;;  %v2078_v44 = vadd.f32 %v1974_v63, %v814_v9  ;;  %v2081_v49 = vadd.f32 %v1974_v63, %v815_v3  ;;  %v2084_v28 = vadd.f32 %v1974_v63, %v816_v36  ;;  %v2087_v43 = vadd.f32 %v1974_v63, %v817_v14 }
 0x1a4   :  { %2709 = vst [vmem:[#allocation6_spill] sm:$0xff] %v2066_v15  ;;  %2710 = vst [vmem:[#allocation7_spill] sm:$0xff] %v2075_v47  ;;  %v2090_v33 = vadd.f32 %v1974_v63, %v818_v6  ;;  %v2093_v53 = vadd.f32 %v1974_v63, %v819_v2  ;;  %v2096_v13 = vadd.f32 %v1974_v63, %v820_v19  ;;  %vm884_vm4 = vcmp.gt.f32.partialorder %v1979_v25, 0.0 }
 0x1a5   :  { %2711 = vst [vmem:[#allocation8_spill] sm:$0xff] %v2084_v28  ;;  %v2099_v7 = vadd.f32 %v1974_v63, %v821_v16  ;;  %v2102_v57 = vadd.f32 %v1974_v63, %v822_v20  ;;  %v2105_v37 = vadd.f32 %v1974_v63, %v823_v24  ;;  %v2108_v26 = vadd.f32 %v1974_v63, %v824_v30 }
 0x1a6   :  { %2712 = vst [vmem:[#allocation13_spill] sm:$0xff] %v2090_v33  ;;  %2713 = vst [vmem:[#allocation9_spill] sm:$0xff] %v2093_v53  ;;  %v2111_v61 = vadd.f32 %v1974_v63, %v825_v38  ;;  %v2114_v1 = vadd.f32 %v1974_v63, %v826_v46  ;;  %v2117_v23 = vadd.f32 %v1974_v63, %v827_v55  ;;  %vm885_vm5 = vcmp.gt.f32.partialorder %v1982_v34, 0.0 }
 0x1a7   :  { %2714 = vst [vmem:[#allocation10_spill] sm:$0xff] %v2099_v7  ;;  %2715 = vst [vmem:[#allocation11_spill] sm:$0xff] %v2102_v57  ;;  %vm886_vm6 = vcmp.gt.f32.partialorder %v1985_v42, 0.0  ;;  %vm887_vm7 = vcmp.gt.f32.partialorder %v1988_v50, 0.0  ;;  %vm888_vm8 = vcmp.gt.f32.partialorder %v1991_v54, 0.0  ;;  %vm889_vm9 = vcmp.gt.f32.partialorder %v1994_v17, 0.0 }
 0x1a8   :  { %2716 = vst [vmem:[#allocation12_spill] sm:$0xff] %v2111_v61  ;;  %vm890_vm10 = vcmp.gt.f32.partialorder %v1997_v29, 0.0  ;;  %vm891_vm11 = vcmp.gt.f32.partialorder %v2000_v40, 0.0  ;;  %vm892_vm12 = vcmp.gt.f32.partialorder %v2003_v48, 0.0  ;;  %v2129_v9 = vadd.f32 %v1974_v63, %v828_v0 }
 0x1a9   :  { %vm893_vm13 = vcmp.gt.f32.partialorder %v2006_v10, 0.0  ;;  %v933_v3 = vmul.f32 0.2, %v1979_v25  ;;  %v934_v36 = vmul.f32 0.2, %v1982_v34  ;;  %v2137_v6 = vadd.f32 %v1974_v63, %v1976_v11 }
 0x1aa   :  { %v935_v14 = vmul.f32 0.2, %v1985_v42  ;;  %vm894_vm14 = vcmp.gt.f32.partialorder %v2009_v32, 0.0  ;;  %v936_v2 = vmul.f32 0.2, %v1988_v50  ;;  %vm895_vm15 = vcmp.gt.f32.partialorder %v2012_v41, 0.0 }
 0x1ab   :  { %v937_v19 = vmul.f32 0.2, %v1991_v54  ;;  %v938_v16 = vmul.f32 0.2, %v1994_v17  ;;  %v939_v20 = vmul.f32 0.2, %v1997_v29  ;;  %v982_v63 = vsel %vm884_vm4, %v1979_v25, %v933_v3 }
 0x1ac   :  { %v940_v24 = vmul.f32 0.2, %v2000_v40  ;;  %v2147_v30 = vmul.f32 0.2, %v2003_v48  ;;  %vm896_vm0 = vcmp.gt.f32.partialorder %v2015_v59, 0.0  ;;  %v983_v0 = vsel %vm885_vm5, %v1982_v34, %v934_v36  ;;  %1031 = vst [vmem:[%s2638_s3] sm:$0xff] %v982_v63 }
 0x1ad   :  { %v2154_v38 = vmul.f32 0.2, %v2006_v10  ;;  %v2157_v46 = vmul.f32 0.2, %v2009_v32  ;;  %v2160_v55 = vmul.f32 0.2, %v2012_v41  ;;  %v984_v41 = vsel %vm886_vm6, %v1985_v42, %v935_v14 }
 0x1ae   :  { %vm897_vm1 = vcmp.gt.f32.partialorder %v2018_v21, 0.0  ;;  %v2170_v11 = vmul.f32 0.2, %v2015_v59  ;;  %v2173_v25 = vmul.f32 0.2, %v2018_v21  ;;  %1032 = vst [vmem:[%s2638_s3 + $0x8] sm:$0xff] %v983_v0  ;;  %v985_v42 = vsel %vm887_vm7, %v1988_v50, %v936_v2 }
 0x1af   :  { %v2176_v3 = vmul.f32 0.2, %v2021_v27  ;;  %vm898_vm2 = vcmp.gt.f32.partialorder %v2021_v27, 0.0  ;;  %v2188_v34 = vmul.f32 0.2, %v2024_v12  ;;  %1033 = vst [vmem:[%s2638_s3 + $0x10] sm:$0xff] %v984_v41  ;;  %v986_v41 = vsel %vm888_vm8, %v1991_v54, %v937_v19 }
 0x1b0   :  { %v2191_v36 = vmul.f32 0.2, %v2027_v56  ;;  %v2194_v63 = vmul.f32 0.2, %v2030_v62  ;;  %vm901_vm5 = vcmp.gt.f32.partialorder %v2030_v62, 0.0  ;;  %1034 = vst [vmem:[%s2638_s3 + $0x18] sm:$0xff] %v985_v42  ;;  %v987_v19 = vsel %vm889_vm9, %v1994_v17, %v938_v16 }
 0x1b1   :  { %v2207_v14 = vmul.f32 0.2, %v2033_v4  ;;  %v2210_v0 = vmul.f32 0.2, %v2036_v22  ;;  %v2213_v50 = vmul.f32 0.2, %v2039_v39  ;;  %v988_v16 = vsel %vm890_vm10, %v1997_v29, %v939_v20 }
 0x1b2   :  { %vm905_vm7 = vcmp.gt.f32.partialorder %v2042_v60, 0.0  ;;  %v2226_v2 = vmul.f32 0.2, %v2042_v60  ;;  %v2229_v39 = vmul.f32 0.2, %v2045_v52  ;;  %1035 = vst [vmem:[%s2638_s3 + $0x20] sm:$0xff] %v986_v41  ;;  %v989_v20 = vsel %vm891_vm11, %v2000_v40, %v940_v24 }
 0x1b3   :  { %v2232_v54 = vmul.f32 0.2, %v2048_v35  ;;  %vm909_vm8 = vcmp.gt.f32.partialorder %v2054_v58, 0.0  ;;  %v2245_v42 = vmul.f32 0.2, %v2051_v51  ;;  %1036 = vst [vmem:[%s2638_s3 + $0x28] sm:$0xff] %v987_v19  ;;  %v990_v24 = vsel %vm892_vm12, %v2003_v48, %v2147_v30 }
 0x1b4   :  { %v2248_v35 = vmul.f32 0.2, %v2054_v58  ;;  %v2251_v17 = vmul.f32 0.2, %v2057_v8  ;;  %vm913_vm9 = vcmp.gt.f32.partialorder %v2066_v15, 0.0  ;;  %1037 = vst [vmem:[%s2638_s3 + $0x30] sm:$0xff] %v988_v16  ;;  %v991_v30 = vsel %vm893_vm13, %v2006_v10, %v2154_v38 }
 0x1b5   :  { %v2264_v41 = vmul.f32 0.2, %v2060_v18  ;;  %v2267_v8 = vmul.f32 0.2, %v2063_v5  ;;  %v2270_v29 = vmul.f32 0.2, %v2066_v15  ;;  %v992_v38 = vsel %vm894_vm14, %v2009_v32, %v2157_v46 }
 0x1b6   :  { %vm917_vm10 = vcmp.gt.f32.partialorder %v2078_v44, 0.0  ;;  %v2283_v19 = vmul.f32 0.2, %v2069_v31  ;;  %v2286_v15 = vmul.f32 0.2, %v2072_v45  ;;  %1038 = vst [vmem:[%s2638_s3 + $0x38] sm:$0xff] %v989_v20 }
 0x1b7   :  { %v2289_v40 = vmul.f32 0.2, %v2075_v47  ;;  %vm921_vm11 = vcmp.gt.f32.partialorder %v2090_v33, 0.0  ;;  %v2303_v16 = vmul.f32 0.2, %v2078_v44  ;;  %1039 = vst [vmem:[%s2638_s3 + $0x40] sm:$0xff] %v990_v24 }
 0x1b8   :  { %v2306_v47 = vmul.f32 0.2, %v2081_v49  ;;  %v2309_v48 = vmul.f32 0.2, %v2084_v28  ;;  %vm925_vm12 = vcmp.gt.f32.partialorder %v2102_v57, 0.0  ;;  %1040 = vst [vmem:[%s2638_s3 + $0x48] sm:$0xff] %v991_v30 }
 0x1b9   :  { %v2323_v20 = vmul.f32 0.2, %v2087_v43  ;;  %v2326_v28 = vmul.f32 0.2, %v2090_v33  ;;  %v2329_v10 = vmul.f32 0.2, %v2093_v53 }
 0x1ba   :  { %vm929_vm13 = vcmp.gt.f32.partialorder %v2114_v1, 0.0  ;;  %vm930_vm3 = vcmp.gt.f32.partialorder %v2117_v23, 0.0  ;;  %vm931_vm4 = vcmp.gt.f32.partialorder %v2129_v9, 0.0  ;;  %vm932_vm6 = vcmp.gt.f32.partialorder %v2137_v6, 0.0  ;;  %v2718_v32 = vld [vmem:[#allocation2_spill] sm:$0xff]  ;;  %1041 = vst [vmem:[%s2638_s3 + $0x50] sm:$0xff] %v992_v38 }
 0x1bb   :  { %2717 = vst [vmem:[#allocation14_spill] sm:$0xff] %v2329_v10  ;;  %v972_v24 = vmul.f32 0.2, %v2096_v13  ;;  %v973_v53 = vmul.f32 0.2, %v2099_v7  ;;  %v993_v46 = vsel %vm895_vm15, %v2718_v32, %v2160_v55  ;;  %vm2719_vm14 = vcmp.gt.f32.partialorder %v2024_v12, 0.0 }
 0x1bc   :  { %v2345_v10 = vmul.f32 0.2, %v2102_v57  ;;  %v2355_v30 = vmul.f32 0.2, %v2105_v37  ;;  %v2358_v33 = vmul.f32 0.2, %v2108_v26  ;;  %v994_v57 = vsel %vm896_vm0, %v2015_v59, %v2170_v11 }
 0x1bd   :  { %v2361_v7 = vmul.f32 0.2, %v2111_v61  ;;  %1042 = vst [vmem:[%s2638_s3 + $0x58] sm:$0xff] %v993_v46  ;;  %v2371_v55 = vmul.f32 0.2, %v2114_v1  ;;  %v995_v61 = vsel %vm897_vm1, %v2018_v21, %v2173_v25  ;;  %1043 = vst [vmem:[%s2638_s3 + $0x60] sm:$0xff] %v994_v57  ;;  %v996_v11 = vsel %vm898_vm2, %v2021_v27, %v2176_v3 }
 0x1be   :  { %v2374_v38 = vmul.f32 0.2, %v2117_v23  ;;  %v2377_v32 = vmul.f32 0.2, %v2129_v9  ;;  %v2387_v59 = vmul.f32 0.2, %v2137_v6  ;;  %v997_v46 = vsel %vm2719_vm14, %v2024_v12, %v2188_v34 }
 0x1bf   :  { %vm2720_vm15 = vcmp.gt.f32.partialorder %v2027_v56, 0.0  ;;  %1044 = vst [vmem:[%s2638_s3 + $0x68] sm:$0xff] %v995_v61  ;;  %v999_v57 = vsel %vm901_vm5, %v2030_v62, %v2194_v63  ;;  %vm2721_vm0 = vcmp.gt.f32.partialorder %v2033_v4, 0.0  ;;  %vm2722_vm1 = vcmp.gt.f32.partialorder %v2036_v22, 0.0  ;;  %1045 = vst [vmem:[%s2638_s3 + $0x70] sm:$0xff] %v996_v11 }
 0x1c0   :  { %v998_v21 = vsel %vm2720_vm15, %v2027_v56, %v2191_v36  ;;  %v1000_v27 = vsel %vm2721_vm0, %v2033_v4, %v2207_v14  ;;  %v1001_v12 = vsel %vm2722_vm1, %v2036_v22, %v2210_v0  ;;  %v2723_v56 = vld [vmem:[#allocation3_spill] sm:$0xff]  ;;  %1046 = vst [vmem:[%s2638_s3 + $0x78] sm:$0xff] %v997_v46  ;;  %v1003_v62 = vsel %vm905_vm7, %v2042_v60, %v2226_v2  ;;  %v2726_v22 = vld [vmem:[#allocation4_spill] sm:$0xff]  ;;  %v2729_v60 = vld [vmem:[#allocation5_spill] sm:$0xff] }
 0x1c1   :  { %vm2724_vm2 = vcmp.gt.f32.partialorder %v2723_v56, 0.0  ;;  %1047 = vst [vmem:[%s2638_s3 + $0x80] sm:$0xff] %v998_v21  ;;  %vm2725_vm5 = vcmp.gt.f32.partialorder %v2045_v52, 0.0  ;;  %vm2727_vm14 = vcmp.gt.f32.partialorder %v2726_v22, 0.0  ;;  %vm2728_vm15 = vcmp.gt.f32.partialorder %v2051_v51, 0.0  ;;  %1048 = vst [vmem:[%s2638_s3 + $0x88] sm:$0xff] %v999_v57 }
 0x1c2   :  { %v1002_v61 = vsel %vm2724_vm2, %v2723_v56, %v2213_v50  ;;  %v1004_v4 = vsel %vm2725_vm5, %v2045_v52, %v2229_v39  ;;  %v1005_v25 = vsel %vm2727_vm14, %v2726_v22, %v2232_v54  ;;  %v1006_v3 = vsel %vm2728_vm15, %v2051_v51, %v2245_v42  ;;  %1049 = vst [vmem:[%s2638_s3 + $0x90] sm:$0xff] %v1000_v27  ;;  %v2747_v2 = vld [vmem:[#allocation10_spill] sm:$0xff] }
 0x1c3   :  { %1050 = vst [vmem:[%s2638_s3 + $0x98] sm:$0xff] %v1001_v12  ;;  %1051 = vst [vmem:[%s2638_s3 + $0xa0] sm:$0xff] %v1002_v61  ;;  %v1007_v39 = vsel %vm909_vm8, %v2054_v58, %v2248_v35  ;;  %vm2730_vm7 = vcmp.gt.f32.partialorder %v2729_v60, 0.0  ;;  %vm2731_vm0 = vcmp.gt.f32.partialorder %v2060_v18, 0.0  ;;  %vm2732_vm1 = vcmp.gt.f32.partialorder %v2063_v5, 0.0  ;;  %v2733_v35 = vld [vmem:[#allocation6_spill] sm:$0xff] }
 0x1c4   :  { %v1008_v52 = vsel %vm2730_vm7, %v2729_v60, %v2251_v17  ;;  %v1009_v51 = vsel %vm2731_vm0, %v2060_v18, %v2264_v41  ;;  %v1010_v34 = vsel %vm2732_vm1, %v2063_v5, %v2267_v8  ;;  %1052 = vst [vmem:[%s2638_s3 + $0xa8] sm:$0xff] %v1003_v62  ;;  %1053 = vst [vmem:[%s2638_s3 + $0xb0] sm:$0xff] %v1004_v4  ;;  %vm2734_vm8 = vcmp.gt.f32.partialorder %v2069_v31, 0.0  ;;  %v2736_v5 = vld [vmem:[#allocation7_spill] sm:$0xff]  ;;  %v2752_v17 = vld [vmem:[#allocation12_spill] sm:$0xff] }
 0x1c5   :  { %1054 = vst [vmem:[%s2638_s3 + $0xb8] sm:$0xff] %v1005_v25  ;;  %1055 = vst [vmem:[%s2638_s3 + $0xc0] sm:$0xff] %v1006_v3  ;;  %v1011_v58 = vsel %vm913_vm9, %v2733_v35, %v2270_v29  ;;  %v1012_v8 = vsel %vm2734_vm8, %v2069_v31, %v2283_v19  ;;  %vm2735_vm2 = vcmp.gt.f32.partialorder %v2072_v45, 0.0  ;;  %vm2737_vm5 = vcmp.gt.f32.partialorder %v2736_v5, 0.0 }
 0x1c6   :  { %v1013_v18 = vsel %vm2735_vm2, %v2072_v45, %v2286_v15  ;;  %v1014_v36 = vsel %vm2737_vm5, %v2736_v5, %v2289_v40  ;;  %1056 = vst [vmem:[%s2638_s3 + $0xc8] sm:$0xff] %v1007_v39  ;;  %1057 = vst [vmem:[%s2638_s3 + $0xd0] sm:$0xff] %v1008_v52  ;;  %v1015_v15 = vsel %vm917_vm10, %v2078_v44, %v2303_v16  ;;  %vm2738_vm9 = vcmp.gt.f32.partialorder %v2081_v49, 0.0  ;;  %v2739_v45 = vld [vmem:[#allocation8_spill] sm:$0xff] }
 0x1c7   :  { %1058 = vst [vmem:[%s2638_s3 + $0xd8] sm:$0xff] %v1009_v51  ;;  %1059 = vst [vmem:[%s2638_s3 + $0xe0] sm:$0xff] %v1010_v34  ;;  %v1016_v31 = vsel %vm2738_vm9, %v2081_v49, %v2306_v47  ;;  %vm2740_vm14 = vcmp.gt.f32.partialorder %v2739_v45, 0.0  ;;  %vm2741_vm15 = vcmp.gt.f32.partialorder %v2087_v43, 0.0  ;;  %v2742_v47 = vld [vmem:[#allocation13_spill] sm:$0xff]  ;;  %v2743_v49 = vld [vmem:[#allocation14_spill] sm:$0xff] }
 0x1c8   :  { %v1017_v63 = vsel %vm2740_vm14, %v2739_v45, %v2309_v48  ;;  %v1018_v14 = vsel %vm2741_vm15, %v2087_v43, %v2323_v20  ;;  %1060 = vst [vmem:[%s2638_s3 + $0xe8] sm:$0xff] %v1011_v58  ;;  %1061 = vst [vmem:[%s2638_s3 + $0xf0] sm:$0xff] %v1012_v8  ;;  %v1019_v44 = vsel %vm921_vm11, %v2742_v47, %v2326_v28  ;;  %v2744_v43 = vld [vmem:[#allocation9_spill] sm:$0xff]  ;;  %vm2746_vm7 = vcmp.gt.f32.partialorder %v2096_v13, 0.0  ;;  %v2749_v28 = vld [vmem:[#allocation11_spill] sm:$0xff] }
 0x1c9   :  { %1062 = vst [vmem:[%s2638_s3 + $0xf8] sm:$0xff] %v1013_v18  ;;  %1063 = vst [vmem:[%s2638_s3 + $0x100] sm:$0xff] %v1014_v36  ;;  %vm2745_vm10 = vcmp.gt.f32.partialorder %v2744_v43, 0.0  ;;  %v1021_v50 = vsel %vm2746_vm7, %v2096_v13, %v972_v24  ;;  %vm2748_vm0 = vcmp.gt.f32.partialorder %v2747_v2, 0.0  ;;  %vm2750_vm11 = vcmp.gt.f32.partialorder %v2105_v37, 0.0 }
 0x1ca   :  { %v1020_v0 = vsel %vm2745_vm10, %v2744_v43, %v2743_v49  ;;  %v1022_v54 = vsel %vm2748_vm0, %v2747_v2, %v973_v53  ;;  %1064 = vst [vmem:[%s2638_s3 + $0x108] sm:$0xff] %v1015_v15  ;;  %1065 = vst [vmem:[%s2638_s3 + $0x110] sm:$0xff] %v1016_v31  ;;  %v1023_v53 = vsel %vm925_vm12, %v2749_v28, %v2345_v10  ;;  %vm2751_vm1 = vcmp.gt.f32.partialorder %v2108_v26, 0.0 }
 0x1cb   :  { %1066 = vst [vmem:[%s2638_s3 + $0x118] sm:$0xff] %v1017_v63  ;;  %1067 = vst [vmem:[%s2638_s3 + $0x120] sm:$0xff] %v1018_v14  ;;  %v1024_v13 = vsel %vm2750_vm11, %v2105_v37, %v2355_v30  ;;  %v1025_v42 = vsel %vm2751_vm1, %v2108_v26, %v2358_v33  ;;  %vm2753_vm8 = vcmp.gt.f32.partialorder %v2752_v17, 0.0  ;;  %v1027_v33 = vsel %vm929_vm13, %v2114_v1, %v2371_v55 }
 0x1cc   :  { %v1026_v41 = vsel %vm2753_vm8, %v2752_v17, %v2361_v7  ;;  %1068 = vst [vmem:[%s2638_s3 + $0x128] sm:$0xff] %v1019_v44  ;;  %1069 = vst [vmem:[%s2638_s3 + $0x130] sm:$0xff] %v1020_v0  ;;  %v1028_v7 = vsel %vm930_vm3, %v2117_v23, %v2374_v38  ;;  %v1029_v37 = vsel %vm931_vm4, %v2129_v9, %v2377_v32 }
 0x1cd   :  { %1070 = vst [vmem:[%s2638_s3 + $0x138] sm:$0xff] %v1021_v50  ;;  %1071 = vst [vmem:[%s2638_s3 + $0x140] sm:$0xff] %v1022_v54  ;;  %v1030_v26 = vsel %vm932_vm6, %v2137_v6, %v2387_v59 }
 0x1ce   :  { %1072 = vst [vmem:[%s2638_s3 + $0x148] sm:$0xff] %v1023_v53  ;;  %1073 = vst [vmem:[%s2638_s3 + $0x150] sm:$0xff] %v1024_v13 }
 0x1cf   :  { %1074 = vst [vmem:[%s2638_s3 + $0x158] sm:$0xff] %v1025_v42  ;;  %1075 = vst [vmem:[%s2638_s3 + $0x160] sm:$0xff] %v1026_v41 }
 0x1d0   :  { %1076 = vst [vmem:[%s2638_s3 + $0x168] sm:$0xff] %v1027_v33  ;;  %1077 = vst [vmem:[%s2638_s3 + $0x170] sm:$0xff] %v1028_v7 }
 0x1d1   :  { %1078 = vst [vmem:[%s2638_s3 + $0x178] sm:$0xff] %v1029_v37  ;;  %1079 = vst [vmem:[%s2638_s3 + $0x180] sm:$0xff] %v1030_v26 }

// kernel: vae_forward.7
= control target key start
LH: loop header
LB: loop body
LE: loop exit
PB: predicated region body
PF: predicated region fallthrough
CT: control target
= control target key end

     0   :  { %v535_v0 = vmov 0   ;;  %vm165_vm0 = vcmask 130048   ;;  %vm286_vm1 = vcmask 1041408   ;;  %s762_s1 = inlined_call_operand.vmem [shape: bf16[144,128], index: 1, kind: input, shape index: {}]   ;;  %s763_s0 = inlined_call_operand.vmem [shape: bf16[98,144], index: 0, kind: input, shape index: {}]   ;;  %s764_s2 = inlined_call_operand.vmem [shape: f32[3,128], index: 2, kind: input, shape index: {}]   ;;  %s765_s3 = inlined_call_operand.vmem [shape: f32[98,128], index: 3, kind: output, shape index: {}]  }
   0x1   :  { %187 = vmatprep.subr.bf16.mxu0 %v535_v0  ;;  %v504_v1 = vld [vmem:[%s762_s1 + $0x38] sm:$0xff]   ;;  %485 = vmatprep.subr.bf16.mxu1 %v535_v0  ;;  %v505_v2 = vld [vmem:[%s762_s1 + $0x30] sm:$0xff]   ;;  %v506_v3 = vld [vmem:[%s762_s1 + $0x28] sm:$0xff]  }
   0x2   :  { %188 = vmatpush1.bf16.msra.mxu0 %v504_v1  ;;  %494 = vmatpush1.bf16.msra.mxu1 %v504_v1  ;;  %v507_v4 = vld [vmem:[%s762_s1 + $0x20] sm:$0xff]   ;;  %v508_v7 = vld [vmem:[%s762_s1 + $0x18] sm:$0xff]   ;;  %v509_v8 = vld [vmem:[%s762_s1 + $0x10] sm:$0xff]  }
   0x3   :  { %189 = vmatprep.subr.bf16.mxu0 %v535_v0  ;;  %486 = vmatprep.subr.bf16.mxu1 %v535_v0  ;;  %v515_v5 = vld [vmem:[%s763_s0 + $0x4] ss:$8 sps:$4 sm:$0xff]   ;;  %v513_v12 = vld [vmem:[%s763_s0] ss:$8 sps:$4 sm:$0xff]   ;;  %v516_v14 = vld [vmem:[%s763_s0 + $0x14] ss:$8 sps:$4 sm:$0xff]  }
   0x4   :  { %476 = vmatprep.mubr.msk.bf16.mxu0 %vm165_vm0, %v515_v5  ;;  %v521_v6 = vld [vmem:[%s763_s0 + $0x44] ss:$8 sps:$4 sm:$0xff]   ;;  %v519_v13 = vld [vmem:[%s763_s0 + $0x40] ss:$8 sps:$4 sm:$0xff]   ;;  %v525_v15 = vld [vmem:[%s763_s0 + $0x54] ss:$8 sps:$4 sm:$0xff]  }
   0x5   :  { %480 = vmatprep.mubr.msk.bf16.mxu1 %vm165_vm0, %v521_v6  ;;  %v510_v9 = vld [vmem:[%s762_s1 + $0x8] sm:$0xff]   ;;  %v511_v10 = vld [vmem:[%s762_s1] sm:$0xff]   ;;  %v518_v17 = vld [vmem:[%s763_s0 + $0x10] ss:$8 sps:$4 sm:$0xff]  }
   0x6   :  { %190 = vmatpush1.bf16.msra.mxu0 %v505_v2  ;;  %495 = vmatpush1.bf16.msra.mxu1 %v505_v2  ;;  %v512_v11 = vld [vmem:[%s762_s1 + $0x40] sm:$0xff]   ;;  %v529_v18 = vld [vmem:[%s763_s0 + $0x50] ss:$8 sps:$4 sm:$0xff]   ;;  %v527_v23 = vld [vmem:[%s763_s0 + $0x34] ss:$8 sps:$4 sm:$0xff]  }
   0x7   :  { %191 = vmatprep.subr.bf16.mxu0 %v535_v0  ;;  %487 = vmatprep.subr.bf16.mxu1 %v535_v0  ;;  %v27_v16 = vld [vmem:[%s763_s0 + $0x60] sm:$0x11]  ;;  %v530_v24 = vld [vmem:[%s763_s0 + $0x30] ss:$8 sps:$4 sm:$0xff]  }
   0x8   :  { %v522_v19 = vld [vmem:[%s763_s0 + $0x24] ss:$8 sps:$4 sm:$0xff]   ;;  %v466_v20 = vcombine.high %v27_v16, %v27_v16  ;;  %v524_v21 = vld [vmem:[%s763_s0 + $0x20] ss:$8 sps:$4 sm:$0xff]   ;;  %v465_v22 = vcombine.low %v27_v16, %v27_v16 }
   0x9   :  { %v452_v37 = vld [vmem:[%s764_s2] ss:$0 sm:$0xff] }
   0xa   :  { %192 = vmatpush1.bf16.msra.mxu0 %v506_v3  ;;  %496 = vmatpush1.bf16.msra.mxu1 %v506_v3 }
   0xb   :  { %193 = vmatprep.subr.bf16.mxu0 %v535_v0  ;;  %488 = vmatprep.subr.bf16.mxu1 %v535_v0 }
   0xe   :  { %194 = vmatpush1.bf16.msra.mxu0 %v507_v4  ;;  %497 = vmatpush1.bf16.msra.mxu1 %v507_v4 }
   0xf   :  { %195 = vmatprep.subr.bf16.mxu0 %v535_v0  ;;  %489 = vmatprep.subr.bf16.mxu1 %v535_v0 }
  0x12   :  { %196 = vmatpush1.bf16.msra.mxu0 %v508_v7  ;;  %498 = vmatpush1.bf16.msra.mxu1 %v508_v7 }
  0x13   :  { %197 = vmatprep.subr.bf16.mxu0 %v535_v0  ;;  %490 = vmatprep.subr.bf16.mxu1 %v535_v0 }
  0x16   :  { %198 = vmatpush1.bf16.msra.mxu0 %v509_v8  ;;  %499 = vmatpush1.bf16.msra.mxu1 %v509_v8 }
  0x17   :  { %199 = vmatprep.subr.bf16.mxu0 %v535_v0  ;;  %491 = vmatprep.subr.bf16.mxu1 %v535_v0 }
  0x1a   :  { %200 = vmatpush1.bf16.msra.mxu0 %v510_v9  ;;  %500 = vmatpush1.bf16.msra.mxu1 %v510_v9 }
  0x1b   :  { %201 = vmatprep.subr.bf16.mxu0 %v535_v0  ;;  %492 = vmatprep.subr.bf16.mxu1 %v535_v0 }
  0x1e   :  { %202 = vmatpush1.bf16.msra.mxu0 %v511_v10  ;;  %501 = vmatpush1.bf16.msra.mxu1 %v511_v10 }
  0x1f   :  { %217 = vmatprep.subr.bf16.mxu0 %v535_v0  ;;  %493 = vmatprep.subr.bf16.mxu1 %v535_v0 }
  0x22   :  { %218 = vmatpush2.bf16.msra.mxu0 %v512_v11  ;;  %502 = vmatpush2.bf16.msra.mxu1 %v512_v11 }
  0x25   :  { %220 = vmatmul.mubr.bf16.vlgmr.msra.gmra.mxu0 %v513_v12  ;;  %252 = vmatmul.mubr.bf16.vlgmr.msra.gmra.mxu1 %v519_v13 }
  0x26   :  { %477 = vmatprep.mubr.msk.bf16.mxu0 %vm165_vm0, %v516_v14  ;;  %481 = vmatprep.mubr.msk.bf16.mxu1 %vm165_vm0, %v525_v15 }
  0x2d   :  { %228 = vmatmul.mubr.bf16.gmra.mxu0 %v518_v17  ;;  %260 = vmatmul.mubr.bf16.gmra.mxu1 %v529_v18 }
  0x2e   :  { %478 = vmatprep.mubr.msk.bf16.mxu0 %vm165_vm0, %v522_v19  ;;  %482 = vmatprep.mubr.msk.bf16.mxu1 %vm165_vm0, %v466_v20 }
  0x35   :  { %236 = vmatmul.mubr.bf16.gmra.mxu0 %v524_v21  ;;  %268 = vmatmul.mubr.bf16.gmra.mxu1 %v465_v22 }
  0x36   :  { %479 = vmatprep.mubr.msk.bf16.mxu0 %vm165_vm0, %v527_v23 }
  0x3d   :  { %244 = vmatmul.mubr.bf16.gmra.mxu0 %v530_v24 }
  0xe5   :  { %v221_v25 = vpop.f32.mrf.mxu0  ;;  %v253_v26 = vpop.f32.mrf.mxu1 }
  0xe6   :  { %v634_v43 = vadd.f32 %v452_v37, %v221_v25  ;;  %v666_v12 = vadd.f32 %v452_v37, %v253_v26 }
  0xe7   :  { %v223_v27 = vpop.f32.mrf.mxu0  ;;  %v255_v28 = vpop.f32.mrf.mxu1 }
  0xe8   :  { %v297_v51 = vmul.f32 %v634_v43, %v634_v43  ;;  %v305_v22 = vmul.f32 %v666_v12, %v666_v12 }
  0xe9   :  { %v224_v29 = vpop.f32.mrf.mxu0  ;;  %v256_v30 = vpop.f32.mrf.mxu1 }
  0xea   :  { %v632_v40 = vadd.f32 %v452_v37, %v224_v29  ;;  %v671_v17 = vadd.f32 %v452_v37, %v256_v30 }
  0xeb   :  { %v226_v31 = vpop.f32.mrf.mxu0  ;;  %v258_v32 = vpop.f32.mrf.mxu1 }
  0xec   :  { %v298_v47 = vmul.f32 %v632_v40, %v632_v40  ;;  %v275_v52 = vadd.f32 %v632_v40, %v634_v43  ;;  %v306_v26 = vmul.f32 %v671_v17, %v671_v17 }
  0xed   :  { %v229_v33 = vpop.f32.mrf.mxu0  ;;  %v261_v34 = vpop.f32.mrf.mxu1 }
  0xee   :  { %v636_v44 = vadd.f32 %v452_v37, %v229_v33  ;;  %v310_v57 = vadd.f32 %v298_v47, %v297_v51  ;;  %v680_v23 = vadd.f32 %v452_v37, %v261_v34 }
  0xef   :  { %v231_v35 = vpop.f32.mrf.mxu0  ;;  %v263_v36 = vpop.f32.mrf.mxu1 }
  0xf0   :  { %v299_v53 = vmul.f32 %v636_v44, %v636_v44  ;;  %v276_v58 = vadd.f32 %v275_v52, %v636_v44  ;;  %v307_v31 = vmul.f32 %v680_v23, %v680_v23 }
  0xf1   :  { %v232_v38 = vpop.f32.mrf.mxu0  ;;  %v264_v39 = vpop.f32.mrf.mxu1 }
  0xf2   :  { %v640_v48 = vadd.f32 %v452_v37, %v232_v38  ;;  %v311_v63 = vadd.f32 %v310_v57, %v299_v53  ;;  %v265_v27 = vadd.f32 %v452_v37, %v264_v39 }
  0xf3   :  { %v234_v41 = vpop.f32.mrf.mxu0  ;;  %v266_v42 = vpop.f32.mrf.mxu1 }
  0xf4   :  { %v300_v59 = vmul.f32 %v640_v48, %v640_v48  ;;  %v277_v0 = vadd.f32 %v276_v58, %v640_v48  ;;  %v308_v35 = vmul.f32 %v265_v27, %v265_v27 }
  0xf5   :  { %v237_v45 = vpop.f32.mrf.mxu0  ;;  %v269_v46 = vpop.f32.mrf.mxu1 }
  0xf6   :  { %v648_v54 = vadd.f32 %v452_v37, %v237_v45  ;;  %v312_v3 = vadd.f32 %v311_v63, %v300_v59  ;;  %v676_v21 = vadd.f32 %v452_v37, %v269_v46 }
  0xf7   :  { %v239_v49 = vpop.f32.mrf.mxu0  ;;  %v271_v50 = vpop.f32.mrf.mxu1 }
  0xf8   :  { %v301_v1 = vmul.f32 %v648_v54, %v648_v54  ;;  %v278_v4 = vadd.f32 %v277_v0, %v648_v54  ;;  %v309_v30 = vmul.f32 %v676_v21, %v676_v21  ;;  %v287_v34 = vsel %vm286_vm1, %v676_v21, 0.0 }
  0xf9   :  { %v240_v55 = vpop.f32.mrf.mxu0  ;;  %v272_v56 = vpop.f32.mrf.mxu1 }
  0xfa   :  { %v653_v60 = vadd.f32 %v452_v37, %v240_v55  ;;  %v313_v8 = vadd.f32 %v312_v3, %v301_v1  ;;  %v321_v41 = vsel %vm286_vm1, %v309_v30, 0.0 }
  0xfb   :  { %v242_v61 = vpop.f32.mrf.mxu0  ;;  %v273_v62 = vpop.f32.mrf.mxu1 }
  0xfc   :  { %v302_v5 = vmul.f32 %v653_v60, %v653_v60  ;;  %v279_v9 = vadd.f32 %v278_v4, %v653_v60 }
  0xfd   :  { %v245_v2 = vpop.f32.mrf.mxu0 }
  0xfe   :  { %v661_v6 = vadd.f32 %v452_v37, %v245_v2  ;;  %v314_v13 = vadd.f32 %v313_v8, %v302_v5 }
  0xff   :  { %v247_v7 = vpop.f32.mrf.mxu0 }
 0x100   :  { %v303_v10 = vmul.f32 %v661_v6, %v661_v6  ;;  %v280_v14 = vadd.f32 %v279_v9, %v661_v6 }
 0x101   :  { %v248_v11 = vpop.f32.mrf.mxu0 }
 0x102   :  { %v669_v15 = vadd.f32 %v452_v37, %v248_v11  ;;  %v315_v18 = vadd.f32 %v314_v13, %v303_v10 }
 0x103   :  { %v250_v16 = vpop.f32.mrf.mxu0 }
 0x104   :  { %v281_v19 = vadd.f32 %v280_v14, %v669_v15  ;;  %v304_v20 = vmul.f32 %v669_v15, %v669_v15 }
 0x106   :  { %v282_v24 = vadd.f32 %v281_v19, %v666_v12  ;;  %v316_v25 = vadd.f32 %v315_v18, %v304_v20 }
 0x108   :  { %v283_v28 = vadd.f32 %v282_v24, %v671_v17  ;;  %v317_v29 = vadd.f32 %v316_v25, %v305_v22 }
 0x10a   :  { %v318_v32 = vadd.f32 %v317_v29, %v306_v26  ;;  %v284_v33 = vadd.f32 %v283_v28, %v680_v23 }
 0x10c   :  { %v285_v36 = vadd.f32 %v284_v33, %v265_v27  ;;  %v319_v38 = vadd.f32 %v318_v32, %v307_v31 }
 0x10e   :  { %v288_v42 = vadd.f32 %v287_v34, %v285_v36  ;;  %v320_v37 = vadd.f32 %v319_v38, %v308_v35 }
 0x110   :  { %v289_v39 = vrot.slane %v288_v42, 4  ;;  %v322_v45 = vadd.f32 %v321_v41, %v320_v37 }
 0x112   :  { %v290_v46 = vadd.f32 %v289_v39, %v288_v42  ;;  %v323_v47 = vrot.slane %v322_v45, 4 }
 0x114   :  { %v291_v49 = vrot.slane %v290_v46, 2  ;;  %v324_v50 = vadd.f32 %v323_v47, %v322_v45 }
 0x116   :  { %v292_v51 = vadd.f32 %v291_v49, %v290_v46  ;;  %v325_v52 = vrot.slane %v324_v50, 2 }
 0x118   :  { %v293_v53 = vrot.slane %v292_v51, 1  ;;  %v326_v55 = vadd.f32 %v325_v52, %v324_v50 }
 0x11a   :  { %v294_v56 = vadd.f32 %v293_v53, %v292_v51  ;;  %v327_v57 = vrot.slane %v326_v55, 1 }
 0x11c   :  { %v296_v58 = vmul.f32 0.010204081, %v294_v56  ;;  %v328_v59 = vadd.f32 %v327_v57, %v326_v55 }
 0x11e   :  { %v329_v61 = vmul.f32 0.010204081, %v328_v59  ;;  %v330_v62 = vmul.f32 %v296_v58, %v296_v58  ;;  %v332_v1 = vsub.f32 %v634_v43, %v296_v58  ;;  %v333_v2 = vsub.f32 %v632_v40, %v296_v58 }
 0x11f   :  { %v334_v3 = vsub.f32 %v636_v44, %v296_v58  ;;  %v335_v4 = vsub.f32 %v640_v48, %v296_v58  ;;  %v336_v5 = vsub.f32 %v648_v54, %v296_v58  ;;  %v337_v7 = vsub.f32 %v653_v60, %v296_v58  ;;  %v483_v48 = vld [vmem:[%s764_s2 + $0x1] ss:$0 sm:$0xff] }
 0x120   :  { %v331_v63 = vsub.f32 %v329_v61, %v330_v62  ;;  %v338_v8 = vsub.f32 %v661_v6, %v296_v58  ;;  %v339_v9 = vsub.f32 %v669_v15, %v296_v58  ;;  %v340_v10 = vsub.f32 %v666_v12, %v296_v58 }
 0x121   :  { %v341_v13 = vsub.f32 %v671_v17, %v296_v58  ;;  %v342_v43 = vsub.f32 %v680_v23, %v296_v58  ;;  %v343_v40 = vsub.f32 %v265_v27, %v296_v58  ;;  %v344_v44 = vsub.f32 %v676_v21, %v296_v58  ;;  %v484_v21 = vld [vmem:[%s764_s2 + $0x2] ss:$0 sm:$0xff] }
 0x122   :  { %v345_v0 = vadd.f32 1e-05, %v331_v63 }
 0x124   :  { %533 = vrsqrt.f32 %v345_v0 }
 0x131   :  { %v534_v11 = vpop.eup %533 }
 0x132   :  { %v347_v54 = vmul.f32 %v534_v11, %v332_v1  ;;  %v348_v60 = vmul.f32 %v534_v11, %v333_v2  ;;  %v349_v14 = vmul.f32 %v534_v11, %v334_v3  ;;  %v350_v6 = vmul.f32 %v534_v11, %v335_v4 }
 0x133   :  { %v351_v16 = vmul.f32 %v534_v11, %v336_v5  ;;  %v352_v15 = vmul.f32 %v534_v11, %v337_v7  ;;  %v353_v18 = vmul.f32 %v534_v11, %v338_v8  ;;  %v354_v12 = vmul.f32 %v534_v11, %v339_v9 }
 0x134   :  { %v355_v19 = vmul.f32 %v534_v11, %v340_v10  ;;  %v356_v20 = vmul.f32 %v534_v11, %v341_v13  ;;  %v357_v17 = vmul.f32 %v534_v11, %v342_v43  ;;  %v358_v22 = vmul.f32 %v534_v11, %v343_v40 }
 0x135   :  { %v359_v23 = vmul.f32 %v534_v11, %v344_v44  ;;  %v365_v24 = vmul.f32 %v483_v48, %v347_v54  ;;  %v366_v25 = vmul.f32 %v483_v48, %v348_v60  ;;  %v367_v26 = vmul.f32 %v483_v48, %v349_v14 }
 0x136   :  { %v368_v27 = vmul.f32 %v483_v48, %v350_v6  ;;  %v369_v28 = vmul.f32 %v483_v48, %v351_v16  ;;  %v370_v29 = vmul.f32 %v483_v48, %v352_v15  ;;  %v371_v30 = vmul.f32 %v483_v48, %v353_v18 }
 0x137   :  { %v372_v31 = vmul.f32 %v483_v48, %v354_v12  ;;  %v373_v32 = vmul.f32 %v483_v48, %v355_v19  ;;  %v374_v33 = vmul.f32 %v483_v48, %v356_v20  ;;  %v375_v34 = vmul.f32 %v483_v48, %v357_v17 }
 0x138   :  { %v376_v35 = vmul.f32 %v483_v48, %v358_v22  ;;  %v377_v36 = vmul.f32 %v483_v48, %v359_v23  ;;  %v383_v38 = vadd.f32 %v484_v21, %v365_v24  ;;  %v384_v41 = vadd.f32 %v484_v21, %v366_v25 }
 0x139   :  { %v385_v42 = vadd.f32 %v484_v21, %v367_v26  ;;  %v386_v37 = vadd.f32 %v484_v21, %v368_v27  ;;  %v387_v39 = vadd.f32 %v484_v21, %v369_v28  ;;  %v388_v45 = vadd.f32 %v484_v21, %v370_v29 }
 0x13a   :  { %v389_v46 = vadd.f32 %v484_v21, %v371_v30  ;;  %v390_v47 = vadd.f32 %v484_v21, %v372_v31  ;;  %v391_v49 = vadd.f32 %v484_v21, %v373_v32  ;;  %v392_v50 = vadd.f32 %v484_v21, %v374_v33 }
 0x13b   :  { %v393_v51 = vadd.f32 %v484_v21, %v375_v34  ;;  %v394_v52 = vadd.f32 %v484_v21, %v376_v35  ;;  %v395_v53 = vadd.f32 %v484_v21, %v377_v36  ;;  %vm396_vm2 = vcmp.gt.f32.partialorder %v383_v38, 0.0 }
 0x13c   :  { %vm397_vm3 = vcmp.gt.f32.partialorder %v384_v41, 0.0  ;;  %vm398_vm4 = vcmp.gt.f32.partialorder %v385_v42, 0.0  ;;  %vm399_vm5 = vcmp.gt.f32.partialorder %v386_v37, 0.0  ;;  %vm400_vm6 = vcmp.gt.f32.partialorder %v387_v39, 0.0 }
 0x13d   :  { %vm401_vm7 = vcmp.gt.f32.partialorder %v388_v45, 0.0  ;;  %vm402_vm8 = vcmp.gt.f32.partialorder %v389_v46, 0.0  ;;  %vm403_vm9 = vcmp.gt.f32.partialorder %v390_v47, 0.0  ;;  %vm404_vm10 = vcmp.gt.f32.partialorder %v391_v49, 0.0 }
 0x13e   :  { %vm405_vm11 = vcmp.gt.f32.partialorder %v392_v50, 0.0  ;;  %vm406_vm12 = vcmp.gt.f32.partialorder %v393_v51, 0.0  ;;  %vm407_vm13 = vcmp.gt.f32.partialorder %v394_v52, 0.0  ;;  %vm408_vm14 = vcmp.gt.f32.partialorder %v395_v53, 0.0 }
 0x13f   :  { %v409_v55 = vmul.f32 0.2, %v383_v38  ;;  %v410_v56 = vmul.f32 0.2, %v384_v41  ;;  %v411_v57 = vmul.f32 0.2, %v385_v42 }
 0x140   :  { %v412_v58 = vmul.f32 0.2, %v386_v37  ;;  %v413_v59 = vmul.f32 0.2, %v387_v39  ;;  %v414_v61 = vmul.f32 0.2, %v388_v45 }
 0x141   :  { %v415_v62 = vmul.f32 0.2, %v389_v46  ;;  %v416_v63 = vmul.f32 0.2, %v390_v47  ;;  %v417_v0 = vmul.f32 0.2, %v391_v49  ;;  %v422_v1 = vsel %vm396_vm2, %v383_v38, %v409_v55 }
 0x142   :  { %v418_v2 = vmul.f32 0.2, %v392_v50  ;;  %v419_v3 = vmul.f32 0.2, %v393_v51  ;;  %v420_v4 = vmul.f32 0.2, %v394_v52  ;;  %v423_v5 = vsel %vm397_vm3, %v384_v41, %v410_v56  ;;  %435 = vst [vmem:[%s765_s3] sm:$0xff] %v422_v1 }
 0x143   :  { %v421_v7 = vmul.f32 0.2, %v395_v53  ;;  %v424_v8 = vsel %vm398_vm4, %v385_v42, %v411_v57  ;;  %v425_v9 = vsel %vm399_vm5, %v386_v37, %v412_v58  ;;  %v426_v10 = vsel %vm400_vm6, %v387_v39, %v413_v59  ;;  %436 = vst [vmem:[%s765_s3 + $0x8] sm:$0xff] %v423_v5 }
 0x144   :  { %v427_v11 = vsel %vm401_vm7, %v388_v45, %v414_v61  ;;  %v428_v13 = vsel %vm402_vm8, %v389_v46, %v415_v62  ;;  %v429_v43 = vsel %vm403_vm9, %v390_v47, %v416_v63  ;;  %v430_v40 = vsel %vm404_vm10, %v391_v49, %v417_v0  ;;  %437 = vst [vmem:[%s765_s3 + $0x10] sm:$0xff] %v424_v8 }
 0x145   :  { %438 = vst [vmem:[%s765_s3 + $0x18] sm:$0xff] %v425_v9  ;;  %439 = vst [vmem:[%s765_s3 + $0x20] sm:$0xff] %v426_v10  ;;  %v431_v44 = vsel %vm405_vm11, %v392_v50, %v418_v2  ;;  %v432_v48 = vsel %vm406_vm12, %v393_v51, %v419_v3  ;;  %v433_v54 = vsel %vm407_vm13, %v394_v52, %v420_v4 }
 0x146   :  { %v434_v60 = vsel %vm408_vm14, %v395_v53, %v421_v7  ;;  %440 = vst [vmem:[%s765_s3 + $0x28] sm:$0xff] %v427_v11  ;;  %441 = vst [vmem:[%s765_s3 + $0x30] sm:$0xff] %v428_v13 }
 0x147   :  { %442 = vst [vmem:[%s765_s3 + $0x38] sm:$0xff] %v429_v43  ;;  %443 = vst [vmem:[%s765_s3 + $0x40] sm:$0xff] %v430_v40 }
 0x148   :  { %444 = vst [vmem:[%s765_s3 + $0x48] sm:$0xff] %v431_v44  ;;  %445 = vst [vmem:[%s765_s3 + $0x50] sm:$0xff] %v432_v48 }
 0x149   :  { %446 = vst [vmem:[%s765_s3 + $0x58] sm:$0xff] %v433_v54  ;;  %447 = vst [vmem:[%s765_s3 + $0x60] sm:$0x3] %v434_v60 }

// kernel: vae_forward.8
= control target key start
LH: loop header
LB: loop body
LE: loop exit
PB: predicated region body
PF: predicated region fallthrough
CT: control target
= control target key end

     0   :  { %v862_v1 = vmov 0.0   ;;  %vm863_vm0 = vmmov 0   ;;  %vm290_vm1 = vcmask 261120   ;;  %vm499_vm2 = vcmask 1041408   ;;  %s1181_s1 = inlined_call_operand.vmem [shape: bf16[288,128], index: 1, kind: input, shape index: {}]   ;;  %s1182_s0 = inlined_call_operand.vmem [shape: bf16[98,288], index: 0, kind: input, shape index: {}]   ;;  %s1183_s2 = inlined_call_operand.vmem [shape: f32[3,128], index: 2, kind: input, shape index: {}]   ;;  %s1184_s3 = inlined_call_operand.vmem [shape: f32[98,128], index: 3, kind: output, shape index: {}]  }
   0x1   :  { %v815_v0 = vld [vmem:[%s1181_s1 + $0x78] sm:$0xff]   ;;  %781 = vmatprep.subr.bf16.mxu1 %v862_v1  ;;  %785 = vmatprep.mubr.msk.bf16.mxu1 %vm863_vm0, %v862_v1  ;;  %v817_v3 = vld [vmem:[%s1181_s1 + $0x70] sm:$0xff]   ;;  %v819_v5 = vld [vmem:[%s1181_s1 + $0x68] sm:$0xff]  }
   0x2   :  { %v816_v2 = vld [vmem:[%s1181_s1 + $0x38] sm:$0xff]   ;;  %714 = vmatprep.subr.bf16.mxu0 %v815_v0  ;;  %v818_v4 = vld [vmem:[%s1181_s1 + $0x30] sm:$0xff]   ;;  %v820_v6 = vld [vmem:[%s1181_s1 + $0x28] sm:$0xff]  }
   0x3   :  { %715 = vmatpush3.bf16.msra.mxu0 %v816_v2  ;;  %v821_v7 = vld [vmem:[%s1181_s1 + $0x60] sm:$0xff]   ;;  %v823_v9 = vld [vmem:[%s1181_s1 + $0x58] sm:$0xff]   ;;  %v829_v10 = vld [vmem:[%s1181_s1 + $0x88] sm:$0xff]  }
   0x4   :  { %716 = vmatprep.subr.bf16.mxu0 %v817_v3  ;;  %v822_v8 = vld [vmem:[%s1181_s1 + $0x20] sm:$0xff]   ;;  %v824_v11 = vld [vmem:[%s1181_s1 + $0x18] sm:$0xff]   ;;  %v825_v12 = vld [vmem:[%s1181_s1 + $0x50] sm:$0xff]   ;;  %782 = vmatpush3.bf16.msra.mxu1 %v829_v10 }
   0x5   :  { %v826_v13 = vld [vmem:[%s1181_s1 + $0x10] sm:$0xff]   ;;  %783 = vmatprep.subr.bf16.mxu1 %v862_v1  ;;  %v832_v14 = vld [vmem:[%s1181_s1 + $0x80] sm:$0xff]   ;;  %v827_v15 = vld [vmem:[%s1181_s1 + $0x48] sm:$0xff]  }
   0x6   :  { %v835_v16 = vld [vmem:[%s1182_s0 + $0x4] ss:$12 sps:$4 sm:$0xff]   ;;  %v836_v17 = vld [vmem:[%s1182_s0 + $0x8] ss:$12 sps:$4 sm:$0xff]   ;;  %v840_v21 = vld [vmem:[%s1182_s0 + $0x20] ss:$12 sps:$4 sm:$0xff]  }
   0x7   :  { %717 = vmatpush3.bf16.msra.mxu0 %v818_v4  ;;  %344 = vmatprep.mubr.bf16.mxu0 %v835_v16  ;;  %v828_v18 = vld [vmem:[%s1181_s1 + $0x8] sm:$0xff]   ;;  %v830_v19 = vld [vmem:[%s1181_s1 + $0x40] sm:$0xff]   ;;  %v848_v27 = vld [vmem:[%s1182_s0 + $0x50] ss:$12 sps:$4 sm:$0xff]  }
   0x8   :  { %718 = vmatprep.subr.bf16.mxu0 %v819_v5  ;;  %784 = vmatpush3.bf16.msra.mxu1 %v832_v14  ;;  %v831_v20 = vld [vmem:[%s1181_s1] sm:$0xff]   ;;  %v837_v23 = vld [vmem:[%s1182_s0 + $0x1c] ss:$12 sps:$4 sm:$0xff]   ;;  %v845_v29 = vld [vmem:[%s1182_s0 + $0x4c] ss:$12 sps:$4 sm:$0xff]  }
   0x9   :  { %v833_v22 = vld [vmem:[%s1182_s0] ss:$12 sps:$4 sm:$0xff]   ;;  %v844_v24 = vld [vmem:[%s1182_s0 + $0x38] ss:$12 sps:$4 sm:$0xff]   ;;  %v843_v28 = vld [vmem:[%s1182_s0 + $0x30] ss:$12 sps:$4 sm:$0xff]  }
   0xa   :  { %v839_v25 = vld [vmem:[%s1182_s0 + $0x18] ss:$12 sps:$4 sm:$0xff]   ;;  %v841_v26 = vld [vmem:[%s1182_s0 + $0x34] ss:$12 sps:$4 sm:$0xff]   ;;  %v853_v35 = vld [vmem:[%s1182_s0 + $0x7c] ss:$12 sps:$4 sm:$0xff]  }
   0xb   :  { %719 = vmatpush3.bf16.msra.mxu0 %v820_v6  ;;  %786 = vmatmul.mubr.msk.bf16.vlgmr.msra.gmra.mxu1 %vm290_vm1, %v836_v17  ;;  %v852_v30 = vld [vmem:[%s1182_s0 + $0x68] ss:$12 sps:$4 sm:$0xff]   ;;  %v849_v32 = vld [vmem:[%s1182_s0 + $0x64] ss:$12 sps:$4 sm:$0xff]   ;;  %v856_v33 = vld [vmem:[%s1182_s0 + $0x80] ss:$12 sps:$4 sm:$0xff]  }
   0xc   :  { %720 = vmatprep.subr.bf16.mxu0 %v821_v7  ;;  %789 = vmatprep.mubr.msk.bf16.mxu1 %vm863_vm0, %v862_v1  ;;  %v847_v31 = vld [vmem:[%s1182_s0 + $0x48] ss:$12 sps:$4 sm:$0xff]   ;;  %v851_v34 = vld [vmem:[%s1182_s0 + $0x60] ss:$12 sps:$4 sm:$0xff]   ;;  %v855_v38 = vld [vmem:[%s1182_s0 + $0x78] ss:$12 sps:$4 sm:$0xff]  }
   0xd   :  { %v859_v36 = vld [vmem:[%s1182_s0 + $0x98] ss:$0 sps:$4 sm:$0x11]   ;;  %v39_v37 = vld [vmem:[%s1182_s0 + $0x90] sm:$0x11] }
   0xe   :  { %v685_v39 = vcombine.high %v39_v37, %v39_v37  ;;  %v684_v40 = vcombine.low %v39_v37, %v39_v37  ;;  %v1030_v10 = vld [vmem:[%s1183_s2] ss:$0 sm:$0xff] }
   0xf   :  { %721 = vmatpush3.bf16.msra.mxu0 %v822_v8 }
  0x10   :  { %722 = vmatprep.subr.bf16.mxu0 %v823_v9 }
  0x13   :  { %723 = vmatpush3.bf16.msra.mxu0 %v824_v11  ;;  %790 = vmatmul.mubr.msk.bf16.gmra.mxu1 %vm290_vm1, %v840_v21 }
  0x14   :  { %724 = vmatprep.subr.bf16.mxu0 %v825_v12  ;;  %793 = vmatprep.mubr.msk.bf16.mxu1 %vm863_vm0, %v862_v1 }
  0x17   :  { %725 = vmatpush3.bf16.msra.mxu0 %v826_v13 }
  0x18   :  { %726 = vmatprep.subr.bf16.mxu0 %v827_v15 }
  0x1b   :  { %727 = vmatpush3.bf16.msra.mxu0 %v828_v18  ;;  %794 = vmatmul.mubr.msk.bf16.gmra.mxu1 %vm290_vm1, %v844_v24 }
  0x1c   :  { %728 = vmatprep.subr.bf16.mxu0 %v830_v19  ;;  %797 = vmatprep.mubr.msk.bf16.mxu1 %vm863_vm0, %v862_v1 }
  0x1f   :  { %729 = vmatpush3.bf16.msra.mxu0 %v831_v20 }
  0x22   :  { %345 = vmatmul.mubr.bf16.vlgmr.msra.gmra.mxu0 %v833_v22 }
  0x23   :  { %352 = vmatprep.mubr.bf16.mxu0 %v837_v23  ;;  %798 = vmatmul.mubr.msk.bf16.gmra.mxu1 %vm290_vm1, %v848_v27 }
  0x24   :  { %801 = vmatprep.mubr.msk.bf16.mxu1 %vm863_vm0, %v862_v1 }
  0x2a   :  { %353 = vmatmul.mubr.bf16.gmra.mxu0 %v839_v25 }
  0x2b   :  { %360 = vmatprep.mubr.bf16.mxu0 %v841_v26  ;;  %802 = vmatmul.mubr.msk.bf16.gmra.mxu1 %vm290_vm1, %v852_v30 }
  0x2c   :  { %805 = vmatprep.mubr.msk.bf16.mxu1 %vm863_vm0, %v862_v1 }
  0x32   :  { %361 = vmatmul.mubr.bf16.gmra.mxu0 %v843_v28 }
  0x33   :  { %368 = vmatprep.mubr.bf16.mxu0 %v845_v29  ;;  %806 = vmatmul.mubr.msk.bf16.gmra.mxu1 %vm290_vm1, %v856_v33 }
  0x34   :  { %809 = vmatprep.mubr.msk.bf16.mxu1 %vm863_vm0, %v862_v1 }
  0x3a   :  { %369 = vmatmul.mubr.bf16.gmra.mxu0 %v847_v31 }
  0x3b   :  { %376 = vmatprep.mubr.bf16.mxu0 %v849_v32  ;;  %810 = vmatmul.mubr.msk.bf16.gmra.mxu1 %vm290_vm1, %v859_v36 }
  0x42   :  { %377 = vmatmul.mubr.bf16.gmra.mxu0 %v851_v34 }
  0x43   :  { %384 = vmatprep.mubr.bf16.mxu0 %v853_v35 }
  0x4a   :  { %385 = vmatmul.mubr.bf16.gmra.mxu0 %v855_v38 }
  0x4b   :  { %392 = vmatprep.mubr.bf16.mxu0 %v685_v39 }
  0x52   :  { %393 = vmatmul.mubr.bf16.gmra.mxu0 %v684_v40 }
  0xcb   :  { %v434_v41 = vpop.f32.mrf.mxu1 }
  0xcd   :  { %v787_v42 = vpop.f32.mrf.mxu1 }
  0xcf   :  { %v437_v43 = vpop.f32.mrf.mxu1 }
  0xd1   :  { %v788_v44 = vpop.f32.mrf.mxu1 }
  0xd3   :  { %v442_v45 = vpop.f32.mrf.mxu1 }
  0xd5   :  { %v791_v46 = vpop.f32.mrf.mxu1 }
  0xd7   :  { %v445_v48 = vpop.f32.mrf.mxu1 }
  0xd9   :  { %v792_v50 = vpop.f32.mrf.mxu1 }
  0xdb   :  { %v450_v52 = vpop.f32.mrf.mxu1 }
  0xdd   :  { %v795_v54 = vpop.f32.mrf.mxu1 }
  0xdf   :  { %v453_v56 = vpop.f32.mrf.mxu1 }
  0xe1   :  { %v796_v58 = vpop.f32.mrf.mxu1 }
  0xe2   :  { %v730_v47 = vpop.f32.mrf.mxu0 }
  0xe3   :  { %v1021_v60 = vpop.f32.mrf.mxu1 }
  0xe4   :  { %v731_v49 = vpop.f32.mrf.mxu0 }
  0xe5   :  { %v799_v62 = vpop.f32.mrf.mxu1  ;;  %v732_v7 = vadd.f32 %v731_v49, %v730_v47 }
  0xe6   :  { %v733_v51 = vpop.f32.mrf.mxu0 }
  0xe7   :  { %v1023_v0 = vpop.f32.mrf.mxu1  ;;  %v347_v16 = vadd.f32 %v732_v7, %v1030_v10 }
  0xe8   :  { %v734_v53 = vpop.f32.mrf.mxu0 }
  0xe9   :  { %v800_v2 = vpop.f32.mrf.mxu1  ;;  %v735_v4 = vadd.f32 %v734_v53, %v733_v51  ;;  %v1040_v26 = vadd.f32 %v434_v41, %v347_v16 }
  0xea   :  { %v736_v55 = vpop.f32.mrf.mxu0 }
  0xeb   :  { %v1025_v5 = vpop.f32.mrf.mxu1  ;;  %v350_v12 = vadd.f32 %v735_v4, %v1030_v10  ;;  %v510_v38 = vmul.f32 %v1040_v26, %v1040_v26 }
  0xec   :  { %v737_v57 = vpop.f32.mrf.mxu0 }
  0xed   :  { %v738_v8 = vadd.f32 %v737_v57, %v736_v55  ;;  %v803_v9 = vpop.f32.mrf.mxu1  ;;  %v1037_v21 = vadd.f32 %v437_v43, %v350_v12 }
  0xee   :  { %v739_v59 = vpop.f32.mrf.mxu0 }
  0xef   :  { %v1033_v14 = vpop.f32.mrf.mxu1  ;;  %v355_v17 = vadd.f32 %v738_v8, %v1030_v10  ;;  %v511_v32 = vmul.f32 %v1037_v21, %v1037_v21  ;;  %v488_v41 = vadd.f32 %v1037_v21, %v1040_v26 }
  0xf0   :  { %v740_v61 = vpop.f32.mrf.mxu0 }
  0xf1   :  { %v741_v13 = vadd.f32 %v740_v61, %v739_v59  ;;  %v804_v18 = vpop.f32.mrf.mxu1  ;;  %v1042_v27 = vadd.f32 %v442_v45, %v355_v17  ;;  %v523_v46 = vadd.f32 %v511_v32, %v510_v38 }
  0xf2   :  { %v742_v63 = vpop.f32.mrf.mxu0 }
  0xf3   :  { %v358_v22 = vadd.f32 %v741_v13, %v1030_v10  ;;  %v474_v23 = vpop.f32.mrf.mxu1  ;;  %v512_v39 = vmul.f32 %v1042_v27, %v1042_v27  ;;  %v489_v49 = vadd.f32 %v488_v41, %v1042_v27 }
  0xf4   :  { %v743_v1 = vpop.f32.mrf.mxu0 }
  0xf5   :  { %v744_v19 = vadd.f32 %v743_v1, %v742_v63  ;;  %v807_v28 = vpop.f32.mrf.mxu1  ;;  %v1047_v33 = vadd.f32 %v445_v48, %v358_v22  ;;  %v524_v54 = vadd.f32 %v523_v46, %v512_v39 }
  0xf6   :  { %v745_v3 = vpop.f32.mrf.mxu0 }
  0xf7   :  { %v363_v29 = vadd.f32 %v744_v19, %v1030_v10  ;;  %v477_v34 = vpop.f32.mrf.mxu1  ;;  %v513_v47 = vmul.f32 %v1047_v33, %v1047_v33  ;;  %v490_v57 = vadd.f32 %v489_v49, %v1047_v33 }
  0xf8   :  { %v746_v6 = vpop.f32.mrf.mxu0 }
  0xf9   :  { %v747_v24 = vadd.f32 %v746_v6, %v745_v3  ;;  %v808_v40 = vpop.f32.mrf.mxu1  ;;  %v1056_v42 = vadd.f32 %v450_v52, %v363_v29  ;;  %v525_v63 = vadd.f32 %v524_v54, %v513_v47 }
  0xfa   :  { %v748_v11 = vpop.f32.mrf.mxu0 }
  0xfb   :  { %v366_v35 = vadd.f32 %v747_v24, %v1030_v10  ;;  %v482_v48 = vpop.f32.mrf.mxu1  ;;  %v514_v58 = vmul.f32 %v1056_v42, %v1056_v42  ;;  %v491_v1 = vadd.f32 %v490_v57, %v1056_v42 }
  0xfc   :  { %v749_v15 = vpop.f32.mrf.mxu0 }
  0xfd   :  { %v750_v30 = vadd.f32 %v749_v15, %v748_v11  ;;  %v1062_v50 = vadd.f32 %v453_v56, %v366_v35  ;;  %v811_v52 = vpop.f32.mrf.mxu1 }
  0xfe   :  { %v751_v20 = vpop.f32.mrf.mxu0 }
  0xff   :  { %v371_v43 = vadd.f32 %v750_v30, %v1030_v10  ;;  %v485_v56 = vpop.f32.mrf.mxu1  ;;  %v515_v2 = vmul.f32 %v1062_v50, %v1062_v50  ;;  %v492_v9 = vadd.f32 %v491_v1, %v1062_v50 }
 0x100   :  { %v752_v25 = vpop.f32.mrf.mxu0 }
 0x101   :  { %v753_v36 = vadd.f32 %v752_v25, %v751_v20  ;;  %v1069_v59 = vadd.f32 %v1021_v60, %v371_v43  ;;  %v812_v8 = vpop.f32.mrf.mxu1  ;;  %v526_v60 = vadd.f32 %v525_v63, %v514_v58 }
 0x102   :  { %v754_v31 = vpop.f32.mrf.mxu0 }
 0x103   :  { %v374_v51 = vadd.f32 %v753_v36, %v1030_v10  ;;  %v516_v11 = vmul.f32 %v1069_v59, %v1069_v59  ;;  %v527_v16 = vadd.f32 %v526_v60, %v515_v2 }
 0x104   :  { %v755_v37 = vpop.f32.mrf.mxu0 }
 0x105   :  { %v756_v44 = vadd.f32 %v755_v37, %v754_v31  ;;  %v1076_v3 = vadd.f32 %v1023_v0, %v374_v51  ;;  %v493_v0 = vadd.f32 %v492_v9, %v1069_v59  ;;  %v528_v22 = vadd.f32 %v527_v16, %v516_v11 }
 0x106   :  { %v757_v45 = vpop.f32.mrf.mxu0 }
 0x107   :  { %v379_v61 = vadd.f32 %v756_v44, %v1030_v10  ;;  %v517_v17 = vmul.f32 %v1076_v3, %v1076_v3  ;;  %v494_v24 = vadd.f32 %v493_v0, %v1076_v3 }
 0x108   :  { %v758_v53 = vpop.f32.mrf.mxu0 }
 0x109   :  { %v759_v55 = vadd.f32 %v758_v53, %v757_v45  ;;  %v1083_v12 = vadd.f32 %v1025_v5, %v379_v61  ;;  %v529_v30 = vadd.f32 %v528_v22, %v517_v17 }
 0x10a   :  { %v760_v62 = vpop.f32.mrf.mxu0 }
 0x10b   :  { %v382_v4 = vadd.f32 %v759_v55, %v1030_v10  ;;  %v518_v5 = vmul.f32 %v1083_v12, %v1083_v12  ;;  %v495_v31 = vadd.f32 %v494_v24, %v1083_v12 }
 0x10c   :  { %v761_v6 = vpop.f32.mrf.mxu0 }
 0x10d   :  { %v762_v7 = vadd.f32 %v761_v6, %v760_v62  ;;  %v1090_v18 = vadd.f32 %v1033_v14, %v382_v4  ;;  %v530_v37 = vadd.f32 %v529_v30, %v518_v5 }
 0x10e   :  { %v763_v13 = vpop.f32.mrf.mxu0 }
 0x10f   :  { %v387_v15 = vadd.f32 %v762_v7, %v1030_v10  ;;  %v519_v14 = vmul.f32 %v1090_v18, %v1090_v18  ;;  %v496_v38 = vadd.f32 %v495_v31, %v1090_v18 }
 0x110   :  { %v764_v19 = vpop.f32.mrf.mxu0 }
 0x111   :  { %v765_v20 = vadd.f32 %v764_v19, %v763_v13  ;;  %v1095_v25 = vadd.f32 %v474_v23, %v387_v15  ;;  %v531_v41 = vadd.f32 %v530_v37, %v519_v14 }
 0x112   :  { %v766_v28 = vpop.f32.mrf.mxu0 }
 0x113   :  { %v390_v29 = vadd.f32 %v765_v20, %v1030_v10  ;;  %v520_v23 = vmul.f32 %v1095_v25, %v1095_v25  ;;  %v497_v43 = vadd.f32 %v496_v38, %v1095_v25 }
 0x114   :  { %v767_v32 = vpop.f32.mrf.mxu0 }
 0x115   :  { %v1101_v35 = vadd.f32 %v477_v34, %v390_v29  ;;  %v768_v36 = vadd.f32 %v767_v32, %v766_v28  ;;  %v532_v46 = vadd.f32 %v531_v41, %v520_v23 }
 0x116   :  { %v769_v39 = vpop.f32.mrf.mxu0 }
 0x117   :  { %v395_v40 = vadd.f32 %v768_v36, %v1030_v10  ;;  %v521_v44 = vmul.f32 %v1101_v35, %v1101_v35  ;;  %v498_v47 = vadd.f32 %v497_v43, %v1101_v35 }
 0x118   :  { %v770_v45 = vpop.f32.mrf.mxu0 }
 0x119   :  { %v483_v34 = vadd.f32 %v482_v48, %v395_v40  ;;  %v533_v53 = vadd.f32 %v532_v46, %v521_v44 }
 0x11b   :  { %v500_v49 = vsel %vm499_vm2, %v483_v34, 0.0  ;;  %v522_v51 = vmul.f32 %v483_v34, %v483_v34 }
 0x11c   :  { %v501_v54 = vadd.f32 %v500_v49, %v498_v47 }
 0x11d   :  { %v534_v55 = vsel %vm499_vm2, %v522_v51, 0.0 }
 0x11e   :  { %v502_v52 = vrot.slane %v501_v54, 4  ;;  %v535_v57 = vadd.f32 %v534_v55, %v533_v53 }
 0x120   :  { %v503_v10 = vadd.f32 %v502_v52, %v501_v54  ;;  %v536_v58 = vrot.slane %v535_v57, 4 }
 0x122   :  { %v504_v61 = vrot.slane %v503_v10, 2  ;;  %v537_v62 = vadd.f32 %v536_v58, %v535_v57 }
 0x124   :  { %v505_v63 = vadd.f32 %v504_v61, %v503_v10  ;;  %v538_v56 = vrot.slane %v537_v62, 2 }
 0x126   :  { %v506_v1 = vrot.slane %v505_v63, 1  ;;  %v539_v2 = vadd.f32 %v538_v56, %v537_v62 }
 0x128   :  { %v507_v4 = vadd.f32 %v506_v1, %v505_v63  ;;  %v540_v48 = vrot.slane %v539_v2, 1 }
 0x12a   :  { %v509_v6 = vmul.f32 0.010204081, %v507_v4  ;;  %v541_v7 = vadd.f32 %v540_v48, %v539_v2 }
 0x12c   :  { %v542_v8 = vmul.f32 0.010204081, %v541_v7  ;;  %v543_v60 = vmul.f32 %v509_v6, %v509_v6  ;;  %v545_v13 = vsub.f32 %v1040_v26, %v509_v6  ;;  %v546_v15 = vsub.f32 %v1037_v21, %v509_v6 }
 0x12d   :  { %v547_v16 = vsub.f32 %v1042_v27, %v509_v6  ;;  %v548_v0 = vsub.f32 %v1047_v33, %v509_v6  ;;  %v549_v17 = vsub.f32 %v1056_v42, %v509_v6  ;;  %v550_v19 = vsub.f32 %v1062_v50, %v509_v6  ;;  %v712_v33 = vld [vmem:[%s1183_s2 + $0x1] ss:$0 sm:$0xff] }
 0x12e   :  { %v544_v9 = vsub.f32 %v542_v8, %v543_v60  ;;  %v551_v20 = vsub.f32 %v1069_v59, %v509_v6  ;;  %v552_v22 = vsub.f32 %v1076_v3, %v509_v6  ;;  %v553_v24 = vsub.f32 %v1083_v12, %v509_v6 }
 0x12f   :  { %v554_v28 = vsub.f32 %v1090_v18, %v509_v6  ;;  %v555_v26 = vsub.f32 %v1095_v25, %v509_v6  ;;  %v556_v21 = vsub.f32 %v1101_v35, %v509_v6  ;;  %v557_v27 = vsub.f32 %v483_v34, %v509_v6  ;;  %v713_v25 = vld [vmem:[%s1183_s2 + $0x2] ss:$0 sm:$0xff] }
 0x130   :  { %v558_v11 = vadd.f32 1e-05, %v544_v9 }
 0x132   :  { %860 = vrsqrt.f32 %v558_v11 }
 0x13f   :  { %v861_v5 = vpop.eup %860 }
 0x140   :  { %v560_v42 = vmul.f32 %v861_v5, %v545_v13  ;;  %v561_v50 = vmul.f32 %v861_v5, %v546_v15  ;;  %v562_v29 = vmul.f32 %v861_v5, %v547_v16  ;;  %v563_v59 = vmul.f32 %v861_v5, %v548_v0 }
 0x141   :  { %v564_v30 = vmul.f32 %v861_v5, %v549_v17  ;;  %v565_v3 = vmul.f32 %v861_v5, %v550_v19  ;;  %v566_v31 = vmul.f32 %v861_v5, %v551_v20  ;;  %v567_v12 = vmul.f32 %v861_v5, %v552_v22 }
 0x142   :  { %v568_v14 = vmul.f32 %v861_v5, %v553_v24  ;;  %v569_v32 = vmul.f32 %v861_v5, %v554_v28  ;;  %v570_v18 = vmul.f32 %v861_v5, %v555_v26  ;;  %v571_v36 = vmul.f32 %v861_v5, %v556_v21 }
 0x143   :  { %v572_v35 = vmul.f32 %v861_v5, %v557_v27  ;;  %v578_v37 = vmul.f32 %v712_v33, %v560_v42  ;;  %v579_v38 = vmul.f32 %v712_v33, %v561_v50  ;;  %v580_v23 = vmul.f32 %v712_v33, %v562_v29 }
 0x144   :  { %v581_v39 = vmul.f32 %v712_v33, %v563_v59  ;;  %v582_v40 = vmul.f32 %v712_v33, %v564_v30  ;;  %v583_v41 = vmul.f32 %v712_v33, %v565_v3  ;;  %v584_v43 = vmul.f32 %v712_v33, %v566_v31 }
 0x145   :  { %v585_v44 = vmul.f32 %v712_v33, %v567_v12  ;;  %v586_v45 = vmul.f32 %v712_v33, %v568_v14  ;;  %v587_v34 = vmul.f32 %v712_v33, %v569_v32  ;;  %v588_v46 = vmul.f32 %v712_v33, %v570_v18 }
 0x146   :  { %v589_v47 = vmul.f32 %v712_v33, %v571_v36  ;;  %v590_v49 = vmul.f32 %v712_v33, %v572_v35  ;;  %v596_v51 = vadd.f32 %v713_v25, %v578_v37  ;;  %v597_v53 = vadd.f32 %v713_v25, %v579_v38 }
 0x147   :  { %v598_v54 = vadd.f32 %v713_v25, %v580_v23  ;;  %v599_v55 = vadd.f32 %v713_v25, %v581_v39  ;;  %v600_v52 = vadd.f32 %v713_v25, %v582_v40  ;;  %v601_v57 = vadd.f32 %v713_v25, %v583_v41 }
 0x148   :  { %v602_v10 = vadd.f32 %v713_v25, %v584_v43  ;;  %v603_v58 = vadd.f32 %v713_v25, %v585_v44  ;;  %v604_v61 = vadd.f32 %v713_v25, %v586_v45  ;;  %v605_v62 = vadd.f32 %v713_v25, %v587_v34 }
 0x149   :  { %v606_v63 = vadd.f32 %v713_v25, %v588_v46  ;;  %v607_v56 = vadd.f32 %v713_v25, %v589_v47  ;;  %v608_v1 = vadd.f32 %v713_v25, %v590_v49  ;;  %vm609_vm3 = vcmp.gt.f32.partialorder %v596_v51, 0.0 }
 0x14a   :  { %vm610_vm4 = vcmp.gt.f32.partialorder %v597_v53, 0.0  ;;  %vm611_vm5 = vcmp.gt.f32.partialorder %v598_v54, 0.0  ;;  %vm612_vm6 = vcmp.gt.f32.partialorder %v599_v55, 0.0  ;;  %vm613_vm7 = vcmp.gt.f32.partialorder %v600_v52, 0.0 }
 0x14b   :  { %vm614_vm8 = vcmp.gt.f32.partialorder %v601_v57, 0.0  ;;  %vm615_vm9 = vcmp.gt.f32.partialorder %v602_v10, 0.0  ;;  %vm616_vm10 = vcmp.gt.f32.partialorder %v603_v58, 0.0  ;;  %vm617_vm11 = vcmp.gt.f32.partialorder %v604_v61, 0.0 }
 0x14c   :  { %vm618_vm12 = vcmp.gt.f32.partialorder %v605_v62, 0.0  ;;  %vm619_vm13 = vcmp.gt.f32.partialorder %v606_v63, 0.0  ;;  %vm620_vm14 = vcmp.gt.f32.partialorder %v607_v56, 0.0  ;;  %vm621_vm15 = vcmp.gt.f32.partialorder %v608_v1, 0.0 }
 0x14d   :  { %v622_v2 = vmul.f32 0.2, %v596_v51  ;;  %v623_v4 = vmul.f32 0.2, %v597_v53  ;;  %v624_v48 = vmul.f32 0.2, %v598_v54 }
 0x14e   :  { %v625_v6 = vmul.f32 0.2, %v599_v55  ;;  %v626_v7 = vmul.f32 0.2, %v600_v52  ;;  %v627_v8 = vmul.f32 0.2, %v601_v57 }
 0x14f   :  { %v628_v60 = vmul.f32 0.2, %v602_v10  ;;  %v629_v9 = vmul.f32 0.2, %v603_v58  ;;  %v630_v11 = vmul.f32 0.2, %v604_v61  ;;  %v635_v13 = vsel %vm609_vm3, %v596_v51, %v622_v2 }
 0x150   :  { %v631_v15 = vmul.f32 0.2, %v605_v62  ;;  %v632_v16 = vmul.f32 0.2, %v606_v63  ;;  %v633_v0 = vmul.f32 0.2, %v607_v56  ;;  %v636_v17 = vsel %vm610_vm4, %v597_v53, %v623_v4  ;;  %648 = vst [vmem:[%s1184_s3] sm:$0xff] %v635_v13 }
 0x151   :  { %v634_v19 = vmul.f32 0.2, %v608_v1  ;;  %v637_v20 = vsel %vm611_vm5, %v598_v54, %v624_v48  ;;  %v638_v22 = vsel %vm612_vm6, %v599_v55, %v625_v6  ;;  %v639_v24 = vsel %vm613_vm7, %v600_v52, %v626_v7  ;;  %649 = vst [vmem:[%s1184_s3 + $0x8] sm:$0xff] %v636_v17 }
 0x152   :  { %v640_v5 = vsel %vm614_vm8, %v601_v57, %v627_v8  ;;  %v641_v28 = vsel %vm615_vm9, %v602_v10, %v628_v60  ;;  %v642_v26 = vsel %vm616_vm10, %v603_v58, %v629_v9  ;;  %v643_v21 = vsel %vm617_vm11, %v604_v61, %v630_v11  ;;  %650 = vst [vmem:[%s1184_s3 + $0x10] sm:$0xff] %v637_v20 }
 0x153   :  { %651 = vst [vmem:[%s1184_s3 + $0x18] sm:$0xff] %v638_v22  ;;  %652 = vst [vmem:[%s1184_s3 + $0x20] sm:$0xff] %v639_v24  ;;  %v644_v27 = vsel %vm618_vm12, %v605_v62, %v631_v15  ;;  %v645_v33 = vsel %vm619_vm13, %v606_v63, %v632_v16  ;;  %v646_v42 = vsel %vm620_vm14, %v607_v56, %v633_v0 }
 0x154   :  { %v647_v50 = vsel %vm621_vm15, %v608_v1, %v634_v19  ;;  %653 = vst [vmem:[%s1184_s3 + $0x28] sm:$0xff] %v640_v5  ;;  %654 = vst [vmem:[%s1184_s3 + $0x30] sm:$0xff] %v641_v28 }
 0x155   :  { %655 = vst [vmem:[%s1184_s3 + $0x38] sm:$0xff] %v642_v26  ;;  %656 = vst [vmem:[%s1184_s3 + $0x40] sm:$0xff] %v643_v21 }
 0x156   :  { %657 = vst [vmem:[%s1184_s3 + $0x48] sm:$0xff] %v644_v27  ;;  %658 = vst [vmem:[%s1184_s3 + $0x50] sm:$0xff] %v645_v33 }
 0x157   :  { %659 = vst [vmem:[%s1184_s3 + $0x58] sm:$0xff] %v646_v42  ;;  %660 = vst [vmem:[%s1184_s3 + $0x60] sm:$0x3] %v647_v50 }

// kernel: vae_forward.10
= control target key start
LH: loop header
LB: loop body
LE: loop exit
PB: predicated region body
PF: predicated region fallthrough
CT: control target
= control target key end

     0   :  { %v1468_v0 = vmov 0.0   ;;  %vm1469_vm0 = vmmov 0   ;;  %s1971_s1 = inlined_call_operand.vmem [shape: bf16[4,128,128], index: 1, kind: input, shape index: {}]   ;;  %s1972_s0 = inlined_call_operand.vmem [shape: bf16[4,98,128], index: 0, kind: input, shape index: {}]   ;;  %s1973_s2 = inlined_call_operand.vmem [shape: f32[1,128], index: 2, kind: input, shape index: {}]   ;;  %s1974_s3 = inlined_call_operand.vmem [shape: f32[4,98,128], index: 3, kind: output, shape index: {}]  }
   0x1   :  { %1230 = vmatprep.subr.bf16.mxu0 %v1468_v0  ;;  %1274 = vmatprep.subr.bf16.mxu1 %v1468_v0  ;;  %v1408_v1 = vld [vmem:[%s1971_s1 + $0x38] sm:$0xff]   ;;  %v1410_v3 = vld [vmem:[%s1971_s1 + $0x30] sm:$0xff]   ;;  %v1412_v5 = vld [vmem:[%s1971_s1 + $0x28] sm:$0xff]  }
   0x2   :  { %v1409_v2 = vld [vmem:[%s1971_s1 + $0x78] sm:$0xff]   ;;  %1246 = vmatprep.mubr.msk.bf16.mxu0 %vm1469_vm0, %v1468_v0  ;;  %1290 = vmatprep.mubr.msk.bf16.mxu1 %vm1469_vm0, %v1468_v0  ;;  %v1411_v4 = vld [vmem:[%s1971_s1 + $0x70] sm:$0xff]   ;;  %v1413_v6 = vld [vmem:[%s1971_s1 + $0x68] sm:$0xff]  }
   0x3   :  { %1231 = vmatpush3.bf16.msra.mxu0 %v1408_v1  ;;  %1275 = vmatpush3.bf16.msra.mxu1 %v1409_v2  ;;  %v1414_v7 = vld [vmem:[%s1971_s1 + $0x20] sm:$0xff]   ;;  %v1416_v9 = vld [vmem:[%s1971_s1 + $0x18] sm:$0xff]   ;;  %v1418_v11 = vld [vmem:[%s1971_s1 + $0x10] sm:$0xff]  }
   0x4   :  { %1232 = vmatprep.subr.bf16.mxu0 %v1468_v0  ;;  %1276 = vmatprep.subr.bf16.mxu1 %v1468_v0  ;;  %v1415_v8 = vld [vmem:[%s1971_s1 + $0x60] sm:$0xff]   ;;  %v1417_v10 = vld [vmem:[%s1971_s1 + $0x58] sm:$0xff]   ;;  %v1419_v12 = vld [vmem:[%s1971_s1 + $0x50] sm:$0xff]  }
   0x5   :  { %v1420_v13 = vld [vmem:[%s1971_s1 + $0x8] sm:$0xff]   ;;  %v1422_v15 = vld [vmem:[%s1971_s1] sm:$0xff]   ;;  %v1425_v18 = vld [vmem:[%s1972_s0 + $0x34] sm:$0xff]  }
   0x6   :  { %v1421_v14 = vld [vmem:[%s1971_s1 + $0x48] sm:$0xff]   ;;  %v1423_v16 = vld [vmem:[%s1971_s1 + $0x40] sm:$0xff]   ;;  %v1426_v19 = vld [vmem:[%s1971_s1 + $0xb8] sm:$0xff]  }
   0x7   :  { %1233 = vmatpush3.bf16.msra.mxu0 %v1410_v3  ;;  %1277 = vmatpush3.bf16.msra.mxu1 %v1411_v4  ;;  %v1424_v17 = vld [vmem:[%s1972_s0] sm:$0xff]   ;;  %v1427_v20 = vld [vmem:[%s1971_s1 + $0xf8] sm:$0xff]   ;;  %v1430_v21 = vld [vmem:[%s1971_s1 + $0xb0] sm:$0xff]  }
   0x8   :  { %1234 = vmatprep.subr.bf16.mxu0 %v1468_v0  ;;  %1278 = vmatprep.subr.bf16.mxu1 %v1468_v0  ;;  %v1431_v22 = vld [vmem:[%s1971_s1 + $0xf0] sm:$0xff]   ;;  %v1428_v23 = vld [vmem:[%s1972_s0 + $0x8] sm:$0xff]   ;;  %v1429_v24 = vld [vmem:[%s1972_s0 + $0x3c] sm:$0xff]  }
   0x9   :  { %v1432_v25 = vld [vmem:[%s1971_s1 + $0xa8] sm:$0xff]   ;;  %v1434_v27 = vld [vmem:[%s1972_s0 + $0x10] sm:$0xff]   ;;  %v1436_v28 = vld [vmem:[%s1971_s1 + $0xa0] sm:$0xff]  }
   0xa   :  { %v1433_v26 = vld [vmem:[%s1971_s1 + $0xe8] sm:$0xff]   ;;  %v1437_v29 = vld [vmem:[%s1971_s1 + $0xe0] sm:$0xff]   ;;  %v1440_v31 = vld [vmem:[%s1971_s1 + $0x98] sm:$0xff]  }
   0xb   :  { %1235 = vmatpush3.bf16.msra.mxu0 %v1412_v5  ;;  %1279 = vmatpush3.bf16.msra.mxu1 %v1413_v6  ;;  %v1435_v30 = vld [vmem:[%s1972_s0 + $0x44] sm:$0xff]   ;;  %v1441_v32 = vld [vmem:[%s1971_s1 + $0xd8] sm:$0xff]   ;;  %v1444_v33 = vld [vmem:[%s1971_s1 + $0x90] sm:$0xff]  }
   0xc   :  { %1236 = vmatprep.subr.bf16.mxu0 %v1468_v0  ;;  %1280 = vmatprep.subr.bf16.mxu1 %v1468_v0  ;;  %v1445_v34 = vld [vmem:[%s1971_s1 + $0xd0] sm:$0xff]   ;;  %v1438_v35 = vld [vmem:[%s1972_s0 + $0x18] sm:$0xff]   ;;  %v1448_v37 = vld [vmem:[%s1971_s1 + $0x88] sm:$0xff]  }
   0xd   :  { %v1439_v36 = vld [vmem:[%s1972_s0 + $0x4c] sm:$0xff]   ;;  %v1452_v39 = vld [vmem:[%s1971_s1 + $0x80] sm:$0xff]   ;;  %v1443_v42 = vld [vmem:[%s1972_s0 + $0x54] sm:$0xff]  }
   0xe   :  { %v1449_v38 = vld [vmem:[%s1971_s1 + $0xc8] sm:$0xff]   ;;  %v1453_v40 = vld [vmem:[%s1971_s1 + $0xc0] sm:$0xff]   ;;  %v1450_v45 = vld [vmem:[%s1972_s0 + $0x30] ss:$0 sps:$4 sm:$0x11]  }
   0xf   :  { %1237 = vmatpush3.bf16.msra.mxu0 %v1414_v7  ;;  %1281 = vmatpush3.bf16.msra.mxu1 %v1415_v8  ;;  %v1442_v41 = vld [vmem:[%s1972_s0 + $0x20] sm:$0xff]   ;;  %v1446_v43 = vld [vmem:[%s1972_s0 + $0x28] sm:$0xff]   ;;  %v1456_v49 = vld [vmem:[%s1972_s0 + $0x70] sm:$0xff]  }
  0x10   :  { %1238 = vmatprep.subr.bf16.mxu0 %v1468_v0  ;;  %1282 = vmatprep.subr.bf16.mxu1 %v1468_v0  ;;  %v1447_v44 = vld [vmem:[%s1972_s0 + $0x5c] sm:$0xff]   ;;  %v1451_v46 = vld [vmem:[%s1972_s0 + $0x64] ss:$0 sps:$4 sm:$0x11]   ;;  %v1454_v47 = vld [vmem:[%s1972_s0 + $0x68] sm:$0xff]  }
  0x11   :  { %v1455_v48 = vld [vmem:[%s1972_s0 + $0x9c] sm:$0xff]   ;;  %v1457_v50 = vld [vmem:[%s1972_s0 + $0xa4] sm:$0xff]   ;;  %v1459_v52 = vld [vmem:[%s1972_s0 + $0xac] sm:$0xff]  }
  0x12   :  { %v1458_v51 = vld [vmem:[%s1972_s0 + $0x78] sm:$0xff]   ;;  %v1460_v53 = vld [vmem:[%s1972_s0 + $0x80] sm:$0xff]   ;;  %v1462_v55 = vld [vmem:[%s1972_s0 + $0x88] sm:$0xff]  }
  0x13   :  { %1239 = vmatpush3.bf16.msra.mxu0 %v1416_v9  ;;  %1283 = vmatpush3.bf16.msra.mxu1 %v1417_v10  ;;  %v1461_v54 = vld [vmem:[%s1972_s0 + $0xb4] sm:$0xff]   ;;  %v1463_v56 = vld [vmem:[%s1972_s0 + $0xbc] sm:$0xff]   ;;  %v1465_v58 = vld [vmem:[%s1972_s0 + $0xc4] sm:$0xff]  }
  0x14   :  { %1240 = vmatprep.subr.bf16.mxu0 %v1468_v0  ;;  %1284 = vmatprep.subr.bf16.mxu1 %v1468_v0  ;;  %v1464_v57 = vld [vmem:[%s1972_s0 + $0x90] sm:$0xff]   ;;  %v1466_v59 = vld [vmem:[%s1972_s0 + $0x98] ss:$0 sps:$4 sm:$0x11]   ;;  %v1761_v61 = vld [vmem:[%s1973_s2] ss:$0 sm:$0xff] }
  0x15   :  { %v1467_v60 = vld [vmem:[%s1972_s0 + $0xcc] ss:$0 sps:$4 sm:$0x11]  }
  0x17   :  { %1241 = vmatpush3.bf16.msra.mxu0 %v1418_v11  ;;  %1285 = vmatpush3.bf16.msra.mxu1 %v1419_v12 }
  0x18   :  { %1242 = vmatprep.subr.bf16.mxu0 %v1468_v0  ;;  %1286 = vmatprep.subr.bf16.mxu1 %v1468_v0 }
  0x1b   :  { %1243 = vmatpush3.bf16.msra.mxu0 %v1420_v13  ;;  %1287 = vmatpush3.bf16.msra.mxu1 %v1421_v14 }
  0x1c   :  { %1244 = vmatprep.subr.bf16.mxu0 %v1468_v0  ;;  %1288 = vmatprep.subr.bf16.mxu1 %v1468_v0 }
  0x1f   :  { %1245 = vmatpush3.bf16.msra.mxu0 %v1422_v15  ;;  %1289 = vmatpush3.bf16.msra.mxu1 %v1423_v16 }
  0x20   :  { %1318 = vmatprep.subr.bf16.mxu0 %v1468_v0  ;;  %1362 = vmatprep.subr.bf16.mxu1 %v1468_v0 }
  0x22   :  { %1247 = vmatmul.mubr.bf16.vlgmr.msra.gmra.mxu0 %v1424_v17  ;;  %1291 = vmatmul.mubr.bf16.vlgmr.msra.gmra.mxu1 %v1425_v18 }
  0x23   :  { %1319 = vmatpush3.bf16.msra.mxu0 %v1426_v19  ;;  %1363 = vmatpush3.bf16.msra.mxu1 %v1427_v20 }
  0x24   :  { %1250 = vmatprep.mubr.msk.bf16.mxu0 %vm1469_vm0, %v1468_v0  ;;  %1294 = vmatprep.mubr.msk.bf16.mxu1 %vm1469_vm0, %v1468_v0 }
  0x25   :  { %1320 = vmatprep.subr.bf16.mxu0 %v1468_v0  ;;  %1364 = vmatprep.subr.bf16.mxu1 %v1468_v0 }
  0x27   :  { %1321 = vmatpush3.bf16.msra.mxu0 %v1430_v21  ;;  %1365 = vmatpush3.bf16.msra.mxu1 %v1431_v22 }
  0x28   :  { %1322 = vmatprep.subr.bf16.mxu0 %v1468_v0  ;;  %1366 = vmatprep.subr.bf16.mxu1 %v1468_v0 }
  0x2a   :  { %1251 = vmatmul.mubr.bf16.gmra.mxu0 %v1428_v23  ;;  %1295 = vmatmul.mubr.bf16.gmra.mxu1 %v1429_v24 }
  0x2b   :  { %1254 = vmatprep.mubr.msk.bf16.mxu0 %vm1469_vm0, %v1468_v0  ;;  %1298 = vmatprep.mubr.msk.bf16.mxu1 %vm1469_vm0, %v1468_v0 }
  0x2c   :  { %1323 = vmatpush3.bf16.msra.mxu0 %v1432_v25  ;;  %1367 = vmatpush3.bf16.msra.mxu1 %v1433_v26 }
  0x2d   :  { %1324 = vmatprep.subr.bf16.mxu0 %v1468_v0  ;;  %1368 = vmatprep.subr.bf16.mxu1 %v1468_v0 }
  0x30   :  { %1325 = vmatpush3.bf16.msra.mxu0 %v1436_v28  ;;  %1369 = vmatpush3.bf16.msra.mxu1 %v1437_v29 }
  0x31   :  { %1326 = vmatprep.subr.bf16.mxu0 %v1468_v0  ;;  %1370 = vmatprep.subr.bf16.mxu1 %v1468_v0 }
  0x32   :  { %1255 = vmatmul.mubr.bf16.gmra.mxu0 %v1434_v27  ;;  %1299 = vmatmul.mubr.bf16.gmra.mxu1 %v1435_v30 }
  0x33   :  { %1258 = vmatprep.mubr.msk.bf16.mxu0 %vm1469_vm0, %v1468_v0  ;;  %1302 = vmatprep.mubr.msk.bf16.mxu1 %vm1469_vm0, %v1468_v0 }
  0x34   :  { %1327 = vmatpush3.bf16.msra.mxu0 %v1440_v31  ;;  %1371 = vmatpush3.bf16.msra.mxu1 %v1441_v32 }
  0x35   :  { %1328 = vmatprep.subr.bf16.mxu0 %v1468_v0  ;;  %1372 = vmatprep.subr.bf16.mxu1 %v1468_v0 }
  0x38   :  { %1329 = vmatpush3.bf16.msra.mxu0 %v1444_v33  ;;  %1373 = vmatpush3.bf16.msra.mxu1 %v1445_v34 }
  0x39   :  { %1330 = vmatprep.subr.bf16.mxu0 %v1468_v0  ;;  %1374 = vmatprep.subr.bf16.mxu1 %v1468_v0 }
  0x3a   :  { %1259 = vmatmul.mubr.bf16.gmra.mxu0 %v1438_v35  ;;  %1303 = vmatmul.mubr.bf16.gmra.mxu1 %v1439_v36 }
  0x3b   :  { %1262 = vmatprep.mubr.msk.bf16.mxu0 %vm1469_vm0, %v1468_v0  ;;  %1306 = vmatprep.mubr.msk.bf16.mxu1 %vm1469_vm0, %v1468_v0 }
  0x3c   :  { %1331 = vmatpush3.bf16.msra.mxu0 %v1448_v37  ;;  %1375 = vmatpush3.bf16.msra.mxu1 %v1449_v38 }
  0x3d   :  { %1332 = vmatprep.subr.bf16.mxu0 %v1468_v0  ;;  %1376 = vmatprep.subr.bf16.mxu1 %v1468_v0 }
  0x40   :  { %1333 = vmatpush3.bf16.msra.mxu0 %v1452_v39  ;;  %1377 = vmatpush3.bf16.msra.mxu1 %v1453_v40 }
  0x42   :  { %1263 = vmatmul.mubr.bf16.gmra.mxu0 %v1442_v41  ;;  %1307 = vmatmul.mubr.bf16.gmra.mxu1 %v1443_v42 }
  0x43   :  { %1266 = vmatprep.mubr.msk.bf16.mxu0 %vm1469_vm0, %v1468_v0  ;;  %1310 = vmatprep.mubr.msk.bf16.mxu1 %vm1469_vm0, %v1468_v0 }
  0x4a   :  { %1267 = vmatmul.mubr.bf16.gmra.mxu0 %v1446_v43  ;;  %1311 = vmatmul.mubr.bf16.gmra.mxu1 %v1447_v44 }
  0x4b   :  { %1270 = vmatprep.mubr.msk.bf16.mxu0 %vm1469_vm0, %v1468_v0  ;;  %1314 = vmatprep.mubr.msk.bf16.mxu1 %vm1469_vm0, %v1468_v0 }
  0x52   :  { %1271 = vmatmul.mubr.bf16.gmra.mxu0 %v1450_v45  ;;  %1315 = vmatmul.mubr.bf16.gmra.mxu1 %v1451_v46 }
  0x53   :  { %1334 = vmatprep.mubr.msk.bf16.mxu0 %vm1469_vm0, %v1468_v0  ;;  %1378 = vmatprep.mubr.msk.bf16.mxu1 %vm1469_vm0, %v1468_v0 }
  0x5a   :  { %1335 = vmatmul.mubr.bf16.vlgmr.msra.gmra.mxu0 %v1454_v47  ;;  %1379 = vmatmul.mubr.bf16.vlgmr.msra.gmra.mxu1 %v1455_v48 }
  0x5b   :  { %1338 = vmatprep.mubr.msk.bf16.mxu0 %vm1469_vm0, %v1468_v0  ;;  %1382 = vmatprep.mubr.msk.bf16.mxu1 %vm1469_vm0, %v1468_v0 }
  0x62   :  { %1339 = vmatmul.mubr.bf16.gmra.mxu0 %v1456_v49  ;;  %1383 = vmatmul.mubr.bf16.gmra.mxu1 %v1457_v50 }
  0x63   :  { %1342 = vmatprep.mubr.msk.bf16.mxu0 %vm1469_vm0, %v1468_v0  ;;  %1386 = vmatprep.mubr.msk.bf16.mxu1 %vm1469_vm0, %v1468_v0 }
  0x6a   :  { %1343 = vmatmul.mubr.bf16.gmra.mxu0 %v1458_v51  ;;  %1387 = vmatmul.mubr.bf16.gmra.mxu1 %v1459_v52 }
  0x6b   :  { %1346 = vmatprep.mubr.msk.bf16.mxu0 %vm1469_vm0, %v1468_v0  ;;  %1390 = vmatprep.mubr.msk.bf16.mxu1 %vm1469_vm0, %v1468_v0 }
  0x72   :  { %1347 = vmatmul.mubr.bf16.gmra.mxu0 %v1460_v53  ;;  %1391 = vmatmul.mubr.bf16.gmra.mxu1 %v1461_v54 }
  0x73   :  { %1350 = vmatprep.mubr.msk.bf16.mxu0 %vm1469_vm0, %v1468_v0  ;;  %1394 = vmatprep.mubr.msk.bf16.mxu1 %vm1469_vm0, %v1468_v0 }
  0x7a   :  { %1351 = vmatmul.mubr.bf16.gmra.mxu0 %v1462_v55  ;;  %1395 = vmatmul.mubr.bf16.gmra.mxu1 %v1463_v56 }
  0x7b   :  { %1354 = vmatprep.mubr.msk.bf16.mxu0 %vm1469_vm0, %v1468_v0  ;;  %1398 = vmatprep.mubr.msk.bf16.mxu1 %vm1469_vm0, %v1468_v0 }
  0x82   :  { %1355 = vmatmul.mubr.bf16.gmra.mxu0 %v1464_v57  ;;  %1399 = vmatmul.mubr.bf16.gmra.mxu1 %v1465_v58 }
  0x83   :  { %1358 = vmatprep.mubr.msk.bf16.mxu0 %vm1469_vm0, %v1468_v0  ;;  %1402 = vmatprep.mubr.msk.bf16.mxu1 %vm1469_vm0, %v1468_v0 }
  0x8a   :  { %1359 = vmatmul.mubr.bf16.gmra.mxu0 %v1466_v59  ;;  %1403 = vmatmul.mubr.bf16.gmra.mxu1 %v1467_v60 }
  0xe2   :  { %v173_v62 = vpop.f32.mrf.mxu0  ;;  %v413_v1 = vpop.f32.mrf.mxu1 }
  0xe3   :  { %v174_v63 = vadd.f32 %v1761_v61, %v173_v62  ;;  %v414_v0 = vadd.f32 %v1761_v61, %v413_v1 }
  0xe4   :  { %v1248_v2 = vpop.f32.mrf.mxu0  ;;  %v1292_v4 = vpop.f32.mrf.mxu1 }
  0xe5   :  { %v227_v3 = vmax.f32 %v174_v63, 0.0  ;;  %v467_v5 = vmax.f32 %v414_v0, 0.0 }
  0xe6   :  { %v176_v6 = vpop.f32.mrf.mxu0  ;;  %v416_v8 = vpop.f32.mrf.mxu1 }
  0xe7   :  { %240 = vst [vmem:[%s1974_s3] sm:$0xff] %v227_v3  ;;  %v177_v7 = vadd.f32 %v1761_v61, %v176_v6  ;;  %1041 = vst [vmem:[%s1974_s3 + $0x68] sm:$0xff] %v467_v5  ;;  %v417_v9 = vadd.f32 %v1761_v61, %v416_v8 }
  0xe8   :  { %v1249_v10 = vpop.f32.mrf.mxu0  ;;  %v1293_v12 = vpop.f32.mrf.mxu1 }
  0xe9   :  { %v228_v11 = vmax.f32 %v177_v7, 0.0  ;;  %v468_v13 = vmax.f32 %v417_v9, 0.0 }
  0xea   :  { %v181_v14 = vpop.f32.mrf.mxu0  ;;  %v421_v16 = vpop.f32.mrf.mxu1 }
  0xeb   :  { %241 = vst [vmem:[%s1974_s3 + $0x8] sm:$0xff] %v228_v11  ;;  %v182_v15 = vadd.f32 %v1761_v61, %v181_v14  ;;  %1042 = vst [vmem:[%s1974_s3 + $0x70] sm:$0xff] %v468_v13  ;;  %v422_v17 = vadd.f32 %v1761_v61, %v421_v16 }
  0xec   :  { %v1252_v18 = vpop.f32.mrf.mxu0  ;;  %v1296_v20 = vpop.f32.mrf.mxu1 }
  0xed   :  { %v229_v19 = vmax.f32 %v182_v15, 0.0  ;;  %v469_v21 = vmax.f32 %v422_v17, 0.0 }
  0xee   :  { %v184_v22 = vpop.f32.mrf.mxu0  ;;  %v424_v24 = vpop.f32.mrf.mxu1 }
  0xef   :  { %242 = vst [vmem:[%s1974_s3 + $0x10] sm:$0xff] %v229_v19  ;;  %v185_v23 = vadd.f32 %v1761_v61, %v184_v22  ;;  %1043 = vst [vmem:[%s1974_s3 + $0x78] sm:$0xff] %v469_v21  ;;  %v425_v25 = vadd.f32 %v1761_v61, %v424_v24 }
  0xf0   :  { %v1253_v26 = vpop.f32.mrf.mxu0  ;;  %v1297_v28 = vpop.f32.mrf.mxu1 }
  0xf1   :  { %v230_v27 = vmax.f32 %v185_v23, 0.0  ;;  %v470_v29 = vmax.f32 %v425_v25, 0.0 }
  0xf2   :  { %v189_v30 = vpop.f32.mrf.mxu0  ;;  %v429_v32 = vpop.f32.mrf.mxu1 }
  0xf3   :  { %243 = vst [vmem:[%s1974_s3 + $0x18] sm:$0xff] %v230_v27  ;;  %v190_v31 = vadd.f32 %v1761_v61, %v189_v30  ;;  %1044 = vst [vmem:[%s1974_s3 + $0x80] sm:$0xff] %v470_v29  ;;  %v430_v33 = vadd.f32 %v1761_v61, %v429_v32 }
  0xf4   :  { %v1256_v34 = vpop.f32.mrf.mxu0  ;;  %v1300_v36 = vpop.f32.mrf.mxu1 }
  0xf5   :  { %v231_v35 = vmax.f32 %v190_v31, 0.0  ;;  %v471_v37 = vmax.f32 %v430_v33, 0.0 }
  0xf6   :  { %v192_v38 = vpop.f32.mrf.mxu0  ;;  %v432_v40 = vpop.f32.mrf.mxu1 }
  0xf7   :  { %244 = vst [vmem:[%s1974_s3 + $0x20] sm:$0xff] %v231_v35  ;;  %v193_v39 = vadd.f32 %v1761_v61, %v192_v38  ;;  %1045 = vst [vmem:[%s1974_s3 + $0x88] sm:$0xff] %v471_v37  ;;  %v433_v41 = vadd.f32 %v1761_v61, %v432_v40 }
  0xf8   :  { %v1257_v42 = vpop.f32.mrf.mxu0  ;;  %v1301_v44 = vpop.f32.mrf.mxu1 }
  0xf9   :  { %v232_v43 = vmax.f32 %v193_v39, 0.0  ;;  %v472_v45 = vmax.f32 %v433_v41, 0.0 }
  0xfa   :  { %v197_v46 = vpop.f32.mrf.mxu0  ;;  %v437_v48 = vpop.f32.mrf.mxu1 }
  0xfb   :  { %245 = vst [vmem:[%s1974_s3 + $0x28] sm:$0xff] %v232_v43  ;;  %v198_v47 = vadd.f32 %v1761_v61, %v197_v46  ;;  %1046 = vst [vmem:[%s1974_s3 + $0x90] sm:$0xff] %v472_v45  ;;  %v438_v49 = vadd.f32 %v1761_v61, %v437_v48 }
  0xfc   :  { %v1260_v50 = vpop.f32.mrf.mxu0  ;;  %v1304_v52 = vpop.f32.mrf.mxu1 }
  0xfd   :  { %v233_v51 = vmax.f32 %v198_v47, 0.0  ;;  %v473_v53 = vmax.f32 %v438_v49, 0.0 }
  0xfe   :  { %v200_v54 = vpop.f32.mrf.mxu0  ;;  %v440_v56 = vpop.f32.mrf.mxu1 }
  0xff   :  { %246 = vst [vmem:[%s1974_s3 + $0x30] sm:$0xff] %v233_v51  ;;  %v201_v55 = vadd.f32 %v1761_v61, %v200_v54  ;;  %1047 = vst [vmem:[%s1974_s3 + $0x98] sm:$0xff] %v473_v53  ;;  %v441_v57 = vadd.f32 %v1761_v61, %v440_v56 }
 0x100   :  { %v1261_v58 = vpop.f32.mrf.mxu0  ;;  %v1305_v60 = vpop.f32.mrf.mxu1 }
 0x101   :  { %v234_v59 = vmax.f32 %v201_v55, 0.0  ;;  %v474_v62 = vmax.f32 %v441_v57, 0.0 }
 0x102   :  { %v205_v63 = vpop.f32.mrf.mxu0  ;;  %v445_v0 = vpop.f32.mrf.mxu1 }
 0x103   :  { %247 = vst [vmem:[%s1974_s3 + $0x38] sm:$0xff] %v234_v59  ;;  %v206_v1 = vadd.f32 %v1761_v61, %v205_v63  ;;  %1048 = vst [vmem:[%s1974_s3 + $0xa0] sm:$0xff] %v474_v62  ;;  %v446_v2 = vadd.f32 %v1761_v61, %v445_v0 }
 0x104   :  { %v1264_v3 = vpop.f32.mrf.mxu0  ;;  %v1308_v5 = vpop.f32.mrf.mxu1 }
 0x105   :  { %v235_v4 = vmax.f32 %v206_v1, 0.0  ;;  %v475_v6 = vmax.f32 %v446_v2, 0.0 }
 0x106   :  { %v208_v7 = vpop.f32.mrf.mxu0  ;;  %v448_v9 = vpop.f32.mrf.mxu1 }
 0x107   :  { %248 = vst [vmem:[%s1974_s3 + $0x40] sm:$0xff] %v235_v4  ;;  %v209_v8 = vadd.f32 %v1761_v61, %v208_v7  ;;  %1049 = vst [vmem:[%s1974_s3 + $0xa8] sm:$0xff] %v475_v6  ;;  %v449_v10 = vadd.f32 %v1761_v61, %v448_v9 }
 0x108   :  { %v1265_v11 = vpop.f32.mrf.mxu0  ;;  %v1309_v13 = vpop.f32.mrf.mxu1 }
 0x109   :  { %v236_v12 = vmax.f32 %v209_v8, 0.0  ;;  %v476_v14 = vmax.f32 %v449_v10, 0.0 }
 0x10a   :  { %v213_v15 = vpop.f32.mrf.mxu0  ;;  %v453_v17 = vpop.f32.mrf.mxu1 }
 0x10b   :  { %249 = vst [vmem:[%s1974_s3 + $0x48] sm:$0xff] %v236_v12  ;;  %v214_v16 = vadd.f32 %v1761_v61, %v213_v15  ;;  %1050 = vst [vmem:[%s1974_s3 + $0xb0] sm:$0xff] %v476_v14  ;;  %v454_v18 = vadd.f32 %v1761_v61, %v453_v17 }
 0x10c   :  { %v1268_v19 = vpop.f32.mrf.mxu0  ;;  %v1312_v21 = vpop.f32.mrf.mxu1 }
 0x10d   :  { %v237_v20 = vmax.f32 %v214_v16, 0.0  ;;  %v477_v22 = vmax.f32 %v454_v18, 0.0 }
 0x10e   :  { %v216_v23 = vpop.f32.mrf.mxu0  ;;  %v456_v25 = vpop.f32.mrf.mxu1 }
 0x10f   :  { %250 = vst [vmem:[%s1974_s3 + $0x50] sm:$0xff] %v237_v20  ;;  %v217_v24 = vadd.f32 %v1761_v61, %v216_v23  ;;  %1051 = vst [vmem:[%s1974_s3 + $0xb8] sm:$0xff] %v477_v22  ;;  %v457_v26 = vadd.f32 %v1761_v61, %v456_v25 }
 0x110   :  { %v1269_v27 = vpop.f32.mrf.mxu0  ;;  %v1313_v29 = vpop.f32.mrf.mxu1 }
 0x111   :  { %v238_v28 = vmax.f32 %v217_v24, 0.0  ;;  %v478_v30 = vmax.f32 %v457_v26, 0.0 }
 0x112   :  { %v221_v31 = vpop.f32.mrf.mxu0  ;;  %v461_v33 = vpop.f32.mrf.mxu1 }
 0x113   :  { %251 = vst [vmem:[%s1974_s3 + $0x58] sm:$0xff] %v238_v28  ;;  %v222_v32 = vadd.f32 %v1761_v61, %v221_v31  ;;  %1052 = vst [vmem:[%s1974_s3 + $0xc0] sm:$0xff] %v478_v30  ;;  %v462_v34 = vadd.f32 %v1761_v61, %v461_v33 }
 0x114   :  { %v1272_v35 = vpop.f32.mrf.mxu0  ;;  %v1316_v37 = vpop.f32.mrf.mxu1 }
 0x115   :  { %v239_v36 = vmax.f32 %v222_v32, 0.0  ;;  %v479_v38 = vmax.f32 %v462_v34, 0.0 }
 0x116   :  { %v224_v39 = vpop.f32.mrf.mxu0  ;;  %v464_v40 = vpop.f32.mrf.mxu1 }
 0x117   :  { %252 = vst [vmem:[%s1974_s3 + $0x60] sm:$0x3] %v239_v36  ;;  %1053 = vst [vmem:[%s1974_s3 + $0xc8] sm:$0x3] %v479_v38 }
 0x118   :  { %v1273_v41 = vpop.f32.mrf.mxu0  ;;  %v1317_v42 = vpop.f32.mrf.mxu1 }
 0x11a   :  { %v654_v43 = vpop.f32.mrf.mxu0  ;;  %v895_v45 = vpop.f32.mrf.mxu1 }
 0x11b   :  { %v655_v44 = vadd.f32 %v1761_v61, %v654_v43  ;;  %v896_v46 = vadd.f32 %v1761_v61, %v895_v45 }
 0x11c   :  { %v1336_v47 = vpop.f32.mrf.mxu0  ;;  %v1380_v49 = vpop.f32.mrf.mxu1 }
 0x11d   :  { %v708_v48 = vmax.f32 %v655_v44, 0.0  ;;  %v949_v50 = vmax.f32 %v896_v46, 0.0 }
 0x11e   :  { %v657_v51 = vpop.f32.mrf.mxu0  ;;  %v898_v53 = vpop.f32.mrf.mxu1 }
 0x11f   :  { %1099 = vst [vmem:[%s1974_s3 + $0xd0] sm:$0xff] %v708_v48  ;;  %v658_v52 = vadd.f32 %v1761_v61, %v657_v51  ;;  %1157 = vst [vmem:[%s1974_s3 + $0x138] sm:$0xff] %v949_v50  ;;  %v899_v54 = vadd.f32 %v1761_v61, %v898_v53 }
 0x120   :  { %v1337_v55 = vpop.f32.mrf.mxu0  ;;  %v1381_v57 = vpop.f32.mrf.mxu1 }
 0x121   :  { %v709_v56 = vmax.f32 %v658_v52, 0.0  ;;  %v950_v58 = vmax.f32 %v899_v54, 0.0 }
 0x122   :  { %v662_v59 = vpop.f32.mrf.mxu0  ;;  %v903_v62 = vpop.f32.mrf.mxu1 }
 0x123   :  { %1100 = vst [vmem:[%s1974_s3 + $0xd8] sm:$0xff] %v709_v56  ;;  %v663_v60 = vadd.f32 %v1761_v61, %v662_v59  ;;  %1158 = vst [vmem:[%s1974_s3 + $0x140] sm:$0xff] %v950_v58  ;;  %v904_v63 = vadd.f32 %v1761_v61, %v903_v62 }
 0x124   :  { %v1340_v1 = vpop.f32.mrf.mxu0  ;;  %v1384_v2 = vpop.f32.mrf.mxu1 }
 0x125   :  { %v710_v0 = vmax.f32 %v663_v60, 0.0  ;;  %v951_v3 = vmax.f32 %v904_v63, 0.0 }
 0x126   :  { %v665_v4 = vpop.f32.mrf.mxu0  ;;  %v906_v6 = vpop.f32.mrf.mxu1 }
 0x127   :  { %1101 = vst [vmem:[%s1974_s3 + $0xe0] sm:$0xff] %v710_v0  ;;  %v666_v5 = vadd.f32 %v1761_v61, %v665_v4  ;;  %1159 = vst [vmem:[%s1974_s3 + $0x148] sm:$0xff] %v951_v3  ;;  %v907_v7 = vadd.f32 %v1761_v61, %v906_v6 }
 0x128   :  { %v1341_v8 = vpop.f32.mrf.mxu0  ;;  %v1385_v10 = vpop.f32.mrf.mxu1 }
 0x129   :  { %v711_v9 = vmax.f32 %v666_v5, 0.0  ;;  %v952_v11 = vmax.f32 %v907_v7, 0.0 }
 0x12a   :  { %v670_v12 = vpop.f32.mrf.mxu0  ;;  %v911_v14 = vpop.f32.mrf.mxu1 }
 0x12b   :  { %1102 = vst [vmem:[%s1974_s3 + $0xe8] sm:$0xff] %v711_v9  ;;  %v671_v13 = vadd.f32 %v1761_v61, %v670_v12  ;;  %1160 = vst [vmem:[%s1974_s3 + $0x150] sm:$0xff] %v952_v11  ;;  %v912_v15 = vadd.f32 %v1761_v61, %v911_v14 }
 0x12c   :  { %v1344_v16 = vpop.f32.mrf.mxu0  ;;  %v1388_v18 = vpop.f32.mrf.mxu1 }
 0x12d   :  { %v712_v17 = vmax.f32 %v671_v13, 0.0  ;;  %v953_v19 = vmax.f32 %v912_v15, 0.0 }
 0x12e   :  { %v673_v20 = vpop.f32.mrf.mxu0  ;;  %v914_v22 = vpop.f32.mrf.mxu1 }
 0x12f   :  { %1103 = vst [vmem:[%s1974_s3 + $0xf0] sm:$0xff] %v712_v17  ;;  %v674_v21 = vadd.f32 %v1761_v61, %v673_v20  ;;  %1161 = vst [vmem:[%s1974_s3 + $0x158] sm:$0xff] %v953_v19  ;;  %v915_v23 = vadd.f32 %v1761_v61, %v914_v22 }
 0x130   :  { %v1345_v24 = vpop.f32.mrf.mxu0  ;;  %v1389_v26 = vpop.f32.mrf.mxu1 }
 0x131   :  { %v713_v25 = vmax.f32 %v674_v21, 0.0  ;;  %v954_v27 = vmax.f32 %v915_v23, 0.0 }
 0x132   :  { %v678_v28 = vpop.f32.mrf.mxu0  ;;  %v919_v30 = vpop.f32.mrf.mxu1 }
 0x133   :  { %1104 = vst [vmem:[%s1974_s3 + $0xf8] sm:$0xff] %v713_v25  ;;  %v679_v29 = vadd.f32 %v1761_v61, %v678_v28  ;;  %1162 = vst [vmem:[%s1974_s3 + $0x160] sm:$0xff] %v954_v27  ;;  %v920_v31 = vadd.f32 %v1761_v61, %v919_v30 }
 0x134   :  { %v1348_v32 = vpop.f32.mrf.mxu0  ;;  %v1392_v34 = vpop.f32.mrf.mxu1 }
 0x135   :  { %v714_v33 = vmax.f32 %v679_v29, 0.0  ;;  %v955_v35 = vmax.f32 %v920_v31, 0.0 }
 0x136   :  { %v681_v36 = vpop.f32.mrf.mxu0  ;;  %v922_v38 = vpop.f32.mrf.mxu1 }
 0x137   :  { %1105 = vst [vmem:[%s1974_s3 + $0x100] sm:$0xff] %v714_v33  ;;  %v682_v37 = vadd.f32 %v1761_v61, %v681_v36  ;;  %1163 = vst [vmem:[%s1974_s3 + $0x168] sm:$0xff] %v955_v35  ;;  %v923_v39 = vadd.f32 %v1761_v61, %v922_v38 }
 0x138   :  { %v1349_v40 = vpop.f32.mrf.mxu0  ;;  %v1393_v42 = vpop.f32.mrf.mxu1 }
 0x139   :  { %v715_v41 = vmax.f32 %v682_v37, 0.0  ;;  %v956_v43 = vmax.f32 %v923_v39, 0.0 }
 0x13a   :  { %v686_v44 = vpop.f32.mrf.mxu0  ;;  %v927_v46 = vpop.f32.mrf.mxu1 }
 0x13b   :  { %1106 = vst [vmem:[%s1974_s3 + $0x108] sm:$0xff] %v715_v41  ;;  %v687_v45 = vadd.f32 %v1761_v61, %v686_v44  ;;  %1164 = vst [vmem:[%s1974_s3 + $0x170] sm:$0xff] %v956_v43  ;;  %v928_v47 = vadd.f32 %v1761_v61, %v927_v46 }
 0x13c   :  { %v1352_v48 = vpop.f32.mrf.mxu0  ;;  %v1396_v50 = vpop.f32.mrf.mxu1 }
 0x13d   :  { %v716_v49 = vmax.f32 %v687_v45, 0.0  ;;  %v957_v51 = vmax.f32 %v928_v47, 0.0 }
 0x13e   :  { %v689_v52 = vpop.f32.mrf.mxu0  ;;  %v930_v54 = vpop.f32.mrf.mxu1 }
 0x13f   :  { %1107 = vst [vmem:[%s1974_s3 + $0x110] sm:$0xff] %v716_v49  ;;  %v690_v53 = vadd.f32 %v1761_v61, %v689_v52  ;;  %1165 = vst [vmem:[%s1974_s3 + $0x178] sm:$0xff] %v957_v51  ;;  %v931_v55 = vadd.f32 %v1761_v61, %v930_v54 }
 0x140   :  { %v1353_v56 = vpop.f32.mrf.mxu0  ;;  %v1397_v58 = vpop.f32.mrf.mxu1 }
 0x141   :  { %v717_v57 = vmax.f32 %v690_v53, 0.0  ;;  %v958_v59 = vmax.f32 %v931_v55, 0.0 }
 0x142   :  { %v694_v60 = vpop.f32.mrf.mxu0  ;;  %v935_v63 = vpop.f32.mrf.mxu1 }
 0x143   :  { %1108 = vst [vmem:[%s1974_s3 + $0x118] sm:$0xff] %v717_v57  ;;  %v695_v62 = vadd.f32 %v1761_v61, %v694_v60  ;;  %1166 = vst [vmem:[%s1974_s3 + $0x180] sm:$0xff] %v958_v59  ;;  %v936_v1 = vadd.f32 %v1761_v61, %v935_v63 }
 0x144   :  { %v1356_v0 = vpop.f32.mrf.mxu0  ;;  %v1400_v3 = vpop.f32.mrf.mxu1 }
 0x145   :  { %v718_v2 = vmax.f32 %v695_v62, 0.0  ;;  %v959_v4 = vmax.f32 %v936_v1, 0.0 }
 0x146   :  { %v697_v5 = vpop.f32.mrf.mxu0  ;;  %v938_v7 = vpop.f32.mrf.mxu1 }
 0x147   :  { %1109 = vst [vmem:[%s1974_s3 + $0x120] sm:$0xff] %v718_v2  ;;  %v698_v6 = vadd.f32 %v1761_v61, %v697_v5  ;;  %1167 = vst [vmem:[%s1974_s3 + $0x188] sm:$0xff] %v959_v4  ;;  %v939_v8 = vadd.f32 %v1761_v61, %v938_v7 }
 0x148   :  { %v1357_v9 = vpop.f32.mrf.mxu0  ;;  %v1401_v11 = vpop.f32.mrf.mxu1 }
 0x149   :  { %v719_v10 = vmax.f32 %v698_v6, 0.0  ;;  %v960_v12 = vmax.f32 %v939_v8, 0.0 }
 0x14a   :  { %v702_v13 = vpop.f32.mrf.mxu0  ;;  %v943_v15 = vpop.f32.mrf.mxu1 }
 0x14b   :  { %1110 = vst [vmem:[%s1974_s3 + $0x128] sm:$0xff] %v719_v10  ;;  %v703_v14 = vadd.f32 %v1761_v61, %v702_v13  ;;  %1168 = vst [vmem:[%s1974_s3 + $0x190] sm:$0xff] %v960_v12  ;;  %v944_v16 = vadd.f32 %v1761_v61, %v943_v15 }
 0x14c   :  { %v1360_v17 = vpop.f32.mrf.mxu0  ;;  %v1404_v19 = vpop.f32.mrf.mxu1 }
 0x14d   :  { %v720_v18 = vmax.f32 %v703_v14, 0.0  ;;  %v961_v20 = vmax.f32 %v944_v16, 0.0 }
 0x14e   :  { %v705_v21 = vpop.f32.mrf.mxu0  ;;  %v946_v22 = vpop.f32.mrf.mxu1 }
 0x14f   :  { %1111 = vst [vmem:[%s1974_s3 + $0x130] sm:$0x3] %v720_v18  ;;  %1169 = vst [vmem:[%s1974_s3 + $0x198] sm:$0x3] %v961_v20 }
 0x150   :  { %v1361_v23 = vpop.f32.mrf.mxu0  ;;  %v1405_v24 = vpop.f32.mrf.mxu1 }

// kernel: vae_forward.9
= control target key start
LH: loop header
LB: loop body
LE: loop exit
PB: predicated region body
PF: predicated region fallthrough
CT: control target
= control target key end

     0   :  { %v226_v35 = vlaneseq  ;;  %v3496_v36 = vmov 1966171168   ;;  %vm1318_vm0 = vcmask 261120   ;;  %vm3499_vm1 = vmmov 0   ;;  %s4574_s1 = inlined_call_operand.vmem [shape: bf16[1568,256], index: 1, kind: input, shape index: {}]   ;;  %s4575_s0 = inlined_call_operand.vmem [shape: bf16[2,1568], index: 0, kind: input, shape index: {}]   ;;  %s4576_s2 = inlined_call_operand.vmem [shape: f32[1,256], index: 2, kind: input, shape index: {}]   ;;  %s4577_s4 = inlined_call_operand.vmem [shape: bf16[128,1568], index: 4, kind: input, shape index: {}]   ;;  %s4578_s6 = inlined_call_operand.vmem [shape: f32[2,256], index: 6, kind: output, shape index: {0}]   ;;  %s4579_s3 = inlined_call_operand.vmem [shape: f32[2,128], index: 3, kind: input, shape index: {}]   ;;  %s4580_s5 = inlined_call_operand.vmem [shape: f32[1,1568], index: 5, kind: input, shape index: {}]   ;;  %s4581_s7 = inlined_call_operand.vmem [shape: f32[2,1568], index: 7, kind: output, shape index: {1}]  }
   0x1   :  { %v3046_v0 = vld [vmem:[%s4574_s1 + $0x74] ss:$8 sps:$4 sm:$0xff]   ;;  %v3048_v1 = vld [vmem:[%s4574_s1 + $0x70] ss:$8 sps:$4 sm:$0xff]   ;;  %v3052_v4 = vld [vmem:[%s4574_s1 + $0x64] ss:$8 sps:$4 sm:$0xff]   ;;  %v240_v37 = vunpack.c.l.s4 %v3496_v36 }
   0x2   :  { %1322 = vmatprep.subr.bf16.mxu0 %v3046_v0  ;;  %v3049_v2 = vld [vmem:[%s4574_s1 + $0x174] ss:$8 sps:$4 sm:$0xff]   ;;  %v3051_v3 = vld [vmem:[%s4574_s1 + $0x170] ss:$8 sps:$4 sm:$0xff]   ;;  %v3054_v5 = vld [vmem:[%s4574_s1 + $0x60] ss:$8 sps:$4 sm:$0xff]  }
   0x3   :  { %1323 = vmatpush1.bf16.msra.mxu0 %v3048_v1  ;;  %1363 = vmatprep.subr.bf16.mxu1 %v3049_v2  ;;  %v3055_v6 = vld [vmem:[%s4574_s1 + $0x164] ss:$8 sps:$4 sm:$0xff]   ;;  %v3057_v7 = vld [vmem:[%s4574_s1 + $0x160] ss:$8 sps:$4 sm:$0xff]   ;;  %v3058_v8 = vld [vmem:[%s4574_s1 + $0x54] ss:$8 sps:$4 sm:$0xff]   ;;  %v241_v43 = vunpack.c.0.s8 %v240_v37 }
   0x4   :  { %1364 = vmatpush1.bf16.msra.mxu1 %v3051_v3  ;;  %1324 = vmatprep.subr.bf16.mxu0 %v3052_v4  ;;  %v3060_v9 = vld [vmem:[%s4574_s1 + $0x50] ss:$8 sps:$4 sm:$0xff]   ;;  %v3061_v10 = vld [vmem:[%s4574_s1 + $0x154] ss:$8 sps:$4 sm:$0xff]   ;;  %v3064_v11 = vld [vmem:[%s4574_s1 + $0x44] ss:$8 sps:$4 sm:$0xff]  }
   0x5   :  { %1365 = vmatprep.subr.bf16.mxu1 %v3055_v6  ;;  %v3063_v12 = vld [vmem:[%s4574_s1 + $0x150] ss:$8 sps:$4 sm:$0xff]   ;;  %v3067_v13 = vld [vmem:[%s4574_s1 + $0x144] ss:$8 sps:$4 sm:$0xff]   ;;  %v3066_v14 = vld [vmem:[%s4574_s1 + $0x40] ss:$8 sps:$4 sm:$0xff]  }
   0x6   :  { %v3070_v15 = vld [vmem:[%s4574_s1 + $0x34] ss:$8 sps:$4 sm:$0xff]   ;;  %v3069_v16 = vld [vmem:[%s4574_s1 + $0x140] ss:$8 sps:$4 sm:$0xff]   ;;  %v3072_v18 = vld [vmem:[%s4574_s1 + $0x30] ss:$8 sps:$4 sm:$0xff]  }
   0x7   :  { %1325 = vmatpush1.bf16.msra.mxu0 %v3054_v5  ;;  %v3073_v17 = vld [vmem:[%s4574_s1 + $0x134] ss:$8 sps:$4 sm:$0xff]   ;;  %v3076_v19 = vld [vmem:[%s4574_s1 + $0x24] ss:$8 sps:$4 sm:$0xff]   ;;  %v3075_v20 = vld [vmem:[%s4574_s1 + $0x130] ss:$8 sps:$4 sm:$0xff]  }
   0x8   :  { %1326 = vmatprep.subr.bf16.mxu0 %v3058_v8  ;;  %1366 = vmatpush1.bf16.msra.mxu1 %v3057_v7  ;;  %v3079_v21 = vld [vmem:[%s4574_s1 + $0x124] ss:$8 sps:$4 sm:$0xff]   ;;  %v3078_v22 = vld [vmem:[%s4574_s1 + $0x20] ss:$8 sps:$4 sm:$0xff]   ;;  %v3082_v23 = vld [vmem:[%s4574_s1 + $0x14] ss:$8 sps:$4 sm:$0xff]  }
   0x9   :  { %1367 = vmatprep.subr.bf16.mxu1 %v3061_v10  ;;  %v3081_v24 = vld [vmem:[%s4574_s1 + $0x120] ss:$8 sps:$4 sm:$0xff]   ;;  %v3085_v25 = vld [vmem:[%s4574_s1 + $0x114] ss:$8 sps:$4 sm:$0xff]   ;;  %v3084_v26 = vld [vmem:[%s4574_s1 + $0x10] ss:$8 sps:$4 sm:$0xff]  }
   0xa   :  { %v3088_v27 = vld [vmem:[%s4574_s1 + $0x4] ss:$8 sps:$4 sm:$0xff]   ;;  %v3087_v28 = vld [vmem:[%s4574_s1 + $0x110] ss:$8 sps:$4 sm:$0xff]   ;;  %v3090_v30 = vld [vmem:[%s4574_s1] ss:$8 sps:$4 sm:$0xff]  }
   0xb   :  { %1327 = vmatpush1.bf16.msra.mxu0 %v3060_v9  ;;  %v3091_v29 = vld [vmem:[%s4574_s1 + $0x104] ss:$8 sps:$4 sm:$0xff]   ;;  %v3094_v31 = vld [vmem:[%s4574_s1 + $0xf4] ss:$8 sps:$4 sm:$0xff]   ;;  %v3093_v32 = vld [vmem:[%s4574_s1 + $0x100] ss:$8 sps:$4 sm:$0xff]  }
   0xc   :  { %1328 = vmatprep.subr.bf16.mxu0 %v3064_v11  ;;  %1368 = vmatpush1.bf16.msra.mxu1 %v3063_v12  ;;  %v3097_v33 = vld [vmem:[%s4574_s1 + $0x1f4] ss:$8 sps:$4 sm:$0xff]   ;;  %v3096_v34 = vld [vmem:[%s4574_s1 + $0xf0] ss:$8 sps:$4 sm:$0xff]   ;;  %v3100_v38 = vld [vmem:[%s4574_s1 + $0xe4] ss:$8 sps:$4 sm:$0xff]  }
   0xd   :  { %1369 = vmatprep.subr.bf16.mxu1 %v3067_v13  ;;  %v3099_v39 = vld [vmem:[%s4574_s1 + $0x1f0] ss:$8 sps:$4 sm:$0xff]   ;;  %v3103_v40 = vld [vmem:[%s4574_s1 + $0x1e4] ss:$8 sps:$4 sm:$0xff]   ;;  %v3102_v41 = vld [vmem:[%s4574_s1 + $0xe0] ss:$8 sps:$4 sm:$0xff]  }
   0xe   :  { %v3658_v42 = vshrl.u32 %v226_v35, 7  ;;  %v3106_v44 = vld [vmem:[%s4574_s1 + $0xd4] ss:$8 sps:$4 sm:$0xff]   ;;  %v3105_v45 = vld [vmem:[%s4574_s1 + $0x1e0] ss:$8 sps:$4 sm:$0xff]   ;;  %vm2700_vm2 = vcmask 254976  }
   0xf   :  { %1329 = vmatpush1.bf16.msra.mxu0 %v3066_v14  ;;  %v3109_v46 = vld [vmem:[%s4574_s1 + $0x1d4] ss:$8 sps:$4 sm:$0xff]   ;;  %v3108_v47 = vld [vmem:[%s4574_s1 + $0xd0] ss:$8 sps:$4 sm:$0xff]   ;;  %v3112_v49 = vld [vmem:[%s4574_s1 + $0xc4] ss:$8 sps:$4 sm:$0xff]  }
  0x10   :  { %1330 = vmatprep.subr.bf16.mxu0 %v3070_v15  ;;  %1370 = vmatpush1.bf16.msra.mxu1 %v3069_v16  ;;  %v3673_v48 = vsub.s32 %v241_v43, %v3658_v42  ;;  %v3111_v50 = vld [vmem:[%s4574_s1 + $0x1d0] ss:$8 sps:$4 sm:$0xff]   ;;  %v3114_v51 = vld [vmem:[%s4574_s1 + $0xc0] ss:$8 sps:$4 sm:$0xff]   ;;  %v3115_v52 = vld [vmem:[%s4574_s1 + $0x1c4] ss:$8 sps:$4 sm:$0xff]  }
  0x11   :  { %1371 = vmatprep.subr.bf16.mxu1 %v3073_v17  ;;  %v26_v53 = vld [vmem:[%s4575_s0] sm:$0xff]  ;;  %v27_v54 = vld [vmem:[%s4575_s0 + $0x8] sm:$0x1f]  ;;  %v3118_v57 = vld [vmem:[%s4574_s1 + $0xb4] ss:$8 sps:$4 sm:$0xff]  }
  0x12   :  { %v238_v55 = vcombine.high %v26_v53, %v26_v53  ;;  %v245_v56 = vrot.slane %v26_v53, %v3673_v48  ;;  %v287_v58 = vcombine.high %v27_v54, %v27_v54  ;;  %v3117_v59 = vld [vmem:[%s4574_s1 + $0x1c0] ss:$8 sps:$4 sm:$0xff]   ;;  %v3121_v62 = vld [vmem:[%s4574_s1 + $0x1b4] ss:$8 sps:$4 sm:$0xff]   ;;  %v3120_v0 = vld [vmem:[%s4574_s1 + $0xb0] ss:$8 sps:$4 sm:$0xff]   ;;  %v294_v17 = vrot.slane %v27_v54, %v3673_v48 }
  0x13   :  { %1331 = vmatpush1.bf16.msra.mxu0 %v3072_v18  ;;  %v3124_v3 = vld [vmem:[%s4574_s1 + $0xa4] ss:$8 sps:$4 sm:$0xff]   ;;  %v3123_v4 = vld [vmem:[%s4574_s1 + $0x1b0] ss:$8 sps:$4 sm:$0xff]   ;;  %v3126_v7 = vld [vmem:[%s4574_s1 + $0xa0] ss:$8 sps:$4 sm:$0xff]  }
  0x14   :  { %1332 = vmatprep.subr.bf16.mxu0 %v3076_v19  ;;  %1372 = vmatpush1.bf16.msra.mxu1 %v3075_v20  ;;  %v253_v60 = vcombine.high %v245_v56, %v245_v56  ;;  %v252_v61 = vrot.slane %v238_v55, %v3673_v48  ;;  %v3705_v63 = vrot.slane %v287_v58, %v3673_v48  ;;  %v3127_v6 = vld [vmem:[%s4574_s1 + $0x1a4] ss:$8 sps:$4 sm:$0xff]   ;;  %v3130_v8 = vld [vmem:[%s4574_s1 + $0x94] ss:$8 sps:$4 sm:$0xff]   ;;  %v3129_v9 = vld [vmem:[%s4574_s1 + $0x1a0] ss:$8 sps:$4 sm:$0xff]  }
  0x15   :  { %1373 = vmatprep.subr.bf16.mxu1 %v3079_v21  ;;  %v3133_v10 = vld [vmem:[%s4574_s1 + $0x194] ss:$8 sps:$4 sm:$0xff]   ;;  %v3132_v11 = vld [vmem:[%s4574_s1 + $0x90] ss:$8 sps:$4 sm:$0xff]   ;;  %v3136_v12 = vld [vmem:[%s4574_s1 + $0x84] ss:$8 sps:$4 sm:$0xff]   ;;  %v261_v18 = vrot.slane %v245_v56, %v3673_v48 }
  0x16   :  { %v275_v1 = vrot.slane %v253_v60, %v3673_v48  ;;  %v3712_v2 = vrot.slane %v252_v61, %v3673_v48  ;;  %v3135_v13 = vld [vmem:[%s4574_s1 + $0x190] ss:$8 sps:$4 sm:$0xff]   ;;  %v254_v14 = vcombine.high %v252_v61, %v252_v61  ;;  %v3139_v15 = vld [vmem:[%s4574_s1 + $0x184] ss:$8 sps:$4 sm:$0xff]   ;;  %v3138_v16 = vld [vmem:[%s4574_s1 + $0x80] ss:$8 sps:$4 sm:$0xff]   ;;  %v316_v37 = vrot.slane %v3705_v63, %v3673_v48 }
  0x17   :  { %1333 = vmatpush1.bf16.msra.mxu0 %v3078_v22  ;;  %v3146_v19 = vld [vmem:[%s4574_s1 + $0x274] ss:$8 sps:$4 sm:$0xff]   ;;  %v3141_v20 = vld [vmem:[%s4574_s1 + $0x180] ss:$8 sps:$4 sm:$0xff]   ;;  %v302_v22 = vcombine.high %v294_v17, %v294_v17  ;;  %v3156_v36 = vld [vmem:[%s4574_s1 + $0x250] ss:$8 sps:$4 sm:$0xff]  }
  0x18   :  { %1334 = vmatprep.subr.bf16.mxu0 %v3082_v23  ;;  %1374 = vmatpush1.bf16.msra.mxu1 %v3081_v24  ;;  %v285_v5 = vcombine.high %v275_v1, %v275_v1  ;;  %v282_v21 = vrot.slane %v254_v14, %v3673_v48  ;;  %v3149_v23 = vld [vmem:[%s4574_s1 + $0x374] ss:$8 sps:$4 sm:$0xff]   ;;  %v3144_v24 = vld [vmem:[%s4574_s1 + $0x270] ss:$8 sps:$4 sm:$0xff]   ;;  %v3177_v53 = vld [vmem:[%s4574_s1 + $0x320] ss:$8 sps:$4 sm:$0xff]  }
  0x19   :  { %1375 = vmatprep.subr.bf16.mxu1 %v3085_v25  ;;  %1354 = vmatprep.mubr.bf16.mxu0 %v275_v1  ;;  %v3766_v25 = vrot.slane %v302_v22, %v3673_v48  ;;  %v3161_v35 = vld [vmem:[%s4574_s1 + $0x354] ss:$8 sps:$4 sm:$0xff]   ;;  %v3180_v55 = vld [vmem:[%s4574_s1 + $0x210] ss:$8 sps:$4 sm:$0xff]   ;;  %v3188_v56 = vld [vmem:[%s4574_s1 + $0x204] ss:$8 sps:$4 sm:$0xff]  }
  0x1a   :  { %1395 = vmatprep.mubr.bf16.mxu1 %v285_v5  ;;  %v3170_v43 = vld [vmem:[%s4574_s1 + $0x234] ss:$8 sps:$4 sm:$0xff]   ;;  %v3191_v58 = vld [vmem:[%s4574_s1 + $0x304] ss:$8 sps:$4 sm:$0xff]   ;;  %v3189_v61 = vld [vmem:[%s4574_s1 + $0x300] ss:$8 sps:$4 sm:$0xff]  }
  0x1b   :  { %1335 = vmatpush1.bf16.msra.mxu0 %v3084_v26  ;;  %v283_v26 = vcombine.high %v261_v18, %v261_v18  ;;  %v3185_v54 = vld [vmem:[%s4574_s1 + $0x314] ss:$8 sps:$4 sm:$0xff]   ;;  %v3200_v1 = vld [vmem:[%s4574_s1 + $0x2e4] ss:$8 sps:$4 sm:$0xff]   ;;  %v3198_v5 = vld [vmem:[%s4574_s1 + $0x2e0] ss:$8 sps:$4 sm:$0xff]  }
  0x1c   :  { %1336 = vmatprep.subr.bf16.mxu0 %v3088_v27  ;;  %1376 = vmatpush1.bf16.msra.mxu1 %v3087_v28  ;;  %v3152_v27 = vld [vmem:[%s4574_s1 + $0x264] ss:$8 sps:$4 sm:$0xff]   ;;  %v3772_v28 = vrot.slane %v294_v17, %v3673_v48  ;;  %v3194_v60 = vld [vmem:[%s4574_s1 + $0x2f4] ss:$8 sps:$4 sm:$0xff]   ;;  %v3216_v17 = vld [vmem:[%s4574_s1 + $0x2b0] ss:$8 sps:$4 sm:$0xff]  }
  0x1d   :  { %1377 = vmatprep.subr.bf16.mxu1 %v3091_v29  ;;  %v3147_v29 = vld [vmem:[%s4574_s1 + $0x370] ss:$8 sps:$4 sm:$0xff]   ;;  %v3218_v14 = vld [vmem:[%s4574_s1 + $0x2b4] ss:$8 sps:$4 sm:$0xff]  }
  0x1e   :  { %v3230_v22 = vld [vmem:[%s4574_s1 + $0x294] ss:$8 sps:$4 sm:$0xff]  }
  0x1f   :  { %1337 = vmatpush1.bf16.msra.mxu0 %v3090_v30  ;;  %v286_v30 = vcombine.high %v282_v21, %v282_v21 }
  0x20   :  { %1338 = vmatprep.subr.bf16.mxu0 %v3094_v31  ;;  %1378 = vmatpush1.bf16.msra.mxu1 %v3093_v32  ;;  %v3155_v31 = vld [vmem:[%s4574_s1 + $0x364] ss:$8 sps:$4 sm:$0xff]   ;;  %v3150_v32 = vld [vmem:[%s4574_s1 + $0x260] ss:$8 sps:$4 sm:$0xff]  }
  0x21   :  { %1379 = vmatprep.subr.bf16.mxu1 %v3097_v33  ;;  %v3158_v33 = vld [vmem:[%s4574_s1 + $0x254] ss:$8 sps:$4 sm:$0xff]  }
  0x23   :  { %1339 = vmatpush2.bf16.msra.mxu0 %v3096_v34  ;;  %v3153_v34 = vld [vmem:[%s4574_s1 + $0x360] ss:$8 sps:$4 sm:$0xff]  }
  0x24   :  { %1340 = vmatprep.subr.bf16.mxu0 %v3100_v38  ;;  %1380 = vmatpush2.bf16.msra.mxu1 %v3099_v39  ;;  %v3164_v38 = vld [vmem:[%s4574_s1 + $0x244] ss:$8 sps:$4 sm:$0xff]   ;;  %v3159_v39 = vld [vmem:[%s4574_s1 + $0x350] ss:$8 sps:$4 sm:$0xff]  }
  0x25   :  { %1381 = vmatprep.subr.bf16.mxu1 %v3103_v40  ;;  %v3167_v40 = vld [vmem:[%s4574_s1 + $0x344] ss:$8 sps:$4 sm:$0xff]  }
  0x27   :  { %1341 = vmatpush2.bf16.msra.mxu0 %v3102_v41  ;;  %v3162_v41 = vld [vmem:[%s4574_s1 + $0x240] ss:$8 sps:$4 sm:$0xff]  }
  0x28   :  { %1342 = vmatprep.subr.bf16.mxu0 %v3106_v44  ;;  %1382 = vmatpush2.bf16.msra.mxu1 %v3105_v45  ;;  %v3165_v44 = vld [vmem:[%s4574_s1 + $0x340] ss:$8 sps:$4 sm:$0xff]   ;;  %v3173_v45 = vld [vmem:[%s4574_s1 + $0x334] ss:$8 sps:$4 sm:$0xff]  }
  0x29   :  { %1383 = vmatprep.subr.bf16.mxu1 %v3109_v46  ;;  %v3168_v46 = vld [vmem:[%s4574_s1 + $0x230] ss:$8 sps:$4 sm:$0xff]  }
  0x2b   :  { %1343 = vmatpush2.bf16.msra.mxu0 %v3108_v47  ;;  %v3176_v47 = vld [vmem:[%s4574_s1 + $0x224] ss:$8 sps:$4 sm:$0xff]  }
  0x2c   :  { %1344 = vmatprep.subr.bf16.mxu0 %v3112_v49  ;;  %1384 = vmatpush2.bf16.msra.mxu1 %v3111_v50  ;;  %v3171_v49 = vld [vmem:[%s4574_s1 + $0x330] ss:$8 sps:$4 sm:$0xff]   ;;  %v3179_v50 = vld [vmem:[%s4574_s1 + $0x324] ss:$8 sps:$4 sm:$0xff]  }
  0x2d   :  { %1385 = vmatprep.subr.bf16.mxu1 %v3115_v52  ;;  %v3182_v52 = vld [vmem:[%s4574_s1 + $0x214] ss:$8 sps:$4 sm:$0xff]  }
  0x2f   :  { %1345 = vmatpush2.bf16.msra.mxu0 %v3114_v51  ;;  %v3174_v51 = vld [vmem:[%s4574_s1 + $0x220] ss:$8 sps:$4 sm:$0xff]  }
  0x30   :  { %1346 = vmatprep.subr.bf16.mxu0 %v3118_v57  ;;  %1386 = vmatpush2.bf16.msra.mxu1 %v3117_v59  ;;  %v3183_v57 = vld [vmem:[%s4574_s1 + $0x310] ss:$8 sps:$4 sm:$0xff]   ;;  %v3186_v59 = vld [vmem:[%s4574_s1 + $0x200] ss:$8 sps:$4 sm:$0xff]  }
  0x31   :  { %1387 = vmatprep.subr.bf16.mxu1 %v3121_v62  ;;  %v3197_v62 = vld [vmem:[%s4574_s1 + $0x3f4] ss:$8 sps:$4 sm:$0xff]  }
  0x33   :  { %1347 = vmatpush2.bf16.msra.mxu0 %v3120_v0  ;;  %v3192_v0 = vld [vmem:[%s4574_s1 + $0x2f0] ss:$8 sps:$4 sm:$0xff]  }
  0x34   :  { %1348 = vmatprep.subr.bf16.mxu0 %v3124_v3  ;;  %1388 = vmatpush2.bf16.msra.mxu1 %v3123_v4  ;;  %v3195_v3 = vld [vmem:[%s4574_s1 + $0x3f0] ss:$8 sps:$4 sm:$0xff]   ;;  %v3203_v4 = vld [vmem:[%s4574_s1 + $0x3e4] ss:$8 sps:$4 sm:$0xff]  }
  0x35   :  { %1389 = vmatprep.subr.bf16.mxu1 %v3127_v6  ;;  %v3206_v6 = vld [vmem:[%s4574_s1 + $0x2d4] ss:$8 sps:$4 sm:$0xff]  }
  0x37   :  { %1349 = vmatpush2.bf16.msra.mxu0 %v3126_v7  ;;  %v3201_v7 = vld [vmem:[%s4574_s1 + $0x3e0] ss:$8 sps:$4 sm:$0xff]  }
  0x38   :  { %1350 = vmatprep.subr.bf16.mxu0 %v3130_v8  ;;  %1390 = vmatpush2.bf16.msra.mxu1 %v3129_v9  ;;  %v3209_v8 = vld [vmem:[%s4574_s1 + $0x3d4] ss:$8 sps:$4 sm:$0xff]   ;;  %v3204_v9 = vld [vmem:[%s4574_s1 + $0x2d0] ss:$8 sps:$4 sm:$0xff]  }
  0x39   :  { %1391 = vmatprep.subr.bf16.mxu1 %v3133_v10  ;;  %v3212_v10 = vld [vmem:[%s4574_s1 + $0x2c4] ss:$8 sps:$4 sm:$0xff]  }
  0x3b   :  { %1351 = vmatpush2.bf16.msra.mxu0 %v3132_v11  ;;  %v3207_v11 = vld [vmem:[%s4574_s1 + $0x3d0] ss:$8 sps:$4 sm:$0xff]  }
  0x3c   :  { %1352 = vmatprep.subr.bf16.mxu0 %v3136_v12  ;;  %1392 = vmatpush2.bf16.msra.mxu1 %v3135_v13  ;;  %v3215_v12 = vld [vmem:[%s4574_s1 + $0x3c4] ss:$8 sps:$4 sm:$0xff]   ;;  %v3210_v13 = vld [vmem:[%s4574_s1 + $0x2c0] ss:$8 sps:$4 sm:$0xff]  }
  0x3d   :  { %1393 = vmatprep.subr.bf16.mxu1 %v3139_v15  ;;  %v3213_v15 = vld [vmem:[%s4574_s1 + $0x3c0] ss:$8 sps:$4 sm:$0xff]  }
  0x3f   :  { %1353 = vmatpush2.bf16.msra.mxu0 %v3138_v16  ;;  %v3221_v16 = vld [vmem:[%s4574_s1 + $0x3b4] ss:$8 sps:$4 sm:$0xff]  }
  0x40   :  { %1404 = vmatprep.subr.bf16.mxu0 %v3146_v19  ;;  %1394 = vmatpush2.bf16.msra.mxu1 %v3141_v20  ;;  %v3219_v19 = vld [vmem:[%s4574_s1 + $0x3b0] ss:$8 sps:$4 sm:$0xff]   ;;  %v3227_v20 = vld [vmem:[%s4574_s1 + $0x3a4] ss:$8 sps:$4 sm:$0xff]  }
  0x41   :  { %1445 = vmatprep.subr.bf16.mxu1 %v3149_v23  ;;  %v3225_v23 = vld [vmem:[%s4574_s1 + $0x3a0] ss:$8 sps:$4 sm:$0xff]  }
  0x42   :  { %1355 = vmatmul.mubr.bf16.vlgmr.msra.gmra.mxu0 %v261_v18  ;;  %v3224_v18 = vld [vmem:[%s4574_s1 + $0x2a4] ss:$8 sps:$4 sm:$0xff]  }
  0x43   :  { %1405 = vmatpush1.bf16.msra.mxu0 %v3144_v24  ;;  %1436 = vmatprep.mubr.bf16.mxu0 %v282_v21  ;;  %v3222_v21 = vld [vmem:[%s4574_s1 + $0x2a0] ss:$8 sps:$4 sm:$0xff]   ;;  %v3233_v24 = vld [vmem:[%s4574_s1 + $0x394] ss:$8 sps:$4 sm:$0xff]  }
  0x44   :  { %1396 = vmatmul.mubr.bf16.vlgmr.msra.gmra.mxu1 %v283_v26  ;;  %1406 = vmatprep.subr.bf16.mxu0 %v3152_v27  ;;  %v3228_v26 = vld [vmem:[%s4574_s1 + $0x290] ss:$8 sps:$4 sm:$0xff]   ;;  %v3236_v27 = vld [vmem:[%s4574_s1 + $0x284] ss:$8 sps:$4 sm:$0xff]  }
  0x45   :  { %1446 = vmatpush1.bf16.msra.mxu1 %v3147_v29  ;;  %1477 = vmatprep.mubr.bf16.mxu1 %v286_v30  ;;  %v3231_v29 = vld [vmem:[%s4574_s1 + $0x390] ss:$8 sps:$4 sm:$0xff]   ;;  %v3239_v30 = vld [vmem:[%s4574_s1 + $0x384] ss:$8 sps:$4 sm:$0xff]  }
  0x46   :  { %1447 = vmatprep.subr.bf16.mxu1 %v3155_v31  ;;  %v3234_v31 = vld [vmem:[%s4574_s1 + $0x280] ss:$8 sps:$4 sm:$0xff]  }
  0x47   :  { %1407 = vmatpush1.bf16.msra.mxu0 %v3150_v32  ;;  %v3242_v32 = vld [vmem:[%s4574_s1 + $0x474] ss:$8 sps:$4 sm:$0xff]  }
  0x48   :  { %1408 = vmatprep.subr.bf16.mxu0 %v3158_v33  ;;  %v3237_v33 = vld [vmem:[%s4574_s1 + $0x380] ss:$8 sps:$4 sm:$0xff]  }
  0x49   :  { %1448 = vmatpush1.bf16.msra.mxu1 %v3153_v34  ;;  %v3245_v34 = vld [vmem:[%s4574_s1 + $0x574] ss:$8 sps:$4 sm:$0xff]  }
  0x4a   :  { %1449 = vmatprep.subr.bf16.mxu1 %v3161_v35  ;;  %v3240_v35 = vld [vmem:[%s4574_s1 + $0x470] ss:$8 sps:$4 sm:$0xff]  }
  0x4b   :  { %1409 = vmatpush1.bf16.msra.mxu0 %v3156_v36  ;;  %v284_v36 = vcombine.high %v3712_v2, %v3712_v2 }
  0x4c   :  { %1410 = vmatprep.subr.bf16.mxu0 %v3164_v38  ;;  %v3248_v38 = vld [vmem:[%s4574_s1 + $0x464] ss:$8 sps:$4 sm:$0xff]  }
  0x4d   :  { %1450 = vmatpush1.bf16.msra.mxu1 %v3159_v39  ;;  %v3243_v39 = vld [vmem:[%s4574_s1 + $0x570] ss:$8 sps:$4 sm:$0xff]  }
  0x4e   :  { %1451 = vmatprep.subr.bf16.mxu1 %v3167_v40  ;;  %v325_v40 = vcombine.high %v3766_v25, %v3766_v25 }
  0x4f   :  { %1411 = vmatpush1.bf16.msra.mxu0 %v3162_v41  ;;  %v3251_v41 = vld [vmem:[%s4574_s1 + $0x564] ss:$8 sps:$4 sm:$0xff]  }
  0x50   :  { %1412 = vmatprep.subr.bf16.mxu0 %v3170_v43  ;;  %v3246_v43 = vld [vmem:[%s4574_s1 + $0x460] ss:$8 sps:$4 sm:$0xff]  }
  0x51   :  { %1452 = vmatpush1.bf16.msra.mxu1 %v3165_v44  ;;  %v3254_v44 = vld [vmem:[%s4574_s1 + $0x454] ss:$8 sps:$4 sm:$0xff]  }
  0x52   :  { %1453 = vmatprep.subr.bf16.mxu1 %v3173_v45  ;;  %v3257_v45 = vld [vmem:[%s4574_s1 + $0x554] ss:$8 sps:$4 sm:$0xff]  }
  0x53   :  { %1413 = vmatpush1.bf16.msra.mxu0 %v3168_v46  ;;  %v3260_v46 = vld [vmem:[%s4574_s1 + $0x444] ss:$8 sps:$4 sm:$0xff]  }
  0x54   :  { %1414 = vmatprep.subr.bf16.mxu0 %v3176_v47  ;;  %v3255_v47 = vld [vmem:[%s4574_s1 + $0x550] ss:$8 sps:$4 sm:$0xff]  }
  0x55   :  { %1454 = vmatpush1.bf16.msra.mxu1 %v3171_v49  ;;  %v3263_v49 = vld [vmem:[%s4574_s1 + $0x544] ss:$8 sps:$4 sm:$0xff]  }
  0x56   :  { %1455 = vmatprep.subr.bf16.mxu1 %v3179_v50  ;;  %v3258_v50 = vld [vmem:[%s4574_s1 + $0x440] ss:$8 sps:$4 sm:$0xff]  }
  0x57   :  { %1415 = vmatpush1.bf16.msra.mxu0 %v3174_v51  ;;  %v3266_v51 = vld [vmem:[%s4574_s1 + $0x434] ss:$8 sps:$4 sm:$0xff]  }
  0x58   :  { %1416 = vmatprep.subr.bf16.mxu0 %v3182_v52  ;;  %v3261_v52 = vld [vmem:[%s4574_s1 + $0x540] ss:$8 sps:$4 sm:$0xff]  }
  0x59   :  { %1456 = vmatpush1.bf16.msra.mxu1 %v3177_v53  ;;  %v3269_v53 = vld [vmem:[%s4574_s1 + $0x534] ss:$8 sps:$4 sm:$0xff]  }
  0x5a   :  { %1457 = vmatprep.subr.bf16.mxu1 %v3185_v54  ;;  %v3264_v54 = vld [vmem:[%s4574_s1 + $0x430] ss:$8 sps:$4 sm:$0xff]  }
  0x5b   :  { %1417 = vmatpush1.bf16.msra.mxu0 %v3180_v55  ;;  %v3272_v55 = vld [vmem:[%s4574_s1 + $0x424] ss:$8 sps:$4 sm:$0xff]  }
  0x5c   :  { %1418 = vmatprep.subr.bf16.mxu0 %v3188_v56  ;;  %v3267_v56 = vld [vmem:[%s4574_s1 + $0x530] ss:$8 sps:$4 sm:$0xff]  }
  0x5d   :  { %1458 = vmatpush1.bf16.msra.mxu1 %v3183_v57  ;;  %v3275_v57 = vld [vmem:[%s4574_s1 + $0x524] ss:$8 sps:$4 sm:$0xff]  }
  0x5e   :  { %1459 = vmatprep.subr.bf16.mxu1 %v3191_v58  ;;  %v3270_v58 = vld [vmem:[%s4574_s1 + $0x420] ss:$8 sps:$4 sm:$0xff]  }
  0x5f   :  { %1419 = vmatpush1.bf16.msra.mxu0 %v3186_v59  ;;  %v3278_v59 = vld [vmem:[%s4574_s1 + $0x414] ss:$8 sps:$4 sm:$0xff]  }
  0x60   :  { %1420 = vmatprep.subr.bf16.mxu0 %v3194_v60  ;;  %v3273_v60 = vld [vmem:[%s4574_s1 + $0x520] ss:$8 sps:$4 sm:$0xff]  }
  0x61   :  { %1460 = vmatpush1.bf16.msra.mxu1 %v3189_v61  ;;  %v3281_v61 = vld [vmem:[%s4574_s1 + $0x514] ss:$8 sps:$4 sm:$0xff]  }
  0x62   :  { %1461 = vmatprep.subr.bf16.mxu1 %v3197_v62  ;;  %v3276_v62 = vld [vmem:[%s4574_s1 + $0x410] ss:$8 sps:$4 sm:$0xff]  }
  0x63   :  { %1421 = vmatpush2.bf16.msra.mxu0 %v3192_v0  ;;  %v3284_v0 = vld [vmem:[%s4574_s1 + $0x404] ss:$8 sps:$4 sm:$0xff]  }
  0x64   :  { %1422 = vmatprep.subr.bf16.mxu0 %v3200_v1  ;;  %v3279_v1 = vld [vmem:[%s4574_s1 + $0x510] ss:$8 sps:$4 sm:$0xff]  }
  0x65   :  { %1462 = vmatpush2.bf16.msra.mxu1 %v3195_v3  ;;  %v3287_v3 = vld [vmem:[%s4574_s1 + $0x504] ss:$8 sps:$4 sm:$0xff]  }
  0x66   :  { %1463 = vmatprep.subr.bf16.mxu1 %v3203_v4  ;;  %v3282_v4 = vld [vmem:[%s4574_s1 + $0x400] ss:$8 sps:$4 sm:$0xff]  }
  0x67   :  { %1423 = vmatpush2.bf16.msra.mxu0 %v3198_v5  ;;  %v3290_v5 = vld [vmem:[%s4574_s1 + $0x4f4] ss:$8 sps:$4 sm:$0xff]  }
  0x68   :  { %1424 = vmatprep.subr.bf16.mxu0 %v3206_v6  ;;  %v3285_v6 = vld [vmem:[%s4574_s1 + $0x500] ss:$8 sps:$4 sm:$0xff]  }
  0x69   :  { %1464 = vmatpush2.bf16.msra.mxu1 %v3201_v7  ;;  %v3293_v7 = vld [vmem:[%s4574_s1 + $0x5f4] ss:$8 sps:$4 sm:$0xff]  }
  0x6a   :  { %1465 = vmatprep.subr.bf16.mxu1 %v3209_v8  ;;  %v3288_v8 = vld [vmem:[%s4574_s1 + $0x4f0] ss:$8 sps:$4 sm:$0xff]  }
  0x6b   :  { %1425 = vmatpush2.bf16.msra.mxu0 %v3204_v9  ;;  %v3296_v9 = vld [vmem:[%s4574_s1 + $0x4e4] ss:$8 sps:$4 sm:$0xff]  }
  0x6c   :  { %1426 = vmatprep.subr.bf16.mxu0 %v3212_v10  ;;  %v3291_v10 = vld [vmem:[%s4574_s1 + $0x5f0] ss:$8 sps:$4 sm:$0xff]  }
  0x6d   :  { %1466 = vmatpush2.bf16.msra.mxu1 %v3207_v11  ;;  %v3299_v11 = vld [vmem:[%s4574_s1 + $0x5e4] ss:$8 sps:$4 sm:$0xff]  }
  0x6e   :  { %1467 = vmatprep.subr.bf16.mxu1 %v3215_v12  ;;  %v3294_v12 = vld [vmem:[%s4574_s1 + $0x4e0] ss:$8 sps:$4 sm:$0xff]  }
  0x6f   :  { %1427 = vmatpush2.bf16.msra.mxu0 %v3210_v13  ;;  %v3302_v13 = vld [vmem:[%s4574_s1 + $0x4d4] ss:$8 sps:$4 sm:$0xff]  }
  0x70   :  { %1428 = vmatprep.subr.bf16.mxu0 %v3218_v14  ;;  %v3297_v14 = vld [vmem:[%s4574_s1 + $0x5e0] ss:$8 sps:$4 sm:$0xff]  }
  0x71   :  { %1468 = vmatpush2.bf16.msra.mxu1 %v3213_v15  ;;  %v3305_v15 = vld [vmem:[%s4574_s1 + $0x5d4] ss:$8 sps:$4 sm:$0xff]  }
  0x72   :  { %1469 = vmatprep.subr.bf16.mxu1 %v3221_v16  ;;  %v3300_v16 = vld [vmem:[%s4574_s1 + $0x4d0] ss:$8 sps:$4 sm:$0xff]  }
  0x73   :  { %1429 = vmatpush2.bf16.msra.mxu0 %v3216_v17  ;;  %v3308_v17 = vld [vmem:[%s4574_s1 + $0x4c4] ss:$8 sps:$4 sm:$0xff]  }
  0x74   :  { %1430 = vmatprep.subr.bf16.mxu0 %v3224_v18  ;;  %v3303_v18 = vld [vmem:[%s4574_s1 + $0x5d0] ss:$8 sps:$4 sm:$0xff]  }
  0x75   :  { %1470 = vmatpush2.bf16.msra.mxu1 %v3219_v19  ;;  %v3311_v19 = vld [vmem:[%s4574_s1 + $0x5c4] ss:$8 sps:$4 sm:$0xff]  }
  0x76   :  { %1471 = vmatprep.subr.bf16.mxu1 %v3227_v20  ;;  %v3306_v20 = vld [vmem:[%s4574_s1 + $0x4c0] ss:$8 sps:$4 sm:$0xff]  }
  0x77   :  { %1431 = vmatpush2.bf16.msra.mxu0 %v3222_v21  ;;  %v3314_v21 = vld [vmem:[%s4574_s1 + $0x4b4] ss:$8 sps:$4 sm:$0xff]  }
  0x78   :  { %1432 = vmatprep.subr.bf16.mxu0 %v3230_v22  ;;  %v3309_v22 = vld [vmem:[%s4574_s1 + $0x5c0] ss:$8 sps:$4 sm:$0xff]  }
  0x79   :  { %1472 = vmatpush2.bf16.msra.mxu1 %v3225_v23  ;;  %v3317_v23 = vld [vmem:[%s4574_s1 + $0x5b4] ss:$8 sps:$4 sm:$0xff]  }
  0x7a   :  { %1473 = vmatprep.subr.bf16.mxu1 %v3233_v24  ;;  %v3312_v24 = vld [vmem:[%s4574_s1 + $0x4b0] ss:$8 sps:$4 sm:$0xff]  }
  0x7b   :  { %1433 = vmatpush2.bf16.msra.mxu0 %v3228_v26  ;;  %v3320_v26 = vld [vmem:[%s4574_s1 + $0x4a4] ss:$8 sps:$4 sm:$0xff]  }
  0x7c   :  { %1434 = vmatprep.subr.bf16.mxu0 %v3236_v27  ;;  %v3315_v27 = vld [vmem:[%s4574_s1 + $0x5b0] ss:$8 sps:$4 sm:$0xff]  }
  0x7d   :  { %1474 = vmatpush2.bf16.msra.mxu1 %v3231_v29  ;;  %v3323_v29 = vld [vmem:[%s4574_s1 + $0x5a4] ss:$8 sps:$4 sm:$0xff]  }
  0x7e   :  { %1475 = vmatprep.subr.bf16.mxu1 %v3239_v30  ;;  %v3318_v30 = vld [vmem:[%s4574_s1 + $0x4a0] ss:$8 sps:$4 sm:$0xff]  }
  0x7f   :  { %1435 = vmatpush2.bf16.msra.mxu0 %v3234_v31  ;;  %v3326_v31 = vld [vmem:[%s4574_s1 + $0x494] ss:$8 sps:$4 sm:$0xff]  }
  0x80   :  { %1486 = vmatprep.subr.bf16.mxu0 %v3242_v32  ;;  %v3321_v32 = vld [vmem:[%s4574_s1 + $0x5a0] ss:$8 sps:$4 sm:$0xff]  }
  0x81   :  { %1476 = vmatpush2.bf16.msra.mxu1 %v3237_v33  ;;  %v3329_v33 = vld [vmem:[%s4574_s1 + $0x594] ss:$8 sps:$4 sm:$0xff]  }
  0x82   :  { %1437 = vmatmul.mubr.bf16.vlgmr.msra.gmra.mxu0 %v3712_v2  ;;  %1527 = vmatprep.subr.bf16.mxu1 %v3245_v34  ;;  %v3249_v2 = vld [vmem:[%s4574_s1 + $0x560] ss:$8 sps:$4 sm:$0xff]   ;;  %v3324_v34 = vld [vmem:[%s4574_s1 + $0x490] ss:$8 sps:$4 sm:$0xff]  }
  0x83   :  { %1487 = vmatpush1.bf16.msra.mxu0 %v3240_v35  ;;  %1518 = vmatprep.mubr.bf16.mxu0 %v3766_v25  ;;  %v3252_v25 = vld [vmem:[%s4574_s1 + $0x450] ss:$8 sps:$4 sm:$0xff]   ;;  %v3332_v35 = vld [vmem:[%s4574_s1 + $0x484] ss:$8 sps:$4 sm:$0xff]  }
  0x84   :  { %1478 = vmatmul.mubr.bf16.vlgmr.msra.gmra.mxu1 %v284_v36  ;;  %1488 = vmatprep.subr.bf16.mxu0 %v3248_v38  ;;  %v3327_v36 = vld [vmem:[%s4574_s1 + $0x590] ss:$8 sps:$4 sm:$0xff]   ;;  %v3335_v38 = vld [vmem:[%s4574_s1 + $0x584] ss:$8 sps:$4 sm:$0xff]  }
  0x85   :  { %1528 = vmatpush1.bf16.msra.mxu1 %v3243_v39  ;;  %1559 = vmatprep.mubr.bf16.mxu1 %v325_v40  ;;  %v3330_v39 = vld [vmem:[%s4574_s1 + $0x480] ss:$8 sps:$4 sm:$0xff]   ;;  %v3338_v40 = vld [vmem:[%s4574_s1 + $0x614] ss:$8 sps:$4 sm:$0xff]  }
  0x86   :  { %1529 = vmatprep.subr.bf16.mxu1 %v3251_v41  ;;  %v3333_v41 = vld [vmem:[%s4574_s1 + $0x580] ss:$8 sps:$4 sm:$0xff]  }
  0x87   :  { %1489 = vmatpush1.bf16.msra.mxu0 %v3246_v43  ;;  %v3336_v43 = vld [vmem:[%s4574_s1 + $0x610] ss:$8 sps:$4 sm:$0xff]  }
  0x88   :  { %1490 = vmatprep.subr.bf16.mxu0 %v3254_v44  ;;  %v324_v44 = vcombine.high %v3772_v28, %v3772_v28 }
  0x89   :  { %1530 = vmatpush1.bf16.msra.mxu1 %v3249_v2  ;;  %v3341_v2 = vld [vmem:[%s4574_s1 + $0x604] ss:$8 sps:$4 sm:$0xff]  }
  0x8a   :  { %1531 = vmatprep.subr.bf16.mxu1 %v3257_v45  ;;  %v3339_v45 = vld [vmem:[%s4574_s1 + $0x600] ss:$8 sps:$4 sm:$0xff]  }
  0x8b   :  { %1491 = vmatpush1.bf16.msra.mxu0 %v3252_v25  ;;  %v3497_v25 = vmov 0  }
  0x8c   :  { %1492 = vmatprep.subr.bf16.mxu0 %v3260_v46  ;;  %v224_v46 = vld [vmem:[%s4576_s2] sm:$0x3] }
  0x8d   :  { %1532 = vmatpush1.bf16.msra.mxu1 %v3255_v47  ;;  %v4182_v47 = vsub.s32 1, %v3658_v42 }
  0x8e   :  { %1533 = vmatprep.subr.bf16.mxu1 %v3263_v49 }
  0x8f   :  { %1493 = vmatpush1.bf16.msra.mxu0 %v3258_v50  ;;  %v233_v50 = vrot.slane %v224_v46, %v4182_v47 }
  0x90   :  { %1494 = vmatprep.subr.bf16.mxu0 %v3266_v51 }
  0x91   :  { %1534 = vmatpush1.bf16.msra.mxu1 %v3261_v52 }
  0x92   :  { %1535 = vmatprep.subr.bf16.mxu1 %v3269_v53 }
  0x93   :  { %1495 = vmatpush1.bf16.msra.mxu0 %v3264_v54 }
  0x94   :  { %1496 = vmatprep.subr.bf16.mxu0 %v3272_v55  ;;  %v3342_v55 = vld [vmem:[%s4577_s4 + $0x2d8] ss:$52 sps:$4 sm:$0xff]  }
  0x95   :  { %1536 = vmatpush1.bf16.msra.mxu1 %v3267_v56 }
  0x96   :  { %1537 = vmatprep.subr.bf16.mxu1 %v3275_v57 }
  0x97   :  { %1497 = vmatpush1.bf16.msra.mxu0 %v3270_v58  ;;  %v3345_v58 = vld [vmem:[%s4577_s4 + $0x2e0] ss:$52 sps:$4 sm:$0xff]  }
  0x98   :  { %1498 = vmatprep.subr.bf16.mxu0 %v3278_v59  ;;  %v3347_v59 = vld [vmem:[%s4577_s4 + $0x2e4] ss:$52 sps:$4 sm:$0xff]  }
  0x99   :  { %1538 = vmatpush1.bf16.msra.mxu1 %v3273_v60 }
  0x9a   :  { %1539 = vmatprep.subr.bf16.mxu1 %v3281_v61 }
  0x9b   :  { %1499 = vmatpush1.bf16.msra.mxu0 %v3276_v62 }
  0x9c   :  { %1500 = vmatprep.subr.bf16.mxu0 %v3284_v0  ;;  %v3348_v0 = vld [vmem:[%s4577_s4 + $0x270] ss:$52 sps:$4 sm:$0xff]  }
  0x9d   :  { %1540 = vmatpush1.bf16.msra.mxu1 %v3279_v1  ;;  %v3350_v1 = vld [vmem:[%s4577_s4 + $0x274] ss:$52 sps:$4 sm:$0xff]  }
  0x9e   :  { %1541 = vmatprep.subr.bf16.mxu1 %v3287_v3  ;;  %v3351_v3 = vld [vmem:[%s4577_s4 + $0x278] ss:$52 sps:$4 sm:$0xff]  }
  0x9f   :  { %1501 = vmatpush1.bf16.msra.mxu0 %v3282_v4  ;;  %v3353_v4 = vld [vmem:[%s4577_s4 + $0x27c] ss:$52 sps:$4 sm:$0xff]  }
  0xa0   :  { %1502 = vmatprep.subr.bf16.mxu0 %v3290_v5 }
  0xa1   :  { %1542 = vmatpush1.bf16.msra.mxu1 %v3285_v6  ;;  %v3356_v6 = vld [vmem:[%s4577_s4 + $0x20c] ss:$52 sps:$4 sm:$0xff]  }
  0xa2   :  { %1543 = vmatprep.subr.bf16.mxu1 %v3293_v7  ;;  %v3359_v7 = vld [vmem:[%s4577_s4 + $0x214] ss:$52 sps:$4 sm:$0xff]  }
  0xa3   :  { %1503 = vmatpush2.bf16.msra.mxu0 %v3288_v8  ;;  %v3354_v8 = vld [vmem:[%s4577_s4 + $0x208] ss:$52 sps:$4 sm:$0xff]  }
  0xa4   :  { %1504 = vmatprep.subr.bf16.mxu0 %v3296_v9  ;;  %v3357_v9 = vld [vmem:[%s4577_s4 + $0x210] ss:$52 sps:$4 sm:$0xff]  }
  0xa5   :  { %1544 = vmatpush2.bf16.msra.mxu1 %v3291_v10  ;;  %v3362_v10 = vld [vmem:[%s4577_s4 + $0x1a4] ss:$52 sps:$4 sm:$0xff]  }
  0xa6   :  { %1545 = vmatprep.subr.bf16.mxu1 %v3299_v11  ;;  %v3365_v11 = vld [vmem:[%s4577_s4 + $0x1ac] ss:$52 sps:$4 sm:$0xff]  }
  0xa7   :  { %1505 = vmatpush2.bf16.msra.mxu0 %v3294_v12  ;;  %v3360_v12 = vld [vmem:[%s4577_s4 + $0x1a0] ss:$52 sps:$4 sm:$0xff]  }
  0xa8   :  { %1506 = vmatprep.subr.bf16.mxu0 %v3302_v13  ;;  %v3363_v13 = vld [vmem:[%s4577_s4 + $0x1a8] ss:$52 sps:$4 sm:$0xff]  }
  0xa9   :  { %1546 = vmatpush2.bf16.msra.mxu1 %v3297_v14  ;;  %v3368_v14 = vld [vmem:[%s4577_s4 + $0x13c] ss:$52 sps:$4 sm:$0xff]  }
  0xaa   :  { %1547 = vmatprep.subr.bf16.mxu1 %v3305_v15  ;;  %v3371_v15 = vld [vmem:[%s4577_s4 + $0x144] ss:$52 sps:$4 sm:$0xff]  }
  0xab   :  { %1507 = vmatpush2.bf16.msra.mxu0 %v3300_v16  ;;  %v3366_v16 = vld [vmem:[%s4577_s4 + $0x138] ss:$52 sps:$4 sm:$0xff]  }
  0xac   :  { %1508 = vmatprep.subr.bf16.mxu0 %v3308_v17  ;;  %v3369_v17 = vld [vmem:[%s4577_s4 + $0x140] ss:$52 sps:$4 sm:$0xff]  }
  0xad   :  { %1548 = vmatpush2.bf16.msra.mxu1 %v3303_v18  ;;  %v3374_v18 = vld [vmem:[%s4577_s4 + $0xd4] ss:$52 sps:$4 sm:$0xff]  }
  0xae   :  { %1549 = vmatprep.subr.bf16.mxu1 %v3311_v19  ;;  %v3377_v19 = vld [vmem:[%s4577_s4 + $0xdc] ss:$52 sps:$4 sm:$0xff]  }
  0xaf   :  { %1509 = vmatpush2.bf16.msra.mxu0 %v3306_v20  ;;  %v3372_v20 = vld [vmem:[%s4577_s4 + $0xd0] ss:$52 sps:$4 sm:$0xff]  }
  0xb0   :  { %1510 = vmatprep.subr.bf16.mxu0 %v3314_v21  ;;  %v3375_v21 = vld [vmem:[%s4577_s4 + $0xd8] ss:$52 sps:$4 sm:$0xff]  }
  0xb1   :  { %1550 = vmatpush2.bf16.msra.mxu1 %v3309_v22  ;;  %v3380_v22 = vld [vmem:[%s4577_s4 + $0x6c] ss:$52 sps:$4 sm:$0xff]  }
  0xb2   :  { %1551 = vmatprep.subr.bf16.mxu1 %v3317_v23  ;;  %v3383_v23 = vld [vmem:[%s4577_s4 + $0x74] ss:$52 sps:$4 sm:$0xff]  }
  0xb3   :  { %1511 = vmatpush2.bf16.msra.mxu0 %v3312_v24  ;;  %v3378_v24 = vld [vmem:[%s4577_s4 + $0x68] ss:$52 sps:$4 sm:$0xff]  }
  0xb4   :  { %1512 = vmatprep.subr.bf16.mxu0 %v3320_v26  ;;  %v3381_v26 = vld [vmem:[%s4577_s4 + $0x70] ss:$52 sps:$4 sm:$0xff]  }
  0xb5   :  { %1552 = vmatpush2.bf16.msra.mxu1 %v3315_v27  ;;  %v3386_v27 = vld [vmem:[%s4577_s4 + $0x4] ss:$52 sps:$4 sm:$0xff]  }
  0xb6   :  { %1553 = vmatprep.subr.bf16.mxu1 %v3323_v29  ;;  %v3389_v29 = vld [vmem:[%s4577_s4 + $0xc] ss:$52 sps:$4 sm:$0xff]  }
  0xb7   :  { %1513 = vmatpush2.bf16.msra.mxu0 %v3318_v30  ;;  %v3384_v30 = vld [vmem:[%s4577_s4] ss:$52 sps:$4 sm:$0xff]  }
  0xb8   :  { %1514 = vmatprep.subr.bf16.mxu0 %v3326_v31  ;;  %v3387_v31 = vld [vmem:[%s4577_s4 + $0x8] ss:$52 sps:$4 sm:$0xff]  }
  0xb9   :  { %1554 = vmatpush2.bf16.msra.mxu1 %v3321_v32  ;;  %v3392_v32 = vld [vmem:[%s4577_s4 + $0x2ec] ss:$52 sps:$4 sm:$0xff]  }
  0xba   :  { %1555 = vmatprep.subr.bf16.mxu1 %v3329_v33  ;;  %v3395_v33 = vld [vmem:[%s4577_s4 + $0x2f4] ss:$52 sps:$4 sm:$0xff]  }
  0xbb   :  { %1515 = vmatpush2.bf16.msra.mxu0 %v3324_v34 }
  0xbc   :  { %1516 = vmatprep.subr.bf16.mxu0 %v3332_v35 }
  0xbd   :  { %1556 = vmatpush2.bf16.msra.mxu1 %v3327_v36 }
  0xbe   :  { %1557 = vmatprep.subr.bf16.mxu1 %v3335_v38 }
  0xbf   :  { %1517 = vmatpush2.bf16.msra.mxu0 %v3330_v39 }
  0xc0   :  { %1580 = vmatprep.subr.bf16.mxu0 %v3338_v40 }
  0xc1   :  { %1558 = vmatpush2.bf16.msra.mxu1 %v3333_v41 }
  0xc2   :  { %1519 = vmatmul.mubr.bf16.vlgmr.msra.gmra.mxu0 %v3772_v28  ;;  %v4176_v28 = vsub.s32 0, %v3658_v42 }
  0xc3   :  { %1581 = vmatpush1.bf16.msra.mxu0 %v3336_v43  ;;  %1600 = vmatprep.mubr.bf16.mxu0 %v3497_v25 }
  0xc4   :  { %1560 = vmatmul.mubr.bf16.vlgmr.msra.gmra.mxu1 %v324_v44  ;;  %1582 = vmatprep.subr.bf16.mxu0 %v3341_v2  ;;  %v229_v49 = vrot.slane %v224_v46, %v4176_v28 }
  0xc5   :  { %2368 = vmatprep.mubr.bf16.mxu1 %v3497_v25 }
  0xc7   :  { %1583 = vmatpush1.bf16.msra.mxu0 %v3339_v45 }
  0xc8   :  { %2377 = vmatprep.subr.bf16.mxu0 %v3347_v59 }
  0xca   :  { %2906 = vmatmul.mubr.msk.bf16.vlgmr.msra.gmra.mxu0 %vm1318_vm0, %v316_v37  ;;  %v3344_v37 = vld [vmem:[%s4577_s4 + $0x2dc] ss:$52 sps:$4 sm:$0xff]  }
  0xcb   :  { %2409 = vmatprep.mubr.bf16.mxu0 %v3497_v25  ;;  %2336 = vmatprep.subr.bf16.mxu1 %v3344_v37 }
  0xcc   :  { %2337 = vmatpush1.bf16.msra.mxu1 %v3342_v55  ;;  %2378 = vmatpush1.bf16.msra.mxu0 %v3345_v58 }
  0xcd   :  { %2338 = vmatprep.subr.bf16.mxu1 %v3350_v1  ;;  %2379 = vmatprep.subr.bf16.mxu0 %v3353_v4  ;;  %v1609_v4 = vld [vmem:[%s4579_s3] sm:$0x3] }
  0xd0   :  { %2339 = vmatpush1.bf16.msra.mxu1 %v3348_v0  ;;  %2380 = vmatpush1.bf16.msra.mxu0 %v3351_v3 }
  0xd1   :  { %2340 = vmatprep.subr.bf16.mxu1 %v3356_v6  ;;  %2381 = vmatprep.subr.bf16.mxu0 %v3359_v7 }
  0xd4   :  { %2341 = vmatpush1.bf16.msra.mxu1 %v3354_v8  ;;  %2382 = vmatpush1.bf16.msra.mxu0 %v3357_v9  ;;  %v3390_v8 = vld [vmem:[%s4577_s4 + $0x2e8] ss:$52 sps:$4 sm:$0xff]   ;;  %v3393_v9 = vld [vmem:[%s4577_s4 + $0x2f0] ss:$52 sps:$4 sm:$0xff]  }
  0xd5   :  { %2342 = vmatprep.subr.bf16.mxu1 %v3362_v10  ;;  %2383 = vmatprep.subr.bf16.mxu0 %v3365_v11  ;;  %v3398_v11 = vld [vmem:[%s4577_s4 + $0x284] ss:$52 sps:$4 sm:$0xff]  }
  0xd8   :  { %2343 = vmatpush1.bf16.msra.mxu1 %v3360_v12  ;;  %2384 = vmatpush1.bf16.msra.mxu0 %v3363_v13  ;;  %v3401_v12 = vld [vmem:[%s4577_s4 + $0x28c] ss:$52 sps:$4 sm:$0xff]  }
  0xd9   :  { %2344 = vmatprep.subr.bf16.mxu1 %v3368_v14  ;;  %2385 = vmatprep.subr.bf16.mxu0 %v3371_v15  ;;  %v3396_v13 = vld [vmem:[%s4577_s4 + $0x280] ss:$52 sps:$4 sm:$0xff]   ;;  %v3399_v14 = vld [vmem:[%s4577_s4 + $0x288] ss:$52 sps:$4 sm:$0xff]  }
  0xda   :  { %v3404_v15 = vld [vmem:[%s4577_s4 + $0x21c] ss:$52 sps:$4 sm:$0xff]  }
  0xdc   :  { %2345 = vmatpush1.bf16.msra.mxu1 %v3366_v16  ;;  %2386 = vmatpush1.bf16.msra.mxu0 %v3369_v17  ;;  %v3407_v16 = vld [vmem:[%s4577_s4 + $0x224] ss:$52 sps:$4 sm:$0xff]  }
  0xdd   :  { %2346 = vmatprep.subr.bf16.mxu1 %v3374_v18  ;;  %2387 = vmatprep.subr.bf16.mxu0 %v3377_v19  ;;  %v3402_v17 = vld [vmem:[%s4577_s4 + $0x218] ss:$52 sps:$4 sm:$0xff]   ;;  %v3405_v18 = vld [vmem:[%s4577_s4 + $0x220] ss:$52 sps:$4 sm:$0xff]  }
  0xde   :  { %v3410_v19 = vld [vmem:[%s4577_s4 + $0x1b4] ss:$52 sps:$4 sm:$0xff]  }
  0xe0   :  { %2347 = vmatpush1.bf16.msra.mxu1 %v3372_v20  ;;  %2388 = vmatpush1.bf16.msra.mxu0 %v3375_v21  ;;  %v3413_v20 = vld [vmem:[%s4577_s4 + $0x1bc] ss:$52 sps:$4 sm:$0xff]  }
  0xe1   :  { %2348 = vmatprep.subr.bf16.mxu1 %v3380_v22  ;;  %2389 = vmatprep.subr.bf16.mxu0 %v3383_v23  ;;  %v3408_v21 = vld [vmem:[%s4577_s4 + $0x1b0] ss:$52 sps:$4 sm:$0xff]   ;;  %v3411_v22 = vld [vmem:[%s4577_s4 + $0x1b8] ss:$52 sps:$4 sm:$0xff]  }
  0xe2   :  { %v3416_v23 = vld [vmem:[%s4577_s4 + $0x14c] ss:$52 sps:$4 sm:$0xff]  }
  0xe4   :  { %2349 = vmatpush1.bf16.msra.mxu1 %v3378_v24  ;;  %2390 = vmatpush1.bf16.msra.mxu0 %v3381_v26  ;;  %v3419_v24 = vld [vmem:[%s4577_s4 + $0x154] ss:$52 sps:$4 sm:$0xff]  }
  0xe5   :  { %2350 = vmatprep.subr.bf16.mxu1 %v3386_v27  ;;  %2391 = vmatprep.subr.bf16.mxu0 %v3389_v29  ;;  %v3414_v26 = vld [vmem:[%s4577_s4 + $0x148] ss:$52 sps:$4 sm:$0xff]   ;;  %v3417_v27 = vld [vmem:[%s4577_s4 + $0x150] ss:$52 sps:$4 sm:$0xff]  }
  0xe6   :  { %v3422_v29 = vld [vmem:[%s4577_s4 + $0xe4] ss:$52 sps:$4 sm:$0xff]  }
  0xe8   :  { %2351 = vmatpush1.bf16.msra.mxu1 %v3384_v30  ;;  %2392 = vmatpush1.bf16.msra.mxu0 %v3387_v31  ;;  %v3425_v30 = vld [vmem:[%s4577_s4 + $0xec] ss:$52 sps:$4 sm:$0xff]  }
  0xe9   :  { %2418 = vmatprep.subr.bf16.mxu1 %v3392_v32  ;;  %2459 = vmatprep.subr.bf16.mxu0 %v3395_v33  ;;  %v3420_v31 = vld [vmem:[%s4577_s4 + $0xe0] ss:$52 sps:$4 sm:$0xff]   ;;  %v3423_v32 = vld [vmem:[%s4577_s4 + $0xe8] ss:$52 sps:$4 sm:$0xff]  }
  0xea   :  { %v3428_v33 = vld [vmem:[%s4577_s4 + $0x7c] ss:$52 sps:$4 sm:$0xff]  }
 0x102   :  { %v1356_v51 = vpop.f32.mrf.mxu0 }
 0x103   :  { %v1357_v52 = vadd.f32 %v1356_v51, %v229_v49 }
 0x104   :  { %v1358_v48 = vpop.f32.mrf.mxu0  ;;  %v1397_v63 = vpop.f32.mrf.mxu1 }
 0x105   :  { %v1359_v53 = vadd.f32 %v1358_v48, %v233_v50  ;;  %v4189_v54 = vadd.f32 %v1397_v63, %v1357_v52 }
 0x106   :  { %v1360_v56 = vpop.f32.mrf.mxu0  ;;  %v1399_v57 = vpop.f32.mrf.mxu1 }
 0x107   :  { %v4200_v60 = vadd.f32 %v1399_v57, %v1359_v53 }
 0x108   :  { %v1361_v61 = vpop.f32.mrf.mxu0  ;;  %v1401_v62 = vpop.f32.mrf.mxu1 }
 0x10a   :  { %v1402_v5 = vpop.f32.mrf.mxu1 }
 0x142   :  { %v1438_v34 = vpop.f32.mrf.mxu0 }
 0x143   :  { %v1439_v35 = vadd.f32 %v1438_v34, %v4189_v54  ;;  %v3431_v34 = vld [vmem:[%s4577_s4 + $0x84] ss:$52 sps:$4 sm:$0xff]  }
 0x144   :  { %v1440_v36 = vpop.f32.mrf.mxu0  ;;  %v1479_v38 = vpop.f32.mrf.mxu1 }
 0x145   :  { %v1441_v39 = vadd.f32 %v1440_v36, %v4200_v60  ;;  %v1480_v40 = vadd.f32 %v1479_v38, %v1439_v35  ;;  %v3426_v35 = vld [vmem:[%s4577_s4 + $0x78] ss:$52 sps:$4 sm:$0xff]   ;;  %v3429_v36 = vld [vmem:[%s4577_s4 + $0x80] ss:$52 sps:$4 sm:$0xff]  }
 0x146   :  { %v1442_v41 = vpop.f32.mrf.mxu0  ;;  %v1481_v43 = vpop.f32.mrf.mxu1  ;;  %v3434_v38 = vld [vmem:[%s4577_s4 + $0x14] ss:$52 sps:$4 sm:$0xff]  }
 0x147   :  { %v1482_v44 = vadd.f32 %v1481_v43, %v1441_v39  ;;  %v3437_v39 = vld [vmem:[%s4577_s4 + $0x1c] ss:$52 sps:$4 sm:$0xff]   ;;  %v3435_v41 = vld [vmem:[%s4577_s4 + $0x18] ss:$52 sps:$4 sm:$0xff]  }
 0x148   :  { %v1443_v2 = vpop.f32.mrf.mxu0  ;;  %v1483_v45 = vpop.f32.mrf.mxu1  ;;  %v3440_v43 = vld [vmem:[%s4577_s4 + $0x2fc] ss:$52 sps:$4 sm:$0xff]  }
 0x149   :  { %v3438_v2 = vld [vmem:[%s4577_s4 + $0x2f8] ss:$52 sps:$4 sm:$0xff]   ;;  %v3441_v45 = vld [vmem:[%s4577_s4 + $0x300] ss:$52 sps:$4 sm:$0xff]  }
 0x14a   :  { %v1484_v46 = vpop.f32.mrf.mxu1 }
 0x14b   :  { %v3446_v46 = vld [vmem:[%s4577_s4 + $0x294] ss:$52 sps:$4 sm:$0xff]  }
 0x182   :  { %v1520_v49 = vpop.f32.mrf.mxu0 }
 0x183   :  { %v1521_v63 = vadd.f32 %v1520_v49, %v1480_v40  ;;  %v3432_v40 = vld [vmem:[%s4577_s4 + $0x10] ss:$52 sps:$4 sm:$0xff]  }
 0x184   :  { %v1561_v50 = vpop.f32.mrf.mxu1  ;;  %v1522_v51 = vpop.f32.mrf.mxu0  ;;  %v3449_v49 = vld [vmem:[%s4577_s4 + $0x29c] ss:$52 sps:$4 sm:$0xff]  }
 0x185   :  { %v1523_v37 = vadd.f32 %v1522_v51, %v1482_v44  ;;  %v1562_v57 = vadd.f32 %v1561_v50, %v1521_v63  ;;  %v3443_v44 = vld [vmem:[%s4577_s4 + $0x304] ss:$52 sps:$4 sm:$0xff]   ;;  %v3450_v63 = vld [vmem:[%s4577_s4 + $0x228] ss:$52 sps:$4 sm:$0xff]  }
 0x186   :  { %v1563_v52 = vpop.f32.mrf.mxu1  ;;  %v1524_v48 = vpop.f32.mrf.mxu0  ;;  %v3444_v50 = vld [vmem:[%s4577_s4 + $0x290] ss:$52 sps:$4 sm:$0xff]   ;;  %v3447_v51 = vld [vmem:[%s4577_s4 + $0x298] ss:$52 sps:$4 sm:$0xff]  }
 0x187   :  { %v1564_v58 = vadd.f32 %v1563_v52, %v1523_v37  ;;  %v3452_v52 = vld [vmem:[%s4577_s4 + $0x22c] ss:$52 sps:$4 sm:$0xff]   ;;  %v3455_v48 = vld [vmem:[%s4577_s4 + $0x234] ss:$52 sps:$4 sm:$0xff]   ;;  %v3453_v37 = vld [vmem:[%s4577_s4 + $0x230] ss:$52 sps:$4 sm:$0xff]  }
 0x188   :  { %v1565_v53 = vpop.f32.mrf.mxu1  ;;  %v1525_v54 = vpop.f32.mrf.mxu0 }
 0x189   :  { %v3458_v53 = vld [vmem:[%s4577_s4 + $0x1c4] ss:$52 sps:$4 sm:$0xff]   ;;  %v3456_v54 = vld [vmem:[%s4577_s4 + $0x1c0] ss:$52 sps:$4 sm:$0xff]  }
 0x18a   :  { %v1566_v55 = vpop.f32.mrf.mxu1  ;;  %v1602_v56 = vpop.f32.mrf.mxu0 }
 0x18b   :  { %v1603_v60 = vadd.f32 %v1602_v56, %v1562_v57  ;;  %v3459_v55 = vld [vmem:[%s4577_s4 + $0x1c8] ss:$52 sps:$4 sm:$0xff]   ;;  %v3467_v57 = vld [vmem:[%s4577_s4 + $0x164] ss:$52 sps:$4 sm:$0xff]  }
 0x18c   :  { %v1604_v59 = vpop.f32.mrf.mxu0  ;;  %v3464_v56 = vld [vmem:[%s4577_s4 + $0x15c] ss:$52 sps:$4 sm:$0xff]  }
 0x18d   :  { %v1605_v61 = vadd.f32 %v1604_v59, %v1564_v58  ;;  %v3462_v58 = vld [vmem:[%s4577_s4 + $0x158] ss:$52 sps:$4 sm:$0xff]   ;;  %v3465_v59 = vld [vmem:[%s4577_s4 + $0x160] ss:$52 sps:$4 sm:$0xff]  }
 0x18e   :  { %v1606_v62 = vpop.f32.mrf.mxu0 }
 0x18f   :  { %v1610_v0 = vmul.f32 1.442695, %v1605_v61  ;;  %v1616_v1 = vcombine.low %v1603_v60, %v1605_v61  ;;  %v3473_v61 = vld [vmem:[%s4577_s4 + $0xfc] ss:$52 sps:$4 sm:$0xff]  }
 0x190   :  { %v1607_v3 = vpop.f32.mrf.mxu0  ;;  %v3468_v62 = vld [vmem:[%s4577_s4 + $0xf0] ss:$52 sps:$4 sm:$0xff]  }
 0x191   :  { %3494 = vpow2.f32 %v1610_v0  ;;  %2907 = vst.sshfl [vmem:[%s4578_s6] sm:$0x33 pattern:$0x76325410] %v1616_v1  ;;  %v3471_v0 = vld [vmem:[%s4577_s4 + $0xf8] ss:$52 sps:$4 sm:$0xff]  }
 0x192   :  { %v3476_v1 = vld [vmem:[%s4577_s4 + $0x8c] ss:$52 sps:$4 sm:$0xff]   ;;  %v3479_v3 = vld [vmem:[%s4577_s4 + $0x94] ss:$52 sps:$4 sm:$0xff]  }
 0x19e   :  { %v3495_v5 = vpop.eup %3494 }
 0x19f   :  { %v1612_v6 = vmul.f32 %v3495_v5, %v1609_v4  ;;  %v3474_v4 = vld [vmem:[%s4577_s4 + $0x88] ss:$52 sps:$4 sm:$0xff]   ;;  %v3477_v5 = vld [vmem:[%s4577_s4 + $0x90] ss:$52 sps:$4 sm:$0xff]  }
 0x1a1   :  { %v1613_v7 = vadd.f32 %v1612_v6, %v1603_v60  ;;  %v3470_v60 = vld [vmem:[%s4577_s4 + $0xf4] ss:$52 sps:$4 sm:$0xff]   ;;  %v3482_v6 = vld [vmem:[%s4577_s4 + $0x24] ss:$52 sps:$4 sm:$0xff]  }
 0x1a3   :  { %v4306_v10 = vpack.c.bf16 %v1613_v7, %v1613_v7  ;;  %v3485_v7 = vld [vmem:[%s4577_s4 + $0x2c] ss:$52 sps:$4 sm:$0xff]  }
 0x1a5   :  { %2369 = vmatmul.mubr.bf16.vlgmr.msra.gmra.mxu1 %v4306_v10  ;;  %2410 = vmatmul.mubr.bf16.vlgmr.msra.gmra.mxu0 %v4306_v10 }
 0x1a6   :  { %2419 = vmatpush1.bf16.msra.mxu1 %v3390_v8  ;;  %2460 = vmatpush1.bf16.msra.mxu0 %v3393_v9  ;;  %v3480_v8 = vld [vmem:[%s4577_s4 + $0x20] ss:$52 sps:$4 sm:$0xff]   ;;  %v3483_v9 = vld [vmem:[%s4577_s4 + $0x28] ss:$52 sps:$4 sm:$0xff]  }
 0x1a7   :  { %2420 = vmatprep.subr.bf16.mxu1 %v3398_v11  ;;  %2461 = vmatprep.subr.bf16.mxu0 %v3401_v12  ;;  %v3486_v11 = vld [vmem:[%s4577_s4 + $0x308] ss:$52 sps:$4 sm:$0xff]   ;;  %v3498_v12 = vmov 0.0  }
 0x1a8   :  { %2450 = vmatprep.mubr.bf16.mxu1 %v3497_v25  ;;  %2491 = vmatprep.mubr.bf16.mxu0 %v3497_v25 }
 0x1aa   :  { %2421 = vmatpush1.bf16.msra.mxu1 %v3396_v13  ;;  %2462 = vmatpush1.bf16.msra.mxu0 %v3399_v14  ;;  %v3487_v13 = vld [vmem:[%s4577_s4 + $0x2a0] ss:$52 sps:$4 sm:$0xff]   ;;  %v3488_v14 = vld [vmem:[%s4577_s4 + $0x238] ss:$52 sps:$4 sm:$0xff]  }
 0x1ab   :  { %2422 = vmatprep.subr.bf16.mxu1 %v3404_v15  ;;  %2463 = vmatprep.subr.bf16.mxu0 %v3407_v16  ;;  %v3489_v15 = vld [vmem:[%s4577_s4 + $0x1d0] ss:$52 sps:$4 sm:$0xff]   ;;  %v3490_v16 = vld [vmem:[%s4577_s4 + $0x168] ss:$52 sps:$4 sm:$0xff]  }
 0x1ae   :  { %2423 = vmatpush1.bf16.msra.mxu1 %v3402_v17  ;;  %2464 = vmatpush1.bf16.msra.mxu0 %v3405_v18  ;;  %v3491_v17 = vld [vmem:[%s4577_s4 + $0x100] ss:$52 sps:$4 sm:$0xff]   ;;  %v3492_v18 = vld [vmem:[%s4577_s4 + $0x98] ss:$52 sps:$4 sm:$0xff]  }
 0x1af   :  { %2424 = vmatprep.subr.bf16.mxu1 %v3410_v19  ;;  %2465 = vmatprep.subr.bf16.mxu0 %v3413_v20  ;;  %v3493_v19 = vld [vmem:[%s4577_s4 + $0x30] ss:$52 sps:$4 sm:$0xff]   ;;  %v4526_v20 = vld [vmem:[%s4580_s5 + $0x8] sm:$0x1f] }
 0x1b2   :  { %2425 = vmatpush1.bf16.msra.mxu1 %v3408_v21  ;;  %2466 = vmatpush1.bf16.msra.mxu0 %v3411_v22  ;;  %v1753_v21 = vsub.s32 2, %v3658_v42  ;;  %v1757_v22 = vsub.s32 3, %v3658_v42 }
 0x1b3   :  { %2426 = vmatprep.subr.bf16.mxu1 %v3416_v23  ;;  %2467 = vmatprep.subr.bf16.mxu0 %v3419_v24 }
 0x1b4   :  { %v4531_v23 = vrot.slane %v4526_v20, %v1753_v21  ;;  %v4534_v24 = vrot.slane %v4526_v20, %v1757_v22 }
 0x1b6   :  { %2427 = vmatpush1.bf16.msra.mxu1 %v3414_v26  ;;  %2468 = vmatpush1.bf16.msra.mxu0 %v3417_v27  ;;  %v3500_v26 = vmov 1983009808  }
 0x1b7   :  { %2428 = vmatprep.subr.bf16.mxu1 %v3422_v29  ;;  %2469 = vmatprep.subr.bf16.mxu0 %v3425_v30  ;;  %v2638_v27 = vunpack.c.l.s4 %v3500_v26 }
 0x1b9   :  { %v2639_v29 = vunpack.c.0.s8 %v2638_v27 }
 0x1ba   :  { %2429 = vmatpush1.bf16.msra.mxu1 %v3420_v31  ;;  %2470 = vmatpush1.bf16.msra.mxu0 %v3423_v32 }
 0x1bb   :  { %2430 = vmatprep.subr.bf16.mxu1 %v3428_v33  ;;  %2471 = vmatprep.subr.bf16.mxu0 %v3431_v34 }
 0x1be   :  { %2431 = vmatpush1.bf16.msra.mxu1 %v3426_v35  ;;  %2472 = vmatpush1.bf16.msra.mxu0 %v3429_v36 }
 0x1bf   :  { %2432 = vmatprep.subr.bf16.mxu1 %v3434_v38  ;;  %2473 = vmatprep.subr.bf16.mxu0 %v3437_v39  ;;  %v4542_v38 = vsub.s32 %v2639_v29, %v3658_v42 }
 0x1c2   :  { %2433 = vmatpush1.bf16.msra.mxu1 %v3432_v40  ;;  %2474 = vmatpush1.bf16.msra.mxu0 %v3435_v41 }
 0x1c3   :  { %2500 = vmatprep.subr.bf16.mxu1 %v3440_v43  ;;  %2541 = vmatprep.subr.bf16.mxu0 %v3443_v44 }
 0x1c5   :  { %2451 = vmatmul.mubr.bf16.vlgmr.msra.gmra.mxu1 %v4306_v10  ;;  %2492 = vmatmul.mubr.bf16.vlgmr.msra.gmra.mxu0 %v4306_v10 }
 0x1c6   :  { %2501 = vmatpush1.bf16.msra.mxu1 %v3438_v2  ;;  %2542 = vmatpush1.bf16.msra.mxu0 %v3441_v45 }
 0x1c7   :  { %2502 = vmatprep.subr.bf16.mxu1 %v3446_v46  ;;  %2543 = vmatprep.subr.bf16.mxu0 %v3449_v49 }
 0x1c8   :  { %2532 = vmatprep.mubr.bf16.mxu1 %v3497_v25  ;;  %2573 = vmatprep.mubr.bf16.mxu0 %v3497_v25  ;;  %v3461_v25 = vld [vmem:[%s4577_s4 + $0x1cc] ss:$52 sps:$4 sm:$0xff]  }
 0x1ca   :  { %2503 = vmatpush1.bf16.msra.mxu1 %v3444_v50  ;;  %2544 = vmatpush1.bf16.msra.mxu0 %v3447_v51 }
 0x1cb   :  { %2504 = vmatprep.subr.bf16.mxu1 %v3452_v52  ;;  %2545 = vmatprep.subr.bf16.mxu0 %v3455_v48 }
 0x1ce   :  { %2505 = vmatpush1.bf16.msra.mxu1 %v3450_v63  ;;  %2546 = vmatpush1.bf16.msra.mxu0 %v3453_v37  ;;  %v1761_v37 = vsub.s32 4, %v3658_v42 }
 0x1cf   :  { %2506 = vmatprep.subr.bf16.mxu1 %v3458_v53  ;;  %2547 = vmatprep.subr.bf16.mxu0 %v3461_v25  ;;  %v1769_v53 = vsub.s32 6, %v3658_v42  ;;  %v1765_v25 = vsub.s32 5, %v3658_v42 }
 0x1d2   :  { %2507 = vmatpush1.bf16.msra.mxu1 %v3456_v54  ;;  %2548 = vmatpush1.bf16.msra.mxu0 %v3459_v55  ;;  %v1773_v54 = vsub.s32 7, %v3658_v42 }
 0x1d3   :  { %2508 = vmatprep.subr.bf16.mxu1 %v3464_v56  ;;  %2549 = vmatprep.subr.bf16.mxu0 %v3467_v57 }
 0x1d6   :  { %2509 = vmatpush1.bf16.msra.mxu1 %v3462_v58  ;;  %2550 = vmatpush1.bf16.msra.mxu0 %v3465_v59 }
 0x1d7   :  { %2510 = vmatprep.subr.bf16.mxu1 %v3470_v60  ;;  %2551 = vmatprep.subr.bf16.mxu0 %v3473_v61 }
 0x1da   :  { %2511 = vmatpush1.bf16.msra.mxu1 %v3468_v62  ;;  %2552 = vmatpush1.bf16.msra.mxu0 %v3471_v0 }
 0x1db   :  { %2512 = vmatprep.subr.bf16.mxu1 %v3476_v1  ;;  %2553 = vmatprep.subr.bf16.mxu0 %v3479_v3 }
 0x1de   :  { %2513 = vmatpush1.bf16.msra.mxu1 %v3474_v4  ;;  %2554 = vmatpush1.bf16.msra.mxu0 %v3477_v5 }
 0x1df   :  { %2514 = vmatprep.subr.bf16.mxu1 %v3482_v6  ;;  %2555 = vmatprep.subr.bf16.mxu0 %v3485_v7 }
 0x1e2   :  { %2515 = vmatpush1.bf16.msra.mxu1 %v3480_v8  ;;  %2556 = vmatpush1.bf16.msra.mxu0 %v3483_v9 }
 0x1e3   :  { %3021 = vmatprep.subr.bf16.mxu1 %v3498_v12 }
 0x1e5   :  { %2533 = vmatmul.mubr.bf16.vlgmr.msra.gmra.mxu1 %v4306_v10  ;;  %2574 = vmatmul.mubr.bf16.vlgmr.msra.gmra.mxu0 %v4306_v10 }
 0x1e6   :  { %3022 = vmatpush3.bf16.msra.mxu1 %v3486_v11  ;;  %3037 = vmatprep.mubr.msk.bf16.mxu1 %vm3499_vm1, %v3498_v12 }
 0x1e7   :  { %3023 = vmatprep.subr.bf16.mxu1 %v3498_v12 }
 0x1ea   :  { %3024 = vmatpush3.bf16.msra.mxu1 %v3487_v13 }
 0x1eb   :  { %3025 = vmatprep.subr.bf16.mxu1 %v3498_v12 }
 0x1ee   :  { %3026 = vmatpush3.bf16.msra.mxu1 %v3488_v14  ;;  %v1778_v14 = vrot.slane %v4526_v20, %v4176_v28 }
 0x1ef   :  { %3027 = vmatprep.subr.bf16.mxu1 %v3498_v12 }
 0x1f2   :  { %3028 = vmatpush3.bf16.msra.mxu1 %v3489_v15  ;;  %v1782_v15 = vrot.slane %v4526_v20, %v4182_v47 }
 0x1f3   :  { %3029 = vmatprep.subr.bf16.mxu1 %v3498_v12 }
 0x1f6   :  { %3030 = vmatpush3.bf16.msra.mxu1 %v3490_v16 }
 0x1f7   :  { %3031 = vmatprep.subr.bf16.mxu1 %v3498_v12 }
 0x1fa   :  { %3032 = vmatpush3.bf16.msra.mxu1 %v3491_v17 }
 0x1fb   :  { %3033 = vmatprep.subr.bf16.mxu1 %v3498_v12 }
 0x1fe   :  { %3034 = vmatpush3.bf16.msra.mxu1 %v3492_v18 }
 0x1ff   :  { %3035 = vmatprep.subr.bf16.mxu1 %v3498_v12 }
 0x202   :  { %3036 = vmatpush3.bf16.msra.mxu1 %v3493_v19 }
 0x205   :  { %3038 = vmatmul.mubr.bf16.vlgmr.msra.gmra.mxu1 %v4306_v10  ;;  %v1739_v10 = vld [vmem:[%s4580_s5] sm:$0xff] }
 0x206   :  { %v1746_v30 = vrot.slane %v1739_v10, %v4176_v28  ;;  %v1754_v31 = vrot.slane %v1739_v10, %v1753_v21  ;;  %v1750_v32 = vrot.slane %v1739_v10, %v4182_v47  ;;  %v1758_v33 = vrot.slane %v1739_v10, %v1757_v22 }
 0x207   :  { %v1762_v55 = vrot.slane %v1739_v10, %v1761_v37  ;;  %v1770_v56 = vrot.slane %v1739_v10, %v1769_v53  ;;  %v1766_v57 = vrot.slane %v1739_v10, %v1765_v25  ;;  %v1774_v58 = vrot.slane %v1739_v10, %v1773_v54 }
 0x265   :  { %v2370_v34 = vpop.f32.mrf.mxu1  ;;  %v2411_v35 = vpop.f32.mrf.mxu0 }
 0x266   :  { %v2371_v40 = vadd.f32 %v2370_v34, %v1746_v30  ;;  %v2412_v41 = vadd.f32 %v2411_v35, %v1754_v31 }
 0x267   :  { %v2372_v36 = vpop.f32.mrf.mxu1  ;;  %v2413_v39 = vpop.f32.mrf.mxu0 }
 0x268   :  { %v2373_v43 = vadd.f32 %v2372_v36, %v1750_v32  ;;  %v2414_v44 = vadd.f32 %v2413_v39, %v1758_v33 }
 0x269   :  { %v2374_v2 = vpop.f32.mrf.mxu1  ;;  %v2415_v45 = vpop.f32.mrf.mxu0 }
 0x26a   :  { %v2635_v46 = vcombine.low %v2371_v40, %v2373_v43  ;;  %v2636_v49 = vcombine.low %v2412_v41, %v2414_v44 }
 0x26b   :  { %v2375_v50 = vpop.f32.mrf.mxu1  ;;  %v2416_v51 = vpop.f32.mrf.mxu0 }
 0x26c   :  { %v2643_v52 = vrot.slane %v2635_v46, %v4542_v38  ;;  %v2650_v48 = vrot.slane %v2636_v49, %v4542_v38 }
 0x26e   :  { %v2651_v63 = vcombine.low %v2643_v52, %v2650_v48 }
 0x270   :  { %2697 = vst [vmem:[%s4581_s7] sm:$0xff] %v2651_v63 }
 0x285   :  { %v2452_v59 = vpop.f32.mrf.mxu1  ;;  %v2493_v60 = vpop.f32.mrf.mxu0 }
 0x286   :  { %v2453_v0 = vadd.f32 %v2452_v59, %v1762_v55  ;;  %v2494_v1 = vadd.f32 %v2493_v60, %v1770_v56 }
 0x287   :  { %v2454_v61 = vpop.f32.mrf.mxu1  ;;  %v2495_v62 = vpop.f32.mrf.mxu0 }
 0x288   :  { %v2455_v3 = vadd.f32 %v2454_v61, %v1766_v57  ;;  %v2496_v4 = vadd.f32 %v2495_v62, %v1774_v58 }
 0x289   :  { %v2456_v5 = vpop.f32.mrf.mxu1  ;;  %v2497_v6 = vpop.f32.mrf.mxu0 }
 0x28a   :  { %v2652_v7 = vcombine.low %v2453_v0, %v2455_v3  ;;  %v2653_v8 = vcombine.low %v2494_v1, %v2496_v4 }
 0x28b   :  { %v2457_v9 = vpop.f32.mrf.mxu1  ;;  %v2498_v11 = vpop.f32.mrf.mxu0 }
 0x28c   :  { %v2660_v42 = vrot.slane %v2652_v7, %v4542_v38  ;;  %v2667_v12 = vrot.slane %v2653_v8, %v4542_v38 }
 0x28e   :  { %v2668_v13 = vcombine.low %v2660_v42, %v2667_v12 }
 0x290   :  { %2698 = vst [vmem:[%s4581_s7 + $0x8] sm:$0xff] %v2668_v13 }
 0x2a5   :  { %v2534_v16 = vpop.f32.mrf.mxu1  ;;  %v2575_v17 = vpop.f32.mrf.mxu0 }
 0x2a6   :  { %v2535_v21 = vadd.f32 %v2534_v16, %v1778_v14  ;;  %v2576_v22 = vadd.f32 %v2575_v17, %v4531_v23  ;;  %v1794_v23 = vrot.slane %v4526_v20, %v1761_v37 }
 0x2a7   :  { %v2536_v18 = vpop.f32.mrf.mxu1  ;;  %v2577_v19 = vpop.f32.mrf.mxu0 }
 0x2a8   :  { %v2537_v26 = vadd.f32 %v2536_v18, %v1782_v15  ;;  %v2578_v27 = vadd.f32 %v2577_v19, %v4534_v24 }
 0x2a9   :  { %v2538_v10 = vpop.f32.mrf.mxu1  ;;  %v2579_v29 = vpop.f32.mrf.mxu0 }
 0x2aa   :  { %v2669_v30 = vcombine.low %v2535_v21, %v2537_v26  ;;  %v2670_v31 = vcombine.low %v2576_v22, %v2578_v27 }
 0x2ab   :  { %v2539_v32 = vpop.f32.mrf.mxu1  ;;  %v2580_v33 = vpop.f32.mrf.mxu0 }
 0x2ac   :  { %v2677_v28 = vrot.slane %v2669_v30, %v4542_v38  ;;  %v2684_v47 = vrot.slane %v2670_v31, %v4542_v38 }
 0x2ae   :  { %v2685_v34 = vcombine.low %v2677_v28, %v2684_v47 }
 0x2b0   :  { %2699 = vst [vmem:[%s4581_s7 + $0x10] sm:$0xff] %v2685_v34 }
 0x2c5   :  { %v2616_v35 = vpop.f32.mrf.mxu1 }
 0x2c6   :  { %v2617_v36 = vadd.f32 %v2616_v35, %v1794_v23 }
 0x2c7   :  { %v3039_v24 = vpop.f32.mrf.mxu1 }
 0x2c8   :  { %v2692_v39 = vrot.slane %v2617_v36, %v4542_v38 }
 0x2c9   :  { %v2619_v40 = vpop.f32.mrf.mxu1 }
 0x2ca   :  { %2701 = vst.msk [vmem:[%s4581_s7 + $0x18] sm:$0x3] %vm2700_vm2, %v2692_v39 }
 0x2cb   :  { %v3040_v41 = vpop.f32.mrf.mxu1 }

// kernel: vae_forward.11
= control target key start
LH: loop header
LB: loop body
LE: loop exit
PB: predicated region body
PF: predicated region fallthrough
CT: control target
= control target key end

     0   :  { %v6053_v0 = vmov 0.0   ;;  %vm6054_vm0 = vmmov 0   ;;  %vm226_vm1 = vcmask 523264   ;;  %s9910_s1 = inlined_call_operand.vmem [shape: bf16[4,64,128], index: 1, kind: input, shape index: {}]   ;;  %s9911_s0 = inlined_call_operand.vmem [shape: bf16[4,392,64], index: 0, kind: input, shape index: {}]   ;;  %s9912_s2 = inlined_call_operand.vmem [shape: f32[1,128], index: 2, kind: input, shape index: {}]   ;;  %s9913_s3 = inlined_call_operand.vmem [shape: f32[4,392,128], index: 3, kind: output, shape index: {}]  }
   0x1   :  { %4715 = vmatprep.subr.bf16.mxu0 %v6053_v0  ;;  %4823 = vmatprep.subr.bf16.mxu1 %v6053_v0  ;;  %v5149_v1 = vld [vmem:[%s9910_s1 + $0x18] sm:$0xff]   ;;  %v5151_v3 = vld [vmem:[%s9910_s1 + $0x10] sm:$0xff]   ;;  %v5153_v5 = vld [vmem:[%s9910_s1 + $0x8] sm:$0xff]  }
   0x2   :  { %v5150_v2 = vld [vmem:[%s9910_s1 + $0x38] sm:$0xff]   ;;  %4723 = vmatprep.mubr.msk.bf16.mxu0 %vm6054_vm0, %v6053_v0  ;;  %4831 = vmatprep.mubr.msk.bf16.mxu1 %vm6054_vm0, %v6053_v0  ;;  %v5152_v4 = vld [vmem:[%s9910_s1 + $0x30] sm:$0xff]   ;;  %v5154_v6 = vld [vmem:[%s9910_s1 + $0x28] sm:$0xff]  }
   0x3   :  { %4716 = vmatpush3.bf16.msra.mxu0 %v5149_v1  ;;  %4824 = vmatpush3.bf16.msra.mxu1 %v5150_v2  ;;  %v5155_v7 = vld [vmem:[%s9910_s1] sm:$0xff]   ;;  %v5159_v11 = vld [vmem:[%s9910_s1 + $0x58] sm:$0xff]   ;;  %v5161_v13 = vld [vmem:[%s9911_s0 + $0x8] sm:$0xff]  }
   0x4   :  { %4717 = vmatprep.subr.bf16.mxu0 %v6053_v0  ;;  %4825 = vmatprep.subr.bf16.mxu1 %v6053_v0  ;;  %v5156_v8 = vld [vmem:[%s9910_s1 + $0x20] sm:$0xff]   ;;  %v5160_v12 = vld [vmem:[%s9910_s1 + $0x78] sm:$0xff]   ;;  %v5162_v14 = vld [vmem:[%s9911_s0 + $0xcc] sm:$0xff]  }
   0x5   :  { %v5157_v9 = vld [vmem:[%s9911_s0] sm:$0xff]   ;;  %v5173_v15 = vld [vmem:[%s9910_s1 + $0x50] sm:$0xff]   ;;  %v5165_v19 = vld [vmem:[%s9911_s0 + $0x18] sm:$0xff]  }
   0x6   :  { %v5158_v10 = vld [vmem:[%s9911_s0 + $0xc4] sm:$0xff]   ;;  %v5174_v16 = vld [vmem:[%s9910_s1 + $0x70] sm:$0xff]   ;;  %v5166_v20 = vld [vmem:[%s9911_s0 + $0xdc] sm:$0xff]  }
   0x7   :  { %4718 = vmatpush3.bf16.msra.mxu0 %v5151_v3  ;;  %4826 = vmatpush3.bf16.msra.mxu1 %v5152_v4  ;;  %v5163_v17 = vld [vmem:[%s9911_s0 + $0x10] sm:$0xff]   ;;  %v5187_v21 = vld [vmem:[%s9910_s1 + $0x48] sm:$0xff]   ;;  %v5167_v23 = vld [vmem:[%s9911_s0 + $0x20] sm:$0xff]  }
   0x8   :  { %4719 = vmatprep.subr.bf16.mxu0 %v6053_v0  ;;  %4827 = vmatprep.subr.bf16.mxu1 %v6053_v0  ;;  %v5164_v18 = vld [vmem:[%s9911_s0 + $0xd4] sm:$0xff]   ;;  %v5188_v22 = vld [vmem:[%s9910_s1 + $0x68] sm:$0xff]   ;;  %v5201_v26 = vld [vmem:[%s9910_s1 + $0x40] sm:$0xff]  }
   0x9   :  { %v5168_v24 = vld [vmem:[%s9911_s0 + $0xe4] sm:$0xff]   ;;  %v5170_v28 = vld [vmem:[%s9911_s0 + $0xec] sm:$0xff]   ;;  %v5172_v30 = vld [vmem:[%s9911_s0 + $0xf4] sm:$0xff]  }
   0xa   :  { %v5169_v25 = vld [vmem:[%s9911_s0 + $0x28] sm:$0xff]   ;;  %v5202_v27 = vld [vmem:[%s9910_s1 + $0x60] sm:$0xff]   ;;  %v5171_v29 = vld [vmem:[%s9911_s0 + $0x30] sm:$0xff]  }
   0xb   :  { %4720 = vmatpush3.bf16.msra.mxu0 %v5153_v5  ;;  %4828 = vmatpush3.bf16.msra.mxu1 %v5154_v6  ;;  %v5175_v31 = vld [vmem:[%s9911_s0 + $0x38] sm:$0xff]   ;;  %v5177_v33 = vld [vmem:[%s9911_s0 + $0x40] sm:$0xff]   ;;  %v5179_v35 = vld [vmem:[%s9911_s0 + $0x48] sm:$0xff]  }
   0xc   :  { %4721 = vmatprep.subr.bf16.mxu0 %v6053_v0  ;;  %4829 = vmatprep.subr.bf16.mxu1 %v6053_v0  ;;  %v5176_v32 = vld [vmem:[%s9911_s0 + $0xfc] sm:$0xff]   ;;  %v5178_v34 = vld [vmem:[%s9911_s0 + $0x104] sm:$0xff]   ;;  %v5180_v36 = vld [vmem:[%s9911_s0 + $0x10c] sm:$0xff]  }
   0xd   :  { %v5181_v37 = vld [vmem:[%s9911_s0 + $0x50] sm:$0xff]   ;;  %v5183_v39 = vld [vmem:[%s9911_s0 + $0x58] sm:$0xff]   ;;  %v5185_v41 = vld [vmem:[%s9911_s0 + $0x60] sm:$0xff]  }
   0xe   :  { %v5182_v38 = vld [vmem:[%s9911_s0 + $0x114] sm:$0xff]   ;;  %v5184_v40 = vld [vmem:[%s9911_s0 + $0x11c] sm:$0xff]   ;;  %v5186_v42 = vld [vmem:[%s9911_s0 + $0x124] sm:$0xff]  }
   0xf   :  { %4722 = vmatpush3.bf16.msra.mxu0 %v5155_v7  ;;  %4830 = vmatpush3.bf16.msra.mxu1 %v5156_v8  ;;  %v5189_v43 = vld [vmem:[%s9911_s0 + $0x68] sm:$0xff]   ;;  %v5191_v45 = vld [vmem:[%s9911_s0 + $0x70] sm:$0xff]   ;;  %v5193_v47 = vld [vmem:[%s9911_s0 + $0x78] sm:$0xff]  }
  0x10   :  { %4931 = vmatprep.subr.bf16.mxu0 %v6053_v0  ;;  %5039 = vmatprep.subr.bf16.mxu1 %v6053_v0  ;;  %v5190_v44 = vld [vmem:[%s9911_s0 + $0x12c] sm:$0xff]   ;;  %v5192_v46 = vld [vmem:[%s9911_s0 + $0x134] sm:$0xff]   ;;  %v5194_v48 = vld [vmem:[%s9911_s0 + $0x13c] sm:$0xff]  }
  0x11   :  { %v5195_v49 = vld [vmem:[%s9911_s0 + $0x80] sm:$0xff]   ;;  %v5197_v51 = vld [vmem:[%s9911_s0 + $0x88] sm:$0xff]   ;;  %v5199_v53 = vld [vmem:[%s9911_s0 + $0x90] sm:$0xff]  }
  0x12   :  { %4724 = vmatmul.mubr.msk.bf16.vlgmr.msra.gmra.mxu0 %vm226_vm1, %v5157_v9  ;;  %4832 = vmatmul.mubr.msk.bf16.vlgmr.msra.gmra.mxu1 %vm226_vm1, %v5158_v10  ;;  %v5196_v50 = vld [vmem:[%s9911_s0 + $0x144] sm:$0xff]   ;;  %v5198_v52 = vld [vmem:[%s9911_s0 + $0x14c] sm:$0xff]   ;;  %v5200_v54 = vld [vmem:[%s9911_s0 + $0x154] sm:$0xff]  }
  0x13   :  { %4932 = vmatpush3.bf16.msra.mxu0 %v5159_v11  ;;  %5040 = vmatpush3.bf16.msra.mxu1 %v5160_v12  ;;  %v5203_v55 = vld [vmem:[%s9911_s0 + $0x98] sm:$0xff]   ;;  %v5205_v57 = vld [vmem:[%s9911_s0 + $0xa0] sm:$0xff]   ;;  %v5207_v59 = vld [vmem:[%s9911_s0 + $0xa8] sm:$0xff]  }
  0x14   :  { %4727 = vmatprep.mubr.msk.bf16.mxu0 %vm6054_vm0, %v6053_v0  ;;  %4835 = vmatprep.mubr.msk.bf16.mxu1 %vm6054_vm0, %v6053_v0  ;;  %v5204_v56 = vld [vmem:[%s9911_s0 + $0x15c] sm:$0xff]   ;;  %v5206_v58 = vld [vmem:[%s9911_s0 + $0x164] sm:$0xff]   ;;  %v5208_v60 = vld [vmem:[%s9911_s0 + $0x16c] sm:$0xff]  }
  0x15   :  { %4933 = vmatprep.subr.bf16.mxu0 %v6053_v0  ;;  %5041 = vmatprep.subr.bf16.mxu1 %v6053_v0  ;;  %v5209_v61 = vld [vmem:[%s9911_s0 + $0xb0] sm:$0xff]   ;;  %v5211_v63 = vld [vmem:[%s9911_s0 + $0xb8] sm:$0xff]   ;;  %v5213_v2 = vld [vmem:[%s9911_s0 + $0xc0] ss:$0 sps:$4 sm:$0xff]  }
  0x16   :  { %v5210_v62 = vld [vmem:[%s9911_s0 + $0x174] sm:$0xff]   ;;  %v5212_v1 = vld [vmem:[%s9911_s0 + $0x17c] sm:$0xff]   ;;  %v5214_v3 = vld [vmem:[%s9911_s0 + $0x184] ss:$0 sps:$4 sm:$0xff]  }
  0x17   :  { %4934 = vmatpush3.bf16.msra.mxu0 %v5173_v15  ;;  %5042 = vmatpush3.bf16.msra.mxu1 %v5174_v16  ;;  %v6440_v4 = vld [vmem:[%s9912_s2] ss:$0 sm:$0xff] }
  0x18   :  { %4935 = vmatprep.subr.bf16.mxu0 %v6053_v0  ;;  %5043 = vmatprep.subr.bf16.mxu1 %v6053_v0 }
  0x1a   :  { %4728 = vmatmul.mubr.msk.bf16.gmra.mxu0 %vm226_vm1, %v5161_v13  ;;  %4836 = vmatmul.mubr.msk.bf16.gmra.mxu1 %vm226_vm1, %v5162_v14  ;;  %v5215_v14 = vld [vmem:[%s9911_s0 + $0x188] sm:$0xff]  }
  0x1b   :  { %4731 = vmatprep.mubr.msk.bf16.mxu0 %vm6054_vm0, %v6053_v0  ;;  %4839 = vmatprep.mubr.msk.bf16.mxu1 %vm6054_vm0, %v6053_v0 }
  0x1c   :  { %4936 = vmatpush3.bf16.msra.mxu0 %v5187_v21  ;;  %5044 = vmatpush3.bf16.msra.mxu1 %v5188_v22 }
  0x1d   :  { %4937 = vmatprep.subr.bf16.mxu0 %v6053_v0  ;;  %5045 = vmatprep.subr.bf16.mxu1 %v6053_v0 }
  0x20   :  { %4938 = vmatpush3.bf16.msra.mxu0 %v5201_v26  ;;  %5046 = vmatpush3.bf16.msra.mxu1 %v5202_v27 }
  0x22   :  { %4732 = vmatmul.mubr.msk.bf16.gmra.mxu0 %vm226_vm1, %v5163_v17  ;;  %4840 = vmatmul.mubr.msk.bf16.gmra.mxu1 %vm226_vm1, %v5164_v18  ;;  %v5216_v18 = vld [vmem:[%s9911_s0 + $0x24c] sm:$0xff]  }
  0x23   :  { %4735 = vmatprep.mubr.msk.bf16.mxu0 %vm6054_vm0, %v6053_v0  ;;  %4843 = vmatprep.mubr.msk.bf16.mxu1 %vm6054_vm0, %v6053_v0 }
  0x2a   :  { %4736 = vmatmul.mubr.msk.bf16.gmra.mxu0 %vm226_vm1, %v5165_v19  ;;  %4844 = vmatmul.mubr.msk.bf16.gmra.mxu1 %vm226_vm1, %v5166_v20 }
  0x2b   :  { %4739 = vmatprep.mubr.msk.bf16.mxu0 %vm6054_vm0, %v6053_v0  ;;  %4847 = vmatprep.mubr.msk.bf16.mxu1 %vm6054_vm0, %v6053_v0 }
  0x32   :  { %4740 = vmatmul.mubr.msk.bf16.gmra.mxu0 %vm226_vm1, %v5167_v23  ;;  %4848 = vmatmul.mubr.msk.bf16.gmra.mxu1 %vm226_vm1, %v5168_v24 }
  0x33   :  { %4743 = vmatprep.mubr.msk.bf16.mxu0 %vm6054_vm0, %v6053_v0  ;;  %4851 = vmatprep.mubr.msk.bf16.mxu1 %vm6054_vm0, %v6053_v0 }
  0x3a   :  { %4744 = vmatmul.mubr.msk.bf16.gmra.mxu0 %vm226_vm1, %v5169_v25  ;;  %4852 = vmatmul.mubr.msk.bf16.gmra.mxu1 %vm226_vm1, %v5170_v28 }
  0x3b   :  { %4747 = vmatprep.mubr.msk.bf16.mxu0 %vm6054_vm0, %v6053_v0  ;;  %4855 = vmatprep.mubr.msk.bf16.mxu1 %vm6054_vm0, %v6053_v0 }
  0x42   :  { %4748 = vmatmul.mubr.msk.bf16.gmra.mxu0 %vm226_vm1, %v5171_v29  ;;  %4856 = vmatmul.mubr.msk.bf16.gmra.mxu1 %vm226_vm1, %v5172_v30 }
  0x43   :  { %4751 = vmatprep.mubr.msk.bf16.mxu0 %vm6054_vm0, %v6053_v0  ;;  %4859 = vmatprep.mubr.msk.bf16.mxu1 %vm6054_vm0, %v6053_v0 }
  0x4a   :  { %4752 = vmatmul.mubr.msk.bf16.gmra.mxu0 %vm226_vm1, %v5175_v31  ;;  %4860 = vmatmul.mubr.msk.bf16.gmra.mxu1 %vm226_vm1, %v5176_v32 }
  0x4b   :  { %4755 = vmatprep.mubr.msk.bf16.mxu0 %vm6054_vm0, %v6053_v0  ;;  %4863 = vmatprep.mubr.msk.bf16.mxu1 %vm6054_vm0, %v6053_v0 }
  0x52   :  { %4756 = vmatmul.mubr.msk.bf16.gmra.mxu0 %vm226_vm1, %v5177_v33  ;;  %4864 = vmatmul.mubr.msk.bf16.gmra.mxu1 %vm226_vm1, %v5178_v34 }
  0x53   :  { %4759 = vmatprep.mubr.msk.bf16.mxu0 %vm6054_vm0, %v6053_v0  ;;  %4867 = vmatprep.mubr.msk.bf16.mxu1 %vm6054_vm0, %v6053_v0 }
  0x5a   :  { %4760 = vmatmul.mubr.msk.bf16.gmra.mxu0 %vm226_vm1, %v5179_v35  ;;  %4868 = vmatmul.mubr.msk.bf16.gmra.mxu1 %vm226_vm1, %v5180_v36 }
  0x5b   :  { %4763 = vmatprep.mubr.msk.bf16.mxu0 %vm6054_vm0, %v6053_v0  ;;  %4871 = vmatprep.mubr.msk.bf16.mxu1 %vm6054_vm0, %v6053_v0 }
  0x62   :  { %4764 = vmatmul.mubr.msk.bf16.gmra.mxu0 %vm226_vm1, %v5181_v37  ;;  %4872 = vmatmul.mubr.msk.bf16.gmra.mxu1 %vm226_vm1, %v5182_v38 }
  0x63   :  { %4767 = vmatprep.mubr.msk.bf16.mxu0 %vm6054_vm0, %v6053_v0  ;;  %4875 = vmatprep.mubr.msk.bf16.mxu1 %vm6054_vm0, %v6053_v0 }
  0x6a   :  { %4768 = vmatmul.mubr.msk.bf16.gmra.mxu0 %vm226_vm1, %v5183_v39  ;;  %4876 = vmatmul.mubr.msk.bf16.gmra.mxu1 %vm226_vm1, %v5184_v40  ;;  %v5217_v40 = vld [vmem:[%s9911_s0 + $0x190] sm:$0xff]  }
  0x6b   :  { %4771 = vmatprep.mubr.msk.bf16.mxu0 %vm6054_vm0, %v6053_v0  ;;  %4879 = vmatprep.mubr.msk.bf16.mxu1 %vm6054_vm0, %v6053_v0 }
  0x72   :  { %4772 = vmatmul.mubr.msk.bf16.gmra.mxu0 %vm226_vm1, %v5185_v41  ;;  %4880 = vmatmul.mubr.msk.bf16.gmra.mxu1 %vm226_vm1, %v5186_v42 }
  0x73   :  { %4775 = vmatprep.mubr.msk.bf16.mxu0 %vm6054_vm0, %v6053_v0  ;;  %4883 = vmatprep.mubr.msk.bf16.mxu1 %vm6054_vm0, %v6053_v0 }
  0x7a   :  { %4776 = vmatmul.mubr.msk.bf16.gmra.mxu0 %vm226_vm1, %v5189_v43  ;;  %4884 = vmatmul.mubr.msk.bf16.gmra.mxu1 %vm226_vm1, %v5190_v44  ;;  %v5218_v44 = vld [vmem:[%s9911_s0 + $0x254] sm:$0xff]  }
  0x7b   :  { %4779 = vmatprep.mubr.msk.bf16.mxu0 %vm6054_vm0, %v6053_v0  ;;  %4887 = vmatprep.mubr.msk.bf16.mxu1 %vm6054_vm0, %v6053_v0 }
  0x82   :  { %4780 = vmatmul.mubr.msk.bf16.gmra.mxu0 %vm226_vm1, %v5191_v45  ;;  %4888 = vmatmul.mubr.msk.bf16.gmra.mxu1 %vm226_vm1, %v5192_v46 }
  0x83   :  { %4783 = vmatprep.mubr.msk.bf16.mxu0 %vm6054_vm0, %v6053_v0  ;;  %4891 = vmatprep.mubr.msk.bf16.mxu1 %vm6054_vm0, %v6053_v0 }
  0x8a   :  { %4784 = vmatmul.mubr.msk.bf16.gmra.mxu0 %vm226_vm1, %v5193_v47  ;;  %4892 = vmatmul.mubr.msk.bf16.gmra.mxu1 %vm226_vm1, %v5194_v48 }
  0x8b   :  { %4787 = vmatprep.mubr.msk.bf16.mxu0 %vm6054_vm0, %v6053_v0  ;;  %4895 = vmatprep.mubr.msk.bf16.mxu1 %vm6054_vm0, %v6053_v0 }
  0x92   :  { %4788 = vmatmul.mubr.msk.bf16.gmra.mxu0 %vm226_vm1, %v5195_v49  ;;  %4896 = vmatmul.mubr.msk.bf16.gmra.mxu1 %vm226_vm1, %v5196_v50 }
  0x93   :  { %4791 = vmatprep.mubr.msk.bf16.mxu0 %vm6054_vm0, %v6053_v0  ;;  %4899 = vmatprep.mubr.msk.bf16.mxu1 %vm6054_vm0, %v6053_v0 }
  0x9a   :  { %4792 = vmatmul.mubr.msk.bf16.gmra.mxu0 %vm226_vm1, %v5197_v51  ;;  %4900 = vmatmul.mubr.msk.bf16.gmra.mxu1 %vm226_vm1, %v5198_v52 }
  0x9b   :  { %4795 = vmatprep.mubr.msk.bf16.mxu0 %vm6054_vm0, %v6053_v0  ;;  %4903 = vmatprep.mubr.msk.bf16.mxu1 %vm6054_vm0, %v6053_v0 }
  0xa2   :  { %4796 = vmatmul.mubr.msk.bf16.gmra.mxu0 %vm226_vm1, %v5199_v53  ;;  %4904 = vmatmul.mubr.msk.bf16.gmra.mxu1 %vm226_vm1, %v5200_v54 }
  0xa3   :  { %4799 = vmatprep.mubr.msk.bf16.mxu0 %vm6054_vm0, %v6053_v0  ;;  %4907 = vmatprep.mubr.msk.bf16.mxu1 %vm6054_vm0, %v6053_v0 }
  0xaa   :  { %4800 = vmatmul.mubr.msk.bf16.gmra.mxu0 %vm226_vm1, %v5203_v55  ;;  %4908 = vmatmul.mubr.msk.bf16.gmra.mxu1 %vm226_vm1, %v5204_v56 }
  0xab   :  { %4803 = vmatprep.mubr.msk.bf16.mxu0 %vm6054_vm0, %v6053_v0  ;;  %4911 = vmatprep.mubr.msk.bf16.mxu1 %vm6054_vm0, %v6053_v0 }
  0xb2   :  { %4804 = vmatmul.mubr.msk.bf16.gmra.mxu0 %vm226_vm1, %v5205_v57  ;;  %4912 = vmatmul.mubr.msk.bf16.gmra.mxu1 %vm226_vm1, %v5206_v58 }
  0xb3   :  { %4807 = vmatprep.mubr.msk.bf16.mxu0 %vm6054_vm0, %v6053_v0  ;;  %4915 = vmatprep.mubr.msk.bf16.mxu1 %vm6054_vm0, %v6053_v0 }
  0xba   :  { %4808 = vmatmul.mubr.msk.bf16.gmra.mxu0 %vm226_vm1, %v5207_v59  ;;  %4916 = vmatmul.mubr.msk.bf16.gmra.mxu1 %vm226_vm1, %v5208_v60 }
  0xbb   :  { %4811 = vmatprep.mubr.msk.bf16.mxu0 %vm6054_vm0, %v6053_v0  ;;  %4919 = vmatprep.mubr.msk.bf16.mxu1 %vm6054_vm0, %v6053_v0 }
  0xc2   :  { %4812 = vmatmul.mubr.msk.bf16.gmra.mxu0 %vm226_vm1, %v5209_v61  ;;  %4920 = vmatmul.mubr.msk.bf16.gmra.mxu1 %vm226_vm1, %v5210_v62 }
  0xc3   :  { %4815 = vmatprep.mubr.msk.bf16.mxu0 %vm6054_vm0, %v6053_v0  ;;  %4923 = vmatprep.mubr.msk.bf16.mxu1 %vm6054_vm0, %v6053_v0 }
  0xca   :  { %4816 = vmatmul.mubr.msk.bf16.gmra.mxu0 %vm226_vm1, %v5211_v63  ;;  %4924 = vmatmul.mubr.msk.bf16.gmra.mxu1 %vm226_vm1, %v5212_v1 }
  0xcb   :  { %4819 = vmatprep.mubr.msk.bf16.mxu0 %vm6054_vm0, %v6053_v0  ;;  %4927 = vmatprep.mubr.msk.bf16.mxu1 %vm6054_vm0, %v6053_v0 }
  0xd2   :  { %v336_v5 = vpop.f32.mrf.mxu0  ;;  %4820 = vmatmul.mubr.msk.bf16.gmra.mxu0 %vm226_vm1, %v5213_v2  ;;  %v1346_v7 = vpop.f32.mrf.mxu1  ;;  %4928 = vmatmul.mubr.msk.bf16.gmra.mxu1 %vm226_vm1, %v5214_v3  ;;  %v5219_v3 = vld [vmem:[%s9911_s0 + $0x198] sm:$0xff]  }
  0xd3   :  { %v6444_v6 = vadd.f32 %v6440_v4, %v336_v5  ;;  %4939 = vmatprep.mubr.msk.bf16.mxu0 %vm6054_vm0, %v6053_v0  ;;  %v6450_v8 = vadd.f32 %v6440_v4, %v1346_v7  ;;  %5047 = vmatprep.mubr.msk.bf16.mxu1 %vm6054_vm0, %v6053_v0 }
  0xd4   :  { %v4725_v9 = vpop.f32.mrf.mxu0  ;;  %v4833_v11 = vpop.f32.mrf.mxu1 }
  0xd5   :  { %v534_v10 = vand.u32 2147483647, %v6444_v6  ;;  %v1544_v12 = vand.u32 2147483647, %v6450_v8  ;;  %vm828_vm2 = vcmp.ge.f32.partialorder %v6444_v6, 0.0  ;;  %vm1838_vm3 = vcmp.ge.f32.partialorder %v6450_v8, 0.0 }
  0xd6   :  { %v339_v13 = vpop.f32.mrf.mxu0  ;;  %v1349_v17 = vpop.f32.mrf.mxu1 }
  0xd7   :  { %v583_v15 = vsub.f32 0.0, %v534_v10  ;;  %v6460_v16 = vadd.f32 %v6440_v4, %v339_v13  ;;  %v1593_v19 = vsub.f32 0.0, %v1544_v12  ;;  %v6466_v20 = vadd.f32 %v6440_v4, %v1349_v17  ;;  %v5220_v10 = vld [vmem:[%s9911_s0 + $0x25c] sm:$0xff]  }
  0xd8   :  { %v4726_v21 = vpop.f32.mrf.mxu0  ;;  %v4834_v24 = vpop.f32.mrf.mxu1 }
  0xd9   :  { %v632_v22 = vmul.f32 1.442695, %v583_v15  ;;  %v535_v23 = vand.u32 2147483647, %v6460_v16  ;;  %v1642_v25 = vmul.f32 1.442695, %v1593_v19 }
  0xda   :  { %v1545_v26 = vand.u32 2147483647, %v6466_v20  ;;  %v344_v27 = vpop.f32.mrf.mxu0  ;;  %4940 = vmatmul.mubr.msk.bf16.vlgmr.msra.gmra.mxu0 %vm226_vm1, %v5215_v14  ;;  %v1354_v30 = vpop.f32.mrf.mxu1  ;;  %5048 = vmatmul.mubr.msk.bf16.vlgmr.msra.gmra.mxu1 %vm226_vm1, %v5216_v18  ;;  %vm829_vm4 = vcmp.ge.f32.partialorder %v6460_v16, 0.0  ;;  %vm1839_vm5 = vcmp.ge.f32.partialorder %v6466_v20, 0.0 }
  0xdb   :  { %5265 = vpow2.f32 %v632_v22  ;;  %v584_v28 = vsub.f32 0.0, %v535_v23  ;;  %v6472_v29 = vadd.f32 %v6440_v4, %v344_v27  ;;  %4943 = vmatprep.mubr.msk.bf16.mxu0 %vm6054_vm0, %v6053_v0  ;;  %v6478_v32 = vadd.f32 %v6440_v4, %v1354_v30  ;;  %5051 = vmatprep.mubr.msk.bf16.mxu1 %vm6054_vm0, %v6053_v0 }
  0xdc   :  { %5267 = vpow2.f32 %v1642_v25  ;;  %v1594_v31 = vsub.f32 0.0, %v1545_v26  ;;  %v4729_v33 = vpop.f32.mrf.mxu0  ;;  %v4837_v36 = vpop.f32.mrf.mxu1 }
  0xdd   :  { %v634_v34 = vmul.f32 1.442695, %v584_v28  ;;  %v536_v35 = vand.u32 2147483647, %v6472_v29  ;;  %v1546_v38 = vand.u32 2147483647, %v6478_v32 }
  0xde   :  { %v1644_v37 = vmul.f32 1.442695, %v1594_v31  ;;  %v347_v39 = vpop.f32.mrf.mxu0  ;;  %v1357_v43 = vpop.f32.mrf.mxu1  ;;  %vm830_vm6 = vcmp.ge.f32.partialorder %v6472_v29, 0.0  ;;  %vm1840_vm7 = vcmp.ge.f32.partialorder %v6478_v32, 0.0 }
  0xdf   :  { %5269 = vpow2.f32 %v634_v34  ;;  %v585_v41 = vsub.f32 0.0, %v536_v35  ;;  %v6488_v42 = vadd.f32 %v6440_v4, %v347_v39  ;;  %v1595_v45 = vsub.f32 0.0, %v1546_v38 }
  0xe0   :  { %5271 = vpow2.f32 %v1644_v37  ;;  %v6494_v46 = vadd.f32 %v6440_v4, %v1357_v43  ;;  %v4730_v47 = vpop.f32.mrf.mxu0  ;;  %v4838_v50 = vpop.f32.mrf.mxu1 }
  0xe1   :  { %v636_v48 = vmul.f32 1.442695, %v585_v41  ;;  %v537_v49 = vand.u32 2147483647, %v6488_v42  ;;  %v1646_v51 = vmul.f32 1.442695, %v1595_v45 }
  0xe2   :  { %v1547_v52 = vand.u32 2147483647, %v6494_v46  ;;  %v352_v53 = vpop.f32.mrf.mxu0  ;;  %4944 = vmatmul.mubr.msk.bf16.gmra.mxu0 %vm226_vm1, %v5217_v40  ;;  %v1362_v56 = vpop.f32.mrf.mxu1  ;;  %5052 = vmatmul.mubr.msk.bf16.gmra.mxu1 %vm226_vm1, %v5218_v44  ;;  %v5221_v41 = vld [vmem:[%s9911_s0 + $0x1a0] sm:$0xff]   ;;  %vm831_vm8 = vcmp.ge.f32.partialorder %v6488_v42, 0.0  ;;  %vm1841_vm9 = vcmp.ge.f32.partialorder %v6494_v46, 0.0 }
  0xe3   :  { %5273 = vpow2.f32 %v636_v48  ;;  %v586_v54 = vsub.f32 0.0, %v537_v49  ;;  %v6500_v55 = vadd.f32 %v6440_v4, %v352_v53  ;;  %4947 = vmatprep.mubr.msk.bf16.mxu0 %vm6054_vm0, %v6053_v0  ;;  %v6506_v58 = vadd.f32 %v6440_v4, %v1362_v56  ;;  %5055 = vmatprep.mubr.msk.bf16.mxu1 %vm6054_vm0, %v6053_v0  ;;  %v5222_v47 = vld [vmem:[%s9911_s0 + $0x264] sm:$0xff]  }
  0xe4   :  { %5275 = vpow2.f32 %v1646_v51  ;;  %v1596_v57 = vsub.f32 0.0, %v1547_v52  ;;  %v4733_v59 = vpop.f32.mrf.mxu0  ;;  %v4841_v62 = vpop.f32.mrf.mxu1 }
  0xe5   :  { %v638_v60 = vmul.f32 1.442695, %v586_v54  ;;  %v538_v61 = vand.u32 2147483647, %v6500_v55  ;;  %v1548_v1 = vand.u32 2147483647, %v6506_v58 }
  0xe6   :  { %v1648_v63 = vmul.f32 1.442695, %v1596_v57  ;;  %v355_v2 = vpop.f32.mrf.mxu0  ;;  %v1365_v9 = vpop.f32.mrf.mxu1  ;;  %vm832_vm10 = vcmp.ge.f32.partialorder %v6500_v55, 0.0  ;;  %vm1842_vm11 = vcmp.ge.f32.partialorder %v6506_v58, 0.0 }
  0xe7   :  { %5277 = vpow2.f32 %v638_v60  ;;  %v587_v5 = vsub.f32 0.0, %v538_v61  ;;  %v6516_v7 = vadd.f32 %v6440_v4, %v355_v2  ;;  %v1597_v12 = vsub.f32 0.0, %v1548_v1 }
  0xe8   :  { %v6521_v11 = vpop.eup %5265  ;;  %5279 = vpow2.f32 %v1648_v63  ;;  %v6524_v13 = vadd.f32 %v6440_v4, %v1365_v9  ;;  %v4734_v14 = vpop.f32.mrf.mxu0 }
  0xe9   :  { %v6526_v15 = vpop.eup %5267  ;;  %v730_v17 = vadd.f32 1.0, %v6521_v11  ;;  %v640_v18 = vmul.f32 1.442695, %v587_v5  ;;  %v539_v19 = vand.u32 2147483647, %v6516_v7  ;;  %v4842_v21 = vpop.f32.mrf.mxu1  ;;  %vm833_vm12 = vcmp.ge.f32.partialorder %v6516_v7, 0.0 }
  0xea   :  { %v1740_v22 = vadd.f32 1.0, %v6526_v15  ;;  %v1650_v23 = vmul.f32 1.442695, %v1597_v12  ;;  %v360_v24 = vpop.f32.mrf.mxu0  ;;  %4948 = vmatmul.mubr.msk.bf16.gmra.mxu0 %vm226_vm1, %v5219_v3  ;;  %v1549_v26 = vand.u32 2147483647, %v6524_v13  ;;  %5056 = vmatmul.mubr.msk.bf16.gmra.mxu1 %vm226_vm1, %v5220_v10  ;;  %vm1843_vm13 = vcmp.ge.f32.partialorder %v6524_v13, 0.0 }
  0xeb   :  { %5281 = vrcp.f32 %v730_v17  ;;  %v588_v25 = vsub.f32 0.0, %v539_v19  ;;  %v1370_v27 = vpop.f32.mrf.mxu1  ;;  %4951 = vmatprep.mubr.msk.bf16.mxu0 %vm6054_vm0, %v6053_v0  ;;  %v6539_v30 = vadd.f32 %v6440_v4, %v360_v24  ;;  %5059 = vmatprep.mubr.msk.bf16.mxu1 %vm6054_vm0, %v6053_v0  ;;  %v5229_v7 = vld [vmem:[%s9911_s0 + $0x1c0] sm:$0xff]  }
  0xec   :  { %v6536_v28 = vpop.eup %5269  ;;  %5283 = vrcp.f32 %v1740_v22  ;;  %v6542_v31 = vadd.f32 %v6440_v4, %v1370_v27  ;;  %v4737_v33 = vpop.f32.mrf.mxu0  ;;  %v1598_v39 = vsub.f32 0.0, %v1549_v26  ;;  %v5223_v22 = vld [vmem:[%s9911_s0 + $0x1a8] sm:$0xff]  }
  0xed   :  { %v6546_v34 = vpop.eup %5271  ;;  %v731_v35 = vadd.f32 1.0, %v6536_v28  ;;  %5285 = vpow2.f32 %v640_v18  ;;  %v642_v36 = vmul.f32 1.442695, %v588_v25  ;;  %v4845_v37 = vpop.f32.mrf.mxu1  ;;  %v540_v43 = vand.u32 2147483647, %v6539_v30  ;;  %v5224_v27 = vld [vmem:[%s9911_s0 + $0x26c] sm:$0xff]  }
  0xee   :  { %v1741_v38 = vadd.f32 1.0, %v6546_v34  ;;  %5287 = vpow2.f32 %v1650_v23  ;;  %v363_v40 = vpop.f32.mrf.mxu0  ;;  %v1550_v44 = vand.u32 2147483647, %v6542_v31  ;;  %v1652_v49 = vmul.f32 1.442695, %v1598_v39 }
  0xef   :  { %5289 = vrcp.f32 %v731_v35  ;;  %v1373_v45 = vpop.f32.mrf.mxu1  ;;  %v6561_v50 = vadd.f32 %v6440_v4, %v363_v40  ;;  %v589_v54 = vsub.f32 0.0, %v540_v43  ;;  %v877_v23 = vsel %vm828_vm2, 1.0, %v6521_v11 }
  0xf0   :  { %v6558_v48 = vpop.eup %5273  ;;  %5291 = vrcp.f32 %v1741_v38  ;;  %v4738_v51 = vpop.f32.mrf.mxu0  ;;  %v1599_v59 = vsub.f32 0.0, %v1550_v44  ;;  %v6577_v3 = vadd.f32 %v6440_v4, %v1373_v45  ;;  %v1887_v35 = vsel %vm1838_vm3, 1.0, %v6526_v15 }
  0xf1   :  { %v6563_v52 = vpop.eup %5275  ;;  %v732_v53 = vadd.f32 1.0, %v6558_v48  ;;  %5293 = vpow2.f32 %v642_v36  ;;  %v4846_v56 = vpop.f32.mrf.mxu1  ;;  %v644_v61 = vmul.f32 1.442695, %v589_v54  ;;  %v541_v62 = vand.u32 2147483647, %v6561_v50 }
  0xf2   :  { %v1742_v57 = vadd.f32 1.0, %v6563_v52  ;;  %5295 = vpow2.f32 %v1652_v49  ;;  %v368_v60 = vpop.f32.mrf.mxu0  ;;  %4952 = vmatmul.mubr.msk.bf16.gmra.mxu0 %vm226_vm1, %v5221_v41  ;;  %5060 = vmatmul.mubr.msk.bf16.gmra.mxu1 %vm226_vm1, %v5222_v47  ;;  %v1654_v2 = vmul.f32 1.442695, %v1599_v59  ;;  %v1551_v19 = vand.u32 2147483647, %v6577_v3 }
  0xf3   :  { %5297 = vrcp.f32 %v732_v53  ;;  %v1378_v63 = vpop.f32.mrf.mxu1  ;;  %4955 = vmatprep.mubr.msk.bf16.mxu0 %vm6054_vm0, %v6053_v0  ;;  %v6580_v5 = vadd.f32 %v6440_v4, %v368_v60  ;;  %5063 = vmatprep.mubr.msk.bf16.mxu1 %vm6054_vm0, %v6053_v0  ;;  %v590_v14 = vsub.f32 0.0, %v541_v62  ;;  %vm834_vm14 = vcmp.ge.f32.partialorder %v6539_v30, 0.0 }
  0xf4   :  { %v6574_v1 = vpop.eup %5277  ;;  %5299 = vrcp.f32 %v1742_v57  ;;  %v4741_v9 = vpop.f32.mrf.mxu0  ;;  %v1600_v36 = vsub.f32 0.0, %v1551_v19  ;;  %v6606_v6 = vadd.f32 %v6440_v4, %v1378_v63  ;;  %v878_v57 = vsel %vm829_vm4, 1.0, %v6536_v28  ;;  %v5225_v19 = vld [vmem:[%s9911_s0 + $0x1b0] sm:$0xff]  }
  0xf5   :  { %v6584_v10 = vpop.eup %5279  ;;  %v733_v12 = vadd.f32 1.0, %v6574_v1  ;;  %5301 = vpow2.f32 %v644_v61  ;;  %v4849_v17 = vpop.f32.mrf.mxu1  ;;  %v646_v24 = vmul.f32 1.442695, %v590_v14  ;;  %v542_v25 = vand.u32 2147483647, %v6580_v5 }
  0xf6   :  { %v1743_v18 = vadd.f32 1.0, %v6584_v10  ;;  %5303 = vpow2.f32 %v1654_v2  ;;  %v371_v21 = vpop.f32.mrf.mxu0  ;;  %v1656_v8 = vmul.f32 1.442695, %v1600_v36  ;;  %v1552_v15 = vand.u32 2147483647, %v6606_v6 }
  0xf7   :  { %5305 = vrcp.f32 %v733_v12  ;;  %v1381_v26 = vpop.f32.mrf.mxu1  ;;  %v591_v39 = vsub.f32 0.0, %v542_v25  ;;  %v6609_v40 = vadd.f32 %v6440_v4, %v371_v21  ;;  %v1888_v2 = vsel %vm1839_vm5, 1.0, %v6546_v34 }
  0xf8   :  { %v5282_v33 = vpop.eup %5281  ;;  %5307 = vrcp.f32 %v1743_v18  ;;  %v4742_v11 = vpop.f32.mrf.mxu0  ;;  %v1601_v60 = vsub.f32 0.0, %v1552_v15  ;;  %v6642_v17 = vadd.f32 %v6440_v4, %v1381_v26  ;;  %v879_v25 = vsel %vm830_vm6, 1.0, %v6558_v48 }
  0xf9   :  { %v5284_v37 = vpop.eup %5283  ;;  %v926_v38 = vmul.f32 %v5282_v33, %v877_v23  ;;  %5309 = vpow2.f32 %v646_v24  ;;  %v4850_v41 = vpop.f32.mrf.mxu1  ;;  %v648_v51 = vmul.f32 1.442695, %v591_v39  ;;  %v543_v53 = vand.u32 2147483647, %v6609_v40  ;;  %v5226_v23 = vld [vmem:[%s9911_s0 + $0x274] sm:$0xff]  }
  0xfa   :  { %v6611_v43 = vpop.eup %5285  ;;  %v1936_v44 = vmul.f32 %v5284_v37, %v1887_v35  ;;  %v376_v45 = vpop.f32.mrf.mxu0  ;;  %4956 = vmatmul.mubr.msk.bf16.gmra.mxu0 %vm226_vm1, %v5223_v22  ;;  %5064 = vmatmul.mubr.msk.bf16.gmra.mxu1 %vm226_vm1, %v5224_v27  ;;  %5311 = vpow2.f32 %v1656_v8  ;;  %v1658_v28 = vmul.f32 1.442695, %v1601_v60  ;;  %v1553_v27 = vand.u32 2147483647, %v6642_v17 }
  0xfb   :  { %v6616_v47 = vpop.eup %5287  ;;  %975 = vst [vmem:[%s9913_s3] sm:$0xff] %v926_v38  ;;  %v734_v49 = vadd.f32 1.0, %v6611_v43  ;;  %v1386_v54 = vpop.f32.mrf.mxu1  ;;  %4959 = vmatprep.mubr.msk.bf16.mxu0 %vm6054_vm0, %v6053_v0  ;;  %5067 = vmatprep.mubr.msk.bf16.mxu1 %vm6054_vm0, %v6053_v0  ;;  %v592_v9 = vsub.f32 0.0, %v543_v53  ;;  %v1889_v11 = vsel %vm1840_vm7, 1.0, %v6563_v52  ;;  %v6671_v37 = vadd.f32 %v6440_v4, %v376_v45 }
  0xfc   :  { %v5290_v56 = vpop.eup %5289  ;;  %4228 = vst [vmem:[%s9913_s3 + $0x188] sm:$0xff] %v1936_v44  ;;  %v1744_v59 = vadd.f32 1.0, %v6616_v47  ;;  %v4745_v61 = vpop.f32.mrf.mxu0  ;;  %v1602_v48 = vsub.f32 0.0, %v1553_v27  ;;  %v6676_v41 = vadd.f32 %v6440_v4, %v1386_v54  ;;  %vm1844_vm15 = vcmp.ge.f32.partialorder %v6542_v31, 0.0 }
  0xfd   :  { %v5292_v62 = vpop.eup %5291  ;;  %v927_v63 = vmul.f32 %v5290_v56, %v878_v57  ;;  %5313 = vrcp.f32 %v734_v49  ;;  %v4853_v12 = vpop.f32.mrf.mxu1  ;;  %v650_v34 = vmul.f32 1.442695, %v592_v9  ;;  %v544_v52 = vand.u32 2147483647, %v6671_v37 }
  0xfe   :  { %v6639_v14 = vpop.eup %5293  ;;  %v1937_v16 = vmul.f32 %v5292_v62, %v1888_v2  ;;  %5315 = vrcp.f32 %v1744_v59  ;;  %v379_v18 = vpop.f32.mrf.mxu0  ;;  %v880_v49 = vsel %vm831_vm8, 1.0, %v6574_v1  ;;  %v1660_v54 = vmul.f32 1.442695, %v1602_v48 }
  0xff   :  { %v6647_v21 = vpop.eup %5295  ;;  %976 = vst [vmem:[%s9913_s3 + $0x8] sm:$0xff] %v927_v63  ;;  %v735_v20 = vadd.f32 1.0, %v6639_v14  ;;  %5317 = vpow2.f32 %v648_v51  ;;  %v6654_v22 = vpop.f32.mrf.mxu1  ;;  %v1890_v51 = vsel %vm1841_vm9, 1.0, %v6584_v10  ;;  %v593_v60 = vsub.f32 0.0, %v544_v52  ;;  %v5227_v63 = vld [vmem:[%s9911_s0 + $0x1b8] sm:$0xff]  }
 0x100   :  { %v5298_v24 = vpop.eup %5297  ;;  %4229 = vst [vmem:[%s9913_s3 + $0x190] sm:$0xff] %v1937_v16  ;;  %v1745_v26 = vadd.f32 1.0, %v6647_v21  ;;  %5319 = vpow2.f32 %v1658_v28  ;;  %v4746_v33 = vpop.f32.mrf.mxu0  ;;  %v1554_v61 = vand.u32 2147483647, %v6676_v41  ;;  %v6707_v46 = vadd.f32 %v6440_v4, %v379_v18  ;;  %v5228_v16 = vld [vmem:[%s9911_s0 + $0x27c] sm:$0xff]  }
 0x101   :  { %v5300_v35 = vpop.eup %5299  ;;  %v928_v36 = vmul.f32 %v5298_v24, %v879_v25  ;;  %5321 = vrcp.f32 %v735_v20  ;;  %v4854_v38 = vpop.f32.mrf.mxu1  ;;  %v652_v9 = vmul.f32 1.442695, %v593_v60  ;;  %v882_v52 = vsel %vm833_vm12, 1.0, %v6639_v14 }
 0x102   :  { %v6673_v39 = vpop.eup %5301  ;;  %v1938_v29 = vmul.f32 %v5300_v35, %v1889_v11  ;;  %5323 = vrcp.f32 %v1745_v26  ;;  %v384_v44 = vpop.f32.mrf.mxu0  ;;  %4960 = vmatmul.mubr.msk.bf16.gmra.mxu0 %vm226_vm1, %v5225_v19  ;;  %5068 = vmatmul.mubr.msk.bf16.gmra.mxu1 %vm226_vm1, %v5226_v23  ;;  %v1603_v28 = vsub.f32 0.0, %v1554_v61  ;;  %v545_v18 = vand.u32 2147483647, %v6707_v46 }
 0x103   :  { %v6679_v8 = vpop.eup %5303  ;;  %977 = vst [vmem:[%s9913_s3 + $0x10] sm:$0xff] %v928_v36  ;;  %v736_v32 = vadd.f32 1.0, %v6673_v39  ;;  %5325 = vpow2.f32 %v650_v34  ;;  %v1394_v15 = vpop.f32.mrf.mxu1  ;;  %4963 = vmatprep.mubr.msk.bf16.mxu0 %vm6054_vm0, %v6053_v0  ;;  %5071 = vmatprep.mubr.msk.bf16.mxu1 %vm6054_vm0, %v6053_v0  ;;  %v6729_v19 = vadd.f32 %v6440_v4, %v6654_v22  ;;  %v881_v23 = vsel %vm832_vm10, 1.0, %v6611_v43 }
 0x104   :  { %v5306_v45 = vpop.eup %5305  ;;  %4230 = vst [vmem:[%s9913_s3 + $0x198] sm:$0xff] %v1938_v29  ;;  %v1746_v53 = vadd.f32 1.0, %v6679_v8  ;;  %v4749_v56 = vpop.f32.mrf.mxu0  ;;  %v6738_v24 = vadd.f32 %v6440_v4, %v384_v44  ;;  %v1891_v22 = vsel %vm1842_vm11, 1.0, %v6616_v47  ;;  %v1662_v33 = vmul.f32 1.442695, %v1603_v28 }
 0x105   :  { %v5308_v57 = vpop.eup %5307  ;;  %v929_v59 = vmul.f32 %v5306_v45, %v880_v49  ;;  %5327 = vrcp.f32 %v736_v32  ;;  %v4857_v62 = vpop.f32.mrf.mxu1  ;;  %v594_v36 = vsub.f32 0.0, %v545_v18  ;;  %v1555_v11 = vand.u32 2147483647, %v6729_v19 }
 0x106   :  { %v6703_v42 = vpop.eup %5309  ;;  %v1939_v1 = vmul.f32 %v5308_v57, %v1890_v51  ;;  %5329 = vrcp.f32 %v1746_v53  ;;  %v387_v10 = vpop.f32.mrf.mxu0  ;;  %v6749_v38 = vadd.f32 %v6440_v4, %v1394_v15  ;;  %v546_v48 = vand.u32 2147483647, %v6738_v24 }
 0x107   :  { %978 = vst [vmem:[%s9913_s3 + $0x18] sm:$0xff] %v929_v59  ;;  %v737_v2 = vadd.f32 1.0, %v6703_v42  ;;  %5331 = vpow2.f32 %v1660_v54  ;;  %v6717_v12 = vpop.f32.mrf.mxu1  ;;  %v6731_v34 = vpop.eup %5311  ;;  %v654_v45 = vmul.f32 1.442695, %v594_v36  ;;  %v1604_v54 = vsub.f32 0.0, %v1555_v11 }
 0x108   :  { %4231 = vst [vmem:[%s9913_s3 + $0x1a0] sm:$0xff] %v1939_v1  ;;  %v4750_v20 = vpop.f32.mrf.mxu0  ;;  %v1747_v27 = vadd.f32 1.0, %v6731_v34  ;;  %v595_v56 = vsub.f32 0.0, %v546_v48  ;;  %v6776_v57 = vadd.f32 %v6440_v4, %v387_v10  ;;  %v1892_v61 = vsel %vm1843_vm13, 1.0, %v6647_v21  ;;  %v5230_v10 = vld [vmem:[%s9911_s0 + $0x284] sm:$0xff]  }
 0x109   :  { %5333 = vrcp.f32 %v737_v2  ;;  %v4858_v25 = vpop.f32.mrf.mxu1  ;;  %v1556_v62 = vand.u32 2147483647, %v6749_v38  ;;  %v883_v13 = vsel %vm834_vm14, 1.0, %v6673_v39  ;;  %v6808_v30 = vadd.f32 %v6440_v4, %v6717_v12  ;;  %v5231_v48 = vld [vmem:[%s9911_s0 + $0x1c8] sm:$0xff]  }
 0x10a   :  { %v5314_v26 = vpop.eup %5313  ;;  %5335 = vpow2.f32 %v652_v9  ;;  %v6744_v35 = vpop.f32.mrf.mxu0  ;;  %4964 = vmatmul.mubr.msk.bf16.gmra.mxu0 %vm226_vm1, %v5227_v63  ;;  %5072 = vmatmul.mubr.msk.bf16.gmra.mxu1 %vm226_vm1, %v5228_v16  ;;  %v1664_v9 = vmul.f32 1.442695, %v1604_v54  ;;  %v656_v16 = vmul.f32 1.442695, %v595_v56  ;;  %v1893_v25 = vsel %vm1844_vm15, 1.0, %v6679_v8 }
 0x10b   :  { %v5316_v55 = vpop.eup %5315  ;;  %v930_v43 = vmul.f32 %v5314_v26, %v881_v23  ;;  %v6751_v29 = vpop.f32.mrf.mxu1  ;;  %4967 = vmatprep.mubr.msk.bf16.mxu0 %vm6054_vm0, %v6053_v0  ;;  %5337 = vrcp.f32 %v1747_v27  ;;  %5075 = vmatprep.mubr.msk.bf16.mxu1 %vm6054_vm0, %v6053_v0  ;;  %v1605_v18 = vsub.f32 0.0, %v1556_v62  ;;  %v547_v26 = vand.u32 2147483647, %v6776_v57 }
 0x10c   :  { %v6756_v58 = vpop.eup %5317  ;;  %v1940_v47 = vmul.f32 %v5316_v55, %v1891_v22  ;;  %v4753_v44 = vpop.f32.mrf.mxu0  ;;  %5339 = vpow2.f32 %v1662_v33  ;;  %v6815_v55 = vadd.f32 %v6440_v4, %v6744_v35  ;;  %v1557_v36 = vand.u32 2147483647, %v6808_v30 }
 0x10d   :  { %v6762_v32 = vpop.eup %5319  ;;  %979 = vst [vmem:[%s9913_s3 + $0x20] sm:$0xff] %v930_v43  ;;  %v738_v15 = vadd.f32 1.0, %v6756_v58  ;;  %v4861_v49 = vpop.f32.mrf.mxu1  ;;  %v1666_v33 = vmul.f32 1.442695, %v1605_v18  ;;  %v596_v43 = vsub.f32 0.0, %v547_v26  ;;  %vm835_vm2 = vcmp.ge.f32.partialorder %v6561_v50, 0.0 }
 0x10e   :  { %v5322_v51 = vpop.eup %5321  ;;  %4232 = vst [vmem:[%s9913_s3 + $0x1a8] sm:$0xff] %v1940_v47  ;;  %v1748_v53 = vadd.f32 1.0, %v6762_v32  ;;  %v395_v59 = vpop.f32.mrf.mxu0  ;;  %vm1845_vm3 = vcmp.ge.f32.partialorder %v6577_v3, 0.0  ;;  %v548_v50 = vand.u32 2147483647, %v6815_v55  ;;  %v6847_v54 = vadd.f32 %v6440_v4, %v6751_v29 }
 0x10f   :  { %v5324_v14 = vpop.eup %5323  ;;  %v931_v60 = vmul.f32 %v5322_v51, %v882_v52  ;;  %5341 = vrcp.f32 %v738_v15  ;;  %v6785_v1 = vpop.f32.mrf.mxu1  ;;  %v884_v52 = vsel %vm835_vm2, 1.0, %v6703_v42  ;;  %v658_v15 = vmul.f32 1.442695, %v596_v43  ;;  %v5232_v42 = vld [vmem:[%s9911_s0 + $0x28c] sm:$0xff]  }
 0x110   :  { %v6790_v63 = vpop.eup %5325  ;;  %v1941_v2 = vmul.f32 %v5324_v14, %v1892_v61  ;;  %5343 = vrcp.f32 %v1748_v53  ;;  %v4754_v28 = vpop.f32.mrf.mxu0  ;;  %v6850_v56 = vadd.f32 %v6440_v4, %v395_v59  ;;  %vm836_vm4 = vcmp.ge.f32.partialorder %v6580_v5, 0.0 }
 0x111   :  { %980 = vst [vmem:[%s9913_s3 + $0x28] sm:$0xff] %v931_v60  ;;  %v739_v21 = vadd.f32 1.0, %v6790_v63  ;;  %5345 = vpow2.f32 %v654_v45  ;;  %v4862_v20 = vpop.f32.mrf.mxu1  ;;  %v1606_v45 = vsub.f32 0.0, %v1557_v36  ;;  %v1894_v29 = vsel %vm1845_vm3, 1.0, %v6731_v34 }
 0x112   :  { %v5328_v23 = vpop.eup %5327  ;;  %4233 = vst [vmem:[%s9913_s3 + $0x1b0] sm:$0xff] %v1941_v2  ;;  %5347 = vpow2.f32 %v1664_v9  ;;  %v6810_v39 = vpop.f32.mrf.mxu0  ;;  %4968 = vmatmul.mubr.msk.bf16.gmra.mxu0 %vm226_vm1, %v5229_v7  ;;  %5076 = vmatmul.mubr.msk.bf16.gmra.mxu1 %vm226_vm1, %v5230_v10  ;;  %v597_v59 = vsub.f32 0.0, %v548_v50  ;;  %v1558_v10 = vand.u32 2147483647, %v6847_v54  ;;  %v549_v2 = vand.u32 2147483647, %v6850_v56 }
 0x113   :  { %v5330_v22 = vpop.eup %5329  ;;  %v932_v27 = vmul.f32 %v5328_v23, %v883_v13  ;;  %5349 = vrcp.f32 %v739_v21  ;;  %v6817_v31 = vpop.f32.mrf.mxu1  ;;  %4971 = vmatprep.mubr.msk.bf16.mxu0 %vm6054_vm0, %v6053_v0  ;;  %5079 = vmatprep.mubr.msk.bf16.mxu1 %vm6054_vm0, %v6053_v0  ;;  %v1668_v60 = vmul.f32 1.442695, %v1606_v45  ;;  %vm1846_vm5 = vcmp.ge.f32.partialorder %v6606_v6, 0.0  ;;  %v5233_v6 = vld [vmem:[%s9911_s0 + $0x1d0] sm:$0xff]  }
 0x114   :  { %v6822_v8 = vpop.eup %5331  ;;  %v1942_v12 = vmul.f32 %v5330_v22, %v1893_v25  ;;  %5351 = vpow2.f32 %v656_v16  ;;  %v4757_v11 = vpop.f32.mrf.mxu0  ;;  %v6872_v13 = vadd.f32 %v6440_v4, %v6785_v1  ;;  %vm837_vm6 = vcmp.ge.f32.partialorder %v6609_v40, 0.0 }
 0x115   :  { %981 = vst [vmem:[%s9913_s3 + $0x30] sm:$0xff] %v932_v27  ;;  %v1749_v35 = vadd.f32 1.0, %v6822_v8  ;;  %5353 = vpow2.f32 %v1666_v33  ;;  %v4865_v47 = vpop.f32.mrf.mxu1  ;;  %v660_v34 = vmul.f32 1.442695, %v597_v59  ;;  %v885_v1 = vsel %vm836_vm4, 1.0, %v6756_v58 }
 0x116   :  { %v5334_v44 = vpop.eup %5333  ;;  %4234 = vst [vmem:[%s9913_s3 + $0x1b8] sm:$0xff] %v1942_v12  ;;  %v6841_v49 = vpop.f32.mrf.mxu0  ;;  %v1607_v23 = vsub.f32 0.0, %v1558_v10  ;;  %v598_v25 = vsub.f32 0.0, %v549_v2  ;;  %v1559_v26 = vand.u32 2147483647, %v6872_v13  ;;  %v1895_v12 = vsel %vm1846_vm5, 1.0, %v6762_v32 }
 0x117   :  { %v6843_v51 = vpop.eup %5335  ;;  %v933_v53 = vmul.f32 %v5334_v44, %v884_v52  ;;  %5355 = vrcp.f32 %v1749_v35  ;;  %v6852_v7 = vpop.f32.mrf.mxu1  ;;  %v6898_v43 = vadd.f32 %v6440_v4, %v6810_v39  ;;  %v6904_v35 = vadd.f32 %v6440_v4, %v6817_v31  ;;  %v5234_v32 = vld [vmem:[%s9911_s0 + $0x294] sm:$0xff]  }
 0x118   :  { %v740_v14 = vadd.f32 1.0, %v6843_v51  ;;  %5357 = vpow2.f32 %v658_v15  ;;  %v4758_v61 = vpop.f32.mrf.mxu0  ;;  %v5338_v62 = vpop.eup %5337  ;;  %v1670_v11 = vmul.f32 1.442695, %v1607_v23  ;;  %v662_v31 = vmul.f32 1.442695, %v598_v25 }
 0x119   :  { %982 = vst [vmem:[%s9913_s3 + $0x38] sm:$0xff] %v933_v53  ;;  %v4866_v9 = vpop.f32.mrf.mxu1  ;;  %v6867_v16 = vpop.eup %5339  ;;  %v1943_v28 = vmul.f32 %v5338_v62, %v1894_v29  ;;  %v1608_v44 = vsub.f32 0.0, %v1559_v26  ;;  %v550_v52 = vand.u32 2147483647, %v6898_v43  ;;  %v886_v50 = vsel %vm837_vm6, 1.0, %v6790_v63 }
 0x11a   :  { %5359 = vrcp.f32 %v740_v14  ;;  %v6874_v21 = vpop.f32.mrf.mxu0  ;;  %4972 = vmatmul.mubr.msk.bf16.gmra.mxu0 %vm226_vm1, %v5231_v48  ;;  %v1750_v3 = vadd.f32 1.0, %v6867_v16  ;;  %5080 = vmatmul.mubr.msk.bf16.gmra.mxu1 %vm226_vm1, %v5232_v42  ;;  %vm1847_vm7 = vcmp.ge.f32.partialorder %v6642_v17, 0.0  ;;  %vm838_vm8 = vcmp.ge.f32.partialorder %v6671_v37, 0.0 }
 0x11b   :  { %5361 = vpow2.f32 %v1668_v60  ;;  %v6879_v18 = vpop.f32.mrf.mxu1  ;;  %4975 = vmatprep.mubr.msk.bf16.mxu0 %vm6054_vm0, %v6053_v0  ;;  %4235 = vst [vmem:[%s9913_s3 + $0x1c0] sm:$0xff] %v1943_v28  ;;  %5083 = vmatprep.mubr.msk.bf16.mxu1 %vm6054_vm0, %v6053_v0  ;;  %v599_v61 = vsub.f32 0.0, %v550_v52  ;;  %v1672_v63 = vmul.f32 1.442695, %v1608_v44  ;;  %v1560_v59 = vand.u32 2147483647, %v6904_v35 }
 0x11c   :  { %v5342_v20 = vpop.eup %5341  ;;  %v4761_v22 = vpop.f32.mrf.mxu0  ;;  %5363 = vrcp.f32 %v1750_v3  ;;  %vm1848_vm9 = vcmp.ge.f32.partialorder %v6676_v41, 0.0  ;;  %v6968_v17 = vadd.f32 %v6440_v4, %v6874_v21  ;;  %vm839_vm10 = vcmp.ge.f32.partialorder %v6707_v46, 0.0 }
 0x11d   :  { %v5344_v27 = vpop.eup %5343  ;;  %v934_v33 = vmul.f32 %v5342_v20, %v885_v1  ;;  %v4869_v5 = vpop.f32.mrf.mxu1  ;;  %5365 = vpow2.f32 %v660_v34  ;;  %v664_v9 = vmul.f32 1.442695, %v599_v61  ;;  %v1896_v34 = vsel %vm1847_vm7, 1.0, %v6822_v8 }
 0x11e   :  { %v6900_v58 = vpop.eup %5345  ;;  %v1944_v36 = vmul.f32 %v5344_v27, %v1895_v12  ;;  %v6906_v47 = vpop.f32.mrf.mxu0  ;;  %5367 = vpow2.f32 %v1670_v11  ;;  %v1609_v20 = vsub.f32 0.0, %v1560_v59  ;;  %v6956_v1 = vadd.f32 %v6440_v4, %v6841_v49  ;;  %v5235_v12 = vld [vmem:[%s9911_s0 + $0x1d8] sm:$0xff]  }
 0x11f   :  { %v6914_v39 = vpop.eup %5347  ;;  %983 = vst [vmem:[%s9913_s3 + $0x40] sm:$0xff] %v934_v33  ;;  %v741_v48 = vadd.f32 1.0, %v6900_v58  ;;  %v6921_v15 = vpop.f32.mrf.mxu1  ;;  %v6964_v22 = vadd.f32 %v6440_v4, %v6852_v7  ;;  %v887_v4 = vsel %vm838_vm8, 1.0, %v6843_v51  ;;  %v5236_v11 = vld [vmem:[%s9911_s0 + $0x29c] sm:$0xff]   ;;  %vm1849_vm11 = vcmp.ge.f32.partialorder %v6729_v19, 0.0  ;;  %v5238_v19 = vld [vmem:[%s9911_s0 + $0x2a4] sm:$0xff]  }
 0x120   :  { %v5350_v45 = vpop.eup %5349  ;;  %4236 = vst [vmem:[%s9913_s3 + $0x1c8] sm:$0xff] %v1944_v36  ;;  %v1751_v53 = vadd.f32 1.0, %v6914_v39  ;;  %v4762_v42 = vpop.f32.mrf.mxu0  ;;  %v1674_v27 = vmul.f32 1.442695, %v1609_v20  ;;  %v551_v7 = vand.u32 2147483647, %v6956_v1 }
 0x121   :  { %v6931_v14 = vpop.eup %5351  ;;  %v935_v60 = vmul.f32 %v5350_v45, %v886_v50  ;;  %5369 = vrcp.f32 %v741_v48  ;;  %v4870_v62 = vpop.f32.mrf.mxu1  ;;  %v1561_v21 = vand.u32 2147483647, %v6964_v22  ;;  %v552_v37 = vand.u32 2147483647, %v6968_v17  ;;  %v7005_v42 = vld [vmem:[%s9912_s2] ss:$0 sm:$0xff] }
 0x122   :  { %v6934_v29 = vpop.eup %5353  ;;  %5371 = vrcp.f32 %v1751_v53  ;;  %v742_v40 = vadd.f32 1.0, %v6931_v14  ;;  %v6938_v10 = vpop.f32.mrf.mxu0  ;;  %4976 = vmatmul.mubr.msk.bf16.gmra.mxu0 %vm226_vm1, %v5233_v6  ;;  %5084 = vmatmul.mubr.msk.bf16.gmra.mxu1 %vm226_vm1, %v5234_v32  ;;  %vm840_vm12 = vcmp.ge.f32.partialorder %v6738_v24, 0.0  ;;  %v1897_v45 = vsel %vm1848_vm9, 1.0, %v6867_v16 }
 0x123   :  { %984 = vst [vmem:[%s9913_s3 + $0x48] sm:$0xff] %v935_v60  ;;  %v1752_v2 = vadd.f32 1.0, %v6934_v29  ;;  %5373 = vpow2.f32 %v662_v31  ;;  %v6946_v28 = vpop.f32.mrf.mxu1  ;;  %4979 = vmatprep.mubr.msk.bf16.mxu0 %vm6054_vm0, %v6053_v0  ;;  %5087 = vmatprep.mubr.msk.bf16.mxu1 %vm6054_vm0, %v6053_v0  ;;  %v600_v31 = vsub.f32 0.0, %v551_v7  ;;  %v1610_v50 = vsub.f32 0.0, %v1561_v21 }
 0x124   :  { %v5356_v3 = vpop.eup %5355  ;;  %5375 = vrcp.f32 %v742_v40  ;;  %v4765_v23 = vpop.f32.mrf.mxu0  ;;  %v601_v53 = vsub.f32 0.0, %v552_v37  ;;  %v7009_v60 = vadd.f32 %v7005_v42, %v6879_v18  ;;  %v7018_v16 = vadd.f32 %v7005_v42, %v6906_v47 }
 0x125   :  { %v6960_v25 = vpop.eup %5357  ;;  %v1945_v26 = vmul.f32 %v5356_v3, %v1896_v34  ;;  %5377 = vrcp.f32 %v1752_v2  ;;  %v4873_v8 = vpop.f32.mrf.mxu1  ;;  %v666_v41 = vmul.f32 1.442695, %v600_v31  ;;  %vm1850_vm13 = vcmp.ge.f32.partialorder %v6749_v38, 0.0 }
 0x126   :  { %v743_v49 = vadd.f32 1.0, %v6960_v25  ;;  %5379 = vpow2.f32 %v1672_v63  ;;  %v6972_v33 = vpop.f32.mrf.mxu0  ;;  %vm841_vm14 = vcmp.ge.f32.partialorder %v6776_v57, 0.0  ;;  %v1676_v59 = vmul.f32 1.442695, %v1610_v50  ;;  %v5239_v57 = vld [vmem:[%s9911_s0 + $0x1e8] sm:$0xff]  }
 0x127   :  { %v5360_v5 = vpop.eup %5359  ;;  %4237 = vst [vmem:[%s9913_s3 + $0x1d0] sm:$0xff] %v1945_v26  ;;  %5381 = vpow2.f32 %v664_v9  ;;  %v6985_v36 = vpop.f32.mrf.mxu1  ;;  %v668_v9 = vmul.f32 1.442695, %v601_v53  ;;  %v1562_v3 = vand.u32 2147483647, %v7009_v60  ;;  %v888_v26 = vsel %vm839_vm10, 1.0, %v6900_v58 }
 0x128   :  { %v6990_v6 = vpop.eup %5361  ;;  %v936_v32 = vmul.f32 %v5360_v5, %v887_v4  ;;  %5383 = vrcp.f32 %v743_v49  ;;  %v4766_v51 = vpop.f32.mrf.mxu0  ;;  %v553_v34 = vand.u32 2147483647, %v7018_v16  ;;  %v1898_v8 = vsel %vm1849_vm11, 1.0, %v6914_v39 }
 0x129   :  { %v1753_v48 = vadd.f32 1.0, %v6990_v6  ;;  %5385 = vpow2.f32 %v1674_v27  ;;  %v4874_v44 = vpop.f32.mrf.mxu1  ;;  %v5364_v52 = vpop.eup %5363  ;;  %vm1851_vm15 = vcmp.ge.f32.partialorder %v6808_v30, 0.0  ;;  %v1611_v46 = vsub.f32 0.0, %v1562_v3 }
 0x12a   :  { %985 = vst [vmem:[%s9913_s3 + $0x50] sm:$0xff] %v936_v32  ;;  %v7011_v61 = vpop.f32.mrf.mxu0  ;;  %4980 = vmatmul.mubr.msk.bf16.gmra.mxu0 %vm226_vm1, %v5235_v12  ;;  %v7014_v62 = vpop.eup %5365  ;;  %v1946_v40 = vmul.f32 %v5364_v52, %v1897_v45  ;;  %5088 = vmatmul.mubr.msk.bf16.gmra.mxu1 %vm226_vm1, %v5236_v11  ;;  %v5237_v12 = vld [vmem:[%s9911_s0 + $0x1e0] sm:$0xff]   ;;  %v602_v58 = vsub.f32 0.0, %v553_v34  ;;  %v7059_v11 = vadd.f32 %v7005_v42, %v6921_v15  ;;  %v1899_v45 = vsel %vm1850_vm13, 1.0, %v6934_v29 }
 0x12b   :  { %5387 = vrcp.f32 %v1753_v48  ;;  %v7020_v63 = vpop.f32.mrf.mxu1  ;;  %4983 = vmatprep.mubr.msk.bf16.mxu0 %vm6054_vm0, %v6053_v0  ;;  %v744_v18 = vadd.f32 1.0, %v7014_v62  ;;  %5091 = vmatprep.mubr.msk.bf16.mxu1 %vm6054_vm0, %v6053_v0  ;;  %v7030_v47 = vpop.eup %5367  ;;  %v7063_v32 = vadd.f32 %v7005_v42, %v6938_v10  ;;  %v889_v48 = vsel %vm840_vm12, 1.0, %v6931_v14 }
 0x12c   :  { %v4769_v2 = vpop.f32.mrf.mxu0  ;;  %4238 = vst [vmem:[%s9913_s3 + $0x1d8] sm:$0xff] %v1946_v40  ;;  %5389 = vpow2.f32 %v666_v41  ;;  %v1754_v49 = vadd.f32 1.0, %v7030_v47  ;;  %v1678_v44 = vmul.f32 1.442695, %v1611_v46  ;;  %v670_v50 = vmul.f32 1.442695, %v602_v58 }
 0x12d   :  { %v4877_v20 = vpop.f32.mrf.mxu1  ;;  %5391 = vrcp.f32 %v744_v18  ;;  %v1563_v53 = vand.u32 2147483647, %v7059_v11  ;;  %vm842_vm2 = vcmp.ge.f32.partialorder %v6815_v55, 0.0  ;;  %v554_v41 = vand.u32 2147483647, %v7063_v32  ;;  %v5240_v58 = vld [vmem:[%s9911_s0 + $0x2ac] sm:$0xff]  }
 0x12e   :  { %v5370_v23 = vpop.eup %5369  ;;  %v7044_v27 = vpop.f32.mrf.mxu0  ;;  %5393 = vpow2.f32 %v1676_v59  ;;  %vm1852_vm3 = vcmp.ge.f32.partialorder %v6847_v54, 0.0  ;;  %v890_v3 = vsel %vm841_vm14, 1.0, %v6960_v25  ;;  %vm843_vm4 = vcmp.ge.f32.partialorder %v6850_v56, 0.0  ;;  %v5241_v54 = vld [vmem:[%s9911_s0 + $0x1f0] sm:$0xff]  }
 0x12f   :  { %v5372_v5 = vpop.eup %5371  ;;  %v937_v4 = vmul.f32 %v5370_v23, %v888_v26  ;;  %v7050_v7 = vpop.f32.mrf.mxu1  ;;  %5395 = vrcp.f32 %v1754_v49  ;;  %v1612_v59 = vsub.f32 0.0, %v1563_v53  ;;  %v603_v20 = vsub.f32 0.0, %v554_v41 }
 0x130   :  { %v7055_v39 = vpop.eup %5373  ;;  %v1947_v21 = vmul.f32 %v5372_v5, %v1898_v8  ;;  %v4770_v37 = vpop.f32.mrf.mxu0  ;;  %5397 = vpow2.f32 %v668_v9  ;;  %vm1853_vm5 = vcmp.ge.f32.partialorder %v6872_v13, 0.0  ;;  %vm844_vm6 = vcmp.ge.f32.partialorder %v6898_v43, 0.0 }
 0x131   :  { %v5376_v51 = vpop.eup %5375  ;;  %986 = vst [vmem:[%s9913_s3 + $0x58] sm:$0xff] %v937_v4  ;;  %v745_v31 = vadd.f32 1.0, %v7055_v39  ;;  %v4878_v15 = vpop.f32.mrf.mxu1  ;;  %v1680_v49 = vmul.f32 1.442695, %v1612_v59  ;;  %v672_v4 = vmul.f32 1.442695, %v603_v20  ;;  %v7134_v37 = vadd.f32 %v7005_v42, %v6972_v33 }
 0x132   :  { %v5378_v52 = vpop.eup %5377  ;;  %4239 = vst [vmem:[%s9913_s3 + $0x1e0] sm:$0xff] %v1947_v21  ;;  %v938_v10 = vmul.f32 %v5376_v51, %v889_v48  ;;  %v7079_v24 = vpop.f32.mrf.mxu0  ;;  %4984 = vmatmul.mubr.msk.bf16.gmra.mxu0 %vm226_vm1, %v5237_v12  ;;  %5092 = vmatmul.mubr.msk.bf16.gmra.mxu1 %vm226_vm1, %v5238_v19  ;;  %v7111_v12 = vadd.f32 %v7005_v42, %v6946_v28  ;;  %v1900_v19 = vsel %vm1851_vm15, 1.0, %v6990_v6  ;;  %vm1854_vm7 = vcmp.ge.f32.partialorder %v6904_v35, 0.0 }
 0x133   :  { %v7082_v14 = vpop.eup %5379  ;;  %v1948_v40 = vmul.f32 %v5378_v52, %v1899_v45  ;;  %5399 = vrcp.f32 %v745_v31  ;;  %v7086_v18 = vpop.f32.mrf.mxu1  ;;  %4987 = vmatprep.mubr.msk.bf16.mxu0 %vm6054_vm0, %v6053_v0  ;;  %5095 = vmatprep.mubr.msk.bf16.mxu1 %vm6054_vm0, %v6053_v0  ;;  %v7138_v31 = vadd.f32 %v7005_v42, %v6985_v36  ;;  %v555_v33 = vand.u32 2147483647, %v7134_v37 }
 0x134   :  { %v7091_v38 = vpop.eup %5381  ;;  %987 = vst [vmem:[%s9913_s3 + $0x60] sm:$0xff] %v938_v10  ;;  %v1755_v29 = vadd.f32 1.0, %v7082_v14  ;;  %5401 = vpow2.f32 %v1678_v44  ;;  %v4773_v2 = vpop.f32.mrf.mxu0  ;;  %v1564_v21 = vand.u32 2147483647, %v7111_v12  ;;  %v7142_v44 = vadd.f32 %v7005_v42, %v7011_v61 }
 0x135   :  { %v5384_v9 = vpop.eup %5383  ;;  %4240 = vst [vmem:[%s9913_s3 + $0x1e8] sm:$0xff] %v1948_v40  ;;  %v746_v34 = vadd.f32 1.0, %v7091_v38  ;;  %5403 = vpow2.f32 %v670_v50  ;;  %v4881_v23 = vpop.f32.mrf.mxu1  ;;  %v891_v36 = vsel %vm842_vm2, 1.0, %v7014_v62  ;;  %v1565_v45 = vand.u32 2147483647, %v7138_v31 }
 0x136   :  { %v7107_v26 = vpop.eup %5385  ;;  %v939_v8 = vmul.f32 %v5384_v9, %v890_v3  ;;  %5405 = vrcp.f32 %v1755_v29  ;;  %v7113_v5 = vpop.f32.mrf.mxu0  ;;  %v1613_v15 = vsub.f32 0.0, %v1564_v21  ;;  %v604_v29 = vsub.f32 0.0, %v555_v33 }
 0x137   :  { %5407 = vrcp.f32 %v746_v34  ;;  %v1756_v25 = vadd.f32 1.0, %v7107_v26  ;;  %v7120_v46 = vpop.f32.mrf.mxu1  ;;  %v556_v55 = vand.u32 2147483647, %v7142_v44  ;;  %v1901_v2 = vsel %vm1852_vm3, 1.0, %v7030_v47 }
 0x138   :  { %v5388_v28 = vpop.eup %5387  ;;  %988 = vst [vmem:[%s9913_s3 + $0x68] sm:$0xff] %v939_v8  ;;  %5409 = vpow2.f32 %v1680_v49  ;;  %v4774_v51 = vpop.f32.mrf.mxu0  ;;  %v1682_v41 = vmul.f32 1.442695, %v1613_v15  ;;  %v1614_v3 = vsub.f32 0.0, %v1565_v45  ;;  %v674_v8 = vmul.f32 1.442695, %v604_v29 }
 0x139   :  { %v1949_v48 = vmul.f32 %v5388_v28, %v1900_v19  ;;  %5411 = vrcp.f32 %v1756_v25  ;;  %v4882_v30 = vpop.f32.mrf.mxu1  ;;  %v7144_v6 = vpop.eup %5389  ;;  %v605_v49 = vsub.f32 0.0, %v556_v55  ;;  %v892_v19 = vsel %vm843_vm4, 1.0, %v7055_v39 }
 0x13a   :  { %5413 = vpow2.f32 %v672_v4  ;;  %v7148_v52 = vpop.f32.mrf.mxu0  ;;  %4988 = vmatmul.mubr.msk.bf16.gmra.mxu0 %vm226_vm1, %v5239_v57  ;;  %v5392_v10 = vpop.eup %5391  ;;  %v747_v61 = vadd.f32 1.0, %v7144_v6  ;;  %5096 = vmatmul.mubr.msk.bf16.gmra.mxu1 %vm226_vm1, %v5240_v58  ;;  %v1684_v25 = vmul.f32 1.442695, %v1614_v3  ;;  %v5242_v58 = vld [vmem:[%s9911_s0 + $0x2b4] sm:$0xff]   ;;  %v7199_v51 = vadd.f32 %v7005_v42, %v7020_v63 }
 0x13b   :  { %4241 = vst [vmem:[%s9913_s3 + $0x1f0] sm:$0xff] %v1949_v48  ;;  %v7160_v50 = vpop.f32.mrf.mxu1  ;;  %4991 = vmatprep.mubr.msk.bf16.mxu0 %vm6054_vm0, %v6053_v0  ;;  %v7165_v53 = vpop.eup %5393  ;;  %v940_v40 = vmul.f32 %v5392_v10, %v891_v36  ;;  %5099 = vmatprep.mubr.msk.bf16.mxu1 %vm6054_vm0, %v6053_v0  ;;  %v676_v21 = vmul.f32 1.442695, %v605_v49  ;;  %v7205_v33 = vadd.f32 %v7005_v42, %v7044_v27  ;;  %vm845_vm8 = vcmp.ge.f32.partialorder %v6956_v1, 0.0 }
 0x13c   :  { %v4777_v62 = vpop.f32.mrf.mxu0  ;;  %v5396_v59 = vpop.eup %5395  ;;  %5415 = vrcp.f32 %v747_v61  ;;  %v1757_v9 = vadd.f32 1.0, %v7165_v53  ;;  %v7209_v10 = vadd.f32 %v7005_v42, %v7050_v7  ;;  %v1566_v36 = vand.u32 2147483647, %v7199_v51 }
 0x13d   :  { %v4885_v34 = vpop.f32.mrf.mxu1  ;;  %v7174_v20 = vpop.eup %5397  ;;  %989 = vst [vmem:[%s9913_s3 + $0x70] sm:$0xff] %v940_v40  ;;  %v1950_v23 = vmul.f32 %v5396_v59, %v1901_v2  ;;  %5417 = vpow2.f32 %v1682_v41  ;;  %v1902_v7 = vsel %vm1853_vm5, 1.0, %v7082_v14  ;;  %v893_v45 = vsel %vm844_vm6, 1.0, %v7091_v38 }
 0x13e   :  { %v7179_v57 = vpop.f32.mrf.mxu0  ;;  %5419 = vrcp.f32 %v1757_v9  ;;  %v748_v47 = vadd.f32 1.0, %v7174_v20  ;;  %v1615_v62 = vsub.f32 0.0, %v1566_v36  ;;  %v557_v13 = vand.u32 2147483647, %v7205_v33 }
 0x13f   :  { %v7186_v4 = vpop.f32.mrf.mxu1  ;;  %4242 = vst [vmem:[%s9913_s3 + $0x1f8] sm:$0xff] %v1950_v23  ;;  %5421 = vpow2.f32 %v674_v8  ;;  %vm1855_vm9 = vcmp.ge.f32.partialorder %v6964_v22, 0.0  ;;  %v1567_v59 = vand.u32 2147483647, %v7209_v10  ;;  %v1903_v3 = vsel %vm1854_vm7, 1.0, %v7107_v26 }
 0x140   :  { %v5400_v28 = vpop.eup %5399  ;;  %v4778_v48 = vpop.f32.mrf.mxu0  ;;  %5423 = vrcp.f32 %v748_v47  ;;  %v1686_v23 = vmul.f32 1.442695, %v1615_v62  ;;  %v606_v8 = vsub.f32 0.0, %v557_v13  ;;  %vm846_vm10 = vcmp.ge.f32.partialorder %v6968_v17, 0.0 }
 0x141   :  { %v7201_v30 = vpop.eup %5401  ;;  %v941_v15 = vmul.f32 %v5400_v28, %v892_v19  ;;  %v4886_v56 = vpop.f32.mrf.mxu1  ;;  %5425 = vpow2.f32 %v1684_v25  ;;  %v1616_v35 = vsub.f32 0.0, %v1567_v59  ;;  %v7261_v26 = vadd.f32 %v7005_v42, %v7079_v24  ;;  %v5244_v28 = vld [vmem:[%s9911_s0 + $0x2bc] sm:$0xff]  }
 0x142   :  { %v7211_v39 = vpop.eup %5403  ;;  %v1758_v63 = vadd.f32 1.0, %v7201_v30  ;;  %v7216_v61 = vpop.f32.mrf.mxu0  ;;  %4992 = vmatmul.mubr.msk.bf16.gmra.mxu0 %vm226_vm1, %v5241_v54  ;;  %5427 = vpow2.f32 %v676_v21  ;;  %5100 = vmatmul.mubr.msk.bf16.gmra.mxu1 %vm226_vm1, %v5242_v58  ;;  %v5243_v54 = vld [vmem:[%s9911_s0 + $0x1f8] sm:$0xff]   ;;  %vm1856_vm11 = vcmp.ge.f32.partialorder %v7009_v60, 0.0  ;;  %v678_v21 = vmul.f32 1.442695, %v606_v8  ;;  %v5245_v8 = vld [vmem:[%s9911_s0 + $0x200] sm:$0xff]  }
 0x143   :  { %v5406_v27 = vpop.eup %5405  ;;  %990 = vst [vmem:[%s9913_s3 + $0x78] sm:$0xff] %v941_v15  ;;  %v749_v40 = vadd.f32 1.0, %v7211_v39  ;;  %v7229_v41 = vpop.f32.mrf.mxu1  ;;  %4995 = vmatprep.mubr.msk.bf16.mxu0 %vm6054_vm0, %v6053_v0  ;;  %5103 = vmatprep.mubr.msk.bf16.mxu1 %vm6054_vm0, %v6053_v0  ;;  %vm847_vm12 = vcmp.ge.f32.partialorder %v7018_v16, 0.0  ;;  %v1688_v24 = vmul.f32 1.442695, %v1616_v35  ;;  %v894_v36 = vsel %vm845_vm8, 1.0, %v7144_v6 }
 0x144   :  { %v5408_v29 = vpop.eup %5407  ;;  %v1951_v55 = vmul.f32 %v5406_v27, %v1902_v7  ;;  %5429 = vrcp.f32 %v1758_v63  ;;  %v4781_v14 = vpop.f32.mrf.mxu0  ;;  %v558_v15 = vand.u32 2147483647, %v7261_v26  ;;  %v7280_v27 = vadd.f32 %v7005_v42, %v7086_v18 }
 0x145   :  { %v7237_v43 = vpop.eup %5409  ;;  %v942_v38 = vmul.f32 %v5408_v29, %v893_v45  ;;  %5431 = vrcp.f32 %v749_v40  ;;  %v4889_v2 = vpop.f32.mrf.mxu1  ;;  %v7284_v7 = vadd.f32 %v7005_v42, %v7113_v5  ;;  %v1904_v1 = vsel %vm1855_vm9, 1.0, %v7165_v53 }
 0x146   :  { %v5412_v9 = vpop.eup %5411  ;;  %4243 = vst [vmem:[%s9913_s3 + $0x200] sm:$0xff] %v1951_v55  ;;  %v1759_v34 = vadd.f32 1.0, %v7237_v43  ;;  %v7248_v49 = vpop.f32.mrf.mxu0  ;;  %v607_v6 = vsub.f32 0.0, %v558_v15  ;;  %v895_v5 = vsel %vm846_vm10, 1.0, %v7174_v20  ;;  %v1568_v22 = vand.u32 2147483647, %v7280_v27 }
 0x147   :  { %v7253_v47 = vpop.eup %5413  ;;  %991 = vst [vmem:[%s9913_s3 + $0x80] sm:$0xff] %v942_v38  ;;  %v1952_v25 = vmul.f32 %v5412_v9, %v1903_v3  ;;  %v7263_v58 = vpop.f32.mrf.mxu1  ;;  %v559_v17 = vand.u32 2147483647, %v7284_v7  ;;  %v7314_v20 = vadd.f32 %v7005_v42, %v7120_v46  ;;  %vm1857_vm13 = vcmp.ge.f32.partialorder %v7059_v11, 0.0  ;;  %v5247_v11 = vld [vmem:[%s9911_s0 + $0x208] sm:$0xff]  }
 0x148   :  { %5433 = vrcp.f32 %v1759_v34  ;;  %v750_v19 = vadd.f32 1.0, %v7253_v47  ;;  %v4782_v48 = vpop.f32.mrf.mxu0  ;;  %v680_v38 = vmul.f32 1.442695, %v607_v6  ;;  %v1617_v3 = vsub.f32 0.0, %v1568_v22 }
 0x149   :  { %4244 = vst [vmem:[%s9913_s3 + $0x208] sm:$0xff] %v1952_v25  ;;  %5435 = vpow2.f32 %v1686_v23  ;;  %v4890_v56 = vpop.f32.mrf.mxu1  ;;  %v5416_v63 = vpop.eup %5415  ;;  %v7319_v34 = vadd.f32 %v7005_v42, %v7148_v52  ;;  %v608_v25 = vsub.f32 0.0, %v559_v17  ;;  %v5246_v52 = vld [vmem:[%s9911_s0 + $0x2c4] sm:$0xff]   ;;  %vm848_vm14 = vcmp.ge.f32.partialorder %v7063_v32, 0.0 }
 0x14a   :  { %5437 = vrcp.f32 %v750_v19  ;;  %v7286_v45 = vpop.f32.mrf.mxu0  ;;  %4996 = vmatmul.mubr.msk.bf16.gmra.mxu0 %vm226_vm1, %v5243_v54  ;;  %v7289_v40 = vpop.eup %5417  ;;  %v943_v29 = vmul.f32 %v5416_v63, %v894_v36  ;;  %5104 = vmatmul.mubr.msk.bf16.gmra.mxu1 %vm226_vm1, %v5244_v28  ;;  %v1905_v15 = vsel %vm1856_vm11, 1.0, %v7201_v30  ;;  %v1569_v36 = vand.u32 2147483647, %v7314_v20 }
 0x14b   :  { %5439 = vpow2.f32 %v678_v21  ;;  %v7294_v55 = vpop.f32.mrf.mxu1  ;;  %4999 = vmatprep.mubr.msk.bf16.mxu0 %vm6054_vm0, %v6053_v0  ;;  %v5420_v18 = vpop.eup %5419  ;;  %v1760_v62 = vadd.f32 1.0, %v7289_v40  ;;  %5107 = vmatprep.mubr.msk.bf16.mxu1 %vm6054_vm0, %v6053_v0  ;;  %v1690_v21 = vmul.f32 1.442695, %v1617_v3  ;;  %v682_v63 = vmul.f32 1.442695, %v608_v25 }
 0x14c   :  { %5441 = vpow2.f32 %v1688_v24  ;;  %v4785_v53 = vpop.f32.mrf.mxu0  ;;  %v7306_v13 = vpop.eup %5421  ;;  %992 = vst [vmem:[%s9913_s3 + $0x88] sm:$0xff] %v943_v29  ;;  %v1953_v14 = vmul.f32 %v5420_v18, %v1904_v1  ;;  %v896_v18 = vsel %vm847_vm12, 1.0, %v7211_v39  ;;  %vm1858_vm15 = vcmp.ge.f32.partialorder %v7111_v12, 0.0 }
 0x14d   :  { %v4893_v59 = vpop.f32.mrf.mxu1  ;;  %v5424_v2 = vpop.eup %5423  ;;  %5443 = vrcp.f32 %v1760_v62  ;;  %v751_v9 = vadd.f32 1.0, %v7306_v13  ;;  %v1618_v30 = vsub.f32 0.0, %v1569_v36  ;;  %v7367_v39 = vadd.f32 %v7005_v42, %v7160_v50 }
 0x14e   :  { %v7321_v23 = vpop.f32.mrf.mxu0  ;;  %v7326_v54 = vpop.eup %5425  ;;  %4245 = vst [vmem:[%s9913_s3 + $0x210] sm:$0xff] %v1953_v14  ;;  %v944_v46 = vmul.f32 %v5424_v2, %v895_v5  ;;  %5445 = vpow2.f32 %v680_v38  ;;  %v560_v5 = vand.u32 2147483647, %v7319_v34  ;;  %v7371_v53 = vadd.f32 %v7005_v42, %v7179_v57 }
 0x14f   :  { %v7332_v35 = vpop.f32.mrf.mxu1  ;;  %v7337_v28 = vpop.eup %5427  ;;  %5447 = vrcp.f32 %v751_v9  ;;  %v1761_v19 = vadd.f32 1.0, %v7326_v54  ;;  %v1906_v17 = vsel %vm1857_vm13, 1.0, %v7237_v43  ;;  %v897_v50 = vsel %vm848_vm14, 1.0, %v7253_v47 }
 0x150   :  { %v4786_v48 = vpop.f32.mrf.mxu0  ;;  %993 = vst [vmem:[%s9913_s3 + $0x90] sm:$0xff] %v944_v46  ;;  %v752_v56 = vadd.f32 1.0, %v7337_v28  ;;  %v609_v16 = vsub.f32 0.0, %v560_v5  ;;  %v1692_v57 = vmul.f32 1.442695, %v1618_v30  ;;  %v7389_v46 = vadd.f32 %v7005_v42, %v7186_v4  ;;  %v5248_v4 = vld [vmem:[%s9911_s0 + $0x2cc] sm:$0xff]  }
 0x151   :  { %v5430_v24 = vpop.eup %5429  ;;  %v4894_v29 = vpop.f32.mrf.mxu1  ;;  %5449 = vrcp.f32 %v1761_v19  ;;  %v561_v47 = vand.u32 2147483647, %v7371_v53  ;;  %vm849_vm2 = vcmp.ge.f32.partialorder %v7134_v37, 0.0  ;;  %vm1859_vm3 = vcmp.ge.f32.partialorder %v7138_v31, 0.0  ;;  %v5249_v31 = vld [vmem:[%s9911_s0 + $0x210] sm:$0xff]  }
 0x152   :  { %v5432_v1 = vpop.eup %5431  ;;  %v1954_v6 = vmul.f32 %v5430_v24, %v1905_v15  ;;  %v7353_v62 = vpop.f32.mrf.mxu0  ;;  %5000 = vmatmul.mubr.msk.bf16.gmra.mxu0 %vm226_vm1, %v5245_v8  ;;  %5451 = vrcp.f32 %v752_v56  ;;  %5108 = vmatmul.mubr.msk.bf16.gmra.mxu1 %vm226_vm1, %v5246_v52  ;;  %v684_v3 = vmul.f32 1.442695, %v609_v16  ;;  %v1570_v8 = vand.u32 2147483647, %v7367_v39 }
 0x153   :  { %v945_v60 = vmul.f32 %v5432_v1, %v896_v18  ;;  %v7357_v22 = vpop.f32.mrf.mxu1  ;;  %5003 = vmatprep.mubr.msk.bf16.mxu0 %vm6054_vm0, %v6053_v0  ;;  %5453 = vpow2.f32 %v1690_v21  ;;  %5111 = vmatprep.mubr.msk.bf16.mxu1 %vm6054_vm0, %v6053_v0  ;;  %v7400_v52 = vadd.f32 %v7005_v42, %v7216_v61  ;;  %vm850_vm4 = vcmp.ge.f32.partialorder %v7142_v44, 0.0 }
 0x154   :  { %4246 = vst [vmem:[%s9913_s3 + $0x218] sm:$0xff] %v1954_v6  ;;  %v4789_v14 = vpop.f32.mrf.mxu0  ;;  %5455 = vpow2.f32 %v682_v63  ;;  %v1619_v24 = vsub.f32 0.0, %v1570_v8  ;;  %v610_v63 = vsub.f32 0.0, %v561_v47  ;;  %v1571_v6 = vand.u32 2147483647, %v7389_v46 }
 0x155   :  { %v5434_v38 = vpop.eup %5433  ;;  %994 = vst [vmem:[%s9913_s3 + $0x98] sm:$0xff] %v945_v60  ;;  %v4897_v59 = vpop.f32.mrf.mxu1  ;;  %5457 = vpow2.f32 %v1692_v57  ;;  %v1907_v60 = vsel %vm1858_vm15, 1.0, %v7289_v40  ;;  %v562_v16 = vand.u32 2147483647, %v7400_v52  ;;  %v7460_v47 = vadd.f32 %v7005_v42, %v7248_v49 }
 0x156   :  { %v7384_v2 = vpop.eup %5435  ;;  %v1955_v9 = vmul.f32 %v5434_v38, %v1906_v17  ;;  %v7391_v25 = vpop.f32.mrf.mxu0  ;;  %5459 = vpow2.f32 %v684_v3  ;;  %v1694_v1 = vmul.f32 1.442695, %v1619_v24  ;;  %v686_v30 = vmul.f32 1.442695, %v610_v63 }
 0x157   :  { %v5438_v32 = vpop.eup %5437  ;;  %v1762_v43 = vadd.f32 1.0, %v7384_v2  ;;  %v7402_v19 = vpop.f32.mrf.mxu1  ;;  %v1620_v12 = vsub.f32 0.0, %v1571_v6  ;;  %v1908_v59 = vsel %vm1859_vm3, 1.0, %v7326_v54  ;;  %v611_v3 = vsub.f32 0.0, %v562_v16 }
 0x158   :  { %v7407_v21 = vpop.eup %5439  ;;  %4247 = vst [vmem:[%s9913_s3 + $0x220] sm:$0xff] %v1955_v9  ;;  %v946_v48 = vmul.f32 %v5438_v32, %v897_v50  ;;  %v4790_v15 = vpop.f32.mrf.mxu0  ;;  %v898_v50 = vsel %vm849_vm2, 1.0, %v7306_v13  ;;  %v899_v49 = vsel %vm850_vm4, 1.0, %v7337_v28  ;;  %vm1860_vm5 = vcmp.ge.f32.partialorder %v7199_v51, 0.0 }
 0x159   :  { %v7413_v61 = vpop.eup %5441  ;;  %5461 = vrcp.f32 %v1762_v43  ;;  %v753_v56 = vadd.f32 1.0, %v7407_v21  ;;  %v4898_v36 = vpop.f32.mrf.mxu1  ;;  %v1696_v13 = vmul.f32 1.442695, %v1620_v12  ;;  %v688_v43 = vmul.f32 1.442695, %v611_v3 }
 0x15a   :  { %995 = vst [vmem:[%s9913_s3 + $0xa0] sm:$0xff] %v946_v48  ;;  %v1763_v29 = vadd.f32 1.0, %v7413_v61  ;;  %v7423_v18 = vpop.f32.mrf.mxu0  ;;  %5004 = vmatmul.mubr.msk.bf16.gmra.mxu0 %vm226_vm1, %v5247_v11  ;;  %v5444_v5 = vpop.eup %5443  ;;  %5112 = vmatmul.mubr.msk.bf16.gmra.mxu1 %vm226_vm1, %v5248_v4  ;;  %v7451_v11 = vadd.f32 %v7005_v42, %v7229_v41  ;;  %v7464_v4 = vadd.f32 %v7005_v42, %v7263_v58  ;;  %v5250_v41 = vld [vmem:[%s9911_s0 + $0x2d4] sm:$0xff]   ;;  %vm851_vm6 = vcmp.ge.f32.partialorder %v7205_v33, 0.0 }
 0x15b   :  { %5463 = vrcp.f32 %v753_v56  ;;  %v7430_v14 = vpop.f32.mrf.mxu1  ;;  %5007 = vmatprep.mubr.msk.bf16.mxu0 %vm6054_vm0, %v6053_v0  ;;  %v7435_v38 = vpop.eup %5445  ;;  %v1956_v17 = vmul.f32 %v5444_v5, %v1907_v60  ;;  %5115 = vmatprep.mubr.msk.bf16.mxu1 %vm6054_vm0, %v6053_v0  ;;  %vm1861_vm7 = vcmp.ge.f32.partialorder %v7209_v10, 0.0  ;;  %vm852_vm8 = vcmp.ge.f32.partialorder %v7261_v26, 0.0 }
 0x15c   :  { %5465 = vrcp.f32 %v1763_v29  ;;  %v4793_v40 = vpop.f32.mrf.mxu0  ;;  %v5448_v57 = vpop.eup %5447  ;;  %v754_v9 = vadd.f32 1.0, %v7435_v38  ;;  %v1572_v58 = vand.u32 2147483647, %v7451_v11  ;;  %v563_v29 = vand.u32 2147483647, %v7460_v47 }
 0x15d   :  { %5467 = vpow2.f32 %v1694_v1  ;;  %v4901_v8 = vpop.f32.mrf.mxu1  ;;  %4248 = vst [vmem:[%s9913_s3 + $0x228] sm:$0xff] %v1956_v17  ;;  %v947_v37 = vmul.f32 %v5448_v57, %v898_v50  ;;  %v1573_v5 = vand.u32 2147483647, %v7464_v4  ;;  %v7507_v57 = vadd.f32 %v7005_v42, %v7286_v45 }
 0x15e   :  { %5469 = vpow2.f32 %v686_v30  ;;  %v7453_v32 = vpop.f32.mrf.mxu0  ;;  %v5450_v54 = vpop.eup %5449  ;;  %v1621_v28 = vsub.f32 0.0, %v1572_v58  ;;  %v612_v16 = vsub.f32 0.0, %v563_v29  ;;  %v7542_v33 = vadd.f32 %v7005_v42, %v7321_v23 }
 0x15f   :  { %5471 = vrcp.f32 %v754_v9  ;;  %v7466_v48 = vpop.f32.mrf.mxu1  ;;  %v5452_v24 = vpop.eup %5451  ;;  %996 = vst [vmem:[%s9913_s3 + $0xa8] sm:$0xff] %v947_v37  ;;  %v1957_v15 = vmul.f32 %v5450_v54, %v1908_v59  ;;  %v1622_v40 = vsub.f32 0.0, %v1573_v5  ;;  %v7549_v10 = vadd.f32 %v7005_v42, %v7332_v35 }
 0x160   :  { %5473 = vpow2.f32 %v1696_v13  ;;  %v4794_v56 = vpop.f32.mrf.mxu0  ;;  %v7478_v63 = vpop.eup %5453  ;;  %v948_v36 = vmul.f32 %v5452_v24, %v899_v49  ;;  %v1698_v12 = vmul.f32 1.442695, %v1621_v28  ;;  %v690_v8 = vmul.f32 1.442695, %v612_v16 }
 0x161   :  { %5475 = vpow2.f32 %v688_v43  ;;  %v4902_v1 = vpop.f32.mrf.mxu1  ;;  %v7481_v6 = vpop.eup %5455  ;;  %4249 = vst [vmem:[%s9913_s3 + $0x230] sm:$0xff] %v1957_v15  ;;  %v1764_v44 = vadd.f32 1.0, %v7478_v63  ;;  %v1700_v54 = vmul.f32 1.442695, %v1622_v40  ;;  %v900_v15 = vsel %vm851_vm6, 1.0, %v7407_v21 }
 0x162   :  { %v7489_v60 = vpop.f32.mrf.mxu0  ;;  %5008 = vmatmul.mubr.msk.bf16.gmra.mxu0 %vm226_vm1, %v5249_v31  ;;  %997 = vst [vmem:[%s9913_s3 + $0xb0] sm:$0xff] %v948_v36  ;;  %v755_v30 = vadd.f32 1.0, %v7481_v6  ;;  %5116 = vmatmul.mubr.msk.bf16.gmra.mxu1 %vm226_vm1, %v5250_v41  ;;  %v7503_v50 = vpop.eup %5457  ;;  %v1909_v31 = vsel %vm1860_vm5, 1.0, %v7384_v2  ;;  %v5251_v41 = vld [vmem:[%s9911_s0 + $0x218] sm:$0xff]   ;;  %v564_v49 = vand.u32 2147483647, %v7507_v57  ;;  %v7538_v36 = vadd.f32 %v7005_v42, %v7294_v55 }
 0x163   :  { %v7498_v17 = vpop.f32.mrf.mxu1  ;;  %5011 = vmatprep.mubr.msk.bf16.mxu0 %vm6054_vm0, %v6053_v0  ;;  %5477 = vrcp.f32 %v1764_v44  ;;  %5119 = vmatprep.mubr.msk.bf16.mxu1 %vm6054_vm0, %v6053_v0  ;;  %v7511_v9 = vpop.eup %5459  ;;  %v1765_v3 = vadd.f32 1.0, %v7503_v50  ;;  %v5252_v2 = vld [vmem:[%s9911_s0 + $0x2dc] sm:$0xff]   ;;  %v1910_v56 = vsel %vm1861_vm7, 1.0, %v7413_v61  ;;  %vm1862_vm9 = vcmp.ge.f32.partialorder %v7280_v27, 0.0 }
 0x164   :  { %v4797_v59 = vpop.f32.mrf.mxu0  ;;  %5479 = vrcp.f32 %v755_v30  ;;  %v756_v45 = vadd.f32 1.0, %v7511_v9  ;;  %v613_v44 = vsub.f32 0.0, %v564_v49  ;;  %v1574_v23 = vand.u32 2147483647, %v7538_v36 }
 0x165   :  { %v4905_v37 = vpop.f32.mrf.mxu1  ;;  %5481 = vpow2.f32 %v1698_v12  ;;  %vm853_vm10 = vcmp.ge.f32.partialorder %v7284_v7, 0.0  ;;  %v565_v12 = vand.u32 2147483647, %v7542_v33  ;;  %vm1863_vm11 = vcmp.ge.f32.partialorder %v7314_v20, 0.0 }
 0x166   :  { %v5462_v13 = vpop.eup %5461  ;;  %v7519_v43 = vpop.f32.mrf.mxu0  ;;  %5483 = vrcp.f32 %v1765_v3  ;;  %v692_v16 = vmul.f32 1.442695, %v613_v44  ;;  %v901_v3 = vsel %vm852_vm8, 1.0, %v7435_v38  ;;  %v1623_v37 = vsub.f32 0.0, %v1574_v23 }
 0x167   :  { %v1958_v24 = vmul.f32 %v5462_v13, %v1909_v31  ;;  %v7528_v51 = vpop.f32.mrf.mxu1  ;;  %5485 = vrcp.f32 %v756_v45  ;;  %v7580_v13 = vadd.f32 %v7005_v42, %v7353_v62  ;;  %vm854_vm12 = vcmp.ge.f32.partialorder %v7319_v34, 0.0 }
 0x168   :  { %v5464_v58 = vpop.eup %5463  ;;  %v4798_v21 = vpop.f32.mrf.mxu0  ;;  %5487 = vpow2.f32 %v690_v8  ;;  %vm1864_vm13 = vcmp.ge.f32.partialorder %v7367_v39, 0.0  ;;  %v7620_v27 = vadd.f32 %v7005_v42, %v7391_v25  ;;  %vm855_vm14 = vcmp.ge.f32.partialorder %v7371_v53, 0.0 }
 0x169   :  { %v5466_v29 = vpop.eup %5465  ;;  %4250 = vst [vmem:[%s9913_s3 + $0x238] sm:$0xff] %v1958_v24  ;;  %v949_v1 = vmul.f32 %v5464_v58, %v900_v15  ;;  %v4906_v61 = vpop.f32.mrf.mxu1  ;;  %5489 = vpow2.f32 %v1700_v54  ;;  %v1575_v24 = vand.u32 2147483647, %v7549_v10  ;;  %v1702_v15 = vmul.f32 1.442695, %v1623_v37 }
 0x16a   :  { %v7551_v55 = vpop.eup %5467  ;;  %v1959_v28 = vmul.f32 %v5466_v29, %v1910_v56  ;;  %v7555_v5 = vpop.f32.mrf.mxu0  ;;  %5012 = vmatmul.mubr.msk.bf16.gmra.mxu0 %vm226_vm1, %v5251_v41  ;;  %5120 = vmatmul.mubr.msk.bf16.gmra.mxu1 %vm226_vm1, %v5252_v2  ;;  %v614_v41 = vsub.f32 0.0, %v565_v12  ;;  %v5253_v2 = vld [vmem:[%s9911_s0 + $0x220] sm:$0xff]   ;;  %v566_v61 = vand.u32 2147483647, %v7580_v13  ;;  %vm1865_vm15 = vcmp.ge.f32.partialorder %v7389_v46, 0.0 }
 0x16b   :  { %v7558_v30 = vpop.eup %5469  ;;  %998 = vst [vmem:[%s9913_s3 + $0xb8] sm:$0xff] %v949_v1  ;;  %v1766_v35 = vadd.f32 1.0, %v7551_v55  ;;  %v7566_v40 = vpop.f32.mrf.mxu1  ;;  %5015 = vmatprep.mubr.msk.bf16.mxu0 %vm6054_vm0, %v6053_v0  ;;  %5123 = vmatprep.mubr.msk.bf16.mxu1 %vm6054_vm0, %v6053_v0  ;;  %v5254_v29 = vld [vmem:[%s9911_s0 + $0x2e4] sm:$0xff]   ;;  %v1911_v1 = vsel %vm1862_vm9, 1.0, %v7478_v63  ;;  %v1624_v44 = vsub.f32 0.0, %v1575_v24  ;;  %vm856_vm2 = vcmp.ge.f32.partialorder %v7400_v52, 0.0 }
 0x16c   :  { %v5472_v59 = vpop.eup %5471  ;;  %4251 = vst [vmem:[%s9913_s3 + $0x240] sm:$0xff] %v1959_v28  ;;  %v757_v8 = vadd.f32 1.0, %v7558_v30  ;;  %v4801_v31 = vpop.f32.mrf.mxu0  ;;  %v694_v56 = vmul.f32 1.442695, %v614_v41  ;;  %v5257_v52 = vld [vmem:[%s9911_s0 + $0x230] sm:$0xff]   ;;  %vm1866_vm3 = vcmp.ge.f32.partialorder %v7451_v11, 0.0 }
 0x16d   :  { %v7584_v45 = vpop.eup %5473  ;;  %v950_v54 = vmul.f32 %v5472_v59, %v901_v3  ;;  %5491 = vrcp.f32 %v1766_v35  ;;  %v4909_v26 = vpop.f32.mrf.mxu1  ;;  %v902_v35 = vsel %vm853_vm10, 1.0, %v7481_v6  ;;  %v1704_v3 = vmul.f32 1.442695, %v1624_v44  ;;  %v5255_v44 = vld [vmem:[%s9911_s0 + $0x228] sm:$0xff]  }
 0x16e   :  { %v7587_v38 = vpop.eup %5475  ;;  %5493 = vrcp.f32 %v757_v8  ;;  %v1767_v62 = vadd.f32 1.0, %v7584_v45  ;;  %v7591_v49 = vpop.f32.mrf.mxu0  ;;  %v615_v8 = vsub.f32 0.0, %v566_v61  ;;  %v1912_v31 = vsel %vm1863_vm11, 1.0, %v7503_v50 }
 0x16f   :  { %999 = vst [vmem:[%s9913_s3 + $0xc0] sm:$0xff] %v950_v54  ;;  %v758_v58 = vadd.f32 1.0, %v7587_v38  ;;  %5495 = vpow2.f32 %v692_v16  ;;  %v7601_v21 = vpop.f32.mrf.mxu1  ;;  %v7616_v16 = vadd.f32 %v7005_v42, %v7357_v22  ;;  %v567_v50 = vand.u32 2147483647, %v7620_v27 }
 0x170   :  { %5497 = vrcp.f32 %v1767_v62  ;;  %v4802_v28 = vpop.f32.mrf.mxu0  ;;  %v5478_v23 = vpop.eup %5477  ;;  %v696_v41 = vmul.f32 1.442695, %v615_v8  ;;  %v904_v8 = vsel %vm855_vm14, 1.0, %v7558_v30  ;;  %vm857_vm4 = vcmp.ge.f32.partialorder %v7460_v47, 0.0 }
 0x171   :  { %5499 = vrcp.f32 %v758_v58  ;;  %v4910_v63 = vpop.f32.mrf.mxu1  ;;  %v5480_v12 = vpop.eup %5479  ;;  %v1960_v59 = vmul.f32 %v5478_v23, %v1911_v1  ;;  %v1576_v22 = vand.u32 2147483647, %v7616_v16  ;;  %v5256_v23 = vld [vmem:[%s9911_s0 + $0x2ec] sm:$0xff]   ;;  %vm1867_vm5 = vcmp.ge.f32.partialorder %v7464_v4, 0.0 }
 0x172   :  { %5501 = vpow2.f32 %v1702_v15  ;;  %v7622_v37 = vpop.f32.mrf.mxu0  ;;  %5016 = vmatmul.mubr.msk.bf16.gmra.mxu0 %vm226_vm1, %v5253_v2  ;;  %v7625_v7 = vpop.eup %5481  ;;  %v951_v6 = vmul.f32 %v5480_v12, %v902_v35  ;;  %5124 = vmatmul.mubr.msk.bf16.gmra.mxu1 %vm226_vm1, %v5254_v29  ;;  %v903_v15 = vsel %vm854_vm12, 1.0, %v7511_v9  ;;  %v7655_v29 = vld [vmem:[%s9912_s2] ss:$0 sm:$0xff]  ;;  %v616_v63 = vsub.f32 0.0, %v567_v50 }
 0x173   :  { %5503 = vpow2.f32 %v694_v56  ;;  %v7629_v42 = vpop.f32.mrf.mxu1  ;;  %5019 = vmatprep.mubr.msk.bf16.mxu0 %vm6054_vm0, %v6053_v0  ;;  %v5484_v25 = vpop.eup %5483  ;;  %4252 = vst [vmem:[%s9913_s3 + $0x248] sm:$0xff] %v1960_v59  ;;  %v1768_v54 = vadd.f32 1.0, %v7625_v7  ;;  %5127 = vmatprep.mubr.msk.bf16.mxu1 %vm6054_vm0, %v6053_v0  ;;  %v1625_v20 = vsub.f32 0.0, %v1576_v22  ;;  %v7659_v1 = vadd.f32 %v7655_v29, %v7402_v19 }
 0x174   :  { %5505 = vpow2.f32 %v1704_v3  ;;  %v4805_v24 = vpop.f32.mrf.mxu0  ;;  %v5486_v26 = vpop.eup %5485  ;;  %1000 = vst [vmem:[%s9913_s3 + $0xc8] sm:$0xff] %v951_v6  ;;  %v1961_v62 = vmul.f32 %v5484_v25, %v1912_v31  ;;  %v7663_v34 = vadd.f32 %v7655_v29, %v7423_v18  ;;  %v1913_v3 = vsel %vm1864_vm13, 1.0, %v7551_v55 }
 0x175   :  { %v4913_v2 = vpop.f32.mrf.mxu1  ;;  %v7650_v58 = vpop.eup %5487  ;;  %v952_v56 = vmul.f32 %v5486_v26, %v903_v15  ;;  %5507 = vrcp.f32 %v1768_v54  ;;  %v1706_v28 = vmul.f32 1.442695, %v1625_v20  ;;  %v1577_v12 = vand.u32 2147483647, %v7659_v1 }
 0x176   :  { %v7665_v9 = vpop.f32.mrf.mxu0  ;;  %v7670_v61 = vpop.eup %5489  ;;  %4253 = vst [vmem:[%s9913_s3 + $0x250] sm:$0xff] %v1961_v62  ;;  %v759_v19 = vadd.f32 1.0, %v7650_v58  ;;  %5509 = vpow2.f32 %v696_v41  ;;  %v568_v6 = vand.u32 2147483647, %v7663_v34  ;;  %v698_v31 = vmul.f32 1.442695, %v616_v63 }
 0x177   :  { %v7677_v18 = vpop.f32.mrf.mxu1  ;;  %1001 = vst [vmem:[%s9913_s3 + $0xd0] sm:$0xff] %v952_v56  ;;  %v1769_v35 = vadd.f32 1.0, %v7670_v61  ;;  %v1626_v54 = vsub.f32 0.0, %v1577_v12  ;;  %v7697_v41 = vadd.f32 %v7655_v29, %v7430_v14  ;;  %v7704_v30 = vadd.f32 %v7655_v29, %v7453_v32 }
 0x178   :  { %v4806_v59 = vpop.f32.mrf.mxu0  ;;  %5511 = vrcp.f32 %v759_v19  ;;  %v617_v53 = vsub.f32 0.0, %v568_v6  ;;  %v1914_v2 = vsel %vm1865_vm15, 1.0, %v7584_v45  ;;  %v905_v56 = vsel %vm856_vm2, 1.0, %v7587_v38 }
 0x179   :  { %v4914_v22 = vpop.f32.mrf.mxu1  ;;  %5513 = vrcp.f32 %v1769_v35  ;;  %v1708_v15 = vmul.f32 1.442695, %v1626_v54  ;;  %v1578_v20 = vand.u32 2147483647, %v7697_v41  ;;  %v569_v12 = vand.u32 2147483647, %v7704_v30 }
 0x17a   :  { %v5492_v25 = vpop.eup %5491  ;;  %v7699_v24 = vpop.f32.mrf.mxu0  ;;  %5020 = vmatmul.mubr.msk.bf16.gmra.mxu0 %vm226_vm1, %v5255_v44  ;;  %5515 = vpow2.f32 %v1706_v28  ;;  %5128 = vmatmul.mubr.msk.bf16.gmra.mxu1 %vm226_vm1, %v5256_v23  ;;  %v700_v19 = vmul.f32 1.442695, %v617_v53  ;;  %v7739_v59 = vadd.f32 %v7655_v29, %v7466_v48  ;;  %vm858_vm6 = vcmp.ge.f32.partialorder %v7507_v57, 0.0 }
 0x17b   :  { %v5494_v39 = vpop.eup %5493  ;;  %v1962_v55 = vmul.f32 %v5492_v25, %v1913_v3  ;;  %v7706_v26 = vpop.f32.mrf.mxu1  ;;  %5023 = vmatprep.mubr.msk.bf16.mxu0 %vm6054_vm0, %v6053_v0  ;;  %5517 = vpow2.f32 %v698_v31  ;;  %5131 = vmatprep.mubr.msk.bf16.mxu1 %vm6054_vm0, %v6053_v0  ;;  %v1627_v63 = vsub.f32 0.0, %v1578_v20  ;;  %vm1868_vm7 = vcmp.ge.f32.partialorder %v7538_v36, 0.0 }
 0x17c   :  { %v7711_v14 = vpop.eup %5495  ;;  %v953_v62 = vmul.f32 %v5494_v39, %v904_v8  ;;  %v4809_v50 = vpop.f32.mrf.mxu0  ;;  %5519 = vpow2.f32 %v1708_v15  ;;  %v5258_v8 = vld [vmem:[%s9911_s0 + $0x2f4] sm:$0xff]   ;;  %v618_v39 = vsub.f32 0.0, %v569_v12  ;;  %vm859_vm8 = vcmp.ge.f32.partialorder %v7542_v33, 0.0 }
 0x17d   :  { %v5498_v32 = vpop.eup %5497  ;;  %4254 = vst [vmem:[%s9913_s3 + $0x258] sm:$0xff] %v1962_v55  ;;  %v760_v44 = vadd.f32 1.0, %v7711_v14  ;;  %v4917_v28 = vpop.f32.mrf.mxu1  ;;  %v1710_v54 = vmul.f32 1.442695, %v1627_v63  ;;  %v1579_v55 = vand.u32 2147483647, %v7739_v59 }
 0x17e   :  { %v5500_v23 = vpop.eup %5499  ;;  %1002 = vst [vmem:[%s9913_s3 + $0xd8] sm:$0xff] %v953_v62  ;;  %v1963_v35 = vmul.f32 %v5498_v32, %v1914_v2  ;;  %v7730_v46 = vpop.f32.mrf.mxu0  ;;  %v1915_v62 = vsel %vm1866_vm3, 1.0, %v7625_v7  ;;  %v702_v50 = vmul.f32 1.442695, %v618_v39  ;;  %v7768_v2 = vadd.f32 %v7655_v29, %v7489_v60 }
 0x17f   :  { %v7735_v45 = vpop.eup %5501  ;;  %v954_v38 = vmul.f32 %v5500_v23, %v905_v56  ;;  %5521 = vrcp.f32 %v760_v44  ;;  %v7741_v3 = vpop.f32.mrf.mxu1  ;;  %v1628_v32 = vsub.f32 0.0, %v1579_v55  ;;  %v7783_v28 = vadd.f32 %v7655_v29, %v7519_v43 }
 0x180   :  { %v7746_v6 = vpop.eup %5503  ;;  %4255 = vst [vmem:[%s9913_s3 + $0x260] sm:$0xff] %v1963_v35  ;;  %v1770_v22 = vadd.f32 1.0, %v7735_v45  ;;  %5523 = vpow2.f32 %v700_v19  ;;  %v4810_v25 = vpop.f32.mrf.mxu0  ;;  %v7779_v19 = vadd.f32 %v7655_v29, %v7498_v17  ;;  %v906_v17 = vsel %vm857_vm4, 1.0, %v7650_v58  ;;  %v5260_v58 = vld [vmem:[%s9911_s0 + $0x2fc] sm:$0xff]  }
 0x181   :  { %v7753_v48 = vpop.eup %5505  ;;  %1003 = vst [vmem:[%s9913_s3 + $0xe0] sm:$0xff] %v954_v38  ;;  %v761_v31 = vadd.f32 1.0, %v7746_v6  ;;  %v4918_v53 = vpop.f32.mrf.mxu1  ;;  %v1712_v35 = vmul.f32 1.442695, %v1628_v32  ;;  %v570_v43 = vand.u32 2147483647, %v7768_v2 }
 0x182   :  { %5525 = vrcp.f32 %v1770_v22  ;;  %v1771_v11 = vadd.f32 1.0, %v7753_v48  ;;  %v7763_v15 = vpop.f32.mrf.mxu0  ;;  %5024 = vmatmul.mubr.msk.bf16.gmra.mxu0 %vm226_vm1, %v5257_v52  ;;  %v5508_v20 = vpop.eup %5507  ;;  %5132 = vmatmul.mubr.msk.bf16.gmra.mxu1 %vm226_vm1, %v5258_v8  ;;  %v1580_v52 = vand.u32 2147483647, %v7779_v19  ;;  %v5259_v38 = vld [vmem:[%s9911_s0 + $0x238] sm:$0xff]   ;;  %v1916_v25 = vsel %vm1867_vm5, 1.0, %v7670_v61 }
 0x183   :  { %5527 = vrcp.f32 %v761_v31  ;;  %v7770_v56 = vpop.f32.mrf.mxu1  ;;  %5027 = vmatprep.mubr.msk.bf16.mxu0 %vm6054_vm0, %v6053_v0  ;;  %v7775_v7 = vpop.eup %5509  ;;  %v1964_v44 = vmul.f32 %v5508_v20, %v1915_v62  ;;  %5135 = vmatprep.mubr.msk.bf16.mxu1 %vm6054_vm0, %v6053_v0  ;;  %v571_v31 = vand.u32 2147483647, %v7783_v28  ;;  %v619_v55 = vsub.f32 0.0, %v570_v43 }
 0x184   :  { %5529 = vrcp.f32 %v1771_v11  ;;  %v4813_v60 = vpop.f32.mrf.mxu0  ;;  %v762_v23 = vadd.f32 1.0, %v7775_v7  ;;  %v1629_v53 = vsub.f32 0.0, %v1580_v52  ;;  %vm1869_vm9 = vcmp.ge.f32.partialorder %v7549_v10, 0.0 }
 0x185   :  { %5531 = vpow2.f32 %v1710_v54  ;;  %v4921_v63 = vpop.f32.mrf.mxu1  ;;  %v5512_v12 = vpop.eup %5511  ;;  %4256 = vst [vmem:[%s9913_s3 + $0x268] sm:$0xff] %v1964_v44  ;;  %v620_v20 = vsub.f32 0.0, %v571_v31  ;;  %v704_v44 = vmul.f32 1.442695, %v619_v55  ;;  %v907_v52 = vsel %vm858_vm6, 1.0, %v7711_v14  ;;  %v5261_v55 = vld [vmem:[%s9911_s0 + $0x240] sm:$0xff]  }
 0x186   :  { %5533 = vpow2.f32 %v702_v50  ;;  %v7797_v4 = vpop.f32.mrf.mxu0  ;;  %v5514_v8 = vpop.eup %5513  ;;  %v955_v22 = vmul.f32 %v5512_v12, %v906_v17  ;;  %v7832_v63 = vadd.f32 %v7655_v29, %v7528_v51  ;;  %v7836_v12 = vadd.f32 %v7655_v29, %v7555_v5 }
 0x187   :  { %5535 = vrcp.f32 %v762_v23  ;;  %v7804_v47 = vpop.f32.mrf.mxu1  ;;  %v7809_v54 = vpop.eup %5515  ;;  %v1965_v39 = vmul.f32 %v5514_v8, %v1916_v25  ;;  %v706_v25 = vmul.f32 1.442695, %v620_v20  ;;  %v1917_v14 = vsel %vm1868_vm7, 1.0, %v7735_v45  ;;  %v5262_v20 = vld [vmem:[%s9911_s0 + $0x304] sm:$0xff]  }
 0x188   :  { %5537 = vpow2.f32 %v1712_v35  ;;  %v4814_v62 = vpop.f32.mrf.mxu0  ;;  %v7811_v11 = vpop.eup %5517  ;;  %1004 = vst [vmem:[%s9913_s3 + $0xe8] sm:$0xff] %v955_v22  ;;  %v1772_v61 = vadd.f32 1.0, %v7809_v54  ;;  %v1714_v35 = vmul.f32 1.442695, %v1629_v53  ;;  %v1581_v31 = vand.u32 2147483647, %v7832_v63 }
 0x189   :  { %v4922_v50 = vpop.f32.mrf.mxu1  ;;  %4257 = vst [vmem:[%s9913_s3 + $0x270] sm:$0xff] %v1965_v39  ;;  %v763_v32 = vadd.f32 1.0, %v7811_v11  ;;  %v7828_v23 = vpop.eup %5519  ;;  %v908_v36 = vsel %vm859_vm8, 1.0, %v7746_v6  ;;  %v7888_v10 = vadd.f32 %v7655_v29, %v7591_v49  ;;  %vm860_vm10 = vcmp.ge.f32.partialorder %v7580_v13, 0.0 }
 0x18a   :  { %v7825_v60 = vpop.f32.mrf.mxu0  ;;  %5028 = vmatmul.mubr.msk.bf16.gmra.mxu0 %vm226_vm1, %v5259_v38  ;;  %5539 = vrcp.f32 %v1772_v61  ;;  %5136 = vmatmul.mubr.msk.bf16.gmra.mxu1 %vm226_vm1, %v5260_v58  ;;  %v1773_v51 = vadd.f32 1.0, %v7828_v23  ;;  %v7849_v38 = vadd.f32 %v7655_v29, %v7566_v40  ;;  %v572_v58 = vand.u32 2147483647, %v7836_v12 }
 0x18b   :  { %v7838_v17 = vpop.f32.mrf.mxu1  ;;  %5031 = vmatprep.mubr.msk.bf16.mxu0 %vm6054_vm0, %v6053_v0  ;;  %5541 = vrcp.f32 %v763_v32  ;;  %5139 = vmatprep.mubr.msk.bf16.mxu1 %vm6054_vm0, %v6053_v0  ;;  %v1630_v45 = vsub.f32 0.0, %v1581_v31  ;;  %vm1870_vm11 = vcmp.ge.f32.partialorder %v7616_v16, 0.0  ;;  %vm861_vm12 = vcmp.ge.f32.partialorder %v7620_v27, 0.0 }
 0x18c   :  { %v5522_v43 = vpop.eup %5521  ;;  %v4817_v5 = vpop.f32.mrf.mxu0  ;;  %5543 = vpow2.f32 %v704_v44  ;;  %v1582_v62 = vand.u32 2147483647, %v7849_v38  ;;  %v1918_v44 = vsel %vm1869_vm9, 1.0, %v7753_v48  ;;  %v7892_v48 = vadd.f32 %v7655_v29, %v7601_v21 }
 0x18d   :  { %v7853_v8 = vpop.eup %5523  ;;  %v956_v22 = vmul.f32 %v5522_v43, %v907_v52  ;;  %v4925_v57 = vpop.f32.mrf.mxu1  ;;  %5545 = vrcp.f32 %v1773_v51  ;;  %v621_v43 = vsub.f32 0.0, %v572_v58  ;;  %v1716_v52 = vmul.f32 1.442695, %v1630_v45 }
 0x18e   :  { %v764_v40 = vadd.f32 1.0, %v7853_v8  ;;  %v7861_v39 = vpop.f32.mrf.mxu0  ;;  %5547 = vpow2.f32 %v1714_v35  ;;  %v1631_v51 = vsub.f32 0.0, %v1582_v62  ;;  %v1919_v16 = vsel %vm1870_vm11, 1.0, %v7809_v54 }
 0x18f   :  { %v5526_v53 = vpop.eup %5525  ;;  %1005 = vst [vmem:[%s9913_s3 + $0xf0] sm:$0xff] %v956_v22  ;;  %v7873_v61 = vpop.f32.mrf.mxu1  ;;  %v708_v57 = vmul.f32 1.442695, %v621_v43  ;;  %v7943_v54 = vadd.f32 %v7655_v29, %v7665_v9  ;;  %vm862_vm13 = vcmp.ge.f32.partialorder %v7663_v34, 0.0  ;;  %vm863_vm14 = vcmp.ge.f32.partialorder %v7704_v30, 0.0 }
 0x190   :  { %v5528_v50 = vpop.eup %5527  ;;  %v1966_v32 = vmul.f32 %v5526_v53, %v1917_v14  ;;  %5549 = vrcp.f32 %v764_v40  ;;  %v4818_v33 = vpop.f32.mrf.mxu0  ;;  %v1718_v49 = vmul.f32 1.442695, %v1631_v51  ;;  %v573_v53 = vand.u32 2147483647, %v7888_v10 }
 0x191   :  { %v5530_v6 = vpop.eup %5529  ;;  %v957_v35 = vmul.f32 %v5528_v50, %v908_v36  ;;  %5551 = vpow2.f32 %v706_v25  ;;  %v4926_v5 = vpop.f32.mrf.mxu1  ;;  %v7932_v33 = vadd.f32 %v7655_v29, %v7622_v37  ;;  %vm1873_vm15 = vcmp.ge.f32.partialorder %v7739_v59, 0.0 }
 0x192   :  { %v7881_v22 = vpop.eup %5531  ;;  %4258 = vst [vmem:[%s9913_s3 + $0x278] sm:$0xff] %v1966_v32  ;;  %v1967_v31 = vmul.f32 %v5530_v6, %v1918_v44  ;;  %v7894_v25 = vpop.f32.mrf.mxu0  ;;  %5032 = vmatmul.mubr.msk.bf16.gmra.mxu0 %vm226_vm1, %v5261_v55  ;;  %5553 = vpow2.f32 %v1716_v52  ;;  %5140 = vmatmul.mubr.msk.bf16.gmra.mxu1 %vm226_vm1, %v5262_v20  ;;  %v909_v55 = vsel %vm860_vm10, 1.0, %v7775_v7  ;;  %v1583_v20 = vand.u32 2147483647, %v7892_v48 }
 0x193   :  { %v7897_v14 = vpop.eup %5533  ;;  %1006 = vst [vmem:[%s9913_s3 + $0xf8] sm:$0xff] %v957_v35  ;;  %v1774_v40 = vadd.f32 1.0, %v7881_v22  ;;  %v7904_v58 = vpop.f32.mrf.mxu1  ;;  %5035 = vmatprep.mubr.msk.bf16.mxu0 %vm6054_vm0, %v6053_v0  ;;  %5555 = vpow2.f32 %v708_v57  ;;  %5143 = vmatprep.mubr.msk.bf16.mxu1 %vm6054_vm0, %v6053_v0  ;;  %v622_v32 = vsub.f32 0.0, %v573_v53  ;;  %v5263_v0 = vld [vmem:[%s9911_s0 + $0x248] ss:$0 sps:$4 sm:$0xff]   ;;  %v7939_v5 = vadd.f32 %v7655_v29, %v7629_v42 }
 0x194   :  { %v5536_v21 = vpop.eup %5535  ;;  %4259 = vst [vmem:[%s9913_s3 + $0x280] sm:$0xff] %v1967_v31  ;;  %v765_v13 = vadd.f32 1.0, %v7897_v14  ;;  %v4821_v36 = vpop.f32.mrf.mxu0  ;;  %v1632_v43 = vsub.f32 0.0, %v1583_v20  ;;  %v5264_v35 = vld [vmem:[%s9911_s0 + $0x30c] ss:$0 sps:$4 sm:$0xff]   ;;  %vm1871_vm0 = vcmp.ge.f32.partialorder %v7659_v1, 0.0  ;;  %v8040_v59 = vadd.f32 %v7655_v29, %v7730_v46 }
 0x195   :  { %v7917_v45 = vpop.eup %5537  ;;  %v958_v62 = vmul.f32 %v5536_v21, %v909_v55  ;;  %5557 = vrcp.f32 %v1774_v40  ;;  %v4929_v50 = vpop.f32.mrf.mxu1  ;;  %v710_v51 = vmul.f32 1.442695, %v622_v32  ;;  %v910_v40 = vsel %vm861_vm12, 1.0, %v7811_v11 }
 0x196   :  { %5559 = vrcp.f32 %v765_v13  ;;  %v1775_v7 = vadd.f32 1.0, %v7917_v45  ;;  %v531_v44 = vpop.f32.mrf.mxu0  ;;  %v574_v21 = vand.u32 2147483647, %v7932_v33  ;;  %v1584_v42 = vand.u32 2147483647, %v7939_v5 }
 0x197   :  { %1007 = vst [vmem:[%s9913_s3 + $0x100] sm:$0xff] %v958_v62  ;;  %5561 = vpow2.f32 %v1718_v49  ;;  %v1541_v6 = vpop.f32.mrf.mxu1  ;;  %v5540_v52 = vpop.eup %5539  ;;  %v1720_v49 = vmul.f32 1.442695, %v1632_v43  ;;  %v1920_v27 = vsel %vm1871_vm0, 1.0, %v7828_v23  ;;  %v575_v23 = vand.u32 2147483647, %v7943_v54 }
 0x198   :  { %5563 = vrcp.f32 %v1775_v7  ;;  %v4822_v31 = vpop.f32.mrf.mxu0  ;;  %v5542_v57 = vpop.eup %5541  ;;  %v1968_v37 = vmul.f32 %v5540_v52, %v1919_v16  ;;  %v623_v62 = vsub.f32 0.0, %v574_v21  ;;  %v1633_v7 = vsub.f32 0.0, %v1584_v42 }
 0x199   :  { %v4930_v55 = vpop.f32.mrf.mxu1  ;;  %v7949_v13 = vpop.eup %5543  ;;  %v959_v53 = vmul.f32 %v5542_v57, %v910_v40  ;;  %5565 = vpow2.f32 %v710_v51  ;;  %v624_v51 = vsub.f32 0.0, %v575_v23  ;;  %v7980_v31 = vadd.f32 %v7655_v29, %v7677_v18 }
 0x19a   :  { %v7953_v9 = vpop.f32.mrf.mxu0  ;;  %5036 = vmatmul.mubr.msk.bf16.gmra.mxu0 %vm226_vm1, %v5263_v0  ;;  %v5546_v36 = vpop.eup %5545  ;;  %4260 = vst [vmem:[%s9913_s3 + $0x288] sm:$0xff] %v1968_v37  ;;  %v766_v11 = vadd.f32 1.0, %v7949_v13  ;;  %5567 = vpow2.f32 %v1720_v49  ;;  %5144 = vmatmul.mubr.msk.bf16.gmra.mxu1 %vm226_vm1, %v5264_v35  ;;  %v911_v0 = vsel %vm862_vm13, 1.0, %v7853_v8  ;;  %v712_v43 = vmul.f32 1.442695, %v623_v62 }
 0x19b   :  { %v7961_v20 = vpop.f32.mrf.mxu1  ;;  %v7964_v1 = vpop.eup %5547  ;;  %1008 = vst [vmem:[%s9913_s3 + $0x108] sm:$0xff] %v959_v53  ;;  %v1969_v50 = vmul.f32 %v5546_v36, %v1920_v27  ;;  %v1722_v34 = vmul.f32 1.442695, %v1633_v7  ;;  %vm1872_vm1 = vcmp.ge.f32.partialorder %v7697_v41, 0.0  ;;  %v7988_v37 = vadd.f32 %v7655_v29, %v7699_v24 }
 0x19c   :  { %v4941_v32 = vpop.f32.mrf.mxu0  ;;  %5569 = vrcp.f32 %v766_v11  ;;  %v1776_v16 = vadd.f32 1.0, %v7964_v1  ;;  %v1585_v18 = vand.u32 2147483647, %v7980_v31  ;;  %vm864_vm2 = vcmp.ge.f32.partialorder %v7768_v2, 0.0 }
 0x19d   :  { %v5550_v44 = vpop.eup %5549  ;;  %v5049_v6 = vpop.f32.mrf.mxu1  ;;  %4261 = vst [vmem:[%s9913_s3 + $0x290] sm:$0xff] %v1969_v50  ;;  %v714_v53 = vmul.f32 1.442695, %v624_v51  ;;  %v576_v42 = vand.u32 2147483647, %v7988_v37  ;;  %v1921_v11 = vsel %vm1872_vm1, 1.0, %v7881_v22 }
 0x19e   :  { %v7973_v35 = vpop.eup %5551  ;;  %v960_v52 = vmul.f32 %v5550_v44, %v911_v0  ;;  %v7982_v57 = vpop.f32.mrf.mxu0  ;;  %5571 = vrcp.f32 %v1776_v16  ;;  %v1634_v50 = vsub.f32 0.0, %v1585_v18  ;;  %v912_v44 = vsel %vm863_vm14, 1.0, %v7897_v14 }
 0x19f   :  { %v767_v8 = vadd.f32 1.0, %v7973_v35  ;;  %v7990_v40 = vpop.f32.mrf.mxu1  ;;  %v7992_v49 = vpop.eup %5553  ;;  %5573 = vpow2.f32 %v712_v43  ;;  %v625_v0 = vsub.f32 0.0, %v576_v42  ;;  %v8020_v6 = vadd.f32 %v7655_v29, %v7706_v26 }
 0x1a0   :  { %1009 = vst [vmem:[%s9913_s3 + $0x110] sm:$0xff] %v960_v52  ;;  %v4942_v21 = vpop.f32.mrf.mxu0  ;;  %v8000_v55 = vpop.eup %5555  ;;  %v1777_v24 = vadd.f32 1.0, %v7992_v49  ;;  %v1724_v22 = vmul.f32 1.442695, %v1634_v50  ;;  %v1922_v30 = vsel %vm1873_vm15, 1.0, %v7917_v45  ;;  %vm1874_vm3 = vcmp.ge.f32.partialorder %v7779_v19, 0.0 }
 0x1a1   :  { %5575 = vrcp.f32 %v767_v8  ;;  %v5050_v36 = vpop.f32.mrf.mxu1  ;;  %v768_v62 = vadd.f32 1.0, %v8000_v55  ;;  %v716_v51 = vmul.f32 1.442695, %v625_v0  ;;  %v1586_v18 = vand.u32 2147483647, %v8020_v6 }
 0x1a2   :  { %v5558_v27 = vpop.eup %5557  ;;  %5577 = vpow2.f32 %v1722_v34  ;;  %v8009_v7 = vpop.f32.mrf.mxu0  ;;  %v8044_v45 = vadd.f32 %v7655_v29, %v7741_v3  ;;  %vm865_vm4 = vcmp.ge.f32.partialorder %v7783_v28, 0.0  ;;  %vm1875_vm5 = vcmp.ge.f32.partialorder %v7832_v63, 0.0 }
 0x1a3   :  { %v5560_v23 = vpop.eup %5559  ;;  %v1970_v32 = vmul.f32 %v5558_v27, %v1921_v11  ;;  %5579 = vrcp.f32 %v1777_v24  ;;  %v8014_v16 = vpop.f32.mrf.mxu1  ;;  %v1635_v27 = vsub.f32 0.0, %v1586_v18  ;;  %vm866_vm6 = vcmp.ge.f32.partialorder %v7836_v12, 0.0 }
 0x1a4   :  { %v8016_v43 = vpop.eup %5561  ;;  %v961_v41 = vmul.f32 %v5560_v23, %v912_v44  ;;  %5581 = vrcp.f32 %v768_v62  ;;  %v4945_v52 = vpop.f32.mrf.mxu0  ;;  %v577_v11 = vand.u32 2147483647, %v8040_v59  ;;  %v913_v23 = vsel %vm864_vm2, 1.0, %v7949_v13 }
 0x1a5   :  { %v5564_v34 = vpop.eup %5563  ;;  %4262 = vst [vmem:[%s9913_s3 + $0x298] sm:$0xff] %v1970_v32  ;;  %v1778_v14 = vadd.f32 1.0, %v8016_v43  ;;  %5583 = vpow2.f32 %v714_v53  ;;  %v5053_v8 = vpop.f32.mrf.mxu1  ;;  %v8048_v53 = vadd.f32 %v7655_v29, %v7763_v15  ;;  %v1726_v32 = vmul.f32 1.442695, %v1635_v27 }
 0x1a6   :  { %1010 = vst [vmem:[%s9913_s3 + $0x118] sm:$0xff] %v961_v41  ;;  %v1971_v26 = vmul.f32 %v5564_v34, %v1922_v30  ;;  %5585 = vpow2.f32 %v1724_v22  ;;  %v8034_v21 = vpop.f32.mrf.mxu0  ;;  %v8036_v24 = vpop.eup %5565  ;;  %v1587_v44 = vand.u32 2147483647, %v8044_v45  ;;  %vm1876_vm7 = vcmp.ge.f32.partialorder %v7849_v38, 0.0 }
 0x1a7   :  { %5587 = vrcp.f32 %v1778_v14  ;;  %v8050_v42 = vpop.f32.mrf.mxu1  ;;  %v8052_v36 = vpop.eup %5567  ;;  %v769_v46 = vadd.f32 1.0, %v8036_v24  ;;  %v626_v22 = vsub.f32 0.0, %v577_v11  ;;  %v578_v52 = vand.u32 2147483647, %v8048_v53 }
 0x1a8   :  { %4263 = vst [vmem:[%s9913_s3 + $0x2a0] sm:$0xff] %v1971_v26  ;;  %5589 = vpow2.f32 %v716_v51  ;;  %v4946_v3 = vpop.f32.mrf.mxu0  ;;  %v1779_v15 = vadd.f32 1.0, %v8052_v36  ;;  %v1923_v2 = vsel %vm1874_vm3, 1.0, %v7964_v1  ;;  %v1636_v13 = vsub.f32 0.0, %v1587_v44 }
 0x1a9   :  { %v5054_v62 = vpop.f32.mrf.mxu1  ;;  %v5570_v50 = vpop.eup %5569  ;;  %5591 = vrcp.f32 %v769_v46  ;;  %v8078_v14 = vadd.f32 %v7655_v29, %v7770_v56  ;;  %v718_v18 = vmul.f32 1.442695, %v626_v22  ;;  %v627_v46 = vsub.f32 0.0, %v578_v52 }
 0x1aa   :  { %v8067_v0 = vpop.f32.mrf.mxu0  ;;  %v962_v41 = vmul.f32 %v5570_v50, %v913_v23  ;;  %5593 = vrcp.f32 %v1779_v15  ;;  %v8087_v19 = vadd.f32 %v7655_v29, %v7797_v4  ;;  %v914_v56 = vsel %vm865_vm4, 1.0, %v7973_v35 }
 0x1ab   :  { %v8071_v34 = vpop.f32.mrf.mxu1  ;;  %v5572_v30 = vpop.eup %5571  ;;  %5595 = vpow2.f32 %v1726_v32  ;;  %v1728_v15 = vmul.f32 1.442695, %v1636_v13  ;;  %v1588_v11 = vand.u32 2147483647, %v8078_v14  ;;  %vm867_vm8 = vcmp.ge.f32.partialorder %v7888_v10, 0.0 }
 0x1ac   :  { %v4949_v51 = vpop.f32.mrf.mxu0  ;;  %v8080_v8 = vpop.eup %5573  ;;  %1011 = vst [vmem:[%s9913_s3 + $0x120] sm:$0xff] %v962_v41  ;;  %v1972_v26 = vmul.f32 %v5572_v30, %v1923_v2  ;;  %5597 = vpow2.f32 %v718_v18  ;;  %v720_v23 = vmul.f32 1.442695, %v627_v46  ;;  %v1924_v32 = vsel %vm1875_vm5, 1.0, %v7992_v49 }
 0x1ad   :  { %v5057_v1 = vpop.f32.mrf.mxu1  ;;  %v770_v3 = vadd.f32 1.0, %v8080_v8  ;;  %v1637_v41 = vsub.f32 0.0, %v1588_v11  ;;  %v915_v2 = vsel %vm866_vm6, 1.0, %v8000_v55  ;;  %v579_v13 = vand.u32 2147483647, %v8087_v19 }
 0x1ae   :  { %v5576_v27 = vpop.eup %5575  ;;  %v8094_v62 = vpop.f32.mrf.mxu0  ;;  %4264 = vst [vmem:[%s9913_s3 + $0x2a8] sm:$0xff] %v1972_v26  ;;  %v8119_v18 = vadd.f32 %v7655_v29, %v7804_v47  ;;  %vm1877_vm9 = vcmp.ge.f32.partialorder %v7892_v48, 0.0  ;;  %v1925_v47 = vsel %vm1876_vm7, 1.0, %v8016_v43  ;;  %v8156_v10 = vadd.f32 %v7655_v29, %v7825_v60 }
 0x1af   :  { %v8096_v50 = vpop.eup %5577  ;;  %v963_v4 = vmul.f32 %v5576_v27, %v914_v56  ;;  %v8102_v28 = vpop.f32.mrf.mxu1  ;;  %5599 = vrcp.f32 %v770_v3  ;;  %v1730_v26 = vmul.f32 1.442695, %v1637_v41  ;;  %v628_v55 = vsub.f32 0.0, %v579_v13 }
 0x1b0   :  { %v5580_v35 = vpop.eup %5579  ;;  %v1780_v44 = vadd.f32 1.0, %v8096_v50  ;;  %v4950_v22 = vpop.f32.mrf.mxu0  ;;  %5601 = vpow2.f32 %v1728_v15  ;;  %v1589_v15 = vand.u32 2147483647, %v8119_v18  ;;  %v1926_v38 = vsel %vm1877_vm9, 1.0, %v8052_v36 }
 0x1b1   :  { %v5582_v52 = vpop.eup %5581  ;;  %1012 = vst [vmem:[%s9913_s3 + $0x128] sm:$0xff] %v963_v4  ;;  %v1973_v30 = vmul.f32 %v5580_v35, %v1924_v32  ;;  %v5058_v63 = vpop.f32.mrf.mxu1  ;;  %v916_v35 = vsel %vm867_vm8, 1.0, %v8036_v24  ;;  %v722_v32 = vmul.f32 1.442695, %v628_v55  ;;  %v8160_v48 = vadd.f32 %v7655_v29, %v7838_v17 }
 0x1b2   :  { %v8115_v49 = vpop.eup %5583  ;;  %v964_v51 = vmul.f32 %v5582_v52, %v915_v2  ;;  %5603 = vrcp.f32 %v1780_v44  ;;  %v8121_v46 = vpop.f32.mrf.mxu0  ;;  %v1638_v41 = vsub.f32 0.0, %v1589_v15  ;;  %v8164_v24 = vadd.f32 %v7655_v29, %v7861_v39 }
 0x1b3   :  { %v8123_v1 = vpop.eup %5585  ;;  %4265 = vst [vmem:[%s9913_s3 + $0x2b0] sm:$0xff] %v1973_v30  ;;  %v771_v12 = vadd.f32 1.0, %v8115_v49  ;;  %5605 = vpow2.f32 %v720_v23  ;;  %v8130_v27 = vpop.f32.mrf.mxu1  ;;  %v8170_v63 = vadd.f32 %v7655_v29, %v7873_v61  ;;  %v580_v17 = vand.u32 2147483647, %v8156_v10 }
 0x1b4   :  { %v5588_v56 = vpop.eup %5587  ;;  %1013 = vst [vmem:[%s9913_s3 + $0x130] sm:$0xff] %v964_v51  ;;  %v1781_v3 = vadd.f32 1.0, %v8123_v1  ;;  %5607 = vpow2.f32 %v1730_v26  ;;  %v4953_v11 = vpop.f32.mrf.mxu0  ;;  %v1732_v13 = vmul.f32 1.442695, %v1638_v41  ;;  %vm868_vm10 = vcmp.ge.f32.partialorder %v7932_v33, 0.0 }
 0x1b5   :  { %v8140_v4 = vpop.eup %5589  ;;  %v1974_v23 = vmul.f32 %v5588_v56, %v1925_v47  ;;  %5609 = vrcp.f32 %v771_v12  ;;  %v5061_v44 = vpop.f32.mrf.mxu1  ;;  %v1590_v12 = vand.u32 2147483647, %v8160_v48  ;;  %vm1878_vm11 = vcmp.ge.f32.partialorder %v7939_v5, 0.0  ;;  %v8227_v5 = vld [vmem:[%s9912_s2] ss:$0 sm:$0xff] }
 0x1b6   :  { %5611 = vrcp.f32 %v1781_v3  ;;  %v772_v43 = vadd.f32 1.0, %v8140_v4  ;;  %v8149_v22 = vpop.f32.mrf.mxu0  ;;  %v5592_v52 = vpop.eup %5591  ;;  %vm869_vm12 = vcmp.ge.f32.partialorder %v7943_v54, 0.0  ;;  %v629_v56 = vsub.f32 0.0, %v580_v17 }
 0x1b7   :  { %4266 = vst [vmem:[%s9913_s3 + $0x2b8] sm:$0xff] %v1974_v23  ;;  %5613 = vpow2.f32 %v722_v32  ;;  %v8166_v36 = vpop.f32.mrf.mxu1  ;;  %v5594_v30 = vpop.eup %5593  ;;  %v965_v2 = vmul.f32 %v5592_v52, %v916_v35  ;;  %v1639_v47 = vsub.f32 0.0, %v1590_v12  ;;  %v581_v3 = vand.u32 2147483647, %v8164_v24 }
 0x1b8   :  { %5615 = vrcp.f32 %v772_v43  ;;  %v4954_v60 = vpop.f32.mrf.mxu0  ;;  %v8172_v51 = vpop.eup %5595  ;;  %v1975_v26 = vmul.f32 %v5594_v30, %v1926_v38  ;;  %vm1879_vm0 = vcmp.ge.f32.partialorder %v7980_v31, 0.0  ;;  %v1591_v23 = vand.u32 2147483647, %v8170_v63 }
 0x1b9   :  { %v5062_v39 = vpop.f32.mrf.mxu1  ;;  %1014 = vst [vmem:[%s9913_s3 + $0x138] sm:$0xff] %v965_v2  ;;  %v1782_v61 = vadd.f32 1.0, %v8172_v51  ;;  %5617 = vpow2.f32 %v1732_v13  ;;  %v8191_v11 = vpop.eup %5597  ;;  %v8197_v35 = vadd.f32 %v7655_v29, %v7894_v25  ;;  %v917_v38 = vsel %vm868_vm10, 1.0, %v8080_v8 }
 0x1ba   :  { %v8182_v55 = vpop.f32.mrf.mxu0  ;;  %4267 = vst [vmem:[%s9913_s3 + $0x2c0] sm:$0xff] %v1975_v26  ;;  %v773_v43 = vadd.f32 1.0, %v8191_v11  ;;  %v724_v41 = vmul.f32 1.442695, %v629_v56  ;;  %v1734_v52 = vmul.f32 1.442695, %v1639_v47 }
 0x1bb   :  { %v8189_v15 = vpop.f32.mrf.mxu1  ;;  %5619 = vrcp.f32 %v1782_v61  ;;  %v630_v60 = vsub.f32 0.0, %v581_v3  ;;  %v1640_v26 = vsub.f32 0.0, %v1591_v23  ;;  %v582_v17 = vand.u32 2147483647, %v8197_v35 }
 0x1bc   :  { %v4957_v32 = vpop.f32.mrf.mxu0  ;;  %v5600_v44 = vpop.eup %5599  ;;  %v1927_v33 = vsel %vm1878_vm11, 1.0, %v8096_v50  ;;  %vm870_vm13 = vcmp.ge.f32.partialorder %v7988_v37, 0.0  ;;  %5621 = vrcp.f32 %v773_v43  ;;  %v918_v47 = vsel %vm869_vm12, 1.0, %v8115_v49 }
 0x1bd   :  { %v5065_v30 = vpop.f32.mrf.mxu1  ;;  %v8203_v2 = vpop.eup %5601  ;;  %v966_v13 = vmul.f32 %v5600_v44, %v917_v38  ;;  %vm1880_vm1 = vcmp.ge.f32.partialorder %v8020_v6, 0.0  ;;  %5623 = vpow2.f32 %v724_v41  ;;  %v726_v32 = vmul.f32 1.442695, %v630_v60 }
 0x1be   :  { %v8206_v25 = vpop.f32.mrf.mxu0  ;;  %v1783_v8 = vadd.f32 1.0, %v8203_v2  ;;  %v631_v44 = vsub.f32 0.0, %v582_v17  ;;  %v1736_v49 = vmul.f32 1.442695, %v1640_v26  ;;  %v8238_v41 = vadd.f32 %v7655_v29, %v7904_v58 }
 0x1bf   :  { %v5604_v12 = vpop.eup %5603  ;;  %v8213_v39 = vpop.f32.mrf.mxu1  ;;  %1015 = vst [vmem:[%s9913_s3 + $0x140] sm:$0xff] %v966_v13  ;;  %v1928_v60 = vsel %vm1879_vm0, 1.0, %v8123_v1  ;;  %vm871_vm14 = vcmp.ge.f32.partialorder %v8040_v59, 0.0  ;;  %v8248_v17 = vadd.f32 %v8227_v5, %v7953_v9  ;;  %v919_v9 = vsel %vm870_vm13, 1.0, %v8140_v4 }
 0x1c0   :  { %v8215_v61 = vpop.eup %5605  ;;  %v1976_v56 = vmul.f32 %v5604_v12, %v1927_v33  ;;  %v4958_v50 = vpop.f32.mrf.mxu0  ;;  %5625 = vrcp.f32 %v1783_v8  ;;  %v728_v58 = vmul.f32 1.442695, %v631_v44  ;;  %v1592_v33 = vand.u32 2147483647, %v8238_v41 }
 0x1c1   :  { %v8229_v3 = vpop.eup %5607  ;;  %v774_v23 = vadd.f32 1.0, %v8215_v61  ;;  %v5066_v38 = vpop.f32.mrf.mxu1  ;;  %5627 = vpow2.f32 %v1734_v52  ;;  %v2555_v1 = vand.u32 2147483647, %v8248_v17  ;;  %vm1881_vm15 = vcmp.ge.f32.partialorder %v8044_v45, 0.0 }
 0x1c2   :  { %v5610_v43 = vpop.eup %5609  ;;  %4268 = vst [vmem:[%s9913_s3 + $0x2c8] sm:$0xff] %v1976_v56  ;;  %v1784_v54 = vadd.f32 1.0, %v8229_v3  ;;  %v8240_v30 = vpop.f32.mrf.mxu0  ;;  %v8273_v4 = vadd.f32 %v8227_v5, %v7961_v20  ;;  %vm872_vm2 = vcmp.ge.f32.partialorder %v8048_v53, 0.0  ;;  %v1929_v20 = vsel %vm1880_vm1, 1.0, %v8172_v51 }
 0x1c3   :  { %v5612_v13 = vpop.eup %5611  ;;  %v967_v12 = vmul.f32 %v5610_v43, %v918_v47  ;;  %5629 = vrcp.f32 %v774_v23  ;;  %v8250_v52 = vpop.f32.mrf.mxu1  ;;  %v1641_v23 = vsub.f32 0.0, %v1592_v33  ;;  %v2604_v37 = vsub.f32 0.0, %v2555_v1 }
 0x1c4   :  { %v8252_v26 = vpop.eup %5613  ;;  %v1977_v29 = vmul.f32 %v5612_v13, %v1928_v60  ;;  %5631 = vrcp.f32 %v1784_v54  ;;  %v4961_v8 = vpop.f32.mrf.mxu0  ;;  %vm1882_vm3 = vcmp.ge.f32.partialorder %v8078_v14, 0.0  ;;  %v3566_v60 = vand.u32 2147483647, %v8273_v4 }
 0x1c5   :  { %v5616_v56 = vpop.eup %5615  ;;  %1016 = vst [vmem:[%s9913_s3 + $0x148] sm:$0xff] %v967_v12  ;;  %v775_v31 = vadd.f32 1.0, %v8252_v26  ;;  %5633 = vpow2.f32 %v726_v32  ;;  %v5069_v47 = vpop.f32.mrf.mxu1  ;;  %v8277_v32 = vadd.f32 %v8227_v5, %v7982_v57  ;;  %v2653_v57 = vmul.f32 1.442695, %v2604_v37 }
 0x1c6   :  { %4269 = vst [vmem:[%s9913_s3 + $0x2d0] sm:$0xff] %v1977_v29  ;;  %v968_v50 = vmul.f32 %v5616_v56, %v919_v9  ;;  %5635 = vpow2.f32 %v1736_v49  ;;  %v8267_v44 = vpop.f32.mrf.mxu0  ;;  %v8269_v38 = vpop.eup %5617  ;;  %v1738_v49 = vmul.f32 1.442695, %v1641_v23  ;;  %v3615_v9 = vsub.f32 0.0, %v3566_v60 }
 0x1c7   :  { %5637 = vrcp.f32 %v775_v31  ;;  %v8279_v43 = vpop.f32.mrf.mxu1  ;;  %v1785_v54 = vadd.f32 1.0, %v8269_v38  ;;  %v2556_v8 = vand.u32 2147483647, %v8277_v32  ;;  %v8300_v6 = vadd.f32 %v8227_v5, %v8009_v7 }
 0x1c8   :  { %1017 = vst [vmem:[%s9913_s3 + $0x150] sm:$0xff] %v968_v50  ;;  %5639 = vpow2.f32 %v728_v58  ;;  %v4962_v13 = vpop.f32.mrf.mxu0  ;;  %v5620_v12 = vpop.eup %5619  ;;  %v8294_v58 = vadd.f32 %v8227_v5, %v7990_v40  ;;  %v8304_v51 = vadd.f32 %v8227_v5, %v8014_v16  ;;  %v920_v40 = vsel %vm871_vm14, 1.0, %v8191_v11 }
 0x1c9   :  { %v5070_v29 = vpop.f32.mrf.mxu1  ;;  %v1978_v33 = vmul.f32 %v5620_v12, %v1929_v20  ;;  %5641 = vrcp.f32 %v1785_v54  ;;  %v5622_v1 = vpop.eup %5621  ;;  %v2605_v47 = vsub.f32 0.0, %v2556_v8  ;;  %v1930_v37 = vsel %vm1881_vm15, 1.0, %v8203_v2 }
 0x1ca   :  { %v8296_v56 = vpop.f32.mrf.mxu0  ;;  %5643 = vpow2.f32 %v1738_v49  ;;  %v3567_v7 = vand.u32 2147483647, %v8294_v58  ;;  %v8315_v23 = vpop.eup %5623  ;;  %v969_v16 = vmul.f32 %v5622_v1, %v920_v40  ;;  %v3664_v54 = vmul.f32 1.442695, %v3615_v9 }
 0x1cb   :  { %v8306_v31 = vpop.f32.mrf.mxu1  ;;  %4270 = vst [vmem:[%s9913_s3 + $0x2d8] sm:$0xff] %v1978_v33  ;;  %5645 = vpow2.f32 %v2653_v57  ;;  %v2557_v49 = vand.u32 2147483647, %v8300_v6  ;;  %v921_v59 = vsel %vm872_vm2, 1.0, %v8215_v61  ;;  %v776_v11 = vadd.f32 1.0, %v8315_v23 }
 0x1cc   :  { %v4965_v50 = vpop.f32.mrf.mxu0  ;;  %v2655_v20 = vmul.f32 1.442695, %v2605_v47  ;;  %v3616_v57 = vsub.f32 0.0, %v3567_v7  ;;  %1018 = vst [vmem:[%s9913_s3 + $0x158] sm:$0xff] %v969_v16  ;;  %5647 = vpow2.f32 %v3664_v54  ;;  %v3568_v33 = vand.u32 2147483647, %v8304_v51 }
 0x1cd   :  { %v5073_v13 = vpop.f32.mrf.mxu1  ;;  %v5626_v12 = vpop.eup %5625  ;;  %v2606_v2 = vsub.f32 0.0, %v2557_v49  ;;  %v1931_v61 = vsel %vm1882_vm3, 1.0, %v8229_v3  ;;  %5649 = vrcp.f32 %v776_v11  ;;  %v8346_v14 = vadd.f32 %v8227_v5, %v8034_v21 }
 0x1ce   :  { %v8325_v60 = vpop.f32.mrf.mxu0  ;;  %v8327_v29 = vpop.eup %5627  ;;  %v1979_v45 = vmul.f32 %v5626_v12, %v1930_v37  ;;  %v3666_v1 = vmul.f32 1.442695, %v3616_v57  ;;  %5651 = vpow2.f32 %v2655_v20  ;;  %v3617_v16 = vsub.f32 0.0, %v3568_v33 }
 0x1cf   :  { %v8333_v8 = vpop.f32.mrf.mxu1  ;;  %v1786_v9 = vadd.f32 1.0, %v8327_v29  ;;  %v2657_v50 = vmul.f32 1.442695, %v2606_v2  ;;  %vm873_vm4 = vcmp.ge.f32.partialorder %v8087_v19, 0.0  ;;  %vm1883_vm5 = vcmp.ge.f32.partialorder %v8119_v18, 0.0 }
 0x1d0   :  { %v5630_v53 = vpop.eup %5629  ;;  %v4966_v40 = vpop.f32.mrf.mxu0  ;;  %4271 = vst [vmem:[%s9913_s3 + $0x2e0] sm:$0xff] %v1979_v45  ;;  %v922_v21 = vsel %vm873_vm4, 1.0, %v8252_v26  ;;  %v2558_v45 = vand.u32 2147483647, %v8346_v14  ;;  %vm874_vm6 = vcmp.ge.f32.partialorder %v8156_v10, 0.0  ;;  %vm1884_vm7 = vcmp.ge.f32.partialorder %v8160_v48, 0.0 }
 0x1d1   :  { %v5632_v47 = vpop.eup %5631  ;;  %v970_v7 = vmul.f32 %v5630_v53, %v921_v59  ;;  %v5074_v37 = vpop.f32.mrf.mxu1  ;;  %5653 = vrcp.f32 %v1786_v9  ;;  %v3668_v59 = vmul.f32 1.442695, %v3617_v16  ;;  %v8369_v53 = vadd.f32 %v8227_v5, %v8050_v42 }
 0x1d2   :  { %v8342_v54 = vpop.eup %5633  ;;  %v1980_v49 = vmul.f32 %v5632_v47, %v1931_v61  ;;  %v8348_v3 = vpop.f32.mrf.mxu0  ;;  %5655 = vpow2.f32 %v3666_v1  ;;  %v2607_v9 = vsub.f32 0.0, %v2558_v45  ;;  %v1932_v47 = vsel %vm1883_vm5, 1.0, %v8269_v38 }
 0x1d3   :  { %v8350_v13 = vpop.eup %5635  ;;  %1019 = vst [vmem:[%s9913_s3 + $0x160] sm:$0xff] %v970_v7  ;;  %v777_v12 = vadd.f32 1.0, %v8342_v54  ;;  %v8357_v11 = vpop.f32.mrf.mxu1  ;;  %5657 = vpow2.f32 %v2657_v50  ;;  %v3569_v42 = vand.u32 2147483647, %v8369_v53  ;;  %v8382_v7 = vadd.f32 %v8227_v5, %v8067_v0 }
 0x1d4   :  { %v5638_v20 = vpop.eup %5637  ;;  %4272 = vst [vmem:[%s9913_s3 + $0x2e8] sm:$0xff] %v1980_v49  ;;  %v1787_v57 = vadd.f32 1.0, %v8350_v13  ;;  %v4969_v2 = vpop.f32.mrf.mxu0  ;;  %v2659_v37 = vmul.f32 1.442695, %v2607_v9  ;;  %v8390_v49 = vadd.f32 %v8227_v5, %v8071_v34  ;;  %vm875_vm8 = vcmp.ge.f32.partialorder %v8164_v24, 0.0 }
 0x1d5   :  { %v8365_v19 = vpop.eup %5639  ;;  %v971_v33 = vmul.f32 %v5638_v20, %v922_v21  ;;  %5659 = vrcp.f32 %v777_v12  ;;  %v5077_v61 = vpop.f32.mrf.mxu1  ;;  %v3618_v0 = vsub.f32 0.0, %v3569_v42  ;;  %v2559_v20 = vand.u32 2147483647, %v8382_v7 }
 0x1d6   :  { %5661 = vrcp.f32 %v1787_v57  ;;  %v778_v26 = vadd.f32 1.0, %v8365_v19  ;;  %v8373_v1 = vpop.f32.mrf.mxu0  ;;  %v5642_v40 = vpop.eup %5641  ;;  %vm1885_vm9 = vcmp.ge.f32.partialorder %v8170_v63, 0.0  ;;  %v8413_v9 = vadd.f32 %v8227_v5, %v8094_v62 }
 0x1d7   :  { %1020 = vst [vmem:[%s9913_s3 + $0x168] sm:$0xff] %v971_v33  ;;  %5663 = vpow2.f32 %v3668_v59  ;;  %v8384_v18 = vpop.f32.mrf.mxu1  ;;  %v8386_v50 = vpop.eup %5643  ;;  %v1981_v16 = vmul.f32 %v5642_v40, %v1932_v47  ;;  %v3670_v45 = vmul.f32 1.442695, %v3618_v0  ;;  %v2608_v2 = vsub.f32 0.0, %v2559_v20 }
 0x1d8   :  { %5665 = vrcp.f32 %v778_v26  ;;  %v4970_v12 = vpop.f32.mrf.mxu0  ;;  %v8392_v38 = vpop.eup %5645  ;;  %v1788_v59 = vadd.f32 1.0, %v8386_v50  ;;  %v3570_v33 = vand.u32 2147483647, %v8390_v49  ;;  %v8417_v40 = vadd.f32 %v8227_v5, %v8102_v28 }
 0x1d9   :  { %v5078_v21 = vpop.f32.mrf.mxu1  ;;  %4273 = vst [vmem:[%s9913_s3 + $0x2f0] sm:$0xff] %v1981_v16  ;;  %v2751_v34 = vadd.f32 1.0, %v8392_v38  ;;  %5667 = vpow2.f32 %v2659_v37  ;;  %v8408_v26 = vpop.eup %5647  ;;  %v923_v16 = vsel %vm874_vm6, 1.0, %v8315_v23  ;;  %v2661_v12 = vmul.f32 1.442695, %v2608_v2 }
 0x1da   :  { %v8403_v57 = vpop.f32.mrf.mxu0  ;;  %5669 = vrcp.f32 %v1788_v59  ;;  %v5650_v42 = vpop.eup %5649  ;;  %v3762_v37 = vadd.f32 1.0, %v8408_v26  ;;  %vm876_vm10 = vcmp.ge.f32.partialorder %v8197_v35, 0.0  ;;  %v3619_v62 = vsub.f32 0.0, %v3570_v33 }
 0x1db   :  { %v8406_v61 = vpop.f32.mrf.mxu1  ;;  %5671 = vrcp.f32 %v2751_v34  ;;  %v8423_v0 = vpop.eup %5651  ;;  %v972_v20 = vmul.f32 %v5650_v42, %v923_v16  ;;  %v2560_v28 = vand.u32 2147483647, %v8413_v9  ;;  %v1933_v10 = vsel %vm1884_vm7, 1.0, %v8327_v29 }
 0x1dc   :  { %v4973_v47 = vpop.f32.mrf.mxu0  ;;  %5673 = vpow2.f32 %v3670_v45  ;;  %vm1886_vm11 = vcmp.ge.f32.partialorder %v8238_v41, 0.0  ;;  %v2752_v23 = vadd.f32 1.0, %v8423_v0  ;;  %v3571_v45 = vand.u32 2147483647, %v8417_v40 }
 0x1dd   :  { %v5081_v59 = vpop.f32.mrf.mxu1  ;;  %5675 = vrcp.f32 %v3762_v37  ;;  %1021 = vst [vmem:[%s9913_s3 + $0x170] sm:$0xff] %v972_v20  ;;  %v3672_v42 = vmul.f32 1.442695, %v3619_v62  ;;  %v2609_v48 = vsub.f32 0.0, %v2560_v28  ;;  %vm2849_vm12 = vcmp.ge.f32.partialorder %v8248_v17, 0.0 }
 0x1de   :  { %v8427_v21 = vpop.f32.mrf.mxu0  ;;  %v5654_v34 = vpop.eup %5653  ;;  %5677 = vpow2.f32 %v2661_v12  ;;  %v3620_v59 = vsub.f32 0.0, %v3571_v45  ;;  %v924_v12 = vsel %vm875_vm8, 1.0, %v8342_v54  ;;  %v8464_v54 = vadd.f32 %v8227_v5, %v8121_v46 }
 0x1df   :  { %9914 = vst [vmem:[#allocation2_spill] sm:$0xff] %v8427_v21  ;;  %v8435_v2 = vpop.f32.mrf.mxu1  ;;  %v8437_v47 = vpop.eup %5655  ;;  %v1982_v33 = vmul.f32 %v5654_v34, %v1933_v10  ;;  %5679 = vrcp.f32 %v2752_v23  ;;  %v2663_v62 = vmul.f32 1.442695, %v2609_v48  ;;  %v1934_v23 = vsel %vm1885_vm9, 1.0, %v8350_v13 }
 0x1e0   :  { %9915 = vst [vmem:[#allocation3_spill] sm:$0xff] %v8435_v2  ;;  %v4974_v29 = vpop.f32.mrf.mxu0  ;;  %v8442_v16 = vpop.eup %5657  ;;  %v3763_v37 = vadd.f32 1.0, %v8437_v47  ;;  %5681 = vpow2.f32 %v3672_v42  ;;  %v3674_v45 = vmul.f32 1.442695, %v3620_v59  ;;  %v8468_v42 = vadd.f32 %v8227_v5, %v8130_v27 }
 0x1e1   :  { %v5082_v2 = vpop.f32.mrf.mxu1  ;;  %4274 = vst [vmem:[%s9913_s3 + $0x2f8] sm:$0xff] %v1982_v33  ;;  %v2753_v20 = vadd.f32 1.0, %v8442_v16  ;;  %v925_v63 = vsel %vm876_vm10, 1.0, %v8365_v19  ;;  %v8479_v46 = vadd.f32 %v8227_v5, %v8149_v22  ;;  %vm3860_vm0 = vcmp.ge.f32.partialorder %v8273_v4, 0.0 }
 0x1e2   :  { %v5660_v21 = vpop.eup %5659  ;;  %v8453_v28 = vpop.f32.mrf.mxu0  ;;  %5683 = vrcp.f32 %v3763_v37  ;;  %v2561_v37 = vand.u32 2147483647, %v8464_v54  ;;  %vm2850_vm13 = vcmp.ge.f32.partialorder %v8277_v32, 0.0  ;;  %v3572_v22 = vand.u32 2147483647, %v8468_v42 }
 0x1e3   :  { %v5662_v34 = vpop.eup %5661  ;;  %v973_v10 = vmul.f32 %v5660_v21, %v924_v12  ;;  %v8458_v2 = vpop.f32.mrf.mxu1  ;;  %5685 = vrcp.f32 %v2753_v20  ;;  %v2562_v59 = vand.u32 2147483647, %v8479_v46  ;;  %v8513_v17 = vadd.f32 %v8227_v5, %v8182_v55 }
 0x1e4   :  { %v8460_v33 = vpop.eup %5663  ;;  %v1983_v24 = vmul.f32 %v5662_v34, %v1934_v23  ;;  %v4977_v21 = vpop.f32.mrf.mxu0  ;;  %5687 = vpow2.f32 %v2663_v62  ;;  %v1935_v62 = vsel %vm1886_vm11, 1.0, %v8386_v50  ;;  %v2898_v34 = vsel %vm2849_vm12, 1.0, %v8392_v38 }
 0x1e5   :  { %v5666_v48 = vpop.eup %5665  ;;  %1022 = vst [vmem:[%s9913_s3 + $0x178] sm:$0xff] %v973_v10  ;;  %v3764_v13 = vadd.f32 1.0, %v8460_v33  ;;  %v5085_v29 = vpop.f32.mrf.mxu1  ;;  %5689 = vpow2.f32 %v3674_v45  ;;  %v2610_v23 = vsub.f32 0.0, %v2561_v37  ;;  %vm3861_vm1 = vcmp.ge.f32.partialorder %v8294_v58, 0.0 }
 0x1e6   :  { %4275 = vst [vmem:[%s9913_s3 + $0x300] sm:$0xff] %v1983_v24  ;;  %v974_v27 = vmul.f32 %v5666_v48, %v925_v63  ;;  %v8486_v35 = vpop.f32.mrf.mxu0  ;;  %v8488_v19 = vpop.eup %5667  ;;  %v3621_v48 = vsub.f32 0.0, %v3572_v22  ;;  %v2611_v63 = vsub.f32 0.0, %v2562_v59  ;;  %v3909_v55 = vsel %vm3860_vm0, 1.0, %v8408_v26 }
 0x1e7   :  { %5691 = vrcp.f32 %v3764_v13  ;;  %v8493_v12 = vpop.f32.mrf.mxu1  ;;  %v5670_v20 = vpop.eup %5669  ;;  %v2754_v10 = vadd.f32 1.0, %v8488_v19  ;;  %v8507_v13 = vadd.f32 %v8227_v5, %v8166_v36  ;;  %v2665_v50 = vmul.f32 1.442695, %v2610_v23 }
 0x1e8   :  { %1023 = vst [vmem:[%s9913_s3 + $0x180] sm:$0xff] %v974_v27  ;;  %v4978_v45 = vpop.f32.mrf.mxu0  ;;  %v5672_v24 = vpop.eup %5671  ;;  %v1984_v21 = vmul.f32 %v5670_v20, %v1935_v62  ;;  %v3676_v37 = vmul.f32 1.442695, %v3621_v48  ;;  %v2667_v22 = vmul.f32 1.442695, %v2611_v63  ;;  %vm2851_vm14 = vcmp.ge.f32.partialorder %v8300_v6, 0.0 }
 0x1e9   :  { %v5086_v29 = vpop.f32.mrf.mxu1  ;;  %v8509_v27 = vpop.eup %5673  ;;  %v2947_v41 = vmul.f32 %v5672_v24, %v2898_v34  ;;  %5693 = vrcp.f32 %v2754_v10  ;;  %v3573_v62 = vand.u32 2147483647, %v8507_v13  ;;  %v2563_v34 = vand.u32 2147483647, %v8513_v17 }
 0x1ea   :  { %v8515_v38 = vpop.f32.mrf.mxu0  ;;  %4276 = vst [vmem:[%s9913_s3 + $0x308] sm:$0xff] %v1984_v21  ;;  %v3765_v36 = vadd.f32 1.0, %v8509_v27  ;;  %v5676_v20 = vpop.eup %5675  ;;  %5695 = vpow2.f32 %v2665_v50  ;;  %v8537_v24 = vadd.f32 %v8227_v5, %v8189_v15  ;;  %v2899_v4 = vsel %vm2850_vm13, 1.0, %v8423_v0 }
 0x1eb   :  { %v8522_v59 = vpop.f32.mrf.mxu1  ;;  %4389 = vst [vmem:[%s9913_s3 + $0x310] sm:$0xff] %v2947_v41  ;;  %v8532_v23 = vpop.eup %5677  ;;  %v3958_v45 = vmul.f32 %v5676_v20, %v3909_v55  ;;  %v3622_v63 = vsub.f32 0.0, %v3573_v62  ;;  %v2612_v50 = vsub.f32 0.0, %v2563_v34  ;;  %v3910_v0 = vsel %vm3861_vm1, 1.0, %v8437_v47 }
 0x1ec   :  { %v4981_v10 = vpop.f32.mrf.mxu0  ;;  %5697 = vrcp.f32 %v3765_v36  ;;  %v5680_v48 = vpop.eup %5679  ;;  %v2755_v26 = vadd.f32 1.0, %v8532_v23  ;;  %v3574_v36 = vand.u32 2147483647, %v8537_v24  ;;  %v2900_v34 = vsel %vm2851_vm14, 1.0, %v8442_v16 }
 0x1ed   :  { %v5089_v21 = vpop.f32.mrf.mxu1  ;;  %5699 = vpow2.f32 %v3676_v37  ;;  %v8545_v41 = vpop.eup %5681  ;;  %4550 = vst [vmem:[%s9913_s3 + $0x498] sm:$0xff] %v3958_v45  ;;  %v2948_v15 = vmul.f32 %v5680_v48, %v2899_v4  ;;  %v3678_v55 = vmul.f32 1.442695, %v3622_v63  ;;  %v2669_v45 = vmul.f32 1.442695, %v2612_v50 }
 0x1ee   :  { %v8543_v29 = vpop.f32.mrf.mxu0  ;;  %5701 = vpow2.f32 %v2667_v22  ;;  %v3766_v37 = vadd.f32 1.0, %v8545_v41  ;;  %v3623_v21 = vsub.f32 0.0, %v3574_v36  ;;  %v8567_v4 = vadd.f32 %v8227_v5, %v8206_v25 }
 0x1ef   :  { %v8551_v20 = vpop.f32.mrf.mxu1  ;;  %v5684_v32 = vpop.eup %5683  ;;  %5703 = vrcp.f32 %v2755_v26  ;;  %4390 = vst [vmem:[%s9913_s3 + $0x318] sm:$0xff] %v2948_v15  ;;  %v8571_v26 = vadd.f32 %v8227_v5, %v8213_v39  ;;  %vm3862_vm15 = vcmp.ge.f32.partialorder %v8304_v51, 0.0  ;;  %vm2852_vm2 = vcmp.ge.f32.partialorder %v8346_v14, 0.0 }
 0x1f0   :  { %v4982_v62 = vpop.f32.mrf.mxu0  ;;  %v5686_v10 = vpop.eup %5685  ;;  %v3959_v22 = vmul.f32 %v5684_v32, %v3910_v0  ;;  %5705 = vrcp.f32 %v3766_v37  ;;  %v3680_v16 = vmul.f32 1.442695, %v3623_v21  ;;  %v3911_v39 = vsel %vm3862_vm15, 1.0, %v8460_v33 }
 0x1f1   :  { %v5090_v48 = vpop.f32.mrf.mxu1  ;;  %v8563_v58 = vpop.eup %5687  ;;  %v2949_v47 = vmul.f32 %v5686_v10, %v2900_v34  ;;  %5707 = vpow2.f32 %v3678_v55  ;;  %v2564_v32 = vand.u32 2147483647, %v8567_v4  ;;  %v3575_v37 = vand.u32 2147483647, %v8571_v26 }
 0x1f2   :  { %v8573_v63 = vpop.f32.mrf.mxu0  ;;  %v8575_v15 = vpop.eup %5689  ;;  %4551 = vst [vmem:[%s9913_s3 + $0x4a0] sm:$0xff] %v3959_v22  ;;  %v2756_v6 = vadd.f32 1.0, %v8563_v58  ;;  %5709 = vpow2.f32 %v2669_v45  ;;  %v2901_v62 = vsel %vm2852_vm2, 1.0, %v8488_v19  ;;  %v8595_v33 = vadd.f32 %v8227_v5, %v8240_v30 }
 0x1f3   :  { %v8582_v25 = vpop.f32.mrf.mxu1  ;;  %4391 = vst [vmem:[%s9913_s3 + $0x320] sm:$0xff] %v2949_v47  ;;  %v3767_v36 = vadd.f32 1.0, %v8575_v15  ;;  %v2613_v10 = vsub.f32 0.0, %v2564_v32  ;;  %v3624_v14 = vsub.f32 0.0, %v3575_v37  ;;  %v8604_v45 = vadd.f32 %v8227_v5, %v8250_v52 }
 0x1f4   :  { %v5692_v50 = vpop.eup %5691  ;;  %v4985_v0 = vpop.f32.mrf.mxu0  ;;  %5711 = vrcp.f32 %v2756_v6  ;;  %v8608_v19 = vadd.f32 %v8227_v5, %v8267_v44  ;;  %vm3863_vm3 = vcmp.ge.f32.partialorder %v8369_v53, 0.0  ;;  %v2565_v47 = vand.u32 2147483647, %v8595_v33 }
 0x1f5   :  { %v3960_v51 = vmul.f32 %v5692_v50, %v3911_v39  ;;  %v5093_v55 = vpop.f32.mrf.mxu1  ;;  %5713 = vrcp.f32 %v3767_v36  ;;  %v2671_v48 = vmul.f32 1.442695, %v2613_v10  ;;  %vm2853_vm4 = vcmp.ge.f32.partialorder %v8382_v7, 0.0 }
 0x1f6   :  { %v8597_v22 = vpop.f32.mrf.mxu0  ;;  %v5694_v34 = vpop.eup %5693  ;;  %5715 = vpow2.f32 %v3680_v16  ;;  %vm3864_vm5 = vcmp.ge.f32.partialorder %v8390_v49, 0.0  ;;  %v3682_v52 = vmul.f32 1.442695, %v3624_v14  ;;  %v3576_v16 = vand.u32 2147483647, %v8604_v45 }
 0x1f7   :  { %4552 = vst [vmem:[%s9913_s3 + $0x4a8] sm:$0xff] %v3960_v51  ;;  %v8610_v21 = vpop.f32.mrf.mxu1  ;;  %v2950_v30 = vmul.f32 %v5694_v34, %v2901_v62  ;;  %v8614_v50 = vpop.eup %5695  ;;  %v3912_v53 = vsel %vm3863_vm3, 1.0, %v8509_v27  ;;  %5717 = vpow2.f32 %v2671_v48  ;;  %v2614_v32 = vsub.f32 0.0, %v2565_v47 }
 0x1f8   :  { %v4986_v6 = vpop.f32.mrf.mxu0  ;;  %v2757_v36 = vadd.f32 1.0, %v8614_v50  ;;  %5719 = vpow2.f32 %v3682_v52  ;;  %v3625_v55 = vsub.f32 0.0, %v3576_v16  ;;  %v2566_v62 = vand.u32 2147483647, %v8608_v19 }
 0x1f9   :  { %v5094_v44 = vpop.f32.mrf.mxu1  ;;  %v5698_v39 = vpop.eup %5697  ;;  %4392 = vst [vmem:[%s9913_s3 + $0x328] sm:$0xff] %v2950_v30  ;;  %vm2854_vm6 = vcmp.ge.f32.partialorder %v8413_v9, 0.0  ;;  %v2673_v14 = vmul.f32 1.442695, %v2614_v32  ;;  %v2902_v47 = vsel %vm2853_vm4, 1.0, %v8532_v23  ;;  %v3913_v7 = vsel %vm3864_vm5, 1.0, %v8545_v41 }
 0x1fa   :  { %v8624_v0 = vpop.f32.mrf.mxu0  ;;  %v8626_v51 = vpop.eup %5699  ;;  %v3961_v37 = vmul.f32 %v5698_v39, %v3912_v53  ;;  %5721 = vrcp.f32 %v2757_v36  ;;  %v3684_v52 = vmul.f32 1.442695, %v3625_v55  ;;  %v2615_v16 = vsub.f32 0.0, %v2566_v62 }
 0x1fb   :  { %v8629_v10 = vpop.f32.mrf.mxu1  ;;  %v8631_v34 = vpop.eup %5701  ;;  %v3768_v27 = vadd.f32 1.0, %v8626_v51  ;;  %v8644_v53 = vadd.f32 %v8227_v5, %v8279_v43  ;;  %v8648_v36 = vadd.f32 %v8227_v5, %v8296_v56  ;;  %vm3865_vm7 = vcmp.ge.f32.partialorder %v8417_v40, 0.0 }
 0x1fc   :  { %v4989_v30 = vpop.f32.mrf.mxu0  ;;  %v5704_v48 = vpop.eup %5703  ;;  %4553 = vst [vmem:[%s9913_s3 + $0x4b0] sm:$0xff] %v3961_v37  ;;  %v2758_v6 = vadd.f32 1.0, %v8631_v34  ;;  %v2675_v23 = vmul.f32 1.442695, %v2615_v16  ;;  %v8666_v49 = vadd.f32 %v8227_v5, %v8306_v31  ;;  %vm2855_vm8 = vcmp.ge.f32.partialorder %v8464_v54, 0.0 }
 0x1fd   :  { %v5097_v44 = vpop.f32.mrf.mxu1  ;;  %v2951_v39 = vmul.f32 %v5704_v48, %v2902_v47  ;;  %5723 = vrcp.f32 %v3768_v27  ;;  %v5706_v37 = vpop.eup %5705  ;;  %v3577_v56 = vand.u32 2147483647, %v8644_v53  ;;  %v2903_v30 = vsel %vm2854_vm6, 1.0, %v8563_v58 }
 0x1fe   :  { %v8650_v32 = vpop.f32.mrf.mxu0  ;;  %5725 = vrcp.f32 %v2758_v6  ;;  %v8658_v62 = vpop.eup %5707  ;;  %v3962_v43 = vmul.f32 %v5706_v37, %v3913_v7  ;;  %v2567_v47 = vand.u32 2147483647, %v8648_v36  ;;  %v8681_v44 = vadd.f32 %v8227_v5, %v8325_v60 }
 0x1ff   :  { %v8656_v55 = vpop.f32.mrf.mxu1  ;;  %4393 = vst [vmem:[%s9913_s3 + $0x330] sm:$0xff] %v2951_v39  ;;  %5727 = vpow2.f32 %v2673_v14  ;;  %v8668_v27 = vpop.eup %5709  ;;  %v3769_v48 = vadd.f32 1.0, %v8658_v62  ;;  %v3626_v16 = vsub.f32 0.0, %v3577_v56  ;;  %v3914_v39 = vsel %vm3865_vm7, 1.0, %v8575_v15 }
 0x200   :  { %v4990_v41 = vpop.f32.mrf.mxu0  ;;  %5729 = vpow2.f32 %v3684_v52  ;;  %4554 = vst [vmem:[%s9913_s3 + $0x4b8] sm:$0xff] %v3962_v43  ;;  %v2759_v31 = vadd.f32 1.0, %v8668_v27  ;;  %v2616_v37 = vsub.f32 0.0, %v2567_v47  ;;  %v3578_v60 = vand.u32 2147483647, %v8666_v49 }
 0x201   :  { %v5098_v6 = vpop.f32.mrf.mxu1  ;;  %v5712_v14 = vpop.eup %5711  ;;  %5731 = vpow2.f32 %v2675_v23  ;;  %v3686_v56 = vmul.f32 1.442695, %v3626_v16  ;;  %vm3866_vm9 = vcmp.ge.f32.partialorder %v8468_v42, 0.0  ;;  %vm2856_vm10 = vcmp.ge.f32.partialorder %v8479_v46, 0.0 }
 0x202   :  { %v8683_v9 = vpop.f32.mrf.mxu0  ;;  %v5714_v58 = vpop.eup %5713  ;;  %v2952_v52 = vmul.f32 %v5712_v14, %v2903_v30  ;;  %5733 = vrcp.f32 %v3769_v48  ;;  %v2677_v15 = vmul.f32 1.442695, %v2616_v37  ;;  %v3627_v48 = vsub.f32 0.0, %v3578_v60 }
 0x203   :  { %v8688_v7 = vpop.f32.mrf.mxu1  ;;  %v8690_v43 = vpop.eup %5715  ;;  %v3963_v23 = vmul.f32 %v5714_v58, %v3914_v39  ;;  %5735 = vrcp.f32 %v2759_v31  ;;  %v2568_v47 = vand.u32 2147483647, %v8681_v44  ;;  %vm3867_vm11 = vcmp.ge.f32.partialorder %v8507_v13, 0.0 }
 0x204   :  { %v4993_v41 = vpop.f32.mrf.mxu0  ;;  %4394 = vst [vmem:[%s9913_s3 + $0x338] sm:$0xff] %v2952_v52  ;;  %v3770_v40 = vadd.f32 1.0, %v8690_v43  ;;  %5737 = vpow2.f32 %v3686_v56  ;;  %v8706_v14 = vpop.eup %5717  ;;  %v8711_v31 = vadd.f32 %v8227_v5, %v8333_v8  ;;  %v8715_v16 = vadd.f32 %v8227_v5, %v8348_v3 }
 0x205   :  { %v5101_v30 = vpop.f32.mrf.mxu1  ;;  %4555 = vst [vmem:[%s9913_s3 + $0x4c0] sm:$0xff] %v3963_v23  ;;  %v8719_v52 = vpop.eup %5719  ;;  %v2760_v39 = vadd.f32 1.0, %v8706_v14  ;;  %v3688_v37 = vmul.f32 1.442695, %v3627_v48  ;;  %v8724_v23 = vadd.f32 %v8227_v5, %v8357_v11  ;;  %v2904_v8 = vsel %vm2855_vm8, 1.0, %v8614_v50 }
 0x206   :  { %v8704_v6 = vpop.f32.mrf.mxu0  ;;  %5739 = vrcp.f32 %v3770_v40  ;;  %v3771_v3 = vadd.f32 1.0, %v8719_v52  ;;  %v2617_v41 = vsub.f32 0.0, %v2568_v47  ;;  %v3579_v40 = vand.u32 2147483647, %v8711_v31 }
 0x207   :  { %9916 = vst [vmem:[#allocation4_spill] sm:$0xff] %v8704_v6  ;;  %v8717_v58 = vpop.f32.mrf.mxu1  ;;  %5741 = vpow2.f32 %v2677_v15  ;;  %v5722_v60 = vpop.eup %5721  ;;  %v3915_v15 = vsel %vm3866_vm9, 1.0, %v8626_v51  ;;  %v2569_v11 = vand.u32 2147483647, %v8715_v16  ;;  %v2905_v54 = vsel %vm2856_vm10, 1.0, %v8631_v34 }
 0x208   :  { %9917 = vst [vmem:[#allocation5_spill] sm:$0xff] %v8717_v58  ;;  %v4994_v56 = vpop.f32.mrf.mxu0  ;;  %v2953_v58 = vmul.f32 %v5722_v60, %v2904_v8  ;;  %5743 = vrcp.f32 %v2760_v39  ;;  %v2679_v50 = vmul.f32 1.442695, %v2617_v41  ;;  %v3628_v47 = vsub.f32 0.0, %v3579_v40 }
 0x209   :  { %v5102_v30 = vpop.f32.mrf.mxu1  ;;  %5745 = vrcp.f32 %v3771_v3  ;;  %v2618_v51 = vsub.f32 0.0, %v2569_v11  ;;  %v3580_v39 = vand.u32 2147483647, %v8724_v23  ;;  %vm2857_vm12 = vcmp.ge.f32.partialorder %v8513_v17, 0.0 }
 0x20a   :  { %v8735_v48 = vpop.f32.mrf.mxu0  ;;  %v5724_v56 = vpop.eup %5723  ;;  %4395 = vst [vmem:[%s9913_s3 + $0x340] sm:$0xff] %v2953_v58  ;;  %5747 = vpow2.f32 %v3688_v37  ;;  %v3690_v34 = vmul.f32 1.442695, %v3628_v47  ;;  %vm3868_vm0 = vcmp.ge.f32.partialorder %v8537_v24, 0.0  ;;  %vm2858_vm13 = vcmp.ge.f32.partialorder %v8567_v4, 0.0 }
 0x20b   :  { %v8740_v6 = vpop.f32.mrf.mxu1  ;;  %v5726_v60 = vpop.eup %5725  ;;  %v3964_v42 = vmul.f32 %v5724_v56, %v3915_v15  ;;  %5749 = vpow2.f32 %v2679_v50  ;;  %v3629_v37 = vsub.f32 0.0, %v3580_v39  ;;  %v2681_v56 = vmul.f32 1.442695, %v2618_v51 }
 0x20c   :  { %v4997_v8 = vpop.f32.mrf.mxu0  ;;  %v8746_v30 = vpop.eup %5727  ;;  %v2954_v46 = vmul.f32 %v5726_v60, %v2905_v54  ;;  %5751 = vpow2.f32 %v3690_v34  ;;  %v8767_v54 = vadd.f32 %v8227_v5, %v8373_v1  ;;  %v3916_v60 = vsel %vm3867_vm11, 1.0, %v8658_v62 }
 0x20d   :  { %v5105_v3 = vpop.f32.mrf.mxu1  ;;  %v8749_v41 = vpop.eup %5729  ;;  %4556 = vst [vmem:[%s9913_s3 + $0x4c8] sm:$0xff] %v3964_v42  ;;  %v2761_v58 = vadd.f32 1.0, %v8746_v30  ;;  %v3692_v39 = vmul.f32 1.442695, %v3629_v37  ;;  %v2906_v51 = vsel %vm2857_vm12, 1.0, %v8668_v27  ;;  %v8781_v13 = vadd.f32 %v8227_v5, %v8384_v18 }
 0x20e   :  { %v8757_v40 = vpop.f32.mrf.mxu0  ;;  %v8759_v15 = vpop.eup %5731  ;;  %4396 = vst [vmem:[%s9913_s3 + $0x348] sm:$0xff] %v2954_v46  ;;  %v3772_v11 = vadd.f32 1.0, %v8749_v41  ;;  %v2570_v1 = vand.u32 2147483647, %v8767_v54  ;;  %v8785_v62 = vadd.f32 %v8227_v5, %v8403_v57  ;;  %vm3869_vm1 = vcmp.ge.f32.partialorder %v8571_v26, 0.0 }
 0x20f   :  { %v8769_v50 = vpop.f32.mrf.mxu1  ;;  %v5734_v47 = vpop.eup %5733  ;;  %5753 = vrcp.f32 %v2761_v58  ;;  %v2762_v42 = vadd.f32 1.0, %v8759_v15  ;;  %v8798_v18 = vld [vmem:[%s9912_s2] ss:$0 sm:$0xff]  ;;  %vm2859_vm14 = vcmp.ge.f32.partialorder %v8595_v33, 0.0  ;;  %vm3870_vm15 = vcmp.ge.f32.partialorder %v8604_v45, 0.0 }
 0x210   :  { %9918 = vst [vmem:[#allocation6_spill] sm:$0xff] %v8769_v50  ;;  %v4998_v8 = vpop.f32.mrf.mxu0  ;;  %v5736_v46 = vpop.eup %5735  ;;  %v3965_v3 = vmul.f32 %v5734_v47, %v3916_v60  ;;  %5755 = vrcp.f32 %v3772_v11  ;;  %v2619_v17 = vsub.f32 0.0, %v2570_v1  ;;  %v8802_v5 = vadd.f32 %v8798_v18, %v8406_v61 }
 0x211   :  { %v5106_v34 = vpop.f32.mrf.mxu1  ;;  %v2955_v50 = vmul.f32 %v5736_v46, %v2906_v51  ;;  %5757 = vrcp.f32 %v2762_v42  ;;  %v8789_v37 = vpop.eup %5737  ;;  %v3917_v11 = vsel %vm3868_vm0, 1.0, %v8690_v43  ;;  %v3581_v47 = vand.u32 2147483647, %v8781_v13 }
 0x212   :  { %v8787_v58 = vpop.f32.mrf.mxu0  ;;  %4557 = vst [vmem:[%s9913_s3 + $0x4d0] sm:$0xff] %v3965_v3  ;;  %5759 = vpow2.f32 %v2681_v56  ;;  %v3773_v56 = vadd.f32 1.0, %v8789_v37  ;;  %v2683_v8 = vmul.f32 1.442695, %v2619_v17  ;;  %v2571_v46 = vand.u32 2147483647, %v8785_v62 }
 0x213   :  { %v8804_v57 = vpop.f32.mrf.mxu1  ;;  %v5740_v27 = vpop.eup %5739  ;;  %4397 = vst [vmem:[%s9913_s3 + $0x350] sm:$0xff] %v2955_v50  ;;  %5761 = vpow2.f32 %v3692_v39  ;;  %v9920_v3 = vld [vmem:[#allocation2_spill] sm:$0xff]  ;;  %v3630_v43 = vsub.f32 0.0, %v3581_v47  ;;  %v2907_v34 = vsel %vm2858_vm13, 1.0, %v8706_v14  ;;  %v3918_v47 = vsel %vm3869_vm1, 1.0, %v8719_v52 }
 0x214   :  { %9919 = vst [vmem:[#allocation7_spill] sm:$0xff] %v8804_v57  ;;  %v5001_v60 = vpop.f32.mrf.mxu0  ;;  %v8814_v42 = vpop.eup %5741  ;;  %v3966_v61 = vmul.f32 %v5740_v27, %v3917_v11  ;;  %v8819_v51 = vadd.f32 %v8798_v18, %v9920_v3  ;;  %5763 = vrcp.f32 %v3773_v56  ;;  %v2620_v17 = vsub.f32 0.0, %v2571_v46 }
 0x215   :  { %v5109_v50 = vpop.f32.mrf.mxu1  ;;  %v2763_v24 = vadd.f32 1.0, %v8814_v42  ;;  %v5744_v1 = vpop.eup %5743  ;;  %5765 = vpow2.f32 %v2683_v8  ;;  %v3582_v27 = vand.u32 2147483647, %v8802_v5  ;;  %v3694_v3 = vmul.f32 1.442695, %v3630_v43 }
 0x216   :  { %v8823_v39 = vpop.f32.mrf.mxu0  ;;  %4558 = vst [vmem:[%s9913_s3 + $0x4d8] sm:$0xff] %v3966_v61  ;;  %v5746_v56 = vpop.eup %5745  ;;  %v2956_v60 = vmul.f32 %v5744_v1, %v2907_v34  ;;  %v2685_v4 = vmul.f32 1.442695, %v2620_v17  ;;  %v2572_v8 = vand.u32 2147483647, %v8819_v51  ;;  %vm2860_vm2 = vcmp.ge.f32.partialorder %v8608_v19, 0.0 }
 0x217   :  { %9921 = vst [vmem:[#allocation2_spill] sm:$0xff] %v8823_v39  ;;  %v8832_v11 = vpop.f32.mrf.mxu1  ;;  %5767 = vrcp.f32 %v2763_v24  ;;  %v8837_v61 = vpop.eup %5747  ;;  %v3967_v39 = vmul.f32 %v5746_v56, %v3918_v47  ;;  %v3631_v14 = vsub.f32 0.0, %v3582_v27  ;;  %v2908_v24 = vsel %vm2859_vm14, 1.0, %v8746_v30  ;;  %v9922_v56 = vld [vmem:[#allocation3_spill] sm:$0xff] }
 0x218   :  { %v5002_v50 = vpop.f32.mrf.mxu0  ;;  %v8840_v57 = vpop.eup %5749  ;;  %4398 = vst [vmem:[%s9913_s3 + $0x358] sm:$0xff] %v2956_v60  ;;  %v3774_v26 = vadd.f32 1.0, %v8837_v61  ;;  %5769 = vpow2.f32 %v3694_v3  ;;  %v2621_v27 = vsub.f32 0.0, %v2572_v8  ;;  %v8863_v60 = vadd.f32 %v8798_v18, %v9922_v56 }
 0x219   :  { %v5110_v46 = vpop.f32.mrf.mxu1  ;;  %4559 = vst [vmem:[%s9913_s3 + $0x4e0] sm:$0xff] %v3967_v39  ;;  %v2764_v43 = vadd.f32 1.0, %v8840_v57  ;;  %5771 = vpow2.f32 %v2685_v4  ;;  %v3696_v1 = vmul.f32 1.442695, %v3631_v14  ;;  %v8859_v17 = vpop.eup %5751  ;;  %v8867_v39 = vadd.f32 %v8798_v18, %v8453_v28 }
 0x21a   :  { %v8848_v52 = vpop.f32.mrf.mxu0  ;;  %5773 = vrcp.f32 %v3774_v26  ;;  %v3919_v47 = vsel %vm3870_vm15, 1.0, %v8749_v41  ;;  %v3775_v3 = vadd.f32 1.0, %v8859_v17  ;;  %v8875_v50 = vadd.f32 %v8798_v18, %v8458_v2 }
 0x21b   :  { %v8857_v34 = vpop.f32.mrf.mxu1  ;;  %5775 = vrcp.f32 %v2764_v43  ;;  %v2687_v46 = vmul.f32 1.442695, %v2621_v27  ;;  %v3583_v28 = vand.u32 2147483647, %v8863_v60  ;;  %v2909_v45 = vsel %vm2860_vm2, 1.0, %v8759_v15 }
 0x21c   :  { %v5005_v33 = vpop.f32.mrf.mxu0  ;;  %v5754_v30 = vpop.eup %5753  ;;  %5777 = vpow2.f32 %v3696_v1  ;;  %v2573_v41 = vand.u32 2147483647, %v8867_v39  ;;  %vm3871_vm3 = vcmp.ge.f32.partialorder %v8644_v53, 0.0  ;;  %vm2861_vm4 = vcmp.ge.f32.partialorder %v8648_v36, 0.0 }
 0x21d   :  { %v5113_v4 = vpop.f32.mrf.mxu1  ;;  %v5756_v14 = vpop.eup %5755  ;;  %v2957_v8 = vmul.f32 %v5754_v30, %v2908_v24  ;;  %5779 = vrcp.f32 %v3775_v3  ;;  %v3632_v1 = vsub.f32 0.0, %v3583_v28  ;;  %v3920_v53 = vsel %vm3871_vm3, 1.0, %v8789_v37 }
 0x21e   :  { %v8878_v26 = vpop.f32.mrf.mxu0  ;;  %v5758_v56 = vpop.eup %5757  ;;  %v3968_v33 = vmul.f32 %v5756_v14, %v3919_v47  ;;  %5781 = vpow2.f32 %v2687_v46  ;;  %v2622_v15 = vsub.f32 0.0, %v2573_v41  ;;  %v3584_v47 = vand.u32 2147483647, %v8875_v50 }
 0x21f   :  { %v8884_v2 = vpop.f32.mrf.mxu1  ;;  %v8886_v43 = vpop.eup %5759  ;;  %4399 = vst [vmem:[%s9913_s3 + $0x360] sm:$0xff] %v2957_v8  ;;  %v2958_v24 = vmul.f32 %v5758_v56, %v2909_v45  ;;  %vm3872_vm5 = vcmp.ge.f32.partialorder %v8666_v49, 0.0  ;;  %v3698_v14 = vmul.f32 1.442695, %v3632_v1  ;;  %v8922_v1 = vadd.f32 %v8798_v18, %v8515_v38 }
 0x220   :  { %9923 = vst [vmem:[#allocation3_spill] sm:$0xff] %v8884_v2  ;;  %v5006_v27 = vpop.f32.mrf.mxu0  ;;  %v8892_v30 = vpop.eup %5761  ;;  %4560 = vst [vmem:[%s9913_s3 + $0x4e8] sm:$0xff] %v3968_v33  ;;  %v2765_v19 = vadd.f32 1.0, %v8886_v43  ;;  %v2689_v28 = vmul.f32 1.442695, %v2622_v15  ;;  %v3633_v56 = vsub.f32 0.0, %v3584_v47  ;;  %v8910_v33 = vadd.f32 %v8798_v18, %v8486_v35 }
 0x221   :  { %v5114_v3 = vpop.f32.mrf.mxu1  ;;  %4400 = vst [vmem:[%s9913_s3 + $0x368] sm:$0xff] %v2958_v24  ;;  %v3776_v4 = vadd.f32 1.0, %v8892_v30  ;;  %v5764_v46 = vpop.eup %5763  ;;  %v8918_v24 = vadd.f32 %v8798_v18, %v8493_v12  ;;  %v2910_v35 = vsel %vm2861_vm4, 1.0, %v8814_v42  ;;  %vm2862_vm6 = vcmp.ge.f32.partialorder %v8681_v44, 0.0 }
 0x222   :  { %v8906_v8 = vpop.f32.mrf.mxu0  ;;  %5783 = vrcp.f32 %v2765_v19  ;;  %v8914_v41 = vpop.eup %5765  ;;  %v3969_v37 = vmul.f32 %v5764_v46, %v3920_v53  ;;  %v3700_v47 = vmul.f32 1.442695, %v3633_v56  ;;  %v2574_v38 = vand.u32 2147483647, %v8910_v33 }
 0x223   :  { %9924 = vst [vmem:[#allocation8_spill] sm:$0xff] %v8906_v8  ;;  %v8912_v45 = vpop.f32.mrf.mxu1  ;;  %5785 = vrcp.f32 %v3776_v4  ;;  %v2766_v15 = vadd.f32 1.0, %v8914_v41  ;;  %vm3873_vm7 = vcmp.ge.f32.partialorder %v8711_v31, 0.0  ;;  %v3585_v36 = vand.u32 2147483647, %v8918_v24 }
 0x224   :  { %9925 = vst [vmem:[#allocation9_spill] sm:$0xff] %v8912_v45  ;;  %v5009_v27 = vpop.f32.mrf.mxu0  ;;  %v5768_v19 = vpop.eup %5767  ;;  %5787 = vpow2.f32 %v3698_v14  ;;  %4561 = vst [vmem:[%s9913_s3 + $0x4f0] sm:$0xff] %v3969_v37  ;;  %v2575_v42 = vand.u32 2147483647, %v8922_v1  ;;  %vm2863_vm8 = vcmp.ge.f32.partialorder %v8715_v16, 0.0  ;;  %v2623_v56 = vsub.f32 0.0, %v2574_v38 }
 0x225   :  { %v5117_v3 = vpop.f32.mrf.mxu1  ;;  %v2959_v12 = vmul.f32 %v5768_v19, %v2910_v35  ;;  %5789 = vpow2.f32 %v2689_v28  ;;  %v8935_v4 = vpop.eup %5769  ;;  %v3921_v19 = vsel %vm3872_vm5, 1.0, %v8837_v61  ;;  %v3922_v44 = vsel %vm3873_vm7, 1.0, %v8859_v17 }
 0x226   :  { %v8933_v53 = vpop.f32.mrf.mxu0  ;;  %5791 = vrcp.f32 %v2766_v15  ;;  %v8942_v46 = vpop.eup %5771  ;;  %v3777_v28 = vadd.f32 1.0, %v8935_v4  ;;  %v3634_v15 = vsub.f32 0.0, %v3585_v36  ;;  %v2624_v3 = vsub.f32 0.0, %v2575_v42 }
 0x227   :  { %9926 = vst [vmem:[#allocation10_spill] sm:$0xff] %v8933_v53  ;;  %v8940_v14 = vpop.f32.mrf.mxu1  ;;  %4401 = vst [vmem:[%s9913_s3 + $0x370] sm:$0xff] %v2959_v12  ;;  %5793 = vpow2.f32 %v3700_v47  ;;  %v5774_v27 = vpop.eup %5773  ;;  %v2767_v35 = vadd.f32 1.0, %v8942_v46  ;;  %v2911_v12 = vsel %vm2862_vm6, 1.0, %v8840_v57  ;;  %v2691_v47 = vmul.f32 1.442695, %v2623_v56 }
 0x228   :  { %9927 = vst [vmem:[#allocation11_spill] sm:$0xff] %v8940_v14  ;;  %v5010_v37 = vpop.f32.mrf.mxu0  ;;  %v5776_v53 = vpop.eup %5775  ;;  %v3970_v45 = vmul.f32 %v5774_v27, %v3921_v19  ;;  %5795 = vrcp.f32 %v3777_v28  ;;  %v3702_v49 = vmul.f32 1.442695, %v3634_v15  ;;  %v2693_v61 = vmul.f32 1.442695, %v2624_v3 }
 0x229   :  { %v5118_v14 = vpop.f32.mrf.mxu1  ;;  %v8958_v37 = vpop.eup %5777  ;;  %v2960_v8 = vmul.f32 %v5776_v53, %v2911_v12  ;;  %5797 = vrcp.f32 %v2767_v35  ;;  %v8971_v53 = vadd.f32 %v8798_v18, %v8522_v59  ;;  %v8980_v31 = vadd.f32 %v8798_v18, %v8543_v29 }
 0x22a   :  { %v8956_v38 = vpop.f32.mrf.mxu0  ;;  %v5780_v36 = vpop.eup %5779  ;;  %4562 = vst [vmem:[%s9913_s3 + $0x4f8] sm:$0xff] %v3970_v45  ;;  %v3778_v57 = vadd.f32 1.0, %v8958_v37  ;;  %5799 = vpow2.f32 %v2691_v47  ;;  %v8984_v17 = vadd.f32 %v8798_v18, %v8551_v20  ;;  %vm3874_vm9 = vcmp.ge.f32.partialorder %v8724_v23, 0.0 }
 0x22b   :  { %v8960_v2 = vpop.f32.mrf.mxu1  ;;  %v8973_v14 = vpop.eup %5781  ;;  %4402 = vst [vmem:[%s9913_s3 + $0x378] sm:$0xff] %v2960_v8  ;;  %v3971_v28 = vmul.f32 %v5780_v36, %v3922_v44  ;;  %5801 = vpow2.f32 %v3702_v49  ;;  %v3586_v56 = vand.u32 2147483647, %v8971_v53  ;;  %vm2864_vm10 = vcmp.ge.f32.partialorder %v8767_v54, 0.0 }
 0x22c   :  { %v5013_v42 = vpop.f32.mrf.mxu0  ;;  %5803 = vrcp.f32 %v3778_v57  ;;  %v2768_v59 = vadd.f32 1.0, %v8973_v14  ;;  %vm3875_vm11 = vcmp.ge.f32.partialorder %v8781_v13, 0.0  ;;  %v2576_v29 = vand.u32 2147483647, %v8980_v31 }
 0x22d   :  { %v5121_v45 = vpop.f32.mrf.mxu1  ;;  %4563 = vst [vmem:[%s9913_s3 + $0x500] sm:$0xff] %v3971_v28  ;;  %5805 = vpow2.f32 %v2693_v61  ;;  %v2912_v19 = vsel %vm2863_vm8, 1.0, %v8886_v43  ;;  %v3635_v35 = vsub.f32 0.0, %v3586_v56  ;;  %v3587_v15 = vand.u32 2147483647, %v8984_v17 }
 0x22e   :  { %v8989_v27 = vpop.f32.mrf.mxu0  ;;  %5807 = vrcp.f32 %v2768_v59  ;;  %v3923_v49 = vsel %vm3874_vm9, 1.0, %v8892_v30  ;;  %v2625_v61 = vsub.f32 0.0, %v2576_v29  ;;  %v9008_v36 = vadd.f32 %v8798_v18, %v8573_v63 }
 0x22f   :  { %v8997_v20 = vpop.f32.mrf.mxu1  ;;  %v5784_v8 = vpop.eup %5783  ;;  %v3704_v43 = vmul.f32 1.442695, %v3635_v35  ;;  %v3636_v42 = vsub.f32 0.0, %v3587_v15  ;;  %v9014_v28 = vadd.f32 %v8798_v18, %v8582_v25  ;;  %v9027_v56 = vadd.f32 %v8798_v18, %v8597_v22 }
 0x230   :  { %v5014_v3 = vpop.f32.mrf.mxu0  ;;  %v5786_v12 = vpop.eup %5785  ;;  %v2961_v47 = vmul.f32 %v5784_v8, %v2912_v19  ;;  %v2695_v23 = vmul.f32 1.442695, %v2625_v61  ;;  %v2577_v30 = vand.u32 2147483647, %v9008_v36  ;;  %v2913_v8 = vsel %vm2864_vm10, 1.0, %v8914_v41 }
 0x231   :  { %v5122_v44 = vpop.f32.mrf.mxu1  ;;  %v9010_v57 = vpop.eup %5787  ;;  %v3972_v16 = vmul.f32 %v5786_v12, %v3923_v49  ;;  %vm2865_vm12 = vcmp.ge.f32.partialorder %v8785_v62, 0.0  ;;  %5809 = vpow2.f32 %v3704_v43  ;;  %v3706_v3 = vmul.f32 1.442695, %v3636_v42 }
 0x232   :  { %v9016_v45 = vpop.f32.mrf.mxu0  ;;  %v9018_v59 = vpop.eup %5789  ;;  %4403 = vst [vmem:[%s9913_s3 + $0x380] sm:$0xff] %v2961_v47  ;;  %v3779_v63 = vadd.f32 1.0, %v9010_v57  ;;  %v2626_v12 = vsub.f32 0.0, %v2577_v30  ;;  %vm3876_vm0 = vcmp.ge.f32.partialorder %v8802_v5, 0.0  ;;  %v3588_v54 = vand.u32 2147483647, %v9014_v28 }
 0x233   :  { %v9029_v29 = vpop.f32.mrf.mxu1  ;;  %v5792_v25 = vpop.eup %5791  ;;  %4564 = vst [vmem:[%s9913_s3 + $0x508] sm:$0xff] %v3972_v16  ;;  %v2769_v19 = vadd.f32 1.0, %v9018_v59  ;;  %v3924_v44 = vsel %vm3875_vm11, 1.0, %v8935_v4  ;;  %v2578_v43 = vand.u32 2147483647, %v9027_v56  ;;  %v9062_v4 = vadd.f32 %v8798_v18, %v8610_v21 }
 0x234   :  { %v5017_v35 = vpop.f32.mrf.mxu0  ;;  %v9039_v15 = vpop.eup %5793  ;;  %v2962_v22 = vmul.f32 %v5792_v25, %v2913_v8  ;;  %5811 = vrcp.f32 %v3779_v63  ;;  %v2697_v16 = vmul.f32 1.442695, %v2626_v12  ;;  %v2914_v25 = vsel %vm2865_vm12, 1.0, %v8942_v46 }
 0x235   :  { %v5125_v47 = vpop.f32.mrf.mxu1  ;;  %5813 = vrcp.f32 %v2769_v19  ;;  %v3780_v49 = vadd.f32 1.0, %v9039_v15  ;;  %v5796_v61 = vpop.eup %5795  ;;  %v3637_v8 = vsub.f32 0.0, %v3588_v54  ;;  %v2627_v13 = vsub.f32 0.0, %v2578_v43 }
 0x236   :  { %v9044_v41 = vpop.f32.mrf.mxu0  ;;  %4404 = vst [vmem:[%s9913_s3 + $0x388] sm:$0xff] %v2962_v22  ;;  %5815 = vpow2.f32 %v2695_v23  ;;  %v5798_v63 = vpop.eup %5797  ;;  %v3973_v30 = vmul.f32 %v5796_v61, %v3924_v44  ;;  %vm2866_vm13 = vcmp.ge.f32.partialorder %v8819_v51, 0.0  ;;  %v3925_v21 = vsel %vm3876_vm0, 1.0, %v8958_v37 }
 0x237   :  { %v9053_v42 = vpop.f32.mrf.mxu1  ;;  %5817 = vrcp.f32 %v3780_v49  ;;  %v9058_v35 = vpop.eup %5799  ;;  %v2963_v22 = vmul.f32 %v5798_v63, %v2914_v25  ;;  %v3708_v46 = vmul.f32 1.442695, %v3637_v8  ;;  %vm3877_vm1 = vcmp.ge.f32.partialorder %v8863_v60, 0.0 }
 0x238   :  { %v5018_v19 = vpop.f32.mrf.mxu0  ;;  %5819 = vpow2.f32 %v3706_v3  ;;  %v9064_v12 = vpop.eup %5801  ;;  %4565 = vst [vmem:[%s9913_s3 + $0x510] sm:$0xff] %v3973_v30  ;;  %v2770_v62 = vadd.f32 1.0, %v9058_v35  ;;  %v3589_v54 = vand.u32 2147483647, %v9062_v4  ;;  %v2699_v43 = vmul.f32 1.442695, %v2627_v13 }
 0x239   :  { %v5126_v23 = vpop.f32.mrf.mxu1  ;;  %5821 = vpow2.f32 %v2697_v16  ;;  %v5804_v3 = vpop.eup %5803  ;;  %4405 = vst [vmem:[%s9913_s3 + $0x390] sm:$0xff] %v2963_v22  ;;  %v3781_v49 = vadd.f32 1.0, %v9064_v12  ;;  %v9088_v63 = vadd.f32 %v8798_v18, %v8624_v0  ;;  %v2915_v37 = vsel %vm2866_vm13, 1.0, %v8973_v14 }
 0x23a   :  { %v9071_v47 = vpop.f32.mrf.mxu0  ;;  %v9084_v44 = vpop.eup %5805  ;;  %v3974_v16 = vmul.f32 %v5804_v3, %v3925_v21  ;;  %5823 = vrcp.f32 %v2770_v62  ;;  %v3638_v8 = vsub.f32 0.0, %v3589_v54  ;;  %vm2867_vm14 = vcmp.ge.f32.partialorder %v8867_v39, 0.0 }
 0x23b   :  { %v9082_v61 = vpop.f32.mrf.mxu1  ;;  %v5808_v5 = vpop.eup %5807  ;;  %5825 = vrcp.f32 %v3781_v49  ;;  %v2771_v25 = vadd.f32 1.0, %v9084_v44  ;;  %v2579_v0 = vand.u32 2147483647, %v9088_v63  ;;  %v9103_v14 = vadd.f32 %v8798_v18, %v8629_v10 }
 0x23c   :  { %v5021_v30 = vpop.f32.mrf.mxu0  ;;  %4566 = vst [vmem:[%s9913_s3 + $0x518] sm:$0xff] %v3974_v16  ;;  %v2964_v22 = vmul.f32 %v5808_v5, %v2915_v37  ;;  %5827 = vpow2.f32 %v3708_v46  ;;  %v3710_v51 = vmul.f32 1.442695, %v3638_v8  ;;  %v9107_v23 = vadd.f32 %v8798_v18, %v8650_v32 }
 0x23d   :  { %v5129_v19 = vpop.f32.mrf.mxu1  ;;  %5829 = vrcp.f32 %v2771_v25  ;;  %v2628_v46 = vsub.f32 0.0, %v2579_v0  ;;  %v9116_v3 = vadd.f32 %v8798_v18, %v8656_v55  ;;  %v9120_v10 = vadd.f32 %v8798_v18, %v8683_v9 }
 0x23e   :  { %v9099_v13 = vpop.f32.mrf.mxu0  ;;  %4406 = vst [vmem:[%s9913_s3 + $0x398] sm:$0xff] %v2964_v22  ;;  %5831 = vpow2.f32 %v2699_v43  ;;  %v9122_v49 = vpop.eup %5809  ;;  %vm3878_vm15 = vcmp.ge.f32.partialorder %v8875_v50, 0.0  ;;  %v3590_v32 = vand.u32 2147483647, %v9103_v14  ;;  %v2580_v54 = vand.u32 2147483647, %v9107_v23 }
 0x23f   :  { %v9109_v62 = vpop.f32.mrf.mxu1  ;;  %5833 = vpow2.f32 %v3710_v51  ;;  %v3926_v55 = vsel %vm3877_vm1, 1.0, %v9010_v57  ;;  %v2916_v9 = vsel %vm2867_vm14, 1.0, %v9018_v59  ;;  %v3782_v30 = vadd.f32 1.0, %v9122_v49 }
 0x240   :  { %v5022_v21 = vpop.f32.mrf.mxu0  ;;  %v2701_v5 = vmul.f32 1.442695, %v2628_v46  ;;  %v3639_v19 = vsub.f32 0.0, %v3590_v32  ;;  %v2629_v22 = vsub.f32 0.0, %v2580_v54  ;;  %v3591_v0 = vand.u32 2147483647, %v9116_v3 }
 0x241   :  { %v5130_v16 = vpop.f32.mrf.mxu1  ;;  %v5812_v43 = vpop.eup %5811  ;;  %vm2868_vm2 = vcmp.ge.f32.partialorder %v8910_v33, 0.0  ;;  %5835 = vrcp.f32 %v3782_v30  ;;  %v2581_v39 = vand.u32 2147483647, %v9120_v10  ;;  %v3927_v46 = vsel %vm3878_vm15, 1.0, %v9039_v15 }
 0x242   :  { %v9134_v37 = vpop.f32.mrf.mxu0  ;;  %v5814_v25 = vpop.eup %5813  ;;  %v3975_v8 = vmul.f32 %v5812_v43, %v3926_v55  ;;  %5837 = vpow2.f32 %v2701_v5  ;;  %v3712_v54 = vmul.f32 1.442695, %v3639_v19  ;;  %vm3879_vm3 = vcmp.ge.f32.partialorder %v8918_v24, 0.0 }
 0x243   :  { %v9137_v51 = vpop.f32.mrf.mxu1  ;;  %v9139_v21 = vpop.eup %5815  ;;  %v2965_v60 = vmul.f32 %v5814_v25, %v2916_v9  ;;  %v3640_v9 = vsub.f32 0.0, %v3591_v0  ;;  %v2630_v30 = vsub.f32 0.0, %v2581_v39  ;;  %vm2869_vm4 = vcmp.ge.f32.partialorder %v8922_v1, 0.0 }
 0x244   :  { %v5025_v57 = vpop.f32.mrf.mxu0  ;;  %v5818_v59 = vpop.eup %5817  ;;  %4567 = vst [vmem:[%s9913_s3 + $0x520] sm:$0xff] %v3975_v8  ;;  %v2772_v32 = vadd.f32 1.0, %v9139_v21  ;;  %v2703_v5 = vmul.f32 1.442695, %v2629_v22  ;;  %v2917_v19 = vsel %vm2868_vm2, 1.0, %v9058_v35  ;;  %v9173_v22 = vadd.f32 %v8798_v18, %v8688_v7 }
 0x245   :  { %v5133_v16 = vpop.f32.mrf.mxu1  ;;  %v9150_v43 = vpop.eup %5819  ;;  %4407 = vst [vmem:[%s9913_s3 + $0x3a0] sm:$0xff] %v2965_v60  ;;  %v3976_v55 = vmul.f32 %v5818_v59, %v3927_v46  ;;  %v3714_v60 = vmul.f32 1.442695, %v3640_v9  ;;  %v2705_v59 = vmul.f32 1.442695, %v2630_v30  ;;  %v9928_v46 = vld [vmem:[#allocation4_spill] sm:$0xff] }
 0x246   :  { %v9156_v25 = vpop.f32.mrf.mxu0  ;;  %v9158_v50 = vpop.eup %5821  ;;  %5839 = vrcp.f32 %v2772_v32  ;;  %v3783_v15 = vadd.f32 1.0, %v9150_v43  ;;  %v9177_v32 = vadd.f32 %v8798_v18, %v9928_v46  ;;  %v3928_v35 = vsel %vm3879_vm3, 1.0, %v9064_v12 }
 0x247   :  { %v9162_v8 = vpop.f32.mrf.mxu1  ;;  %4568 = vst [vmem:[%s9913_s3 + $0x528] sm:$0xff] %v3976_v55  ;;  %v2773_v0 = vadd.f32 1.0, %v9158_v50  ;;  %5841 = vpow2.f32 %v3712_v54  ;;  %v5824_v57 = vpop.eup %5823  ;;  %v2918_v54 = vsel %vm2869_vm4, 1.0, %v9084_v44  ;;  %v9203_v44 = vadd.f32 %v8798_v18, %v8735_v48 }
 0x248   :  { %v5026_v39 = vpop.f32.mrf.mxu0  ;;  %5843 = vrcp.f32 %v3783_v15  ;;  %v5826_v55 = vpop.eup %5825  ;;  %v2966_v33 = vmul.f32 %v5824_v57, %v2917_v19  ;;  %v3592_v15 = vand.u32 2147483647, %v9173_v22  ;;  %v2582_v12 = vand.u32 2147483647, %v9177_v32 }
 0x249   :  { %v5134_v16 = vpop.f32.mrf.mxu1  ;;  %5845 = vrcp.f32 %v2773_v0  ;;  %v9187_v7 = vpop.eup %5827  ;;  %v3977_v30 = vmul.f32 %v5826_v55, %v3928_v35  ;;  %v9929_v39 = vld [vmem:[#allocation5_spill] sm:$0xff]  ;;  %vm3880_vm5 = vcmp.ge.f32.partialorder %v8971_v53, 0.0  ;;  %vm2870_vm6 = vcmp.ge.f32.partialorder %v8980_v31, 0.0 }
 0x24a   :  { %v9185_v9 = vpop.f32.mrf.mxu0  ;;  %5847 = vpow2.f32 %v2703_v5  ;;  %v9192_v19 = vadd.f32 %v8798_v18, %v9929_v39  ;;  %v5830_v24 = vpop.eup %5829  ;;  %4408 = vst [vmem:[%s9913_s3 + $0x3a8] sm:$0xff] %v2966_v33  ;;  %v3784_v1 = vadd.f32 1.0, %v9187_v7  ;;  %v3641_v16 = vsub.f32 0.0, %v3592_v15 }
 0x24b   :  { %v9194_v57 = vpop.f32.mrf.mxu1  ;;  %5849 = vpow2.f32 %v3714_v60  ;;  %v9205_v0 = vpop.eup %5831  ;;  %4569 = vst [vmem:[%s9913_s3 + $0x530] sm:$0xff] %v3977_v30  ;;  %v2967_v46 = vmul.f32 %v5830_v24, %v2918_v54  ;;  %v2631_v33 = vsub.f32 0.0, %v2582_v12  ;;  %vm3881_vm7 = vcmp.ge.f32.partialorder %v8984_v17, 0.0 }
 0x24c   :  { %v5029_v5 = vpop.f32.mrf.mxu0  ;;  %5851 = vpow2.f32 %v2705_v59  ;;  %v9211_v60 = vpop.eup %5833  ;;  %v2774_v48 = vadd.f32 1.0, %v9205_v0  ;;  %v3716_v54 = vmul.f32 1.442695, %v3641_v16  ;;  %v3593_v30 = vand.u32 2147483647, %v9192_v19 }
 0x24d   :  { %v5137_v55 = vpop.f32.mrf.mxu1  ;;  %5853 = vrcp.f32 %v3784_v1  ;;  %4409 = vst [vmem:[%s9913_s3 + $0x3b0] sm:$0xff] %v2967_v46  ;;  %v3785_v59 = vadd.f32 1.0, %v9211_v60  ;;  %vm2871_vm8 = vcmp.ge.f32.partialorder %v9008_v36, 0.0  ;;  %v2707_v39 = vmul.f32 1.442695, %v2631_v33 }
 0x24e   :  { %v9215_v35 = vpop.f32.mrf.mxu0  ;;  %5855 = vrcp.f32 %v2774_v48  ;;  %v2583_v24 = vand.u32 2147483647, %v9203_v44  ;;  %v5836_v12 = vpop.eup %5835  ;;  %v3929_v5 = vsel %vm3880_vm5, 1.0, %v9122_v49  ;;  %v3642_v46 = vsub.f32 0.0, %v3593_v30 }
 0x24f   :  { %9930 = vst [vmem:[#allocation4_spill] sm:$0xff] %v9215_v35  ;;  %v9223_v15 = vpop.f32.mrf.mxu1  ;;  %5857 = vrcp.f32 %v3785_v59  ;;  %v9232_v16 = vadd.f32 %v8798_v18, %v8740_v6  ;;  %v3978_v35 = vmul.f32 %v5836_v12, %v3929_v5  ;;  %v9238_v33 = vadd.f32 %v8798_v18, %v8757_v40 }
 0x250   :  { %9931 = vst [vmem:[#allocation5_spill] sm:$0xff] %v9223_v15  ;;  %v5030_v1 = vpop.f32.mrf.mxu0  ;;  %v9234_v15 = vpop.eup %5837  ;;  %5859 = vpow2.f32 %v3716_v54  ;;  %v2632_v48 = vsub.f32 0.0, %v2583_v24  ;;  %vm3882_vm9 = vcmp.ge.f32.partialorder %v9014_v28, 0.0  ;;  %v3718_v49 = vmul.f32 1.442695, %v3642_v46 }
 0x251   :  { %v5138_v55 = vpop.f32.mrf.mxu1  ;;  %v2775_v53 = vadd.f32 1.0, %v9234_v15  ;;  %5861 = vpow2.f32 %v2707_v39  ;;  %4570 = vst [vmem:[%s9913_s3 + $0x538] sm:$0xff] %v3978_v35  ;;  %v2919_v40 = vsel %vm2870_vm6, 1.0, %v9139_v21  ;;  %v3930_v54 = vsel %vm3881_vm7, 1.0, %v9150_v43 }
 0x252   :  { %v9240_v1 = vpop.f32.mrf.mxu0  ;;  %v2709_v30 = vmul.f32 1.442695, %v2632_v48  ;;  %v3594_v24 = vand.u32 2147483647, %v9232_v16  ;;  %v2584_v46 = vand.u32 2147483647, %v9238_v33 }
 0x253   :  { %v9244_v6 = vpop.f32.mrf.mxu1  ;;  %v5840_v59 = vpop.eup %5839  ;;  %5863 = vrcp.f32 %v2775_v53  ;;  %v9932_v55 = vld [vmem:[#allocation6_spill] sm:$0xff]  ;;  %v2920_v17 = vsel %vm2871_vm8, 1.0, %v9158_v50  ;;  %vm2872_vm10 = vcmp.ge.f32.partialorder %v9027_v56, 0.0  ;;  %vm3883_vm11 = vcmp.ge.f32.partialorder %v9062_v4, 0.0 }
 0x254   :  { %v5033_v39 = vpop.f32.mrf.mxu0  ;;  %v9256_v12 = vpop.eup %5841  ;;  %v2968_v5 = vmul.f32 %v5840_v59, %v2919_v40  ;;  %v9261_v35 = vadd.f32 %v8798_v18, %v9932_v55  ;;  %5865 = vpow2.f32 %v3718_v49  ;;  %v3643_v48 = vsub.f32 0.0, %v3594_v24 }
 0x255   :  { %v5141_v31 = vpop.f32.mrf.mxu1  ;;  %v5844_v21 = vpop.eup %5843  ;;  %v3786_v43 = vadd.f32 1.0, %v9256_v12  ;;  %5867 = vpow2.f32 %v2709_v30  ;;  %v2633_v40 = vsub.f32 0.0, %v2584_v46  ;;  %vm2873_vm12 = vcmp.ge.f32.partialorder %v9088_v63, 0.0 }
 0x256   :  { %v9267_v39 = vpop.f32.mrf.mxu0  ;;  %v5846_v59 = vpop.eup %5845  ;;  %4410 = vst [vmem:[%s9913_s3 + $0x3b8] sm:$0xff] %v2968_v5  ;;  %v3979_v53 = vmul.f32 %v5844_v21, %v3930_v54  ;;  %v3595_v55 = vand.u32 2147483647, %v9261_v35  ;;  %v3720_v49 = vmul.f32 1.442695, %v3643_v48  ;;  %v3932_v28 = vsel %vm3883_vm11, 1.0, %v9211_v60 }
 0x257   :  { %9933 = vst [vmem:[#allocation6_spill] sm:$0xff] %v9267_v39  ;;  %v9273_v31 = vpop.f32.mrf.mxu1  ;;  %v9275_v36 = vpop.eup %5847  ;;  %v2969_v50 = vmul.f32 %v5846_v59, %v2920_v17  ;;  %5869 = vrcp.f32 %v3786_v43  ;;  %v2711_v17 = vmul.f32 1.442695, %v2633_v40  ;;  %v9294_v43 = vadd.f32 %v8798_v18, %v8787_v58 }
 0x258   :  { %v5034_v24 = vpop.f32.mrf.mxu0  ;;  %v9278_v39 = vpop.eup %5849  ;;  %4571 = vst [vmem:[%s9913_s3 + $0x540] sm:$0xff] %v3979_v53  ;;  %v2776_v54 = vadd.f32 1.0, %v9275_v36  ;;  %v3644_v30 = vsub.f32 0.0, %v3595_v55  ;;  %5871 = vpow2.f32 %v3720_v49  ;;  %v3931_v53 = vsel %vm3882_vm9, 1.0, %v9187_v7  ;;  %v9935_v7 = vld [vmem:[#allocation7_spill] sm:$0xff] }
 0x259   :  { %v5142_v5 = vpop.f32.mrf.mxu1  ;;  %v9286_v46 = vpop.eup %5851  ;;  %4411 = vst [vmem:[%s9913_s3 + $0x3c0] sm:$0xff] %v2969_v50  ;;  %v3787_v21 = vadd.f32 1.0, %v9278_v39  ;;  %v2921_v40 = vsel %vm2872_vm10, 1.0, %v9205_v0  ;;  %v2585_v58 = vand.u32 2147483647, %v9294_v43  ;;  %v9324_v4 = vadd.f32 %v8798_v18, %v8832_v11 }
 0x25a   :  { %v9296_v48 = vpop.f32.mrf.mxu0  ;;  %v5854_v59 = vpop.eup %5853  ;;  %5873 = vrcp.f32 %v2776_v54  ;;  %v2777_v55 = vadd.f32 1.0, %v9286_v46  ;;  %v3722_v24 = vmul.f32 1.442695, %v3644_v30  ;;  %v9313_v54 = vadd.f32 %v8798_v18, %v9935_v7  ;;  %v9936_v30 = vld [vmem:[#allocation2_spill] sm:$0xff] }
 0x25b   :  { %9934 = vst [vmem:[#allocation12_spill] sm:$0xff] %v9296_v48  ;;  %v9302_v50 = vpop.f32.mrf.mxu1  ;;  %v3980_v5 = vmul.f32 %v5854_v59, %v3931_v53  ;;  %5875 = vrcp.f32 %v3787_v21  ;;  %v5856_v48 = vpop.eup %5855  ;;  %v9317_v59 = vadd.f32 %v8798_v18, %v9936_v30  ;;  %v2634_v53 = vsub.f32 0.0, %v2585_v58 }
 0x25c   :  { %v5037_v49 = vpop.f32.mrf.mxu0  ;;  %5877 = vrcp.f32 %v2777_v55  ;;  %v5858_v0 = vpop.eup %5857  ;;  %v2970_v21 = vmul.f32 %v5856_v48, %v2921_v40  ;;  %v3596_v7 = vand.u32 2147483647, %v9313_v54  ;;  %v9331_v30 = vadd.f32 %v8798_v18, %v8848_v52 }
 0x25d   :  { %v5145_v56 = vpop.f32.mrf.mxu1  ;;  %4572 = vst [vmem:[%s9913_s3 + $0x548] sm:$0xff] %v3980_v5  ;;  %5879 = vpow2.f32 %v2711_v17  ;;  %v9326_v55 = vpop.eup %5859  ;;  %v3981_v49 = vmul.f32 %v5858_v0, %v3932_v28  ;;  %vm3884_vm0 = vcmp.ge.f32.partialorder %v9103_v14, 0.0  ;;  %v2713_v17 = vmul.f32 1.442695, %v2634_v53 }
 0x25e   :  { %v2552_v60 = vpop.f32.mrf.mxu0  ;;  %5881 = vpow2.f32 %v3722_v24  ;;  %v9333_v5 = vpop.eup %5861  ;;  %4412 = vst [vmem:[%s9913_s3 + $0x3c8] sm:$0xff] %v2970_v21  ;;  %v3788_v11 = vadd.f32 1.0, %v9326_v55  ;;  %v2586_v48 = vand.u32 2147483647, %v9317_v59  ;;  %vm2874_vm13 = vcmp.ge.f32.partialorder %v9107_v23, 0.0 }
 0x25f   :  { %v3563_v56 = vpop.f32.mrf.mxu1  ;;  %4573 = vst [vmem:[%s9913_s3 + $0x550] sm:$0xff] %v3981_v49  ;;  %vm3885_vm1 = vcmp.ge.f32.partialorder %v9116_v3, 0.0  ;;  %v2778_v18 = vadd.f32 1.0, %v9333_v5  ;;  %v3645_v52 = vsub.f32 0.0, %v3596_v7  ;;  %v2922_v28 = vsel %vm2873_vm12, 1.0, %v9234_v15 }
 0x260   :  { %v5038_v24 = vpop.f32.mrf.mxu0  ;;  %v5864_v58 = vpop.eup %5863  ;;  %5883 = vrcp.f32 %v3788_v11  ;;  %v2635_v0 = vsub.f32 0.0, %v2586_v48  ;;  %v3597_v21 = vand.u32 2147483647, %v9324_v4  ;;  %v2587_v56 = vand.u32 2147483647, %v9331_v30 }
 0x261   :  { %v5146_v40 = vpop.f32.mrf.mxu1  ;;  %v9351_v53 = vpop.eup %5865  ;;  %v2971_v60 = vmul.f32 %v5864_v58, %v2922_v28  ;;  %5885 = vrcp.f32 %v2778_v18  ;;  %v3724_v49 = vmul.f32 1.442695, %v3645_v52  ;;  %vm2875_vm14 = vcmp.ge.f32.partialorder %v9120_v10, 0.0  ;;  %v9371_v28 = vld [vmem:[%s9912_s2] ss:$0 sm:$0xff] }
 0x262   :  { %v9354_v24 = vpop.eup %5867  ;;  %v3789_v7 = vadd.f32 1.0, %v9351_v53  ;;  %5887 = vpow2.f32 %v2713_v17  ;;  %v2715_v63 = vmul.f32 1.442695, %v2635_v0  ;;  %v3933_v11 = vsel %vm3884_vm0, 1.0, %v9256_v12 }
 0x263   :  { %4413 = vst [vmem:[%s9913_s3 + $0x3d0] sm:$0xff] %v2971_v60  ;;  %v2779_v48 = vadd.f32 1.0, %v9354_v24  ;;  %5889 = vpow2.f32 %v3724_v49  ;;  %v3646_v18 = vsub.f32 0.0, %v3597_v21  ;;  %vm3886_vm15 = vcmp.ge.f32.partialorder %v9173_v22, 0.0 }
 0x264   :  { %v5870_v15 = vpop.eup %5869  ;;  %5891 = vrcp.f32 %v3789_v7  ;;  %v2636_v40 = vsub.f32 0.0, %v2587_v56  ;;  %v9375_v14 = vadd.f32 %v9371_v28, %v8857_v34  ;;  %v9379_v12 = vadd.f32 %v9371_v28, %v8878_v26 }
 0x265   :  { %v3982_v52 = vmul.f32 %v5870_v15, %v3933_v11  ;;  %v9366_v17 = vpop.eup %5871  ;;  %5893 = vrcp.f32 %v2779_v48  ;;  %v3726_v58 = vmul.f32 1.442695, %v3646_v18  ;;  %v2923_v21 = vsel %vm2874_vm13, 1.0, %v9275_v36  ;;  %v9937_v48 = vld [vmem:[#allocation3_spill] sm:$0xff] }
 0x266   :  { %v3790_v60 = vadd.f32 1.0, %v9366_v17  ;;  %5895 = vpow2.f32 %v2715_v63  ;;  %v2717_v49 = vmul.f32 1.442695, %v2636_v40  ;;  %v3934_v26 = vsel %vm3885_vm1, 1.0, %v9278_v39  ;;  %v9938_v40 = vld [vmem:[#allocation8_spill] sm:$0xff] }
 0x267   :  { %v5874_v0 = vpop.eup %5873  ;;  %4574 = vst [vmem:[%s9913_s3 + $0x558] sm:$0xff] %v3982_v52  ;;  %5897 = vpow2.f32 %v3726_v58  ;;  %v3598_v7 = vand.u32 2147483647, %v9375_v14  ;;  %v2924_v23 = vsel %vm2875_vm14, 1.0, %v9286_v46  ;;  %v2588_v36 = vand.u32 2147483647, %v9379_v12 }
 0x268   :  { %v5876_v56 = vpop.eup %5875  ;;  %v2972_v34 = vmul.f32 %v5874_v0, %v2923_v21  ;;  %5899 = vrcp.f32 %v3790_v60  ;;  %v9403_v18 = vadd.f32 %v9371_v28, %v9937_v48  ;;  %vm2876_vm2 = vcmp.ge.f32.partialorder %v9177_v32, 0.0 }
 0x269   :  { %v5878_v15 = vpop.eup %5877  ;;  %v3983_v11 = vmul.f32 %v5876_v56, %v3934_v26  ;;  %5901 = vpow2.f32 %v2717_v49  ;;  %v3647_v39 = vsub.f32 0.0, %v3598_v7  ;;  %v2637_v46 = vsub.f32 0.0, %v2588_v36 }
 0x26a   :  { %v9396_v63 = vpop.eup %5879  ;;  %4414 = vst [vmem:[%s9913_s3 + $0x3d8] sm:$0xff] %v2972_v34  ;;  %v2973_v3 = vmul.f32 %v5878_v15, %v2924_v23  ;;  %v9414_v58 = vadd.f32 %v9371_v28, %v9938_v40  ;;  %vm3887_vm3 = vcmp.ge.f32.partialorder %v9192_v19, 0.0  ;;  %v3599_v60 = vand.u32 2147483647, %v9403_v18  ;;  %v9939_v15 = vld [vmem:[#allocation9_spill] sm:$0xff] }
 0x26b   :  { %v9405_v52 = vpop.eup %5881  ;;  %4575 = vst [vmem:[%s9913_s3 + $0x560] sm:$0xff] %v3983_v11  ;;  %v2780_v10 = vadd.f32 1.0, %v9396_v63  ;;  %v3728_v21 = vmul.f32 1.442695, %v3647_v39  ;;  %v3935_v32 = vsel %vm3886_vm15, 1.0, %v9326_v55  ;;  %v2925_v26 = vsel %vm2876_vm2, 1.0, %v9333_v5 }
 0x26c   :  { %4415 = vst [vmem:[%s9913_s3 + $0x3e0] sm:$0xff] %v2973_v3  ;;  %v3791_v0 = vadd.f32 1.0, %v9405_v52  ;;  %v2719_v49 = vmul.f32 1.442695, %v2637_v46  ;;  %v2589_v56 = vand.u32 2147483647, %v9414_v58  ;;  %v9429_v11 = vadd.f32 %v9371_v28, %v9939_v15 }
 0x26d   :  { %5903 = vrcp.f32 %v2780_v10  ;;  %v5884_v34 = vpop.eup %5883  ;;  %v3648_v7 = vsub.f32 0.0, %v3599_v60  ;;  %v9940_v39 = vld [vmem:[#allocation10_spill] sm:$0xff]  ;;  %vm2877_vm4 = vcmp.ge.f32.partialorder %v9203_v44, 0.0  ;;  %vm3888_vm5 = vcmp.ge.f32.partialorder %v9232_v16, 0.0 }
 0x26e   :  { %5905 = vrcp.f32 %v3791_v0  ;;  %v5886_v23 = vpop.eup %5885  ;;  %v3984_v36 = vmul.f32 %v5884_v34, %v3935_v32  ;;  %v2638_v3 = vsub.f32 0.0, %v2589_v56  ;;  %v9433_v22 = vadd.f32 %v9371_v28, %v9940_v39 }
 0x26f   :  { %5907 = vpow2.f32 %v3728_v21  ;;  %v9435_v55 = vpop.eup %5887  ;;  %v2974_v48 = vmul.f32 %v5886_v23, %v2925_v26  ;;  %v3730_v10 = vmul.f32 1.442695, %v3648_v7  ;;  %v3600_v5 = vand.u32 2147483647, %v9429_v11 }
 0x270   :  { %5909 = vpow2.f32 %v2719_v49  ;;  %v9438_v46 = vpop.eup %5889  ;;  %4576 = vst [vmem:[%s9913_s3 + $0x568] sm:$0xff] %v3984_v36  ;;  %v2781_v40 = vadd.f32 1.0, %v9435_v55  ;;  %v2721_v0 = vmul.f32 1.442695, %v2638_v3  ;;  %v3936_v60 = vsel %vm3887_vm3, 1.0, %v9351_v53  ;;  %v9941_v36 = vld [vmem:[#allocation11_spill] sm:$0xff] }
 0x271   :  { %v5892_v21 = vpop.eup %5891  ;;  %4416 = vst [vmem:[%s9913_s3 + $0x3e8] sm:$0xff] %v2974_v48  ;;  %v3792_v32 = vadd.f32 1.0, %v9438_v46  ;;  %5911 = vpow2.f32 %v3730_v10  ;;  %v3649_v49 = vsub.f32 0.0, %v3600_v5  ;;  %v2926_v34 = vsel %vm2877_vm4, 1.0, %v9354_v24 }
 0x272   :  { %v5894_v56 = vpop.eup %5893  ;;  %v3985_v44 = vmul.f32 %v5892_v21, %v3936_v60  ;;  %5913 = vrcp.f32 %v2781_v40  ;;  %v2590_v26 = vand.u32 2147483647, %v9433_v22  ;;  %v9459_v19 = vadd.f32 %v9371_v28, %v9941_v36 }
 0x273   :  { %v9455_v7 = vpop.eup %5895  ;;  %v2975_v15 = vmul.f32 %v5894_v56, %v2926_v34  ;;  %5915 = vrcp.f32 %v3792_v32  ;;  %v3732_v23 = vmul.f32 1.442695, %v3649_v49  ;;  %vm2878_vm6 = vcmp.ge.f32.partialorder %v9238_v33, 0.0 }
 0x274   :  { %v9461_v53 = vpop.eup %5897  ;;  %4577 = vst [vmem:[%s9913_s3 + $0x570] sm:$0xff] %v3985_v44  ;;  %v2782_v24 = vadd.f32 1.0, %v9455_v7  ;;  %5917 = vpow2.f32 %v2721_v0  ;;  %v2639_v3 = vsub.f32 0.0, %v2590_v26  ;;  %v3937_v48 = vsel %vm3888_vm5, 1.0, %v9366_v17 }
 0x275   :  { %v5900_v39 = vpop.eup %5899  ;;  %4417 = vst [vmem:[%s9913_s3 + $0x3f0] sm:$0xff] %v2975_v15  ;;  %v3793_v10 = vadd.f32 1.0, %v9461_v53  ;;  %5919 = vpow2.f32 %v3732_v23  ;;  %v3601_v5 = vand.u32 2147483647, %v9459_v19  ;;  %vm3889_vm7 = vcmp.ge.f32.partialorder %v9261_v35, 0.0 }
 0x276   :  { %v9476_v40 = vpop.eup %5901  ;;  %v3986_v21 = vmul.f32 %v5900_v39, %v3937_v48  ;;  %5921 = vrcp.f32 %v2782_v24  ;;  %v2723_v0 = vmul.f32 1.442695, %v2639_v3  ;;  %vm2879_vm8 = vcmp.ge.f32.partialorder %v9294_v43, 0.0 }
 0x277   :  { %5923 = vrcp.f32 %v3793_v10  ;;  %v2783_v60 = vadd.f32 1.0, %v9476_v40  ;;  %v3650_v32 = vsub.f32 0.0, %v3601_v5  ;;  %v9486_v16 = vadd.f32 %v9371_v28, %v8956_v38 }
 0x278   :  { %4578 = vst [vmem:[%s9913_s3 + $0x578] sm:$0xff] %v3986_v21  ;;  %5925 = vpow2.f32 %v2723_v0  ;;  %v9490_v35 = vadd.f32 %v9371_v28, %v8960_v2  ;;  %v9494_v17 = vadd.f32 %v9371_v28, %v8989_v27  ;;  %v2927_v56 = vsel %vm2878_vm6, 1.0, %v9396_v63 }
 0x279   :  { %v3938_v44 = vsel %vm3889_vm7, 1.0, %v9405_v52  ;;  %5927 = vrcp.f32 %v2783_v60  ;;  %v3734_v34 = vmul.f32 1.442695, %v3650_v32  ;;  %v2591_v15 = vand.u32 2147483647, %v9486_v16 }
 0x27a   :  { %v5904_v49 = vpop.eup %5903  ;;  %v3602_v2 = vand.u32 2147483647, %v9490_v35  ;;  %v9504_v23 = vadd.f32 %v9371_v28, %v8997_v20  ;;  %vm3890_vm9 = vcmp.ge.f32.partialorder %v9313_v54, 0.0  ;;  %v2592_v33 = vand.u32 2147483647, %v9494_v17 }
 0x27b   :  { %v5906_v26 = vpop.eup %5905  ;;  %v2976_v38 = vmul.f32 %v5904_v49, %v2927_v56  ;;  %5929 = vpow2.f32 %v3734_v34  ;;  %vm2880_vm10 = vcmp.ge.f32.partialorder %v9317_v59, 0.0  ;;  %v2640_v20 = vsub.f32 0.0, %v2591_v15 }
 0x27c   :  { %v9506_v27 = vpop.eup %5907  ;;  %v3987_v36 = vmul.f32 %v5906_v26, %v3938_v44  ;;  %v3651_v24 = vsub.f32 0.0, %v3602_v2  ;;  %vm3891_vm11 = vcmp.ge.f32.partialorder %v9324_v4, 0.0  ;;  %v2641_v39 = vsub.f32 0.0, %v2592_v33 }
 0x27d   :  { %v9510_v63 = vpop.eup %5909  ;;  %4418 = vst [vmem:[%s9913_s3 + $0x3f8] sm:$0xff] %v2976_v38  ;;  %v3794_v52 = vadd.f32 1.0, %v9506_v27  ;;  %v9524_v48 = vadd.f32 %v9371_v28, %v9016_v45  ;;  %v2725_v5 = vmul.f32 1.442695, %v2640_v20  ;;  %v3603_v0 = vand.u32 2147483647, %v9504_v23 }
 0x27e   :  { %4579 = vst [vmem:[%s9913_s3 + $0x580] sm:$0xff] %v3987_v36  ;;  %v2784_v3 = vadd.f32 1.0, %v9510_v63  ;;  %v9526_v10 = vpop.eup %5911  ;;  %v3736_v21 = vmul.f32 1.442695, %v3651_v24  ;;  %v2928_v32 = vsel %vm2879_vm8, 1.0, %v9435_v55  ;;  %v3939_v45 = vsel %vm3890_vm9, 1.0, %v9438_v46 }
 0x27f   :  { %5931 = vrcp.f32 %v3794_v52  ;;  %v5914_v60 = vpop.eup %5913  ;;  %v3795_v49 = vadd.f32 1.0, %v9526_v10  ;;  %v2727_v56 = vmul.f32 1.442695, %v2641_v39  ;;  %v3652_v26 = vsub.f32 0.0, %v3603_v0 }
 0x280   :  { %5933 = vrcp.f32 %v2784_v3  ;;  %v5916_v44 = vpop.eup %5915  ;;  %v2977_v34 = vmul.f32 %v5914_v60, %v2928_v32  ;;  %vm2881_vm12 = vcmp.ge.f32.partialorder %v9331_v30, 0.0  ;;  %v2593_v43 = vand.u32 2147483647, %v9524_v48 }
 0x281   :  { %5935 = vpow2.f32 %v2725_v5  ;;  %v9536_v38 = vpop.eup %5917  ;;  %v3988_v15 = vmul.f32 %v5916_v44, %v3939_v45  ;;  %v2929_v54 = vsel %vm2880_vm10, 1.0, %v9455_v7  ;;  %v3738_v2 = vmul.f32 1.442695, %v3652_v26 }
 0x282   :  { %5937 = vrcp.f32 %v3795_v49  ;;  %v9540_v55 = vpop.eup %5919  ;;  %4419 = vst [vmem:[%s9913_s3 + $0x400] sm:$0xff] %v2977_v34  ;;  %v2785_v46 = vadd.f32 1.0, %v9536_v38  ;;  %v3940_v33 = vsel %vm3891_vm11, 1.0, %v9461_v53  ;;  %v2642_v20 = vsub.f32 0.0, %v2593_v43 }
 0x283   :  { %5939 = vpow2.f32 %v3736_v21  ;;  %v5922_v36 = vpop.eup %5921  ;;  %4580 = vst [vmem:[%s9913_s3 + $0x588] sm:$0xff] %v3988_v15  ;;  %v3796_v52 = vadd.f32 1.0, %v9540_v55  ;;  %v9558_v7 = vadd.f32 %v9371_v28, %v9029_v29  ;;  %v9562_v3 = vadd.f32 %v9371_v28, %v9044_v41 }
 0x284   :  { %5941 = vpow2.f32 %v2727_v56  ;;  %v5924_v24 = vpop.eup %5923  ;;  %v2978_v59 = vmul.f32 %v5922_v36, %v2929_v54  ;;  %v2729_v4 = vmul.f32 1.442695, %v2642_v20  ;;  %v9568_v53 = vadd.f32 %v9371_v28, %v9053_v42 }
 0x285   :  { %5943 = vrcp.f32 %v2785_v46  ;;  %v9564_v39 = vpop.eup %5925  ;;  %v3989_v5 = vmul.f32 %v5924_v24, %v3940_v33  ;;  %v2930_v29 = vsel %vm2881_vm12, 1.0, %v9476_v40  ;;  %v3604_v0 = vand.u32 2147483647, %v9558_v7 }
 0x286   :  { %5945 = vrcp.f32 %v3796_v52  ;;  %v5928_v21 = vpop.eup %5927  ;;  %4420 = vst [vmem:[%s9913_s3 + $0x408] sm:$0xff] %v2978_v59  ;;  %v2786_v41 = vadd.f32 1.0, %v9564_v39  ;;  %vm3892_vm0 = vcmp.ge.f32.partialorder %v9375_v14, 0.0  ;;  %v2594_v60 = vand.u32 2147483647, %v9562_v3 }
 0x287   :  { %5947 = vpow2.f32 %v3738_v2  ;;  %4581 = vst [vmem:[%s9913_s3 + $0x590] sm:$0xff] %v3989_v5  ;;  %v2979_v42 = vmul.f32 %v5928_v21, %v2930_v29  ;;  %vm2882_vm13 = vcmp.ge.f32.partialorder %v9379_v12, 0.0  ;;  %v3653_v30 = vsub.f32 0.0, %v3604_v0 }
 0x288   :  { %5949 = vpow2.f32 %v2729_v4  ;;  %v9583_v32 = vpop.eup %5929  ;;  %v3605_v40 = vand.u32 2147483647, %v9568_v53  ;;  %v3941_v49 = vsel %vm3892_vm0, 1.0, %v9506_v27  ;;  %vm3893_vm1 = vcmp.ge.f32.partialorder %v9403_v18, 0.0 }
 0x289   :  { %5951 = vrcp.f32 %v2786_v41  ;;  %4421 = vst [vmem:[%s9913_s3 + $0x410] sm:$0xff] %v2979_v42  ;;  %v3797_v14 = vadd.f32 1.0, %v9583_v32  ;;  %v2643_v56 = vsub.f32 0.0, %v2594_v60  ;;  %v3740_v44 = vmul.f32 1.442695, %v3653_v30 }
 0x28a   :  { %v3654_v34 = vsub.f32 0.0, %v3605_v40  ;;  %v9595_v12 = vadd.f32 %v9371_v28, %v9071_v47  ;;  %v9599_v45 = vadd.f32 %v9371_v28, %v9082_v61  ;;  %v2931_v15 = vsel %vm2882_vm13, 1.0, %v9510_v63 }
 0x28b   :  { %5953 = vrcp.f32 %v3797_v14  ;;  %v2731_v27 = vmul.f32 1.442695, %v2643_v56  ;;  %v9604_v43 = vadd.f32 %v9371_v28, %v9099_v13  ;;  %v3942_v61 = vsel %vm3893_vm1, 1.0, %v9526_v10 }
 0x28c   :  { %v5932_v26 = vpop.eup %5931  ;;  %5955 = vpow2.f32 %v3740_v44  ;;  %v3742_v2 = vmul.f32 1.442695, %v3654_v34  ;;  %v2595_v47 = vand.u32 2147483647, %v9595_v12  ;;  %v3606_v63 = vand.u32 2147483647, %v9599_v45 }
 0x28d   :  { %v5934_v54 = vpop.eup %5933  ;;  %v3990_v46 = vmul.f32 %v5932_v26, %v3941_v49  ;;  %5957 = vpow2.f32 %v2731_v27  ;;  %v9619_v24 = vadd.f32 %v9371_v28, %v9109_v62  ;;  %vm2883_vm14 = vcmp.ge.f32.partialorder %v9414_v58, 0.0 }
 0x28e   :  { %v9607_v36 = vpop.eup %5935  ;;  %v2980_v33 = vmul.f32 %v5934_v54, %v2931_v15  ;;  %5959 = vpow2.f32 %v3742_v2  ;;  %v2644_v20 = vsub.f32 0.0, %v2595_v47  ;;  %v3655_v10 = vsub.f32 0.0, %v3606_v63 }
 0x28f   :  { %v5938_v52 = vpop.eup %5937  ;;  %4582 = vst [vmem:[%s9913_s3 + $0x598] sm:$0xff] %v3990_v46  ;;  %v2787_v13 = vadd.f32 1.0, %v9607_v36  ;;  %v2596_v5 = vand.u32 2147483647, %v9604_v43  ;;  %vm3894_vm15 = vcmp.ge.f32.partialorder %v9429_v11, 0.0  ;;  %v2932_v41 = vsel %vm2883_vm14, 1.0, %v9536_v38 }
 0x290   :  { %v9621_v59 = vpop.eup %5939  ;;  %4422 = vst [vmem:[%s9913_s3 + $0x418] sm:$0xff] %v2980_v33  ;;  %v3991_v18 = vmul.f32 %v5938_v52, %v3942_v61  ;;  %v2733_v21 = vmul.f32 1.442695, %v2644_v20  ;;  %v3744_v0 = vmul.f32 1.442695, %v3655_v10  ;;  %v3943_v40 = vsel %vm3894_vm15, 1.0, %v9540_v55 }
 0x291   :  { %v9628_v4 = vpop.eup %5941  ;;  %5961 = vrcp.f32 %v2787_v13  ;;  %v3798_v62 = vadd.f32 1.0, %v9621_v59  ;;  %v2645_v42 = vsub.f32 0.0, %v2596_v5  ;;  %v3607_v11 = vand.u32 2147483647, %v9619_v24 }
 0x292   :  { %v5944_v29 = vpop.eup %5943  ;;  %4583 = vst [vmem:[%s9913_s3 + $0x5a0] sm:$0xff] %v3991_v18  ;;  %v2788_v58 = vadd.f32 1.0, %v9628_v4  ;;  %vm2884_vm2 = vcmp.ge.f32.partialorder %v9433_v22, 0.0  ;;  %vm3895_vm3 = vcmp.ge.f32.partialorder %v9459_v19, 0.0  ;;  %v9656_v15 = vadd.f32 %v9371_v28, %v9134_v37 }
 0x293   :  { %v5946_v60 = vpop.eup %5945  ;;  %v2981_v30 = vmul.f32 %v5944_v29, %v2932_v41  ;;  %5963 = vrcp.f32 %v3798_v62  ;;  %v2735_v55 = vmul.f32 1.442695, %v2645_v42  ;;  %v3656_v44 = vsub.f32 0.0, %v3607_v11 }
 0x294   :  { %v9639_v49 = vpop.eup %5947  ;;  %v3992_v14 = vmul.f32 %v5946_v60, %v3943_v40  ;;  %5965 = vrcp.f32 %v2788_v58  ;;  %v2933_v22 = vsel %vm2884_vm2, 1.0, %v9564_v39  ;;  %v9660_v46 = vadd.f32 %v9371_v28, %v9137_v51 }
 0x295   :  { %v9643_v38 = vpop.eup %5949  ;;  %4423 = vst [vmem:[%s9913_s3 + $0x420] sm:$0xff] %v2981_v30  ;;  %v3799_v56 = vadd.f32 1.0, %v9639_v49  ;;  %5967 = vpow2.f32 %v2733_v21  ;;  %v3746_v54 = vmul.f32 1.442695, %v3656_v44  ;;  %vm2885_vm4 = vcmp.ge.f32.partialorder %v9486_v16, 0.0 }
 0x296   :  { %v5952_v34 = vpop.eup %5951  ;;  %4584 = vst [vmem:[%s9913_s3 + $0x5a8] sm:$0xff] %v3992_v14  ;;  %v2789_v26 = vadd.f32 1.0, %v9643_v38  ;;  %5969 = vpow2.f32 %v3744_v0  ;;  %v2597_v2 = vand.u32 2147483647, %v9656_v15  ;;  %v9666_v39 = vadd.f32 %v9371_v28, %v9156_v25  ;;  %v9942_v14 = vld [vmem:[#allocation4_spill] sm:$0xff] }
 0x297   :  { %v2982_v27 = vmul.f32 %v5952_v34, %v2933_v22  ;;  %5971 = vrcp.f32 %v3799_v56  ;;  %v3944_v37 = vsel %vm3895_vm3, 1.0, %v9583_v32  ;;  %v3608_v51 = vand.u32 2147483647, %v9660_v46 }
 0x298   :  { %5973 = vrcp.f32 %v2789_v26  ;;  %v5954_v47 = vpop.eup %5953  ;;  %v9677_v33 = vadd.f32 %v9371_v28, %v9162_v8  ;;  %v2646_v63 = vsub.f32 0.0, %v2597_v2  ;;  %v2598_v52 = vand.u32 2147483647, %v9666_v39 }
 0x299   :  { %4424 = vst [vmem:[%s9913_s3 + $0x428] sm:$0xff] %v2982_v27  ;;  %5975 = vpow2.f32 %v2735_v55  ;;  %v9679_v61 = vpop.eup %5955  ;;  %v3993_v25 = vmul.f32 %v5954_v47, %v3944_v37  ;;  %vm3896_vm5 = vcmp.ge.f32.partialorder %v9490_v35, 0.0  ;;  %vm2886_vm6 = vcmp.ge.f32.partialorder %v9494_v17, 0.0  ;;  %v9943_v47 = vld [vmem:[#allocation5_spill] sm:$0xff] }
 0x29a   :  { %5977 = vpow2.f32 %v3746_v54  ;;  %v9682_v13 = vpop.eup %5957  ;;  %v3800_v19 = vadd.f32 1.0, %v9679_v61  ;;  %v3657_v32 = vsub.f32 0.0, %v3608_v51  ;;  %vm3897_vm7 = vcmp.ge.f32.partialorder %v9504_v23, 0.0 }
 0x29b   :  { %v9687_v20 = vpop.eup %5959  ;;  %4585 = vst [vmem:[%s9913_s3 + $0x5b0] sm:$0xff] %v3993_v25  ;;  %v2790_v8 = vadd.f32 1.0, %v9682_v13  ;;  %v2737_v18 = vmul.f32 1.442695, %v2646_v63  ;;  %v2647_v10 = vsub.f32 0.0, %v2598_v52  ;;  %vm2887_vm8 = vcmp.ge.f32.partialorder %v9524_v48, 0.0 }
 0x29c   :  { %5979 = vrcp.f32 %v3800_v19  ;;  %v3801_v5 = vadd.f32 1.0, %v9687_v20  ;;  %v3748_v62 = vmul.f32 1.442695, %v3657_v32  ;;  %v2934_v29 = vsel %vm2885_vm4, 1.0, %v9607_v36 }
 0x29d   :  { %5981 = vrcp.f32 %v2790_v8  ;;  %v2739_v41 = vmul.f32 1.442695, %v2647_v10  ;;  %v3609_v58 = vand.u32 2147483647, %v9677_v33  ;;  %v9702_v42 = vadd.f32 %v9371_v28, %v9185_v9 }
 0x29e   :  { %v5962_v21 = vpop.eup %5961  ;;  %5983 = vrcp.f32 %v3801_v5  ;;  %v9706_v60 = vadd.f32 %v9371_v28, %v9194_v57  ;;  %v3945_v16 = vsel %vm3896_vm5, 1.0, %v9621_v59  ;;  %v2935_v36 = vsel %vm2886_vm6, 1.0, %v9628_v4 }
 0x29f   :  { %v2983_v0 = vmul.f32 %v5962_v21, %v2934_v29  ;;  %5985 = vpow2.f32 %v2737_v18  ;;  %v3658_v40 = vsub.f32 0.0, %v3609_v58  ;;  %v2599_v57 = vand.u32 2147483647, %v9702_v42 }
 0x2a0   :  { %v5964_v30 = vpop.eup %5963  ;;  %5987 = vpow2.f32 %v3748_v62  ;;  %v9720_v56 = vadd.f32 %v9371_v28, %v9942_v14  ;;  %v3610_v4 = vand.u32 2147483647, %v9706_v60  ;;  %v3946_v44 = vsel %vm3897_vm7, 1.0, %v9639_v49 }
 0x2a1   :  { %v5966_v11 = vpop.eup %5965  ;;  %4425 = vst [vmem:[%s9913_s3 + $0x430] sm:$0xff] %v2983_v0  ;;  %v3994_v9 = vmul.f32 %v5964_v30, %v3945_v16  ;;  %5989 = vpow2.f32 %v2739_v41  ;;  %v3750_v17 = vmul.f32 1.442695, %v3658_v40  ;;  %v2936_v34 = vsel %vm2887_vm8, 1.0, %v9643_v38  ;;  %v9944_v41 = vld [vmem:[#allocation6_spill] sm:$0xff] }
 0x2a2   :  { %v9722_v35 = vpop.eup %5967  ;;  %v2984_v59 = vmul.f32 %v5966_v11, %v2935_v36  ;;  %v2648_v26 = vsub.f32 0.0, %v2599_v57  ;;  %v3659_v2 = vsub.f32 0.0, %v3610_v4  ;;  %v9743_v23 = vadd.f32 %v9371_v28, %v9943_v47 }
 0x2a3   :  { %v9725_v55 = vpop.eup %5969  ;;  %4586 = vst [vmem:[%s9913_s3 + $0x5b8] sm:$0xff] %v3994_v9  ;;  %v2791_v22 = vadd.f32 1.0, %v9722_v35  ;;  %5991 = vpow2.f32 %v3750_v17  ;;  %v2600_v38 = vand.u32 2147483647, %v9720_v56  ;;  %vm3898_vm9 = vcmp.ge.f32.partialorder %v9558_v7, 0.0 }
 0x2a4   :  { %v5972_v27 = vpop.eup %5971  ;;  %4426 = vst [vmem:[%s9913_s3 + $0x438] sm:$0xff] %v2984_v59  ;;  %v3802_v54 = vadd.f32 1.0, %v9725_v55  ;;  %v2741_v48 = vmul.f32 1.442695, %v2648_v26  ;;  %v3752_v63 = vmul.f32 1.442695, %v3659_v2  ;;  %v9765_v5 = vadd.f32 %v9371_v28, %v9240_v1 }
 0x2a5   :  { %v5974_v49 = vpop.eup %5973  ;;  %v3995_v37 = vmul.f32 %v5972_v27, %v3946_v44  ;;  %5993 = vrcp.f32 %v2791_v22  ;;  %vm2888_vm10 = vcmp.ge.f32.partialorder %v9562_v3, 0.0  ;;  %v2649_v32 = vsub.f32 0.0, %v2600_v38 }
 0x2a6   :  { %v9746_v51 = vpop.eup %5975  ;;  %v2985_v25 = vmul.f32 %v5974_v49, %v2936_v34  ;;  %5995 = vrcp.f32 %v3802_v54  ;;  %vm3899_vm11 = vcmp.ge.f32.partialorder %v9568_v53, 0.0  ;;  %v3611_v8 = vand.u32 2147483647, %v9743_v23 }
 0x2a7   :  { %v9749_v52 = vpop.eup %5977  ;;  %4587 = vst [vmem:[%s9913_s3 + $0x5c0] sm:$0xff] %v3995_v37  ;;  %v2792_v19 = vadd.f32 1.0, %v9746_v51  ;;  %5997 = vpow2.f32 %v2741_v48  ;;  %v3947_v18 = vsel %vm3898_vm9, 1.0, %v9679_v61  ;;  %v2743_v10 = vmul.f32 1.442695, %v2649_v32 }
 0x2a8   :  { %4427 = vst [vmem:[%s9913_s3 + $0x440] sm:$0xff] %v2985_v25  ;;  %v3803_v7 = vadd.f32 1.0, %v9749_v52  ;;  %5999 = vpow2.f32 %v3752_v63  ;;  %v3660_v21 = vsub.f32 0.0, %v3611_v8  ;;  %v9769_v29 = vadd.f32 %v9371_v28, %v9244_v6 }
 0x2a9   :  { %6001 = vrcp.f32 %v2792_v19  ;;  %v5980_v62 = vpop.eup %5979  ;;  %v9773_v58 = vadd.f32 %v9371_v28, %v9944_v41  ;;  %v2937_v61 = vsel %vm2888_vm10, 1.0, %v9682_v13  ;;  %v2601_v1 = vand.u32 2147483647, %v9765_v5 }
 0x2aa   :  { %6003 = vrcp.f32 %v3803_v7  ;;  %v5982_v0 = vpop.eup %5981  ;;  %v3996_v30 = vmul.f32 %v5980_v62, %v3947_v18  ;;  %v3948_v6 = vsel %vm3899_vm11, 1.0, %v9687_v20  ;;  %v3754_v40 = vmul.f32 1.442695, %v3660_v21 }
 0x2ab   :  { %6005 = vpow2.f32 %v2743_v10  ;;  %v5984_v16 = vpop.eup %5983  ;;  %v2986_v36 = vmul.f32 %v5982_v0, %v2937_v61  ;;  %v3612_v11 = vand.u32 2147483647, %v9769_v29  ;;  %v2650_v13 = vsub.f32 0.0, %v2601_v1 }
 0x2ac   :  { %v9783_v9 = vpop.eup %5985  ;;  %4588 = vst [vmem:[%s9913_s3 + $0x5c8] sm:$0xff] %v3996_v30  ;;  %v3997_v3 = vmul.f32 %v5984_v16, %v3948_v6  ;;  %v2602_v57 = vand.u32 2147483647, %v9773_v58  ;;  %vm2889_vm12 = vcmp.ge.f32.partialorder %v9595_v12, 0.0  ;;  %6007 = vpow2.f32 %v3754_v40 }
 0x2ad   :  { %v9789_v14 = vpop.eup %5987  ;;  %4428 = vst [vmem:[%s9913_s3 + $0x448] sm:$0xff] %v2986_v36  ;;  %v2793_v53 = vadd.f32 1.0, %v9783_v9  ;;  %v3661_v20 = vsub.f32 0.0, %v3612_v11  ;;  %vm3900_vm0 = vcmp.ge.f32.partialorder %v9599_v45, 0.0  ;;  %v2745_v4 = vmul.f32 1.442695, %v2650_v13 }
 0x2ae   :  { %v9796_v59 = vpop.eup %5989  ;;  %4589 = vst [vmem:[%s9913_s3 + $0x5d0] sm:$0xff] %v3997_v3  ;;  %v3804_v17 = vadd.f32 1.0, %v9789_v14  ;;  %v2651_v44 = vsub.f32 0.0, %v2602_v57  ;;  %v2938_v34 = vsel %vm2889_vm12, 1.0, %v9722_v35  ;;  %vm2890_vm13 = vcmp.ge.f32.partialorder %v9604_v43, 0.0  ;;  %v9945_v45 = vld [vmem:[#allocation12_spill] sm:$0xff] }
 0x2af   :  { %6009 = vrcp.f32 %v2793_v53  ;;  %v2794_v12 = vadd.f32 1.0, %v9796_v59  ;;  %v3756_v26 = vmul.f32 1.442695, %v3661_v20  ;;  %v9810_v27 = vadd.f32 %v9371_v28, %v9273_v31 }
 0x2b0   :  { %v9806_v22 = vpop.eup %5991  ;;  %6011 = vrcp.f32 %v3804_v17  ;;  %v9814_v54 = vadd.f32 %v9371_v28, %v9945_v45  ;;  %v3949_v35 = vsel %vm3900_vm0, 1.0, %v9725_v55  ;;  %v2747_v49 = vmul.f32 1.442695, %v2651_v44 }
 0x2b1   :  { %6013 = vrcp.f32 %v2794_v12  ;;  %v3805_v47 = vadd.f32 1.0, %v9806_v22  ;;  %v3613_v38 = vand.u32 2147483647, %v9810_v27  ;;  %v9821_v31 = vadd.f32 %v9371_v28, %v9302_v50 }
 0x2b2   :  { %v5994_v2 = vpop.eup %5993  ;;  %6015 = vpow2.f32 %v2745_v4  ;;  %vm3901_vm1 = vcmp.ge.f32.partialorder %v9619_v24, 0.0  ;;  %v2603_v55 = vand.u32 2147483647, %v9814_v54  ;;  %v2939_v32 = vsel %vm2890_vm13, 1.0, %v9746_v51 }
 0x2b3   :  { %v5996_v37 = vpop.eup %5995  ;;  %v2987_v48 = vmul.f32 %v5994_v2, %v2938_v34  ;;  %6017 = vrcp.f32 %v3805_v47  ;;  %v3662_v28 = vsub.f32 0.0, %v3613_v38  ;;  %v3950_v24 = vsel %vm3901_vm1, 1.0, %v9749_v52 }
 0x2b4   :  { %v9823_v25 = vpop.eup %5997  ;;  %v3998_v63 = vmul.f32 %v5996_v37, %v3949_v35  ;;  %6019 = vpow2.f32 %v3756_v26  ;;  %v2652_v18 = vsub.f32 0.0, %v2603_v55  ;;  %v3614_v51 = vand.u32 2147483647, %v9821_v31 }
 0x2b5   :  { %v9827_v19 = vpop.eup %5999  ;;  %4429 = vst [vmem:[%s9913_s3 + $0x450] sm:$0xff] %v2987_v48  ;;  %v2795_v50 = vadd.f32 1.0, %v9823_v25  ;;  %6021 = vpow2.f32 %v2747_v49  ;;  %v3758_v43 = vmul.f32 1.442695, %v3662_v28  ;;  %vm2891_vm14 = vcmp.ge.f32.partialorder %v9656_v15, 0.0 }
 0x2b6   :  { %v6002_v7 = vpop.eup %6001  ;;  %4590 = vst [vmem:[%s9913_s3 + $0x5d8] sm:$0xff] %v3998_v63  ;;  %v3806_v8 = vadd.f32 1.0, %v9827_v19  ;;  %v2749_v0 = vmul.f32 1.442695, %v2652_v18  ;;  %v3663_v52 = vsub.f32 0.0, %v3614_v51  ;;  %v2940_v6 = vsel %vm2891_vm14, 1.0, %v9783_v9 }
 0x2b7   :  { %v6004_v10 = vpop.eup %6003  ;;  %v2988_v62 = vmul.f32 %v6002_v7, %v2939_v32  ;;  %6023 = vrcp.f32 %v2795_v50  ;;  %vm3902_vm15 = vcmp.ge.f32.partialorder %v9660_v46, 0.0  ;;  %vm2892_vm2 = vcmp.ge.f32.partialorder %v9666_v39, 0.0 }
 0x2b8   :  { %v6006_v21 = vpop.eup %6005  ;;  %v3999_v41 = vmul.f32 %v6004_v10, %v3950_v24  ;;  %6025 = vrcp.f32 %v3806_v8  ;;  %v3760_v1 = vmul.f32 1.442695, %v3663_v52  ;;  %v3951_v3 = vsel %vm3902_vm15, 1.0, %v9789_v14 }
 0x2b9   :  { %4430 = vst [vmem:[%s9913_s3 + $0x458] sm:$0xff] %v2988_v62  ;;  %v2796_v30 = vadd.f32 1.0, %v6006_v21  ;;  %6027 = vpow2.f32 %v3758_v43  ;;  %v6008_v61 = vpop.eup %6007  ;;  %v2941_v53 = vsel %vm2892_vm2, 1.0, %v9796_v59  ;;  %vm3903_vm3 = vcmp.ge.f32.partialorder %v9677_v33, 0.0 }
 0x2ba   :  { %4591 = vst [vmem:[%s9913_s3 + $0x5e0] sm:$0xff] %v3999_v41  ;;  %6029 = vpow2.f32 %v2749_v0  ;;  %v3807_v16 = vadd.f32 1.0, %v6008_v61  ;;  %v3952_v39 = vsel %vm3903_vm3, 1.0, %v9806_v22  ;;  %vm2893_vm4 = vcmp.ge.f32.partialorder %v9702_v42, 0.0 }
 0x2bb   :  { %6031 = vrcp.f32 %v2796_v30  ;;  %v2942_v44 = vsel %vm2893_vm4, 1.0, %v9823_v25  ;;  %vm3904_vm5 = vcmp.ge.f32.partialorder %v9706_v60, 0.0  ;;  %vm2894_vm6 = vcmp.ge.f32.partialorder %v9720_v56, 0.0 }
 0x2bc   :  { %v6010_v36 = vpop.eup %6009  ;;  %6033 = vpow2.f32 %v3760_v1  ;;  %v3953_v26 = vsel %vm3904_vm5, 1.0, %v9827_v19  ;;  %v2943_v60 = vsel %vm2894_vm6, 1.0, %v6006_v21  ;;  %vm3905_vm7 = vcmp.ge.f32.partialorder %v9743_v23, 0.0 }
 0x2bd   :  { %v6012_v40 = vpop.eup %6011  ;;  %v2989_v11 = vmul.f32 %v6010_v36, %v2940_v6  ;;  %6035 = vrcp.f32 %v3807_v16  ;;  %v3954_v56 = vsel %vm3905_vm7, 1.0, %v6008_v61  ;;  %vm2895_vm8 = vcmp.ge.f32.partialorder %v9765_v5, 0.0 }
 0x2be   :  { %v6014_v13 = vpop.eup %6013  ;;  %v4000_v57 = vmul.f32 %v6012_v40, %v3951_v3  ;;  %vm3906_vm9 = vcmp.ge.f32.partialorder %v9769_v29, 0.0  ;;  %vm2896_vm10 = vcmp.ge.f32.partialorder %v9773_v58, 0.0  ;;  %vm3907_vm11 = vcmp.ge.f32.partialorder %v9810_v27, 0.0 }
 0x2bf   :  { %v6016_v20 = vpop.eup %6015  ;;  %4431 = vst [vmem:[%s9913_s3 + $0x460] sm:$0xff] %v2989_v11  ;;  %v2990_v15 = vmul.f32 %v6014_v13, %v2941_v53  ;;  %vm2897_vm12 = vcmp.ge.f32.partialorder %v9814_v54, 0.0  ;;  %vm3908_vm0 = vcmp.ge.f32.partialorder %v9821_v31, 0.0 }
 0x2c0   :  { %v6018_v46 = vpop.eup %6017  ;;  %4592 = vst [vmem:[%s9913_s3 + $0x5e8] sm:$0xff] %v4000_v57  ;;  %v2797_v9 = vadd.f32 1.0, %v6016_v20  ;;  %v2944_v19 = vsel %vm2895_vm8, 1.0, %v6016_v20 }
 0x2c1   :  { %v6020_v14 = vpop.eup %6019  ;;  %4432 = vst [vmem:[%s9913_s3 + $0x468] sm:$0xff] %v2990_v15  ;;  %v4001_v59 = vmul.f32 %v6018_v46, %v3952_v39 }
 0x2c2   :  { %v6022_v17 = vpop.eup %6021  ;;  %6037 = vrcp.f32 %v2797_v9  ;;  %v3808_v4 = vadd.f32 1.0, %v6020_v14  ;;  %v3955_v50 = vsel %vm3906_vm9, 1.0, %v6020_v14 }
 0x2c3   :  { %4593 = vst [vmem:[%s9913_s3 + $0x5f0] sm:$0xff] %v4001_v59  ;;  %v2798_v34 = vadd.f32 1.0, %v6022_v17  ;;  %v2945_v24 = vsel %vm2896_vm10, 1.0, %v6022_v17 }
 0x2c4   :  { %v6024_v33 = vpop.eup %6023  ;;  %6039 = vrcp.f32 %v3808_v4 }
 0x2c5   :  { %v6026_v12 = vpop.eup %6025  ;;  %v2991_v22 = vmul.f32 %v6024_v33, %v2942_v44  ;;  %6041 = vrcp.f32 %v2798_v34 }
 0x2c6   :  { %v6028_v45 = vpop.eup %6027  ;;  %v4002_v2 = vmul.f32 %v6026_v12, %v3953_v26 }
 0x2c7   :  { %v6030_v42 = vpop.eup %6029  ;;  %4433 = vst [vmem:[%s9913_s3 + $0x470] sm:$0xff] %v2991_v22  ;;  %v3809_v35 = vadd.f32 1.0, %v6028_v45  ;;  %v3956_v29 = vsel %vm3907_vm11, 1.0, %v6028_v45 }
 0x2c8   :  { %v6032_v47 = vpop.eup %6031  ;;  %4594 = vst [vmem:[%s9913_s3 + $0x5f8] sm:$0xff] %v4002_v2  ;;  %v2799_v49 = vadd.f32 1.0, %v6030_v42  ;;  %v2946_v10 = vsel %vm2897_vm12, 1.0, %v6030_v42 }
 0x2c9   :  { %v2992_v37 = vmul.f32 %v6032_v47, %v2943_v60  ;;  %6043 = vrcp.f32 %v3809_v35  ;;  %v6034_v48 = vpop.eup %6033 }
 0x2ca   :  { %6045 = vrcp.f32 %v2799_v49  ;;  %v6036_v38 = vpop.eup %6035  ;;  %v3810_v25 = vadd.f32 1.0, %v6034_v48  ;;  %v3957_v27 = vsel %vm3908_vm0, 1.0, %v6034_v48 }
 0x2cb   :  { %4434 = vst [vmem:[%s9913_s3 + $0x478] sm:$0xff] %v2992_v37  ;;  %v4003_v63 = vmul.f32 %v6036_v38, %v3954_v56 }
 0x2cc   :  { %6047 = vrcp.f32 %v3810_v25 }
 0x2cd   :  { %4595 = vst [vmem:[%s9913_s3 + $0x600] sm:$0xff] %v4003_v63 }
 0x2cf   :  { %v6038_v55 = vpop.eup %6037 }
 0x2d0   :  { %v2993_v32 = vmul.f32 %v6038_v55, %v2944_v19 }
 0x2d1   :  { %v6040_v23 = vpop.eup %6039 }
 0x2d2   :  { %v6042_v28 = vpop.eup %6041  ;;  %4435 = vst [vmem:[%s9913_s3 + $0x480] sm:$0xff] %v2993_v32  ;;  %v4004_v7 = vmul.f32 %v6040_v23, %v3955_v50 }
 0x2d3   :  { %v2994_v8 = vmul.f32 %v6042_v28, %v2945_v24 }
 0x2d4   :  { %4596 = vst [vmem:[%s9913_s3 + $0x608] sm:$0xff] %v4004_v7 }
 0x2d5   :  { %4436 = vst [vmem:[%s9913_s3 + $0x488] sm:$0xff] %v2994_v8 }
 0x2d6   :  { %v6044_v5 = vpop.eup %6043 }
 0x2d7   :  { %v6046_v58 = vpop.eup %6045  ;;  %v4005_v18 = vmul.f32 %v6044_v5, %v3956_v29 }
 0x2d8   :  { %v2995_v62 = vmul.f32 %v6046_v58, %v2946_v10 }
 0x2d9   :  { %4597 = vst [vmem:[%s9913_s3 + $0x610] sm:$0xff] %v4005_v18  ;;  %v6048_v43 = vpop.eup %6047 }
 0x2da   :  { %4437 = vst [vmem:[%s9913_s3 + $0x490] sm:$0xff] %v2995_v62  ;;  %v4006_v51 = vmul.f32 %v6048_v43, %v3957_v27 }
 0x2dc   :  { %4598 = vst [vmem:[%s9913_s3 + $0x618] sm:$0xff] %v4006_v51 }

</bundles_post_ra>
